<compile_context>
chip_gen: v7x
topology: tpu7x:2x2x1
jax: 0.10.0
libtpu: 0.0.40
codegen_flags: <defaults>
</compile_context>

<pallas_src>
import functools
import math

import numpy as np
import jax
import jax.numpy as jnp
from jax import lax
from jax.experimental import pallas as pl
from jax.experimental.pallas import tpu as pltpu

# ----------------------- small-model configuration ------------------------
B = 2            # batch
C = 3            # image channels
IMG = 32         # image spatial size
PATCH = 16       # patch size -> 2x2 = 4 patches, vision seq = 5 (with CLS)
DV = 64          # vision transformer width
DT = 64          # text transformer width
PROJ = 32        # joint embedding dim
N_HEADS = 4      # attention heads (head dim 16)
N_LAYERS = 2     # transformer depth (both encoders)
N_CLS = 3        # number of class names
L = 8            # text context length
N_CTX = 4        # learned context tokens ("a photo of a")

GH = IMG // PATCH
GW = IMG // PATCH
N_PATCH = GH * GW          # 4 patches per image
S_V = N_PATCH + 1          # 5 vision tokens (CLS + patches)
M_V = B * S_V              # flattened vision tokens
M_T = N_CLS * L            # flattened text tokens
CPP = C * PATCH * PATCH    # flattened patch dim

MXU_DTYPE = jnp.bfloat16   # MXU operand dtype; accumulation is always f32

# lane-dense packed output slab (per grid step):
#   rows [0, B)                 cols [0, PROJ)  -> normalized image-branch features
#   rows [B, B+N_CLS)           cols [0, PROJ)  -> normalized text-branch features
#   rows [B+N_CLS, 2B+N_CLS)    cols [0, N_CLS) -> logits
OUT_ROWS = 8
OUT_LANES = 128
assert 2 * B + N_CLS <= OUT_ROWS and PROJ <= OUT_LANES and N_CLS <= OUT_LANES

_LAYER_NAMES = ('ln1_g', 'ln1_b', 'w_q', 'b_q', 'w_k', 'b_k', 'w_v', 'b_v',
                'w_out', 'b_out', 'ln2_g', 'ln2_b', 'w_fc', 'b_fc',
                'w_proj', 'b_proj')
_WEIGHT_NAMES = frozenset(('w_q', 'w_k', 'w_v', 'w_out', 'w_fc', 'w_proj'))
_VIS_EXTRA = ('patch_w', 'pos_cls', 'ln_pre_g', 'ln_pre_b',
              'ln_post_g', 'ln_post_b', 'proj')
_TXT_EXTRA = ('ln_final_g', 'ln_final_b', 'text_proj')
_N_VIS = len(_VIS_EXTRA) + len(_LAYER_NAMES)     # 23
_N_TXT = len(_LAYER_NAMES) + len(_TXT_EXTRA)     # 19


# --------------------------- in-kernel helpers -----------------------------

def _mm(x, w):
    """MXU matmul with bf16 operands and f32 accumulation."""
    return lax.dot_general(x.astype(MXU_DTYPE), w.astype(MXU_DTYPE),
                           (((1,), (0,)), ((), ())),
                           preferred_element_type=jnp.float32)


def _layernorm(x, g, b):
    mu = jnp.mean(x, axis=-1, keepdims=True)
    xc = x - mu
    var = jnp.mean(xc * xc, axis=-1, keepdims=True)
    return xc * lax.rsqrt(var + 1e-5) * g + b


def _l2_normalize(x):
    # matches x / x.norm(dim=-1, keepdim=True); reference has no epsilon either
    return x * lax.rsqrt(jnp.sum(x * x, axis=-1, keepdims=True))


def _attn_mlp_block(x, mask, lp, n_heads, scr):
    """Pre-LN CLIP transformer block on a flattened (M, D) activation.

    `mask` is an additive (M, M) block-diagonal (+causal for text) mask so that
    tokens only attend within their own sequence.  Per-head outputs are written
    into the VMEM scratch `scr` at their head offset so the output projection is
    one K=D MXU matmul (no per-head partial matmuls / adds).
    """
    m, d = x.shape
    dh = d // n_heads
    inv_sqrt_dh = 1.0 / math.sqrt(dh)

    h = _layernorm(x, lp['ln1_g'], lp['ln1_b'])
    # three lane-aligned projections instead of one fused (D, 3D) QKV
    q = _mm(h, lp['w_q']) + lp['b_q']
    k = _mm(h, lp['w_k']) + lp['b_k']
    v = _mm(h, lp['w_v']) + lp['b_v']

    for i in range(n_heads):
        lo, hi = i * dh, (i + 1) * dh
        s = lax.dot_general(q[:, lo:hi].astype(MXU_DTYPE),
                            k[:, lo:hi].astype(MXU_DTYPE),
                            (((1,), (1,)), ((), ())),
                            preferred_element_type=jnp.float32)
        s = s * inv_sqrt_dh + mask
        s = s - jnp.max(s, axis=-1, keepdims=True)
        p = jnp.exp(s)
        p = p * pl.reciprocal(jnp.sum(p, axis=-1, keepdims=True), approx=True)
        scr[0:m, lo:hi] = _mm(p, v[:, lo:hi])          # assemble heads in VMEM
    x = x + _mm(scr[0:m, :], lp['w_out']) + lp['b_out']  # single K=D out-proj

    h2 = _layernorm(x, lp['ln2_g'], lp['ln2_b'])
    hf = _mm(h2, lp['w_fc']) + lp['b_fc']
    hf = hf * jax.nn.sigmoid(1.702 * hf)                # QuickGELU (CLIP), f32
    return x + _mm(hf, lp['w_proj']) + lp['b_proj']


def _vision_tower(patches, mask, vx, vl, scr, asm, n_layers, n_heads):
    # patch rows at CLS slots are zero (patch embed has no bias), so one matmul
    # + one pre-combined (pos-emb + class-token) add builds the full sequence.
    x = _mm(patches, vx['patch_w'][0]) + vx['pos_cls'][0]
    x = _layernorm(x, vx['ln_pre_g'][0], vx['ln_pre_b'][0])
    for l in range(n_layers):
        lp = {k: vl[k][0, l] for k in _LAYER_NAMES}
        x = _attn_mlp_block(x, mask, lp, n_heads, scr)
    # gather the B CLS rows (static positions b*S_V) via sublane reads, no one-hot matmul
    scr[0:M_V, :] = x
    for b in range(B):
        asm[b:b + 1, :] = scr[b * S_V:b * S_V + 1, :]
    x0 = _layernorm(asm[0:B, :], vx['ln_post_g'][0], vx['ln_post_b'][0])
    return _mm(x0, vx['proj'][0])                        # (B, PROJ) f32


def _text_tower(xt, mask, tl, tx, eot_ref, scr, asm, n_layers, n_heads):
    x = xt
    for l in range(n_layers):
        lp = {k: tl[k][l] for k in _LAYER_NAMES}
        x = _attn_mlp_block(x, mask, lp, n_heads, scr)
    x = _layernorm(x, tx['ln_final_g'][...], tx['ln_final_b'][...])
    # EOT gather: dynamic sublane reads driven by SMEM row indices (exact f32)
    scr[...] = x
    for c in range(N_CLS):
        asm[c:c + 1, :] = scr[pl.ds(eot_ref[c], 1), :]
    return _mm(asm[0:N_CLS, :], tx['text_proj'][...])    # (N_CLS, PROJ) f32


# ----------------------------- fused Pallas kernel --------------------------

def _fused_clip_kernel(*args, n_layers, n_heads):
    n_fixed = 2 + 5
    (eot_ref, scale_ref,
     patches_ref, vmask_ref, xtext_ref, tmask_ref, fixed_ref) = args[:n_fixed]
    vis_args = args[n_fixed:n_fixed + _N_VIS]
    txt_args = args[n_fixed + _N_VIS:n_fixed + _N_VIS + _N_TXT]
    out_ref = args[n_fixed + _N_VIS + _N_TXT]
    scr = args[n_fixed + _N_VIS + _N_TXT + 1]     # (M_T, D) f32 scratch
    asm = args[n_fixed + _N_VIS + _N_TXT + 2]     # (8, D)  f32 row-assembly scratch

    vx = dict(zip(_VIS_EXTRA, vis_args[:len(_VIS_EXTRA)]))
    vl = dict(zip(_LAYER_NAMES, vis_args[len(_VIS_EXTRA):]))
    tl = dict(zip(_LAYER_NAMES, txt_args[:len(_LAYER_NAMES)]))
    tx = dict(zip(_TXT_EXTRA, txt_args[len(_LAYER_NAMES):]))

    e = pl.program_id(0)              # 0: student branch, 1: frozen teacher branch
    scale = scale_ref[0]

    # zero the padded slab so all lanes are defined, then fill the used regions
    out_ref[0] = jnp.zeros((OUT_ROWS, OUT_LANES), jnp.float32)

    # vision tower for this step's encoder (weights selected by the grid index)
    vis_feat = _vision_tower(patches_ref[...], vmask_ref[...], vx, vl, scr, asm,
                             n_layers, n_heads)
    vis_n = _l2_normalize(vis_feat)
    out_ref[0, 0:B, 0:PROJ] = vis_n

    @pl.when(e == 0)
    def _():
        txt_feat = _text_tower(xtext_ref[...], tmask_ref[...], tl, tx, eot_ref,
                               scr, asm, n_layers, n_heads)
        txt_n = _l2_normalize(txt_feat)
        logits = scale * lax.dot_general(vis_n, txt_n, (((1,), (1,)), ((), ())),
                                         preferred_element_type=jnp.float32)
        out_ref[0, B:B + N_CLS, 0:PROJ] = txt_n
        out_ref[0, B + N_CLS:B + N_CLS + B, 0:N_CLS] = logits

    @pl.when(e == 1)
    def _():
        # TODO(synk): PyTorch casts fixed_embeddings to float16 before the teacher
        # matmul; kept float32 here.
        fixed_n = _l2_normalize(fixed_ref[...])
        zs_logits = scale * lax.dot_general(vis_n, fixed_n, (((1,), (1,)), ((), ())),
                                            preferred_element_type=jnp.float32)
        out_ref[0, B:B + N_CLS, 0:PROJ] = fixed_n
        out_ref[0, B + N_CLS:B + N_CLS + B, 0:N_CLS] = zs_logits


# ------------------------------- call wrapper --------------------------------

_SMEM_SPEC = pl.BlockSpec(memory_space=pltpu.MemorySpace.SMEM)


def _full_spec(a):
    nd = a.ndim
    return pl.BlockSpec(a.shape, lambda e: (0,) * nd)


def _stacked_spec(a):
    nd = a.ndim
    return pl.BlockSpec((1,) + a.shape[1:], lambda e: (e,) + (0,) * (nd - 1))


def fused_clip_call(eot_rows, scale, patches_full, x_text, model):
    vp = model['vision2']
    tp = model['text']
    shared = [patches_full, model['vis_mask'], x_text, model['text_mask'],
              model['prompt']['fixed_embeddings']]
    vis_inputs = ([vp[k] for k in _VIS_EXTRA]
                  + [vp['layers'][k] for k in _LAYER_NAMES])
    txt_inputs = ([tp['layers'][k] for k in _LAYER_NAMES]
                  + [tp[k] for k in _TXT_EXTRA])
    inputs = [eot_rows, scale] + shared + vis_inputs + txt_inputs
    in_specs = ([_SMEM_SPEC, _SMEM_SPEC]
                + [_full_spec(a) for a in shared]
                + [_stacked_spec(a) for a in vis_inputs]
                + [_full_spec(a) for a in txt_inputs])

    kern = functools.partial(_fused_clip_kernel, n_layers=N_LAYERS, n_heads=N_HEADS)
    return pl.pallas_call(
        kern,
        grid=(2,),
        in_specs=in_specs,
        out_specs=pl.BlockSpec((1, OUT_ROWS, OUT_LANES), lambda e: (e, 0, 0)),
        out_shape=jax.ShapeDtypeStruct((2, OUT_ROWS, OUT_LANES), jnp.float32),
        scratch_shapes=[pltpu.VMEM((M_T, DT), jnp.float32),
                        pltpu.VMEM((8, DT), jnp.float32)],
        compiler_params=pltpu.CompilerParams(dimension_semantics=("parallel",)),
    )(*inputs)


# ------------------------------- forward glue --------------------------------

def custom_clip_forward(image, model):
    pp = model['prompt']
    tp = model['text']

    # ---- prompt construction (plain-JAX glue): cat([prefix, ctx, suffix]) + pos ----
    ctx = jnp.broadcast_to(pp['ctx'][None], (N_CLS,) + pp['ctx'].shape)
    prompts = jnp.concatenate([pp['token_prefix'], ctx, pp['token_suffix']], axis=1)
    x_text = (prompts + tp['pos_emb'][None]).reshape(M_T, DT)

    eot = jnp.argmax(model['tokenized_prompts'], axis=-1).astype(jnp.int32)
    eot_rows = jnp.arange(N_CLS, dtype=jnp.int32) * L + eot       # flat EOT row ids

    # ---- patch extraction; zero rows at CLS slots (patch embed is bias-free) ----
    patches = image.reshape(B, C, GH, PATCH, GW, PATCH)
    patches = patches.transpose(0, 2, 4, 1, 3, 5).reshape(B, N_PATCH, CPP)
    patches_full = jnp.concatenate(
        [jnp.zeros((B, 1, CPP), image.dtype), patches], axis=1).reshape(M_V, CPP)

    scale = jnp.exp(model['logit_scale']).reshape(1)

    slab = fused_clip_call(eot_rows, scale, patches_full, x_text, model)

    image_features = slab[0, 0:B, 0:PROJ]
    text_features = slab[0, B:B + N_CLS, 0:PROJ]
    logits = slab[0, B + N_CLS:B + N_CLS + B, 0:N_CLS]
    zero_shot_features = slab[1, 0:B, 0:PROJ]
    fixed_embeddings = slab[1, B:B + N_CLS, 0:PROJ]
    zero_shot_logits = slab[1, B + N_CLS:B + N_CLS + B, 0:N_CLS]

    return (logits, text_features, fixed_embeddings,
            zero_shot_features, image_features, zero_shot_logits)


# --------------------------- parameter init / packing -----------------------

def init_transformer_block(key, D, hidden):
    k = jax.random.split(key, 6)
    s = 0.02
    return dict(
        ln1_g=jnp.ones((D,), jnp.float32), ln1_b=jnp.zeros((D,), jnp.float32),
        w_q=s * jax.random.normal(k[0], (D, D), jnp.float32),
        b_q=jnp.zeros((D,), jnp.float32),
        w_k=s * jax.random.normal(k[1], (D, D), jnp.float32),
        b_k=jnp.zeros((D,), jnp.float32),
        w_v=s * jax.random.normal(k[2], (D, D), jnp.float32),
        b_v=jnp.zeros((D,), jnp.float32),
        w_out=s * jax.random.normal(k[3], (D, D), jnp.float32),
        b_out=jnp.zeros((D,), jnp.float32),
        ln2_g=jnp.ones((D,), jnp.float32), ln2_b=jnp.zeros((D,), jnp.float32),
        w_fc=s * jax.random.normal(k[4], (D, hidden), jnp.float32),
        b_fc=jnp.zeros((hidden,), jnp.float32),
        w_proj=s * jax.random.normal(k[5], (hidden, D), jnp.float32),
        b_proj=jnp.zeros((D,), jnp.float32),
    )


def init_vision_encoder(key, Ci, patch, D, n_layers, proj_dim, seq):
    keys = jax.random.split(key, n_layers + 4)
    s = 0.02
    return dict(
        patch_w=s * jax.random.normal(keys[0], (Ci * patch * patch, D), jnp.float32),
        class_emb=s * jax.random.normal(keys[1], (D,), jnp.float32),
        pos_emb=s * jax.random.normal(keys[2], (seq, D), jnp.float32),
        ln_pre_g=jnp.ones((D,), jnp.float32), ln_pre_b=jnp.zeros((D,), jnp.float32),
        blocks=[init_transformer_block(keys[3 + i], D, 4 * D) for i in range(n_layers)],
        ln_post_g=jnp.ones((D,), jnp.float32), ln_post_b=jnp.zeros((D,), jnp.float32),
        proj=s * jax.random.normal(keys[3 + n_layers], (D, proj_dim), jnp.float32),
    )


def init_text_encoder(key, D, Lx, n_layers, proj_dim):
    keys = jax.random.split(key, n_layers + 2)
    s = 0.02
    return dict(
        pos_emb=s * jax.random.normal(keys[0], (Lx, D), jnp.float32),
        blocks=[init_transformer_block(keys[1 + i], D, 4 * D) for i in range(n_layers)],
        ln_final_g=jnp.ones((D,), jnp.float32), ln_final_b=jnp.zeros((D,), jnp.float32),
        text_proj=s * jax.random.normal(keys[1 + n_layers], (D, proj_dim), jnp.float32),
    )


def init_prompt_learner(key, n_cls, n_ctx, Lx, D, proj_dim):
    k = jax.random.split(key, 4)
    s = 0.02
    return dict(
        ctx=s * jax.random.normal(k[0], (n_ctx, D), jnp.float32),
        token_prefix=s * jax.random.normal(k[1], (n_cls, 1, D), jnp.float32),
        token_suffix=s * jax.random.normal(k[2], (n_cls, Lx - 1 - n_ctx, D), jnp.float32),
        # synthetic stand-in for the frozen-CLIP teacher text features
        fixed_embeddings=s * jax.random.normal(k[3], (n_cls, proj_dim), jnp.float32),
    )


def _pack_layers(blocks):
    """Stack per-layer params into kernel-ready arrays (matmul weights in bf16)."""
    out = {}
    for name in _LAYER_NAMES:
        stacked = jnp.stack([blk[name] for blk in blocks])
        if name in _WEIGHT_NAMES:
            out[name] = stacked.astype(MXU_DTYPE)            # (NL, K, N)
        else:
            out[name] = stacked[:, None, :]                   # (NL, 1, X) f32
    return out


def _pack_text(t):
    return dict(
        pos_emb=t['pos_emb'],
        layers=_pack_layers(t['blocks']),
        ln_final_g=t['ln_final_g'][None, :],
        ln_final_b=t['ln_final_b'][None, :],
        text_proj=t['text_proj'].astype(MXU_DTYPE),
    )


def _pack_vision_pair(v_student, v_teacher):
    packed = [_pack_layers(v['blocks']) for v in (v_student, v_teacher)]
    layers = {k: jnp.stack([packed[0][k], packed[1][k]]) for k in packed[0]}  # (2, NL, ...)
    cls_mask = jnp.asarray((np.arange(M_V) % S_V == 0).astype(np.float32))[:, None]

    def st(fn, dtype=jnp.float32):
        return jnp.stack([fn(v_student), fn(v_teacher)]).astype(dtype)

    return dict(
        patch_w=st(lambda v: v['patch_w'], MXU_DTYPE),                        # (2, CPP, DV)
        # positional embedding tiled over the batch + class-token at CLS rows,
        # pre-combined at init so the kernel does a single add after patch embed
        pos_cls=st(lambda v: jnp.tile(v['pos_emb'], (B, 1))
                   + cls_mask * v['class_emb'][None, :]),                     # (2, M_V, DV)
        ln_pre_g=st(lambda v: v['ln_pre_g'][None, :]),
        ln_pre_b=st(lambda v: v['ln_pre_b'][None, :]),
        ln_post_g=st(lambda v: v['ln_post_g'][None, :]),
        ln_post_b=st(lambda v: v['ln_post_b'][None, :]),
        proj=st(lambda v: v['proj'], MXU_DTYPE),                              # (2, DV, PROJ)
        layers=layers,
    )


def _block_diag_mask(n_seq, seq_len, causal):
    """Additive block-diagonal (+causal) mask, built with numpy at init time."""
    m = n_seq * seq_len
    idx = np.arange(m)
    sid = idx // seq_len
    pos = idx % seq_len
    allowed = sid[:, None] == sid[None, :]
    if causal:
        allowed = allowed & (pos[None, :] <= pos[:, None])
    return jnp.asarray(np.where(allowed, 0.0, -1e9).astype(np.float32))


def init_custom_clip(key):
    kv, kzs, kt, kp = jax.random.split(key, 4)
    vision = init_vision_encoder(kv, C, PATCH, DV, N_LAYERS, PROJ, S_V)
    zs_vision = init_vision_encoder(kzs, C, PATCH, DV, N_LAYERS, PROJ, S_V)
    text = init_text_encoder(kt, DT, L, N_LAYERS, PROJ)
    prompt = init_prompt_learner(kp, N_CLS, N_CTX, L, DT, PROJ)
    eot_pos = np.array([5, 6, 7], dtype=np.int32)[:N_CLS]
    tokenized = np.zeros((N_CLS, L), np.int32)
    tokenized[np.arange(N_CLS), eot_pos] = 49407          # EOT id -> argmax position
    return dict(
        vision2=_pack_vision_pair(vision, zs_vision),
        text=_pack_text(text),
        prompt=prompt,
        logit_scale=jnp.array(math.log(1.0 / 0.07), jnp.float32),
        tokenized_prompts=jnp.asarray(tokenized),
        vis_mask=_block_diag_mask(B, S_V, causal=False),
        text_mask=_block_diag_mask(N_CLS, L, causal=True),
    )


# --------------------------------- main ------------------------------------

if __name__ == "__main__":
    root = jax.random.PRNGKey(0)
    k_img, k_params = jax.random.split(root)
    model = init_custom_clip(k_params)
    image = jax.random.normal(k_img, (B, C, IMG, IMG), dtype=jnp.float32)

    fwd = jax.jit(custom_clip_forward)
    outs = jax.block_until_ready(fwd(image, model))

    (logits, text_f, fixed_f, zs_f, img_f, zs_logits) = outs
    assert logits.shape == (B, N_CLS)
    assert text_f.shape == (N_CLS, PROJ)
    assert fixed_f.shape == (N_CLS, PROJ)
    assert zs_f.shape == (B, PROJ)
    assert img_f.shape == (B, PROJ)
    assert zs_logits.shape == (B, N_CLS)
    assert all(bool(jnp.all(jnp.isfinite(o))) for o in outs)

    print("KERNEL_OK")
</pallas_src>

<mosaic_0001>
module attributes {stable_mosaic.version = 11 : i64} {
  func.func @_fused_clip_kernel(%arg0: i32, %arg1: memref<3xi32, #tpu.memory_space<smem>>, %arg2: memref<1xf32, #tpu.memory_space<smem>>, %arg3: memref<10x768xf32, #tpu.memory_space<vmem>>, %arg4: memref<10x10xf32, #tpu.memory_space<vmem>>, %arg5: memref<24x64xf32, #tpu.memory_space<vmem>>, %arg6: memref<24x24xf32, #tpu.memory_space<vmem>>, %arg7: memref<3x32xf32, #tpu.memory_space<vmem>>, %arg8: memref<1x768x64xbf16, #tpu.memory_space<vmem>>, %arg9: memref<1x10x64xf32, #tpu.memory_space<vmem>>, %arg10: memref<1x1x64xf32, #tpu.memory_space<vmem>>, %arg11: memref<1x1x64xf32, #tpu.memory_space<vmem>>, %arg12: memref<1x1x64xf32, #tpu.memory_space<vmem>>, %arg13: memref<1x1x64xf32, #tpu.memory_space<vmem>>, %arg14: memref<1x64x32xbf16, #tpu.memory_space<vmem>>, %arg15: memref<1x2x1x64xf32, #tpu.memory_space<vmem>>, %arg16: memref<1x2x1x64xf32, #tpu.memory_space<vmem>>, %arg17: memref<1x2x64x64xbf16, #tpu.memory_space<vmem>>, %arg18: memref<1x2x1x64xf32, #tpu.memory_space<vmem>>, %arg19: memref<1x2x64x64xbf16, #tpu.memory_space<vmem>>, %arg20: memref<1x2x1x64xf32, #tpu.memory_space<vmem>>, %arg21: memref<1x2x64x64xbf16, #tpu.memory_space<vmem>>, %arg22: memref<1x2x1x64xf32, #tpu.memory_space<vmem>>, %arg23: memref<1x2x64x64xbf16, #tpu.memory_space<vmem>>, %arg24: memref<1x2x1x64xf32, #tpu.memory_space<vmem>>, %arg25: memref<1x2x1x64xf32, #tpu.memory_space<vmem>>, %arg26: memref<1x2x1x64xf32, #tpu.memory_space<vmem>>, %arg27: memref<1x2x64x256xbf16, #tpu.memory_space<vmem>>, %arg28: memref<1x2x1x256xf32, #tpu.memory_space<vmem>>, %arg29: memref<1x2x256x64xbf16, #tpu.memory_space<vmem>>, %arg30: memref<1x2x1x64xf32, #tpu.memory_space<vmem>>, %arg31: memref<2x1x64xf32, #tpu.memory_space<vmem>>, %arg32: memref<2x1x64xf32, #tpu.memory_space<vmem>>, %arg33: memref<2x64x64xbf16, #tpu.memory_space<vmem>>, %arg34: memref<2x1x64xf32, #tpu.memory_space<vmem>>, %arg35: memref<2x64x64xbf16, #tpu.memory_space<vmem>>, %arg36: memref<2x1x64xf32, #tpu.memory_space<vmem>>, %arg37: memref<2x64x64xbf16, #tpu.memory_space<vmem>>, %arg38: memref<2x1x64xf32, #tpu.memory_space<vmem>>, %arg39: memref<2x64x64xbf16, #tpu.memory_space<vmem>>, %arg40: memref<2x1x64xf32, #tpu.memory_space<vmem>>, %arg41: memref<2x1x64xf32, #tpu.memory_space<vmem>>, %arg42: memref<2x1x64xf32, #tpu.memory_space<vmem>>, %arg43: memref<2x64x256xbf16, #tpu.memory_space<vmem>>, %arg44: memref<2x1x256xf32, #tpu.memory_space<vmem>>, %arg45: memref<2x256x64xbf16, #tpu.memory_space<vmem>>, %arg46: memref<2x1x64xf32, #tpu.memory_space<vmem>>, %arg47: memref<1x64xf32, #tpu.memory_space<vmem>>, %arg48: memref<1x64xf32, #tpu.memory_space<vmem>>, %arg49: memref<64x32xbf16, #tpu.memory_space<vmem>>, %arg50: memref<1x8x128xf32, #tpu.memory_space<vmem>>, %arg51: memref<24x64xf32, #tpu.memory_space<vmem>>, %arg52: memref<8x64xf32, #tpu.memory_space<vmem>>) attributes {dimension_semantics = [#tpu.dimension_semantics<parallel>], iteration_bounds = array<i64: 2>, scalar_prefetch = 0 : i64, scratch_operands = 2 : i64, tpu.core_type = #tpu.core_type<tc>, window_params = [{transform_indices = @transform_0, window_bounds = array<i64: 3>}, {transform_indices = @transform_1, window_bounds = array<i64: 1>}, {pipeline_mode = #tpu.pipeline_mode<synchronous>, transform_indices = @transform_2, window_bounds = array<i64: 10, 768>}, {pipeline_mode = #tpu.pipeline_mode<synchronous>, transform_indices = @transform_3, window_bounds = array<i64: 10, 10>}, {pipeline_mode = #tpu.pipeline_mode<synchronous>, transform_indices = @transform_4, window_bounds = array<i64: 24, 64>}, {pipeline_mode = #tpu.pipeline_mode<synchronous>, transform_indices = @transform_5, window_bounds = array<i64: 24, 24>}, {pipeline_mode = #tpu.pipeline_mode<synchronous>, transform_indices = @transform_6, window_bounds = array<i64: 3, 32>}, {transform_indices = @transform_7, window_bounds = array<i64: 1, 768, 64>}, {transform_indices = @transform_8, window_bounds = array<i64: 1, 10, 64>}, {transform_indices = @transform_9, window_bounds = array<i64: 1, 1, 64>}, {transform_indices = @transform_10, window_bounds = array<i64: 1, 1, 64>}, {transform_indices = @transform_11, window_bounds = array<i64: 1, 1, 64>}, {transform_indices = @transform_12, window_bounds = array<i64: 1, 1, 64>}, {transform_indices = @transform_13, window_bounds = array<i64: 1, 64, 32>}, {transform_indices = @transform_14, window_bounds = array<i64: 1, 2, 1, 64>}, {transform_indices = @transform_15, window_bounds = array<i64: 1, 2, 1, 64>}, {transform_indices = @transform_16, window_bounds = array<i64: 1, 2, 64, 64>}, {transform_indices = @transform_17, window_bounds = array<i64: 1, 2, 1, 64>}, {transform_indices = @transform_18, window_bounds = array<i64: 1, 2, 64, 64>}, {transform_indices = @transform_19, window_bounds = array<i64: 1, 2, 1, 64>}, {transform_indices = @transform_20, window_bounds = array<i64: 1, 2, 64, 64>}, {transform_indices = @transform_21, window_bounds = array<i64: 1, 2, 1, 64>}, {transform_indices = @transform_22, window_bounds = array<i64: 1, 2, 64, 64>}, {transform_indices = @transform_23, window_bounds = array<i64: 1, 2, 1, 64>}, {transform_indices = @transform_24, window_bounds = array<i64: 1, 2, 1, 64>}, {transform_indices = @transform_25, window_bounds = array<i64: 1, 2, 1, 64>}, {transform_indices = @transform_26, window_bounds = array<i64: 1, 2, 64, 256>}, {transform_indices = @transform_27, window_bounds = array<i64: 1, 2, 1, 256>}, {transform_indices = @transform_28, window_bounds = array<i64: 1, 2, 256, 64>}, {transform_indices = @transform_29, window_bounds = array<i64: 1, 2, 1, 64>}, {pipeline_mode = #tpu.pipeline_mode<synchronous>, transform_indices = @transform_30, window_bounds = array<i64: 2, 1, 64>}, {pipeline_mode = #tpu.pipeline_mode<synchronous>, transform_indices = @transform_31, window_bounds = array<i64: 2, 1, 64>}, {pipeline_mode = #tpu.pipeline_mode<synchronous>, transform_indices = @transform_32, window_bounds = array<i64: 2, 64, 64>}, {pipeline_mode = #tpu.pipeline_mode<synchronous>, transform_indices = @transform_33, window_bounds = array<i64: 2, 1, 64>}, {pipeline_mode = #tpu.pipeline_mode<synchronous>, transform_indices = @transform_34, window_bounds = array<i64: 2, 64, 64>}, {pipeline_mode = #tpu.pipeline_mode<synchronous>, transform_indices = @transform_35, window_bounds = array<i64: 2, 1, 64>}, {pipeline_mode = #tpu.pipeline_mode<synchronous>, transform_indices = @transform_36, window_bounds = array<i64: 2, 64, 64>}, {pipeline_mode = #tpu.pipeline_mode<synchronous>, transform_indices = @transform_37, window_bounds = array<i64: 2, 1, 64>}, {pipeline_mode = #tpu.pipeline_mode<synchronous>, transform_indices = @transform_38, window_bounds = array<i64: 2, 64, 64>}, {pipeline_mode = #tpu.pipeline_mode<synchronous>, transform_indices = @transform_39, window_bounds = array<i64: 2, 1, 64>}, {pipeline_mode = #tpu.pipeline_mode<synchronous>, transform_indices = @transform_40, window_bounds = array<i64: 2, 1, 64>}, {pipeline_mode = #tpu.pipeline_mode<synchronous>, transform_indices = @transform_41, window_bounds = array<i64: 2, 1, 64>}, {pipeline_mode = #tpu.pipeline_mode<synchronous>, transform_indices = @transform_42, window_bounds = array<i64: 2, 64, 256>}, {pipeline_mode = #tpu.pipeline_mode<synchronous>, transform_indices = @transform_43, window_bounds = array<i64: 2, 1, 256>}, {pipeline_mode = #tpu.pipeline_mode<synchronous>, transform_indices = @transform_44, window_bounds = array<i64: 2, 256, 64>}, {pipeline_mode = #tpu.pipeline_mode<synchronous>, transform_indices = @transform_45, window_bounds = array<i64: 2, 1, 64>}, {pipeline_mode = #tpu.pipeline_mode<synchronous>, transform_indices = @transform_46, window_bounds = array<i64: 1, 64>}, {pipeline_mode = #tpu.pipeline_mode<synchronous>, transform_indices = @transform_47, window_bounds = array<i64: 1, 64>}, {pipeline_mode = #tpu.pipeline_mode<synchronous>, transform_indices = @transform_48, window_bounds = array<i64: 64, 32>}, {transform_indices = @transform_49, window_bounds = array<i64: 1, 8, 128>}]} {
    %c0 = arith.constant 0 : index
    %0 = memref.load %arg2[%c0] : memref<1xf32, #tpu.memory_space<smem>>
    %cst = arith.constant 0.000000e+00 : f32
    %1 = vector.broadcast %cst : f32 to vector<8x128xf32>
    %c0_0 = arith.constant 0 : index
    %c0_1 = arith.constant 0 : index
    %c0_2 = arith.constant 0 : index
    %2 = vector.load %arg50[%c0_0, %c0_1, %c0_2] : memref<1x8x128xf32, #tpu.memory_space<vmem>>, vector<1x8x128xf32>
    %3 = vector.shape_cast %2 : vector<1x8x128xf32> to vector<8x128xf32>
    %4 = vector.shape_cast %1 : vector<8x128xf32> to vector<1x8x128xf32>
    tpu.vector_store %arg50[%c0_0, %c0_1, %c0_2], %4 {strides = array<i32>} : memref<1x8x128xf32, #tpu.memory_space<vmem>>, vector<1x8x128xf32>,
    %c0_3 = arith.constant 0 : index
    %c0_4 = arith.constant 0 : index
    %5 = vector.load %arg3[%c0_3, %c0_4] : memref<10x768xf32, #tpu.memory_space<vmem>>, vector<10x768xf32>
    %c0_5 = arith.constant 0 : index
    %c0_6 = arith.constant 0 : index
    %6 = vector.load %arg4[%c0_5, %c0_6] : memref<10x10xf32, #tpu.memory_space<vmem>>, vector<10x10xf32>
    %c0_7 = arith.constant 0 : index
    %c0_8 = arith.constant 0 : index
    %c0_9 = arith.constant 0 : index
    %7 = vector.load %arg8[%c0_7, %c0_8, %c0_9] : memref<1x768x64xbf16, #tpu.memory_space<vmem>>, vector<1x768x64xbf16>
    %8 = vector.shape_cast %7 : vector<1x768x64xbf16> to vector<768x64xbf16>
    %9 = arith.truncf %5 : vector<10x768xf32> to vector<10x768xbf16>
    %cst_10 = arith.constant dense<0.000000e+00> : vector<10x64xf32>
    %10 = tpu.matmul %9, %8, %cst_10 {dimension_numbers = #tpu.dot_dimension_numbers<[1], [0], [0], [1], [0, 0, 1, 1], [], []>} : vector<10x768xbf16>, vector<768x64xbf16>, vector<10x64xf32> -> vector<10x64xf32>
    %c0_11 = arith.constant 0 : index
    %c0_12 = arith.constant 0 : index
    %c0_13 = arith.constant 0 : index
    %11 = vector.load %arg9[%c0_11, %c0_12, %c0_13] : memref<1x10x64xf32, #tpu.memory_space<vmem>>, vector<1x10x64xf32>
    %12 = vector.shape_cast %11 : vector<1x10x64xf32> to vector<10x64xf32>
    %13 = arith.addf %10, %12 : vector<10x64xf32>
    %c0_14 = arith.constant 0 : index
    %c0_15 = arith.constant 0 : index
    %c0_16 = arith.constant 0 : index
    %14 = vector.load %arg10[%c0_14, %c0_15, %c0_16] : memref<1x1x64xf32, #tpu.memory_space<vmem>>, vector<1x1x64xf32>
    %15 = vector.shape_cast %14 : vector<1x1x64xf32> to vector<1x64xf32>
    %c0_17 = arith.constant 0 : index
    %c0_18 = arith.constant 0 : index
    %c0_19 = arith.constant 0 : index
    %16 = vector.load %arg11[%c0_17, %c0_18, %c0_19] : memref<1x1x64xf32, #tpu.memory_space<vmem>>, vector<1x1x64xf32>
    %17 = vector.shape_cast %16 : vector<1x1x64xf32> to vector<1x64xf32>
    %cst_20 = arith.constant dense<0.000000e+00> : vector<10xf32>
    %18 = vector.multi_reduction <add>, %13, %cst_20 [1] : vector<10x64xf32> to vector<10xf32>
    %19 = vector.shape_cast %18 : vector<10xf32> to vector<10x1xf32>
    %cst_21 = arith.constant 6.400000e+01 : f32
    %20 = vector.broadcast %cst_21 : f32 to vector<10x1xf32>
    %21 = arith.divf %19, %20 : vector<10x1xf32>
    %22 = vector.broadcast %21 : vector<10x1xf32> to vector<10x64xf32>
    %23 = arith.subf %13, %22 : vector<10x64xf32>
    %24 = arith.mulf %23, %23 : vector<10x64xf32>
    %cst_22 = arith.constant dense<0.000000e+00> : vector<10xf32>
    %25 = vector.multi_reduction <add>, %24, %cst_22 [1] : vector<10x64xf32> to vector<10xf32>
    %26 = vector.shape_cast %25 : vector<10xf32> to vector<10x1xf32>
    %cst_23 = arith.constant 6.400000e+01 : f32
    %27 = vector.broadcast %cst_23 : f32 to vector<10x1xf32>
    %28 = arith.divf %26, %27 : vector<10x1xf32>
    %cst_24 = arith.constant 9.99999974E-6 : f32
    %29 = vector.broadcast %cst_24 : f32 to vector<10x1xf32>
    %30 = arith.addf %28, %29 : vector<10x1xf32>
    %31 = math.rsqrt %30 : vector<10x1xf32>
    %32 = vector.broadcast %31 : vector<10x1xf32> to vector<10x64xf32>
    %33 = arith.mulf %23, %32 : vector<10x64xf32>
    %34 = vector.broadcast %15 : vector<1x64xf32> to vector<10x64xf32>
    %35 = arith.mulf %33, %34 : vector<10x64xf32>
    %36 = vector.broadcast %17 : vector<1x64xf32> to vector<10x64xf32>
    %37 = arith.addf %35, %36 : vector<10x64xf32>
    %c0_25 = arith.constant 0 : index
    %c0_26 = arith.constant 0 : index
    %c0_27 = arith.constant 0 : index
    %c0_28 = arith.constant 0 : index
    %38 = vector.load %arg15[%c0_25, %c0_26, %c0_27, %c0_28] : memref<1x2x1x64xf32, #tpu.memory_space<vmem>>, vector<1x1x1x64xf32>
    %39 = vector.shape_cast %38 : vector<1x1x1x64xf32> to vector<1x64xf32>
    %c0_29 = arith.constant 0 : index
    %c0_30 = arith.constant 0 : index
    %c0_31 = arith.constant 0 : index
    %c0_32 = arith.constant 0 : index
    %40 = vector.load %arg16[%c0_29, %c0_30, %c0_31, %c0_32] : memref<1x2x1x64xf32, #tpu.memory_space<vmem>>, vector<1x1x1x64xf32>
    %41 = vector.shape_cast %40 : vector<1x1x1x64xf32> to vector<1x64xf32>
    %c0_33 = arith.constant 0 : index
    %c0_34 = arith.constant 0 : index
    %c0_35 = arith.constant 0 : index
    %c0_36 = arith.constant 0 : index
    %42 = vector.load %arg17[%c0_33, %c0_34, %c0_35, %c0_36] : memref<1x2x64x64xbf16, #tpu.memory_space<vmem>>, vector<1x1x64x64xbf16>
    %43 = vector.shape_cast %42 : vector<1x1x64x64xbf16> to vector<64x64xbf16>
    %c0_37 = arith.constant 0 : index
    %c0_38 = arith.constant 0 : index
    %c0_39 = arith.constant 0 : index
    %c0_40 = arith.constant 0 : index
    %44 = vector.load %arg18[%c0_37, %c0_38, %c0_39, %c0_40] : memref<1x2x1x64xf32, #tpu.memory_space<vmem>>, vector<1x1x1x64xf32>
    %45 = vector.shape_cast %44 : vector<1x1x1x64xf32> to vector<1x64xf32>
    %c0_41 = arith.constant 0 : index
    %c0_42 = arith.constant 0 : index
    %c0_43 = arith.constant 0 : index
    %c0_44 = arith.constant 0 : index
    %46 = vector.load %arg19[%c0_41, %c0_42, %c0_43, %c0_44] : memref<1x2x64x64xbf16, #tpu.memory_space<vmem>>, vector<1x1x64x64xbf16>
    %47 = vector.shape_cast %46 : vector<1x1x64x64xbf16> to vector<64x64xbf16>
    %c0_45 = arith.constant 0 : index
    %c0_46 = arith.constant 0 : index
    %c0_47 = arith.constant 0 : index
    %c0_48 = arith.constant 0 : index
    %48 = vector.load %arg20[%c0_45, %c0_46, %c0_47, %c0_48] : memref<1x2x1x64xf32, #tpu.memory_space<vmem>>, vector<1x1x1x64xf32>
    %49 = vector.shape_cast %48 : vector<1x1x1x64xf32> to vector<1x64xf32>
    %c0_49 = arith.constant 0 : index
    %c0_50 = arith.constant 0 : index
    %c0_51 = arith.constant 0 : index
    %c0_52 = arith.constant 0 : index
    %50 = vector.load %arg21[%c0_49, %c0_50, %c0_51, %c0_52] : memref<1x2x64x64xbf16, #tpu.memory_space<vmem>>, vector<1x1x64x64xbf16>
    %51 = vector.shape_cast %50 : vector<1x1x64x64xbf16> to vector<64x64xbf16>
    %c0_53 = arith.constant 0 : index
    %c0_54 = arith.constant 0 : index
    %c0_55 = arith.constant 0 : index
    %c0_56 = arith.constant 0 : index
    %52 = vector.load %arg22[%c0_53, %c0_54, %c0_55, %c0_56] : memref<1x2x1x64xf32, #tpu.memory_space<vmem>>, vector<1x1x1x64xf32>
    %53 = vector.shape_cast %52 : vector<1x1x1x64xf32> to vector<1x64xf32>
    %c0_57 = arith.constant 0 : index
    %c0_58 = arith.constant 0 : index
    %c0_59 = arith.constant 0 : index
    %c0_60 = arith.constant 0 : index
    %54 = vector.load %arg23[%c0_57, %c0_58, %c0_59, %c0_60] : memref<1x2x64x64xbf16, #tpu.memory_space<vmem>>, vector<1x1x64x64xbf16>
    %55 = vector.shape_cast %54 : vector<1x1x64x64xbf16> to vector<64x64xbf16>
    %c0_61 = arith.constant 0 : index
    %c0_62 = arith.constant 0 : index
    %c0_63 = arith.constant 0 : index
    %c0_64 = arith.constant 0 : index
    %56 = vector.load %arg24[%c0_61, %c0_62, %c0_63, %c0_64] : memref<1x2x1x64xf32, #tpu.memory_space<vmem>>, vector<1x1x1x64xf32>
    %57 = vector.shape_cast %56 : vector<1x1x1x64xf32> to vector<1x64xf32>
    %c0_65 = arith.constant 0 : index
    %c0_66 = arith.constant 0 : index
    %c0_67 = arith.constant 0 : index
    %c0_68 = arith.constant 0 : index
    %58 = vector.load %arg25[%c0_65, %c0_66, %c0_67, %c0_68] : memref<1x2x1x64xf32, #tpu.memory_space<vmem>>, vector<1x1x1x64xf32>
    %59 = vector.shape_cast %58 : vector<1x1x1x64xf32> to vector<1x64xf32>
    %c0_69 = arith.constant 0 : index
    %c0_70 = arith.constant 0 : index
    %c0_71 = arith.constant 0 : index
    %c0_72 = arith.constant 0 : index
    %60 = vector.load %arg26[%c0_69, %c0_70, %c0_71, %c0_72] : memref<1x2x1x64xf32, #tpu.memory_space<vmem>>, vector<1x1x1x64xf32>
    %61 = vector.shape_cast %60 : vector<1x1x1x64xf32> to vector<1x64xf32>
    %c0_73 = arith.constant 0 : index
    %c0_74 = arith.constant 0 : index
    %c0_75 = arith.constant 0 : index
    %c0_76 = arith.constant 0 : index
    %62 = vector.load %arg27[%c0_73, %c0_74, %c0_75, %c0_76] : memref<1x2x64x256xbf16, #tpu.memory_space<vmem>>, vector<1x1x64x256xbf16>
    %63 = vector.shape_cast %62 : vector<1x1x64x256xbf16> to vector<64x256xbf16>
    %c0_77 = arith.constant 0 : index
    %c0_78 = arith.constant 0 : index
    %c0_79 = arith.constant 0 : index
    %c0_80 = arith.constant 0 : index
    %64 = vector.load %arg28[%c0_77, %c0_78, %c0_79, %c0_80] : memref<1x2x1x256xf32, #tpu.memory_space<vmem>>, vector<1x1x1x256xf32>
    %65 = vector.shape_cast %64 : vector<1x1x1x256xf32> to vector<1x256xf32>
    %c0_81 = arith.constant 0 : index
    %c0_82 = arith.constant 0 : index
    %c0_83 = arith.constant 0 : index
    %c0_84 = arith.constant 0 : index
    %66 = vector.load %arg29[%c0_81, %c0_82, %c0_83, %c0_84] : memref<1x2x256x64xbf16, #tpu.memory_space<vmem>>, vector<1x1x256x64xbf16>
    %67 = vector.shape_cast %66 : vector<1x1x256x64xbf16> to vector<256x64xbf16>
    %c0_85 = arith.constant 0 : index
    %c0_86 = arith.constant 0 : index
    %c0_87 = arith.constant 0 : index
    %c0_88 = arith.constant 0 : index
    %68 = vector.load %arg30[%c0_85, %c0_86, %c0_87, %c0_88] : memref<1x2x1x64xf32, #tpu.memory_space<vmem>>, vector<1x1x1x64xf32>
    %69 = vector.shape_cast %68 : vector<1x1x1x64xf32> to vector<1x64xf32>
    %cst_89 = arith.constant dense<0.000000e+00> : vector<10xf32>
    %70 = vector.multi_reduction <add>, %37, %cst_89 [1] : vector<10x64xf32> to vector<10xf32>
    %71 = vector.shape_cast %70 : vector<10xf32> to vector<10x1xf32>
    %cst_90 = arith.constant 6.400000e+01 : f32
    %72 = vector.broadcast %cst_90 : f32 to vector<10x1xf32>
    %73 = arith.divf %71, %72 : vector<10x1xf32>
    %74 = vector.broadcast %73 : vector<10x1xf32> to vector<10x64xf32>
    %75 = arith.subf %37, %74 : vector<10x64xf32>
    %76 = arith.mulf %75, %75 : vector<10x64xf32>
    %cst_91 = arith.constant dense<0.000000e+00> : vector<10xf32>
    %77 = vector.multi_reduction <add>, %76, %cst_91 [1] : vector<10x64xf32> to vector<10xf32>
    %78 = vector.shape_cast %77 : vector<10xf32> to vector<10x1xf32>
    %cst_92 = arith.constant 6.400000e+01 : f32
    %79 = vector.broadcast %cst_92 : f32 to vector<10x1xf32>
    %80 = arith.divf %78, %79 : vector<10x1xf32>
    %cst_93 = arith.constant 9.99999974E-6 : f32
    %81 = vector.broadcast %cst_93 : f32 to vector<10x1xf32>
    %82 = arith.addf %80, %81 : vector<10x1xf32>
    %83 = math.rsqrt %82 : vector<10x1xf32>
    %84 = vector.broadcast %83 : vector<10x1xf32> to vector<10x64xf32>
    %85 = arith.mulf %75, %84 : vector<10x64xf32>
    %86 = vector.broadcast %39 : vector<1x64xf32> to vector<10x64xf32>
    %87 = arith.mulf %85, %86 : vector<10x64xf32>
    %88 = vector.broadcast %41 : vector<1x64xf32> to vector<10x64xf32>
    %89 = arith.addf %87, %88 : vector<10x64xf32>
    %90 = arith.truncf %89 : vector<10x64xf32> to vector<10x64xbf16>
    %cst_94 = arith.constant dense<0.000000e+00> : vector<10x64xf32>
    %91 = tpu.matmul %90, %43, %cst_94 {dimension_numbers = #tpu.dot_dimension_numbers<[1], [0], [0], [1], [0, 0, 1, 1], [], []>} : vector<10x64xbf16>, vector<64x64xbf16>, vector<10x64xf32> -> vector<10x64xf32>
    %92 = vector.broadcast %45 : vector<1x64xf32> to vector<10x64xf32>
    %93 = arith.addf %91, %92 : vector<10x64xf32>
    %94 = arith.truncf %89 : vector<10x64xf32> to vector<10x64xbf16>
    %cst_95 = arith.constant dense<0.000000e+00> : vector<10x64xf32>
    %95 = tpu.matmul %94, %47, %cst_95 {dimension_numbers = #tpu.dot_dimension_numbers<[1], [0], [0], [1], [0, 0, 1, 1], [], []>} : vector<10x64xbf16>, vector<64x64xbf16>, vector<10x64xf32> -> vector<10x64xf32>
    %96 = vector.broadcast %49 : vector<1x64xf32> to vector<10x64xf32>
    %97 = arith.addf %95, %96 : vector<10x64xf32>
    %98 = arith.truncf %89 : vector<10x64xf32> to vector<10x64xbf16>
    %cst_96 = arith.constant dense<0.000000e+00> : vector<10x64xf32>
    %99 = tpu.matmul %98, %51, %cst_96 {dimension_numbers = #tpu.dot_dimension_numbers<[1], [0], [0], [1], [0, 0, 1, 1], [], []>} : vector<10x64xbf16>, vector<64x64xbf16>, vector<10x64xf32> -> vector<10x64xf32>
    %100 = vector.broadcast %53 : vector<1x64xf32> to vector<10x64xf32>
    %101 = arith.addf %99, %100 : vector<10x64xf32>
    %102 = vector.extract_strided_slice %93 {offsets = [0, 0], sizes = [10, 16], strides = [1, 1]} : vector<10x64xf32> to vector<10x16xf32>
    %103 = arith.truncf %102 : vector<10x16xf32> to vector<10x16xbf16>
    %104 = vector.extract_strided_slice %97 {offsets = [0, 0], sizes = [10, 16], strides = [1, 1]} : vector<10x64xf32> to vector<10x16xf32>
    %105 = arith.truncf %104 : vector<10x16xf32> to vector<10x16xbf16>
    %cst_97 = arith.constant dense<0.000000e+00> : vector<10x10xf32>
    %106 = tpu.matmul %103, %105, %cst_97 {dimension_numbers = #tpu.dot_dimension_numbers<[1], [1], [0], [0], [0, 0, 1, 0], [], []>} : vector<10x16xbf16>, vector<10x16xbf16>, vector<10x10xf32> -> vector<10x10xf32>
    %cst_98 = arith.constant 2.500000e-01 : f32
    %107 = vector.broadcast %cst_98 : f32 to vector<10x10xf32>
    %108 = arith.mulf %106, %107 : vector<10x10xf32>
    %109 = arith.addf %108, %6 : vector<10x10xf32>
    %cst_99 = arith.constant dense<0xFF800000> : vector<10xf32>
    %110 = vector.multi_reduction <maximumf>, %109, %cst_99 [1] : vector<10x10xf32> to vector<10xf32>
    %111 = vector.shape_cast %110 : vector<10xf32> to vector<10x1xf32>
    %112 = vector.broadcast %111 : vector<10x1xf32> to vector<10x10xf32>
    %113 = arith.subf %109, %112 : vector<10x10xf32>
    %114 = math.exp %113 : vector<10x10xf32>
    %cst_100 = arith.constant dense<0.000000e+00> : vector<10xf32>
    %115 = vector.multi_reduction <add>, %114, %cst_100 [1] : vector<10x10xf32> to vector<10xf32>
    %116 = vector.shape_cast %115 : vector<10xf32> to vector<10x1xf32>
    %117 = tpu.reciprocal %116 {approx = true} : vector<10x1xf32> -> vector<10x1xf32>
    %118 = vector.broadcast %117 : vector<10x1xf32> to vector<10x10xf32>
    %119 = arith.mulf %114, %118 : vector<10x10xf32>
    %120 = vector.extract_strided_slice %101 {offsets = [0, 0], sizes = [10, 16], strides = [1, 1]} : vector<10x64xf32> to vector<10x16xf32>
    %121 = arith.truncf %119 : vector<10x10xf32> to vector<10x10xbf16>
    %122 = arith.truncf %120 : vector<10x16xf32> to vector<10x16xbf16>
    %cst_101 = arith.constant dense<0.000000e+00> : vector<10x16xf32>
    %123 = tpu.matmul %121, %122, %cst_101 {dimension_numbers = #tpu.dot_dimension_numbers<[1], [0], [0], [1], [0, 0, 1, 1], [], []>} : vector<10x10xbf16>, vector<10x16xbf16>, vector<10x16xf32> -> vector<10x16xf32>
    %c0_102 = arith.constant 0 : index
    %c0_103 = arith.constant 0 : index
    %124 = vector.load %arg51[%c0_102, %c0_103] : memref<24x64xf32, #tpu.memory_space<vmem>>, vector<10x16xf32>
    tpu.vector_store %arg51[%c0_102, %c0_103], %123 {strides = array<i32>} : memref<24x64xf32, #tpu.memory_space<vmem>>, vector<10x16xf32>,
    %125 = vector.extract_strided_slice %93 {offsets = [0, 16], sizes = [10, 16], strides = [1, 1]} : vector<10x64xf32> to vector<10x16xf32>
    %126 = arith.truncf %125 : vector<10x16xf32> to vector<10x16xbf16>
    %127 = vector.extract_strided_slice %97 {offsets = [0, 16], sizes = [10, 16], strides = [1, 1]} : vector<10x64xf32> to vector<10x16xf32>
    %128 = arith.truncf %127 : vector<10x16xf32> to vector<10x16xbf16>
    %cst_104 = arith.constant dense<0.000000e+00> : vector<10x10xf32>
    %129 = tpu.matmul %126, %128, %cst_104 {dimension_numbers = #tpu.dot_dimension_numbers<[1], [1], [0], [0], [0, 0, 1, 0], [], []>} : vector<10x16xbf16>, vector<10x16xbf16>, vector<10x10xf32> -> vector<10x10xf32>
    %cst_105 = arith.constant 2.500000e-01 : f32
    %130 = vector.broadcast %cst_105 : f32 to vector<10x10xf32>
    %131 = arith.mulf %129, %130 : vector<10x10xf32>
    %132 = arith.addf %131, %6 : vector<10x10xf32>
    %cst_106 = arith.constant dense<0xFF800000> : vector<10xf32>
    %133 = vector.multi_reduction <maximumf>, %132, %cst_106 [1] : vector<10x10xf32> to vector<10xf32>
    %134 = vector.shape_cast %133 : vector<10xf32> to vector<10x1xf32>
    %135 = vector.broadcast %134 : vector<10x1xf32> to vector<10x10xf32>
    %136 = arith.subf %132, %135 : vector<10x10xf32>
    %137 = math.exp %136 : vector<10x10xf32>
    %cst_107 = arith.constant dense<0.000000e+00> : vector<10xf32>
    %138 = vector.multi_reduction <add>, %137, %cst_107 [1] : vector<10x10xf32> to vector<10xf32>
    %139 = vector.shape_cast %138 : vector<10xf32> to vector<10x1xf32>
    %140 = tpu.reciprocal %139 {approx = true} : vector<10x1xf32> -> vector<10x1xf32>
    %141 = vector.broadcast %140 : vector<10x1xf32> to vector<10x10xf32>
    %142 = arith.mulf %137, %141 : vector<10x10xf32>
    %143 = vector.extract_strided_slice %101 {offsets = [0, 16], sizes = [10, 16], strides = [1, 1]} : vector<10x64xf32> to vector<10x16xf32>
    %144 = arith.truncf %142 : vector<10x10xf32> to vector<10x10xbf16>
    %145 = arith.truncf %143 : vector<10x16xf32> to vector<10x16xbf16>
    %cst_108 = arith.constant dense<0.000000e+00> : vector<10x16xf32>
    %146 = tpu.matmul %144, %145, %cst_108 {dimension_numbers = #tpu.dot_dimension_numbers<[1], [0], [0], [1], [0, 0, 1, 1], [], []>} : vector<10x10xbf16>, vector<10x16xbf16>, vector<10x16xf32> -> vector<10x16xf32>
    %c0_109 = arith.constant 0 : index
    %c16 = arith.constant 16 : index
    %147 = vector.load %arg51[%c0_109, %c16] : memref<24x64xf32, #tpu.memory_space<vmem>>, vector<10x16xf32>
    tpu.vector_store %arg51[%c0_109, %c16], %146 {strides = array<i32>} : memref<24x64xf32, #tpu.memory_space<vmem>>, vector<10x16xf32>,
    %148 = vector.extract_strided_slice %93 {offsets = [0, 32], sizes = [10, 16], strides = [1, 1]} : vector<10x64xf32> to vector<10x16xf32>
    %149 = arith.truncf %148 : vector<10x16xf32> to vector<10x16xbf16>
    %150 = vector.extract_strided_slice %97 {offsets = [0, 32], sizes = [10, 16], strides = [1, 1]} : vector<10x64xf32> to vector<10x16xf32>
    %151 = arith.truncf %150 : vector<10x16xf32> to vector<10x16xbf16>
    %cst_110 = arith.constant dense<0.000000e+00> : vector<10x10xf32>
    %152 = tpu.matmul %149, %151, %cst_110 {dimension_numbers = #tpu.dot_dimension_numbers<[1], [1], [0], [0], [0, 0, 1, 0], [], []>} : vector<10x16xbf16>, vector<10x16xbf16>, vector<10x10xf32> -> vector<10x10xf32>
    %cst_111 = arith.constant 2.500000e-01 : f32
    %153 = vector.broadcast %cst_111 : f32 to vector<10x10xf32>
    %154 = arith.mulf %152, %153 : vector<10x10xf32>
    %155 = arith.addf %154, %6 : vector<10x10xf32>
    %cst_112 = arith.constant dense<0xFF800000> : vector<10xf32>
    %156 = vector.multi_reduction <maximumf>, %155, %cst_112 [1] : vector<10x10xf32> to vector<10xf32>
    %157 = vector.shape_cast %156 : vector<10xf32> to vector<10x1xf32>
    %158 = vector.broadcast %157 : vector<10x1xf32> to vector<10x10xf32>
    %159 = arith.subf %155, %158 : vector<10x10xf32>
    %160 = math.exp %159 : vector<10x10xf32>
    %cst_113 = arith.constant dense<0.000000e+00> : vector<10xf32>
    %161 = vector.multi_reduction <add>, %160, %cst_113 [1] : vector<10x10xf32> to vector<10xf32>
    %162 = vector.shape_cast %161 : vector<10xf32> to vector<10x1xf32>
    %163 = tpu.reciprocal %162 {approx = true} : vector<10x1xf32> -> vector<10x1xf32>
    %164 = vector.broadcast %163 : vector<10x1xf32> to vector<10x10xf32>
    %165 = arith.mulf %160, %164 : vector<10x10xf32>
    %166 = vector.extract_strided_slice %101 {offsets = [0, 32], sizes = [10, 16], strides = [1, 1]} : vector<10x64xf32> to vector<10x16xf32>
    %167 = arith.truncf %165 : vector<10x10xf32> to vector<10x10xbf16>
    %168 = arith.truncf %166 : vector<10x16xf32> to vector<10x16xbf16>
    %cst_114 = arith.constant dense<0.000000e+00> : vector<10x16xf32>
    %169 = tpu.matmul %167, %168, %cst_114 {dimension_numbers = #tpu.dot_dimension_numbers<[1], [0], [0], [1], [0, 0, 1, 1], [], []>} : vector<10x10xbf16>, vector<10x16xbf16>, vector<10x16xf32> -> vector<10x16xf32>
    %c0_115 = arith.constant 0 : index
    %c32 = arith.constant 32 : index
    %170 = vector.load %arg51[%c0_115, %c32] : memref<24x64xf32, #tpu.memory_space<vmem>>, vector<10x16xf32>
    tpu.vector_store %arg51[%c0_115, %c32], %169 {strides = array<i32>} : memref<24x64xf32, #tpu.memory_space<vmem>>, vector<10x16xf32>,
    %171 = vector.extract_strided_slice %93 {offsets = [0, 48], sizes = [10, 16], strides = [1, 1]} : vector<10x64xf32> to vector<10x16xf32>
    %172 = arith.truncf %171 : vector<10x16xf32> to vector<10x16xbf16>
    %173 = vector.extract_strided_slice %97 {offsets = [0, 48], sizes = [10, 16], strides = [1, 1]} : vector<10x64xf32> to vector<10x16xf32>
    %174 = arith.truncf %173 : vector<10x16xf32> to vector<10x16xbf16>
    %cst_116 = arith.constant dense<0.000000e+00> : vector<10x10xf32>
    %175 = tpu.matmul %172, %174, %cst_116 {dimension_numbers = #tpu.dot_dimension_numbers<[1], [1], [0], [0], [0, 0, 1, 0], [], []>} : vector<10x16xbf16>, vector<10x16xbf16>, vector<10x10xf32> -> vector<10x10xf32>
    %cst_117 = arith.constant 2.500000e-01 : f32
    %176 = vector.broadcast %cst_117 : f32 to vector<10x10xf32>
    %177 = arith.mulf %175, %176 : vector<10x10xf32>
    %178 = arith.addf %177, %6 : vector<10x10xf32>
    %cst_118 = arith.constant dense<0xFF800000> : vector<10xf32>
    %179 = vector.multi_reduction <maximumf>, %178, %cst_118 [1] : vector<10x10xf32> to vector<10xf32>
    %180 = vector.shape_cast %179 : vector<10xf32> to vector<10x1xf32>
    %181 = vector.broadcast %180 : vector<10x1xf32> to vector<10x10xf32>
    %182 = arith.subf %178, %181 : vector<10x10xf32>
    %183 = math.exp %182 : vector<10x10xf32>
    %cst_119 = arith.constant dense<0.000000e+00> : vector<10xf32>
    %184 = vector.multi_reduction <add>, %183, %cst_119 [1] : vector<10x10xf32> to vector<10xf32>
    %185 = vector.shape_cast %184 : vector<10xf32> to vector<10x1xf32>
    %186 = tpu.reciprocal %185 {approx = true} : vector<10x1xf32> -> vector<10x1xf32>
    %187 = vector.broadcast %186 : vector<10x1xf32> to vector<10x10xf32>
    %188 = arith.mulf %183, %187 : vector<10x10xf32>
    %189 = vector.extract_strided_slice %101 {offsets = [0, 48], sizes = [10, 16], strides = [1, 1]} : vector<10x64xf32> to vector<10x16xf32>
    %190 = arith.truncf %188 : vector<10x10xf32> to vector<10x10xbf16>
    %191 = arith.truncf %189 : vector<10x16xf32> to vector<10x16xbf16>
    %cst_120 = arith.constant dense<0.000000e+00> : vector<10x16xf32>
    %192 = tpu.matmul %190, %191, %cst_120 {dimension_numbers = #tpu.dot_dimension_numbers<[1], [0], [0], [1], [0, 0, 1, 1], [], []>} : vector<10x10xbf16>, vector<10x16xbf16>, vector<10x16xf32> -> vector<10x16xf32>
    %c0_121 = arith.constant 0 : index
    %c48 = arith.constant 48 : index
    %193 = vector.load %arg51[%c0_121, %c48] : memref<24x64xf32, #tpu.memory_space<vmem>>, vector<10x16xf32>
    tpu.vector_store %arg51[%c0_121, %c48], %192 {strides = array<i32>} : memref<24x64xf32, #tpu.memory_space<vmem>>, vector<10x16xf32>,
    %c0_122 = arith.constant 0 : index
    %c0_123 = arith.constant 0 : index
    %194 = vector.load %arg51[%c0_122, %c0_123] : memref<24x64xf32, #tpu.memory_space<vmem>>, vector<10x64xf32>
    %195 = arith.truncf %194 : vector<10x64xf32> to vector<10x64xbf16>
    %cst_124 = arith.constant dense<0.000000e+00> : vector<10x64xf32>
    %196 = tpu.matmul %195, %55, %cst_124 {dimension_numbers = #tpu.dot_dimension_numbers<[1], [0], [0], [1], [0, 0, 1, 1], [], []>} : vector<10x64xbf16>, vector<64x64xbf16>, vector<10x64xf32> -> vector<10x64xf32>
    %197 = arith.addf %37, %196 : vector<10x64xf32>
    %198 = vector.broadcast %57 : vector<1x64xf32> to vector<10x64xf32>
    %199 = arith.addf %197, %198 : vector<10x64xf32>
    %cst_125 = arith.constant dense<0.000000e+00> : vector<10xf32>
    %200 = vector.multi_reduction <add>, %199, %cst_125 [1] : vector<10x64xf32> to vector<10xf32>
    %201 = vector.shape_cast %200 : vector<10xf32> to vector<10x1xf32>
    %cst_126 = arith.constant 6.400000e+01 : f32
    %202 = vector.broadcast %cst_126 : f32 to vector<10x1xf32>
    %203 = arith.divf %201, %202 : vector<10x1xf32>
    %204 = vector.broadcast %203 : vector<10x1xf32> to vector<10x64xf32>
    %205 = arith.subf %199, %204 : vector<10x64xf32>
    %206 = arith.mulf %205, %205 : vector<10x64xf32>
    %cst_127 = arith.constant dense<0.000000e+00> : vector<10xf32>
    %207 = vector.multi_reduction <add>, %206, %cst_127 [1] : vector<10x64xf32> to vector<10xf32>
    %208 = vector.shape_cast %207 : vector<10xf32> to vector<10x1xf32>
    %cst_128 = arith.constant 6.400000e+01 : f32
    %209 = vector.broadcast %cst_128 : f32 to vector<10x1xf32>
    %210 = arith.divf %208, %209 : vector<10x1xf32>
    %cst_129 = arith.constant 9.99999974E-6 : f32
    %211 = vector.broadcast %cst_129 : f32 to vector<10x1xf32>
    %212 = arith.addf %210, %211 : vector<10x1xf32>
    %213 = math.rsqrt %212 : vector<10x1xf32>
    %214 = vector.broadcast %213 : vector<10x1xf32> to vector<10x64xf32>
    %215 = arith.mulf %205, %214 : vector<10x64xf32>
    %216 = vector.broadcast %59 : vector<1x64xf32> to vector<10x64xf32>
    %217 = arith.mulf %215, %216 : vector<10x64xf32>
    %218 = vector.broadcast %61 : vector<1x64xf32> to vector<10x64xf32>
    %219 = arith.addf %217, %218 : vector<10x64xf32>
    %220 = arith.truncf %219 : vector<10x64xf32> to vector<10x64xbf16>
    %cst_130 = arith.constant dense<0.000000e+00> : vector<10x256xf32>
    %221 = tpu.matmul %220, %63, %cst_130 {dimension_numbers = #tpu.dot_dimension_numbers<[1], [0], [0], [1], [0, 0, 1, 1], [], []>} : vector<10x64xbf16>, vector<64x256xbf16>, vector<10x256xf32> -> vector<10x256xf32>
    %222 = vector.broadcast %65 : vector<1x256xf32> to vector<10x256xf32>
    %223 = arith.addf %221, %222 : vector<10x256xf32>
    %cst_131 = arith.constant 1.702000e+00 : f32
    %224 = vector.broadcast %cst_131 : f32 to vector<10x256xf32>
    %225 = arith.mulf %224, %223 : vector<10x256xf32>
    %226 = arith.negf %225 : vector<10x256xf32>
    %227 = math.exp %226 : vector<10x256xf32>
    %cst_132 = arith.constant 1.000000e+00 : f32
    %228 = vector.broadcast %cst_132 : f32 to vector<10x256xf32>
    %229 = arith.addf %228, %227 : vector<10x256xf32>
    %230 = arith.divf %228, %229 : vector<10x256xf32>
    %231 = arith.mulf %223, %230 : vector<10x256xf32>
    %232 = arith.truncf %231 : vector<10x256xf32> to vector<10x256xbf16>
    %cst_133 = arith.constant dense<0.000000e+00> : vector<10x64xf32>
    %233 = tpu.matmul %232, %67, %cst_133 {dimension_numbers = #tpu.dot_dimension_numbers<[1], [0], [0], [1], [0, 0, 1, 1], [], []>} : vector<10x256xbf16>, vector<256x64xbf16>, vector<10x64xf32> -> vector<10x64xf32>
    %234 = arith.addf %199, %233 : vector<10x64xf32>
    %235 = vector.broadcast %69 : vector<1x64xf32> to vector<10x64xf32>
    %236 = arith.addf %234, %235 : vector<10x64xf32>
    %c0_134 = arith.constant 0 : index
    %c1 = arith.constant 1 : index
    %c0_135 = arith.constant 0 : index
    %c0_136 = arith.constant 0 : index
    %237 = vector.load %arg15[%c0_134, %c1, %c0_135, %c0_136] : memref<1x2x1x64xf32, #tpu.memory_space<vmem>>, vector<1x1x1x64xf32>
    %238 = vector.shape_cast %237 : vector<1x1x1x64xf32> to vector<1x64xf32>
    %c0_137 = arith.constant 0 : index
    %c1_138 = arith.constant 1 : index
    %c0_139 = arith.constant 0 : index
    %c0_140 = arith.constant 0 : index
    %239 = vector.load %arg16[%c0_137, %c1_138, %c0_139, %c0_140] : memref<1x2x1x64xf32, #tpu.memory_space<vmem>>, vector<1x1x1x64xf32>
    %240 = vector.shape_cast %239 : vector<1x1x1x64xf32> to vector<1x64xf32>
    %c0_141 = arith.constant 0 : index
    %c1_142 = arith.constant 1 : index
    %c0_143 = arith.constant 0 : index
    %c0_144 = arith.constant 0 : index
    %241 = vector.load %arg17[%c0_141, %c1_142, %c0_143, %c0_144] : memref<1x2x64x64xbf16, #tpu.memory_space<vmem>>, vector<1x1x64x64xbf16>
    %242 = vector.shape_cast %241 : vector<1x1x64x64xbf16> to vector<64x64xbf16>
    %c0_145 = arith.constant 0 : index
    %c1_146 = arith.constant 1 : index
    %c0_147 = arith.constant 0 : index
    %c0_148 = arith.constant 0 : index
    %243 = vector.load %arg18[%c0_145, %c1_146, %c0_147, %c0_148] : memref<1x2x1x64xf32, #tpu.memory_space<vmem>>, vector<1x1x1x64xf32>
    %244 = vector.shape_cast %243 : vector<1x1x1x64xf32> to vector<1x64xf32>
    %c0_149 = arith.constant 0 : index
    %c1_150 = arith.constant 1 : index
    %c0_151 = arith.constant 0 : index
    %c0_152 = arith.constant 0 : index
    %245 = vector.load %arg19[%c0_149, %c1_150, %c0_151, %c0_152] : memref<1x2x64x64xbf16, #tpu.memory_space<vmem>>, vector<1x1x64x64xbf16>
    %246 = vector.shape_cast %245 : vector<1x1x64x64xbf16> to vector<64x64xbf16>
    %c0_153 = arith.constant 0 : index
    %c1_154 = arith.constant 1 : index
    %c0_155 = arith.constant 0 : index
    %c0_156 = arith.constant 0 : index
    %247 = vector.load %arg20[%c0_153, %c1_154, %c0_155, %c0_156] : memref<1x2x1x64xf32, #tpu.memory_space<vmem>>, vector<1x1x1x64xf32>
    %248 = vector.shape_cast %247 : vector<1x1x1x64xf32> to vector<1x64xf32>
    %c0_157 = arith.constant 0 : index
    %c1_158 = arith.constant 1 : index
    %c0_159 = arith.constant 0 : index
    %c0_160 = arith.constant 0 : index
    %249 = vector.load %arg21[%c0_157, %c1_158, %c0_159, %c0_160] : memref<1x2x64x64xbf16, #tpu.memory_space<vmem>>, vector<1x1x64x64xbf16>
    %250 = vector.shape_cast %249 : vector<1x1x64x64xbf16> to vector<64x64xbf16>
    %c0_161 = arith.constant 0 : index
    %c1_162 = arith.constant 1 : index
    %c0_163 = arith.constant 0 : index
    %c0_164 = arith.constant 0 : index
    %251 = vector.load %arg22[%c0_161, %c1_162, %c0_163, %c0_164] : memref<1x2x1x64xf32, #tpu.memory_space<vmem>>, vector<1x1x1x64xf32>
    %252 = vector.shape_cast %251 : vector<1x1x1x64xf32> to vector<1x64xf32>
    %c0_165 = arith.constant 0 : index
    %c1_166 = arith.constant 1 : index
    %c0_167 = arith.constant 0 : index
    %c0_168 = arith.constant 0 : index
    %253 = vector.load %arg23[%c0_165, %c1_166, %c0_167, %c0_168] : memref<1x2x64x64xbf16, #tpu.memory_space<vmem>>, vector<1x1x64x64xbf16>
    %254 = vector.shape_cast %253 : vector<1x1x64x64xbf16> to vector<64x64xbf16>
    %c0_169 = arith.constant 0 : index
    %c1_170 = arith.constant 1 : index
    %c0_171 = arith.constant 0 : index
    %c0_172 = arith.constant 0 : index
    %255 = vector.load %arg24[%c0_169, %c1_170, %c0_171, %c0_172] : memref<1x2x1x64xf32, #tpu.memory_space<vmem>>, vector<1x1x1x64xf32>
    %256 = vector.shape_cast %255 : vector<1x1x1x64xf32> to vector<1x64xf32>
    %c0_173 = arith.constant 0 : index
    %c1_174 = arith.constant 1 : index
    %c0_175 = arith.constant 0 : index
    %c0_176 = arith.constant 0 : index
    %257 = vector.load %arg25[%c0_173, %c1_174, %c0_175, %c0_176] : memref<1x2x1x64xf32, #tpu.memory_space<vmem>>, vector<1x1x1x64xf32>
    %258 = vector.shape_cast %257 : vector<1x1x1x64xf32> to vector<1x64xf32>
    %c0_177 = arith.constant 0 : index
    %c1_178 = arith.constant 1 : index
    %c0_179 = arith.constant 0 : index
    %c0_180 = arith.constant 0 : index
    %259 = vector.load %arg26[%c0_177, %c1_178, %c0_179, %c0_180] : memref<1x2x1x64xf32, #tpu.memory_space<vmem>>, vector<1x1x1x64xf32>
    %260 = vector.shape_cast %259 : vector<1x1x1x64xf32> to vector<1x64xf32>
    %c0_181 = arith.constant 0 : index
    %c1_182 = arith.constant 1 : index
    %c0_183 = arith.constant 0 : index
    %c0_184 = arith.constant 0 : index
    %261 = vector.load %arg27[%c0_181, %c1_182, %c0_183, %c0_184] : memref<1x2x64x256xbf16, #tpu.memory_space<vmem>>, vector<1x1x64x256xbf16>
    %262 = vector.shape_cast %261 : vector<1x1x64x256xbf16> to vector<64x256xbf16>
    %c0_185 = arith.constant 0 : index
    %c1_186 = arith.constant 1 : index
    %c0_187 = arith.constant 0 : index
    %c0_188 = arith.constant 0 : index
    %263 = vector.load %arg28[%c0_185, %c1_186, %c0_187, %c0_188] : memref<1x2x1x256xf32, #tpu.memory_space<vmem>>, vector<1x1x1x256xf32>
    %264 = vector.shape_cast %263 : vector<1x1x1x256xf32> to vector<1x256xf32>
    %c0_189 = arith.constant 0 : index
    %c1_190 = arith.constant 1 : index
    %c0_191 = arith.constant 0 : index
    %c0_192 = arith.constant 0 : index
    %265 = vector.load %arg29[%c0_189, %c1_190, %c0_191, %c0_192] : memref<1x2x256x64xbf16, #tpu.memory_space<vmem>>, vector<1x1x256x64xbf16>
    %266 = vector.shape_cast %265 : vector<1x1x256x64xbf16> to vector<256x64xbf16>
    %c0_193 = arith.constant 0 : index
    %c1_194 = arith.constant 1 : index
    %c0_195 = arith.constant 0 : index
    %c0_196 = arith.constant 0 : index
    %267 = vector.load %arg30[%c0_193, %c1_194, %c0_195, %c0_196] : memref<1x2x1x64xf32, #tpu.memory_space<vmem>>, vector<1x1x1x64xf32>
    %268 = vector.shape_cast %267 : vector<1x1x1x64xf32> to vector<1x64xf32>
    %cst_197 = arith.constant dense<0.000000e+00> : vector<10xf32>
    %269 = vector.multi_reduction <add>, %236, %cst_197 [1] : vector<10x64xf32> to vector<10xf32>
    %270 = vector.shape_cast %269 : vector<10xf32> to vector<10x1xf32>
    %cst_198 = arith.constant 6.400000e+01 : f32
    %271 = vector.broadcast %cst_198 : f32 to vector<10x1xf32>
    %272 = arith.divf %270, %271 : vector<10x1xf32>
    %273 = vector.broadcast %272 : vector<10x1xf32> to vector<10x64xf32>
    %274 = arith.subf %236, %273 : vector<10x64xf32>
    %275 = arith.mulf %274, %274 : vector<10x64xf32>
    %cst_199 = arith.constant dense<0.000000e+00> : vector<10xf32>
    %276 = vector.multi_reduction <add>, %275, %cst_199 [1] : vector<10x64xf32> to vector<10xf32>
    %277 = vector.shape_cast %276 : vector<10xf32> to vector<10x1xf32>
    %cst_200 = arith.constant 6.400000e+01 : f32
    %278 = vector.broadcast %cst_200 : f32 to vector<10x1xf32>
    %279 = arith.divf %277, %278 : vector<10x1xf32>
    %cst_201 = arith.constant 9.99999974E-6 : f32
    %280 = vector.broadcast %cst_201 : f32 to vector<10x1xf32>
    %281 = arith.addf %279, %280 : vector<10x1xf32>
    %282 = math.rsqrt %281 : vector<10x1xf32>
    %283 = vector.broadcast %282 : vector<10x1xf32> to vector<10x64xf32>
    %284 = arith.mulf %274, %283 : vector<10x64xf32>
    %285 = vector.broadcast %238 : vector<1x64xf32> to vector<10x64xf32>
    %286 = arith.mulf %284, %285 : vector<10x64xf32>
    %287 = vector.broadcast %240 : vector<1x64xf32> to vector<10x64xf32>
    %288 = arith.addf %286, %287 : vector<10x64xf32>
    %289 = arith.truncf %288 : vector<10x64xf32> to vector<10x64xbf16>
    %cst_202 = arith.constant dense<0.000000e+00> : vector<10x64xf32>
    %290 = tpu.matmul %289, %242, %cst_202 {dimension_numbers = #tpu.dot_dimension_numbers<[1], [0], [0], [1], [0, 0, 1, 1], [], []>} : vector<10x64xbf16>, vector<64x64xbf16>, vector<10x64xf32> -> vector<10x64xf32>
    %291 = vector.broadcast %244 : vector<1x64xf32> to vector<10x64xf32>
    %292 = arith.addf %290, %291 : vector<10x64xf32>
    %293 = arith.truncf %288 : vector<10x64xf32> to vector<10x64xbf16>
    %cst_203 = arith.constant dense<0.000000e+00> : vector<10x64xf32>
    %294 = tpu.matmul %293, %246, %cst_203 {dimension_numbers = #tpu.dot_dimension_numbers<[1], [0], [0], [1], [0, 0, 1, 1], [], []>} : vector<10x64xbf16>, vector<64x64xbf16>, vector<10x64xf32> -> vector<10x64xf32>
    %295 = vector.broadcast %248 : vector<1x64xf32> to vector<10x64xf32>
    %296 = arith.addf %294, %295 : vector<10x64xf32>
    %297 = arith.truncf %288 : vector<10x64xf32> to vector<10x64xbf16>
    %cst_204 = arith.constant dense<0.000000e+00> : vector<10x64xf32>
    %298 = tpu.matmul %297, %250, %cst_204 {dimension_numbers = #tpu.dot_dimension_numbers<[1], [0], [0], [1], [0, 0, 1, 1], [], []>} : vector<10x64xbf16>, vector<64x64xbf16>, vector<10x64xf32> -> vector<10x64xf32>
    %299 = vector.broadcast %252 : vector<1x64xf32> to vector<10x64xf32>
    %300 = arith.addf %298, %299 : vector<10x64xf32>
    %301 = vector.extract_strided_slice %292 {offsets = [0, 0], sizes = [10, 16], strides = [1, 1]} : vector<10x64xf32> to vector<10x16xf32>
    %302 = arith.truncf %301 : vector<10x16xf32> to vector<10x16xbf16>
    %303 = vector.extract_strided_slice %296 {offsets = [0, 0], sizes = [10, 16], strides = [1, 1]} : vector<10x64xf32> to vector<10x16xf32>
    %304 = arith.truncf %303 : vector<10x16xf32> to vector<10x16xbf16>
    %cst_205 = arith.constant dense<0.000000e+00> : vector<10x10xf32>
    %305 = tpu.matmul %302, %304, %cst_205 {dimension_numbers = #tpu.dot_dimension_numbers<[1], [1], [0], [0], [0, 0, 1, 0], [], []>} : vector<10x16xbf16>, vector<10x16xbf16>, vector<10x10xf32> -> vector<10x10xf32>
    %cst_206 = arith.constant 2.500000e-01 : f32
    %306 = vector.broadcast %cst_206 : f32 to vector<10x10xf32>
    %307 = arith.mulf %305, %306 : vector<10x10xf32>
    %308 = arith.addf %307, %6 : vector<10x10xf32>
    %cst_207 = arith.constant dense<0xFF800000> : vector<10xf32>
    %309 = vector.multi_reduction <maximumf>, %308, %cst_207 [1] : vector<10x10xf32> to vector<10xf32>
    %310 = vector.shape_cast %309 : vector<10xf32> to vector<10x1xf32>
    %311 = vector.broadcast %310 : vector<10x1xf32> to vector<10x10xf32>
    %312 = arith.subf %308, %311 : vector<10x10xf32>
    %313 = math.exp %312 : vector<10x10xf32>
    %cst_208 = arith.constant dense<0.000000e+00> : vector<10xf32>
    %314 = vector.multi_reduction <add>, %313, %cst_208 [1] : vector<10x10xf32> to vector<10xf32>
    %315 = vector.shape_cast %314 : vector<10xf32> to vector<10x1xf32>
    %316 = tpu.reciprocal %315 {approx = true} : vector<10x1xf32> -> vector<10x1xf32>
    %317 = vector.broadcast %316 : vector<10x1xf32> to vector<10x10xf32>
    %318 = arith.mulf %313, %317 : vector<10x10xf32>
    %319 = vector.extract_strided_slice %300 {offsets = [0, 0], sizes = [10, 16], strides = [1, 1]} : vector<10x64xf32> to vector<10x16xf32>
    %320 = arith.truncf %318 : vector<10x10xf32> to vector<10x10xbf16>
    %321 = arith.truncf %319 : vector<10x16xf32> to vector<10x16xbf16>
    %cst_209 = arith.constant dense<0.000000e+00> : vector<10x16xf32>
    %322 = tpu.matmul %320, %321, %cst_209 {dimension_numbers = #tpu.dot_dimension_numbers<[1], [0], [0], [1], [0, 0, 1, 1], [], []>} : vector<10x10xbf16>, vector<10x16xbf16>, vector<10x16xf32> -> vector<10x16xf32>
    %c0_210 = arith.constant 0 : index
    %c0_211 = arith.constant 0 : index
    %323 = vector.load %arg51[%c0_210, %c0_211] : memref<24x64xf32, #tpu.memory_space<vmem>>, vector<10x16xf32>
    tpu.vector_store %arg51[%c0_210, %c0_211], %322 {strides = array<i32>} : memref<24x64xf32, #tpu.memory_space<vmem>>, vector<10x16xf32>,
    %324 = vector.extract_strided_slice %292 {offsets = [0, 16], sizes = [10, 16], strides = [1, 1]} : vector<10x64xf32> to vector<10x16xf32>
    %325 = arith.truncf %324 : vector<10x16xf32> to vector<10x16xbf16>
    %326 = vector.extract_strided_slice %296 {offsets = [0, 16], sizes = [10, 16], strides = [1, 1]} : vector<10x64xf32> to vector<10x16xf32>
    %327 = arith.truncf %326 : vector<10x16xf32> to vector<10x16xbf16>
    %cst_212 = arith.constant dense<0.000000e+00> : vector<10x10xf32>
    %328 = tpu.matmul %325, %327, %cst_212 {dimension_numbers = #tpu.dot_dimension_numbers<[1], [1], [0], [0], [0, 0, 1, 0], [], []>} : vector<10x16xbf16>, vector<10x16xbf16>, vector<10x10xf32> -> vector<10x10xf32>
    %cst_213 = arith.constant 2.500000e-01 : f32
    %329 = vector.broadcast %cst_213 : f32 to vector<10x10xf32>
    %330 = arith.mulf %328, %329 : vector<10x10xf32>
    %331 = arith.addf %330, %6 : vector<10x10xf32>
    %cst_214 = arith.constant dense<0xFF800000> : vector<10xf32>
    %332 = vector.multi_reduction <maximumf>, %331, %cst_214 [1] : vector<10x10xf32> to vector<10xf32>
    %333 = vector.shape_cast %332 : vector<10xf32> to vector<10x1xf32>
    %334 = vector.broadcast %333 : vector<10x1xf32> to vector<10x10xf32>
    %335 = arith.subf %331, %334 : vector<10x10xf32>
    %336 = math.exp %335 : vector<10x10xf32>
    %cst_215 = arith.constant dense<0.000000e+00> : vector<10xf32>
    %337 = vector.multi_reduction <add>, %336, %cst_215 [1] : vector<10x10xf32> to vector<10xf32>
    %338 = vector.shape_cast %337 : vector<10xf32> to vector<10x1xf32>
    %339 = tpu.reciprocal %338 {approx = true} : vector<10x1xf32> -> vector<10x1xf32>
    %340 = vector.broadcast %339 : vector<10x1xf32> to vector<10x10xf32>
    %341 = arith.mulf %336, %340 : vector<10x10xf32>
    %342 = vector.extract_strided_slice %300 {offsets = [0, 16], sizes = [10, 16], strides = [1, 1]} : vector<10x64xf32> to vector<10x16xf32>
    %343 = arith.truncf %341 : vector<10x10xf32> to vector<10x10xbf16>
    %344 = arith.truncf %342 : vector<10x16xf32> to vector<10x16xbf16>
    %cst_216 = arith.constant dense<0.000000e+00> : vector<10x16xf32>
    %345 = tpu.matmul %343, %344, %cst_216 {dimension_numbers = #tpu.dot_dimension_numbers<[1], [0], [0], [1], [0, 0, 1, 1], [], []>} : vector<10x10xbf16>, vector<10x16xbf16>, vector<10x16xf32> -> vector<10x16xf32>
    %c0_217 = arith.constant 0 : index
    %c16_218 = arith.constant 16 : index
    %346 = vector.load %arg51[%c0_217, %c16_218] : memref<24x64xf32, #tpu.memory_space<vmem>>, vector<10x16xf32>
    tpu.vector_store %arg51[%c0_217, %c16_218], %345 {strides = array<i32>} : memref<24x64xf32, #tpu.memory_space<vmem>>, vector<10x16xf32>,
    %347 = vector.extract_strided_slice %292 {offsets = [0, 32], sizes = [10, 16], strides = [1, 1]} : vector<10x64xf32> to vector<10x16xf32>
    %348 = arith.truncf %347 : vector<10x16xf32> to vector<10x16xbf16>
    %349 = vector.extract_strided_slice %296 {offsets = [0, 32], sizes = [10, 16], strides = [1, 1]} : vector<10x64xf32> to vector<10x16xf32>
    %350 = arith.truncf %349 : vector<10x16xf32> to vector<10x16xbf16>
    %cst_219 = arith.constant dense<0.000000e+00> : vector<10x10xf32>
    %351 = tpu.matmul %348, %350, %cst_219 {dimension_numbers = #tpu.dot_dimension_numbers<[1], [1], [0], [0], [0, 0, 1, 0], [], []>} : vector<10x16xbf16>, vector<10x16xbf16>, vector<10x10xf32> -> vector<10x10xf32>
    %cst_220 = arith.constant 2.500000e-01 : f32
    %352 = vector.broadcast %cst_220 : f32 to vector<10x10xf32>
    %353 = arith.mulf %351, %352 : vector<10x10xf32>
    %354 = arith.addf %353, %6 : vector<10x10xf32>
    %cst_221 = arith.constant dense<0xFF800000> : vector<10xf32>
    %355 = vector.multi_reduction <maximumf>, %354, %cst_221 [1] : vector<10x10xf32> to vector<10xf32>
    %356 = vector.shape_cast %355 : vector<10xf32> to vector<10x1xf32>
    %357 = vector.broadcast %356 : vector<10x1xf32> to vector<10x10xf32>
    %358 = arith.subf %354, %357 : vector<10x10xf32>
    %359 = math.exp %358 : vector<10x10xf32>
    %cst_222 = arith.constant dense<0.000000e+00> : vector<10xf32>
    %360 = vector.multi_reduction <add>, %359, %cst_222 [1] : vector<10x10xf32> to vector<10xf32>
    %361 = vector.shape_cast %360 : vector<10xf32> to vector<10x1xf32>
    %362 = tpu.reciprocal %361 {approx = true} : vector<10x1xf32> -> vector<10x1xf32>
    %363 = vector.broadcast %362 : vector<10x1xf32> to vector<10x10xf32>
    %364 = arith.mulf %359, %363 : vector<10x10xf32>
    %365 = vector.extract_strided_slice %300 {offsets = [0, 32], sizes = [10, 16], strides = [1, 1]} : vector<10x64xf32> to vector<10x16xf32>
    %366 = arith.truncf %364 : vector<10x10xf32> to vector<10x10xbf16>
    %367 = arith.truncf %365 : vector<10x16xf32> to vector<10x16xbf16>
    %cst_223 = arith.constant dense<0.000000e+00> : vector<10x16xf32>
    %368 = tpu.matmul %366, %367, %cst_223 {dimension_numbers = #tpu.dot_dimension_numbers<[1], [0], [0], [1], [0, 0, 1, 1], [], []>} : vector<10x10xbf16>, vector<10x16xbf16>, vector<10x16xf32> -> vector<10x16xf32>
    %c0_224 = arith.constant 0 : index
    %c32_225 = arith.constant 32 : index
    %369 = vector.load %arg51[%c0_224, %c32_225] : memref<24x64xf32, #tpu.memory_space<vmem>>, vector<10x16xf32>
    tpu.vector_store %arg51[%c0_224, %c32_225], %368 {strides = array<i32>} : memref<24x64xf32, #tpu.memory_space<vmem>>, vector<10x16xf32>,
    %370 = vector.extract_strided_slice %292 {offsets = [0, 48], sizes = [10, 16], strides = [1, 1]} : vector<10x64xf32> to vector<10x16xf32>
    %371 = arith.truncf %370 : vector<10x16xf32> to vector<10x16xbf16>
    %372 = vector.extract_strided_slice %296 {offsets = [0, 48], sizes = [10, 16], strides = [1, 1]} : vector<10x64xf32> to vector<10x16xf32>
    %373 = arith.truncf %372 : vector<10x16xf32> to vector<10x16xbf16>
    %cst_226 = arith.constant dense<0.000000e+00> : vector<10x10xf32>
    %374 = tpu.matmul %371, %373, %cst_226 {dimension_numbers = #tpu.dot_dimension_numbers<[1], [1], [0], [0], [0, 0, 1, 0], [], []>} : vector<10x16xbf16>, vector<10x16xbf16>, vector<10x10xf32> -> vector<10x10xf32>
    %cst_227 = arith.constant 2.500000e-01 : f32
    %375 = vector.broadcast %cst_227 : f32 to vector<10x10xf32>
    %376 = arith.mulf %374, %375 : vector<10x10xf32>
    %377 = arith.addf %376, %6 : vector<10x10xf32>
    %cst_228 = arith.constant dense<0xFF800000> : vector<10xf32>
    %378 = vector.multi_reduction <maximumf>, %377, %cst_228 [1] : vector<10x10xf32> to vector<10xf32>
    %379 = vector.shape_cast %378 : vector<10xf32> to vector<10x1xf32>
    %380 = vector.broadcast %379 : vector<10x1xf32> to vector<10x10xf32>
    %381 = arith.subf %377, %380 : vector<10x10xf32>
    %382 = math.exp %381 : vector<10x10xf32>
    %cst_229 = arith.constant dense<0.000000e+00> : vector<10xf32>
    %383 = vector.multi_reduction <add>, %382, %cst_229 [1] : vector<10x10xf32> to vector<10xf32>
    %384 = vector.shape_cast %383 : vector<10xf32> to vector<10x1xf32>
    %385 = tpu.reciprocal %384 {approx = true} : vector<10x1xf32> -> vector<10x1xf32>
    %386 = vector.broadcast %385 : vector<10x1xf32> to vector<10x10xf32>
    %387 = arith.mulf %382, %386 : vector<10x10xf32>
    %388 = vector.extract_strided_slice %300 {offsets = [0, 48], sizes = [10, 16], strides = [1, 1]} : vector<10x64xf32> to vector<10x16xf32>
    %389 = arith.truncf %387 : vector<10x10xf32> to vector<10x10xbf16>
    %390 = arith.truncf %388 : vector<10x16xf32> to vector<10x16xbf16>
    %cst_230 = arith.constant dense<0.000000e+00> : vector<10x16xf32>
    %391 = tpu.matmul %389, %390, %cst_230 {dimension_numbers = #tpu.dot_dimension_numbers<[1], [0], [0], [1], [0, 0, 1, 1], [], []>} : vector<10x10xbf16>, vector<10x16xbf16>, vector<10x16xf32> -> vector<10x16xf32>
    %c0_231 = arith.constant 0 : index
    %c48_232 = arith.constant 48 : index
    %392 = vector.load %arg51[%c0_231, %c48_232] : memref<24x64xf32, #tpu.memory_space<vmem>>, vector<10x16xf32>
    tpu.vector_store %arg51[%c0_231, %c48_232], %391 {strides = array<i32>} : memref<24x64xf32, #tpu.memory_space<vmem>>, vector<10x16xf32>,
    %c0_233 = arith.constant 0 : index
    %c0_234 = arith.constant 0 : index
    %393 = vector.load %arg51[%c0_233, %c0_234] : memref<24x64xf32, #tpu.memory_space<vmem>>, vector<10x64xf32>
    %394 = arith.truncf %393 : vector<10x64xf32> to vector<10x64xbf16>
    %cst_235 = arith.constant dense<0.000000e+00> : vector<10x64xf32>
    %395 = tpu.matmul %394, %254, %cst_235 {dimension_numbers = #tpu.dot_dimension_numbers<[1], [0], [0], [1], [0, 0, 1, 1], [], []>} : vector<10x64xbf16>, vector<64x64xbf16>, vector<10x64xf32> -> vector<10x64xf32>
    %396 = arith.addf %236, %395 : vector<10x64xf32>
    %397 = vector.broadcast %256 : vector<1x64xf32> to vector<10x64xf32>
    %398 = arith.addf %396, %397 : vector<10x64xf32>
    %cst_236 = arith.constant dense<0.000000e+00> : vector<10xf32>
    %399 = vector.multi_reduction <add>, %398, %cst_236 [1] : vector<10x64xf32> to vector<10xf32>
    %400 = vector.shape_cast %399 : vector<10xf32> to vector<10x1xf32>
    %cst_237 = arith.constant 6.400000e+01 : f32
    %401 = vector.broadcast %cst_237 : f32 to vector<10x1xf32>
    %402 = arith.divf %400, %401 : vector<10x1xf32>
    %403 = vector.broadcast %402 : vector<10x1xf32> to vector<10x64xf32>
    %404 = arith.subf %398, %403 : vector<10x64xf32>
    %405 = arith.mulf %404, %404 : vector<10x64xf32>
    %cst_238 = arith.constant dense<0.000000e+00> : vector<10xf32>
    %406 = vector.multi_reduction <add>, %405, %cst_238 [1] : vector<10x64xf32> to vector<10xf32>
    %407 = vector.shape_cast %406 : vector<10xf32> to vector<10x1xf32>
    %cst_239 = arith.constant 6.400000e+01 : f32
    %408 = vector.broadcast %cst_239 : f32 to vector<10x1xf32>
    %409 = arith.divf %407, %408 : vector<10x1xf32>
    %cst_240 = arith.constant 9.99999974E-6 : f32
    %410 = vector.broadcast %cst_240 : f32 to vector<10x1xf32>
    %411 = arith.addf %409, %410 : vector<10x1xf32>
    %412 = math.rsqrt %411 : vector<10x1xf32>
    %413 = vector.broadcast %412 : vector<10x1xf32> to vector<10x64xf32>
    %414 = arith.mulf %404, %413 : vector<10x64xf32>
    %415 = vector.broadcast %258 : vector<1x64xf32> to vector<10x64xf32>
    %416 = arith.mulf %414, %415 : vector<10x64xf32>
    %417 = vector.broadcast %260 : vector<1x64xf32> to vector<10x64xf32>
    %418 = arith.addf %416, %417 : vector<10x64xf32>
    %419 = arith.truncf %418 : vector<10x64xf32> to vector<10x64xbf16>
    %cst_241 = arith.constant dense<0.000000e+00> : vector<10x256xf32>
    %420 = tpu.matmul %419, %262, %cst_241 {dimension_numbers = #tpu.dot_dimension_numbers<[1], [0], [0], [1], [0, 0, 1, 1], [], []>} : vector<10x64xbf16>, vector<64x256xbf16>, vector<10x256xf32> -> vector<10x256xf32>
    %421 = vector.broadcast %264 : vector<1x256xf32> to vector<10x256xf32>
    %422 = arith.addf %420, %421 : vector<10x256xf32>
    %cst_242 = arith.constant 1.702000e+00 : f32
    %423 = vector.broadcast %cst_242 : f32 to vector<10x256xf32>
    %424 = arith.mulf %423, %422 : vector<10x256xf32>
    %425 = arith.negf %424 : vector<10x256xf32>
    %426 = math.exp %425 : vector<10x256xf32>
    %cst_243 = arith.constant 1.000000e+00 : f32
    %427 = vector.broadcast %cst_243 : f32 to vector<10x256xf32>
    %428 = arith.addf %427, %426 : vector<10x256xf32>
    %429 = arith.divf %427, %428 : vector<10x256xf32>
    %430 = arith.mulf %422, %429 : vector<10x256xf32>
    %431 = arith.truncf %430 : vector<10x256xf32> to vector<10x256xbf16>
    %cst_244 = arith.constant dense<0.000000e+00> : vector<10x64xf32>
    %432 = tpu.matmul %431, %266, %cst_244 {dimension_numbers = #tpu.dot_dimension_numbers<[1], [0], [0], [1], [0, 0, 1, 1], [], []>} : vector<10x256xbf16>, vector<256x64xbf16>, vector<10x64xf32> -> vector<10x64xf32>
    %433 = arith.addf %398, %432 : vector<10x64xf32>
    %434 = vector.broadcast %268 : vector<1x64xf32> to vector<10x64xf32>
    %435 = arith.addf %433, %434 : vector<10x64xf32>
    %c0_245 = arith.constant 0 : index
    %c0_246 = arith.constant 0 : index
    %436 = vector.load %arg51[%c0_245, %c0_246] : memref<24x64xf32, #tpu.memory_space<vmem>>, vector<10x64xf32>
    tpu.vector_store %arg51[%c0_245, %c0_246], %435 {strides = array<i32>} : memref<24x64xf32, #tpu.memory_space<vmem>>, vector<10x64xf32>,
    %c0_247 = arith.constant 0 : index
    %c0_248 = arith.constant 0 : index
    %437 = vector.load %arg51[%c0_247, %c0_248] : memref<24x64xf32, #tpu.memory_space<vmem>>, vector<1x64xf32>
    %c0_249 = arith.constant 0 : index
    %c0_250 = arith.constant 0 : index
    %438 = vector.load %arg52[%c0_249, %c0_250] : memref<8x64xf32, #tpu.memory_space<vmem>>, vector<1x64xf32>
    tpu.vector_store %arg52[%c0_249, %c0_250], %437 {strides = array<i32>} : memref<8x64xf32, #tpu.memory_space<vmem>>, vector<1x64xf32>,
    %c5 = arith.constant 5 : index
    %c0_251 = arith.constant 0 : index
    %439 = vector.load %arg51[%c5, %c0_251] : memref<24x64xf32, #tpu.memory_space<vmem>>, vector<1x64xf32>
    %c1_252 = arith.constant 1 : index
    %c0_253 = arith.constant 0 : index
    %440 = vector.load %arg52[%c1_252, %c0_253] : memref<8x64xf32, #tpu.memory_space<vmem>>, vector<1x64xf32>
    tpu.vector_store %arg52[%c1_252, %c0_253], %439 {strides = array<i32>} : memref<8x64xf32, #tpu.memory_space<vmem>>, vector<1x64xf32>,
    %c0_254 = arith.constant 0 : index
    %c0_255 = arith.constant 0 : index
    %441 = vector.load %arg52[%c0_254, %c0_255] : memref<8x64xf32, #tpu.memory_space<vmem>>, vector<2x64xf32>
    %c0_256 = arith.constant 0 : index
    %c0_257 = arith.constant 0 : index
    %c0_258 = arith.constant 0 : index
    %442 = vector.load %arg12[%c0_256, %c0_257, %c0_258] : memref<1x1x64xf32, #tpu.memory_space<vmem>>, vector<1x1x64xf32>
    %443 = vector.shape_cast %442 : vector<1x1x64xf32> to vector<1x64xf32>
    %c0_259 = arith.constant 0 : index
    %c0_260 = arith.constant 0 : index
    %c0_261 = arith.constant 0 : index
    %444 = vector.load %arg13[%c0_259, %c0_260, %c0_261] : memref<1x1x64xf32, #tpu.memory_space<vmem>>, vector<1x1x64xf32>
    %445 = vector.shape_cast %444 : vector<1x1x64xf32> to vector<1x64xf32>
    %cst_262 = arith.constant dense<0.000000e+00> : vector<2xf32>
    %446 = vector.multi_reduction <add>, %441, %cst_262 [1] : vector<2x64xf32> to vector<2xf32>
    %447 = vector.shape_cast %446 : vector<2xf32> to vector<2x1xf32>
    %cst_263 = arith.constant 6.400000e+01 : f32
    %448 = vector.broadcast %cst_263 : f32 to vector<2x1xf32>
    %449 = arith.divf %447, %448 : vector<2x1xf32>
    %450 = vector.broadcast %449 : vector<2x1xf32> to vector<2x64xf32>
    %451 = arith.subf %441, %450 : vector<2x64xf32>
    %452 = arith.mulf %451, %451 : vector<2x64xf32>
    %cst_264 = arith.constant dense<0.000000e+00> : vector<2xf32>
    %453 = vector.multi_reduction <add>, %452, %cst_264 [1] : vector<2x64xf32> to vector<2xf32>
    %454 = vector.shape_cast %453 : vector<2xf32> to vector<2x1xf32>
    %cst_265 = arith.constant 6.400000e+01 : f32
    %455 = vector.broadcast %cst_265 : f32 to vector<2x1xf32>
    %456 = arith.divf %454, %455 : vector<2x1xf32>
    %cst_266 = arith.constant 9.99999974E-6 : f32
    %457 = vector.broadcast %cst_266 : f32 to vector<2x1xf32>
    %458 = arith.addf %456, %457 : vector<2x1xf32>
    %459 = math.rsqrt %458 : vector<2x1xf32>
    %460 = vector.broadcast %459 : vector<2x1xf32> to vector<2x64xf32>
    %461 = arith.mulf %451, %460 : vector<2x64xf32>
    %462 = vector.broadcast %443 : vector<1x64xf32> to vector<2x64xf32>
    %463 = arith.mulf %461, %462 : vector<2x64xf32>
    %464 = vector.broadcast %445 : vector<1x64xf32> to vector<2x64xf32>
    %465 = arith.addf %463, %464 : vector<2x64xf32>
    %c0_267 = arith.constant 0 : index
    %c0_268 = arith.constant 0 : index
    %c0_269 = arith.constant 0 : index
    %466 = vector.load %arg14[%c0_267, %c0_268, %c0_269] : memref<1x64x32xbf16, #tpu.memory_space<vmem>>, vector<1x64x32xbf16>
    %467 = vector.shape_cast %466 : vector<1x64x32xbf16> to vector<64x32xbf16>
    %468 = arith.truncf %465 : vector<2x64xf32> to vector<2x64xbf16>
    %cst_270 = arith.constant dense<0.000000e+00> : vector<2x32xf32>
    %469 = tpu.matmul %468, %467, %cst_270 {dimension_numbers = #tpu.dot_dimension_numbers<[1], [0], [0], [1], [0, 0, 1, 1], [], []>} : vector<2x64xbf16>, vector<64x32xbf16>, vector<2x32xf32> -> vector<2x32xf32>
    %470 = arith.mulf %469, %469 : vector<2x32xf32>
    %cst_271 = arith.constant dense<0.000000e+00> : vector<2xf32>
    %471 = vector.multi_reduction <add>, %470, %cst_271 [1] : vector<2x32xf32> to vector<2xf32>
    %472 = vector.shape_cast %471 : vector<2xf32> to vector<2x1xf32>
    %473 = math.rsqrt %472 : vector<2x1xf32>
    %474 = vector.broadcast %473 : vector<2x1xf32> to vector<2x32xf32>
    %475 = arith.mulf %469, %474 : vector<2x32xf32>
    %c0_272 = arith.constant 0 : index
    %c0_273 = arith.constant 0 : index
    %c0_274 = arith.constant 0 : index
    %476 = vector.load %arg50[%c0_272, %c0_273, %c0_274] : memref<1x8x128xf32, #tpu.memory_space<vmem>>, vector<1x2x32xf32>
    %477 = vector.shape_cast %476 : vector<1x2x32xf32> to vector<2x32xf32>
    %478 = vector.shape_cast %475 : vector<2x32xf32> to vector<1x2x32xf32>
    tpu.vector_store %arg50[%c0_272, %c0_273, %c0_274], %478 {strides = array<i32>} : memref<1x8x128xf32, #tpu.memory_space<vmem>>, vector<1x2x32xf32>,
    %c0_i32 = arith.constant 0 : i32
    %479 = arith.cmpi eq, %arg0, %c0_i32 : i32
    %480 = arith.extui %479 : i1 to i32
    %c0_i32_275 = arith.constant 0 : i32
    %481 = arith.cmpi ne, %480, %c0_i32_275 : i32
    scf.if %481 {
      %c0_277 = arith.constant 0 : index
      %c0_278 = arith.constant 0 : index
      %485 = vector.load %arg5[%c0_277, %c0_278] : memref<24x64xf32, #tpu.memory_space<vmem>>, vector<24x64xf32>
      %c0_279 = arith.constant 0 : index
      %c0_280 = arith.constant 0 : index
      %486 = vector.load %arg6[%c0_279, %c0_280] : memref<24x24xf32, #tpu.memory_space<vmem>>, vector<24x24xf32>
      %c0_281 = arith.constant 0 : index
      %c0_282 = arith.constant 0 : index
      %c0_283 = arith.constant 0 : index
      %487 = vector.load %arg31[%c0_281, %c0_282, %c0_283] : memref<2x1x64xf32, #tpu.memory_space<vmem>>, vector<1x1x64xf32>
      %488 = vector.shape_cast %487 : vector<1x1x64xf32> to vector<1x64xf32>
      %c0_284 = arith.constant 0 : index
      %c0_285 = arith.constant 0 : index
      %c0_286 = arith.constant 0 : index
      %489 = vector.load %arg32[%c0_284, %c0_285, %c0_286] : memref<2x1x64xf32, #tpu.memory_space<vmem>>, vector<1x1x64xf32>
      %490 = vector.shape_cast %489 : vector<1x1x64xf32> to vector<1x64xf32>
      %c0_287 = arith.constant 0 : index
      %c0_288 = arith.constant 0 : index
      %c0_289 = arith.constant 0 : index
      %491 = vector.load %arg33[%c0_287, %c0_288, %c0_289] : memref<2x64x64xbf16, #tpu.memory_space<vmem>>, vector<1x64x64xbf16>
      %492 = vector.shape_cast %491 : vector<1x64x64xbf16> to vector<64x64xbf16>
      %c0_290 = arith.constant 0 : index
      %c0_291 = arith.constant 0 : index
      %c0_292 = arith.constant 0 : index
      %493 = vector.load %arg34[%c0_290, %c0_291, %c0_292] : memref<2x1x64xf32, #tpu.memory_space<vmem>>, vector<1x1x64xf32>
      %494 = vector.shape_cast %493 : vector<1x1x64xf32> to vector<1x64xf32>
      %c0_293 = arith.constant 0 : index
      %c0_294 = arith.constant 0 : index
      %c0_295 = arith.constant 0 : index
      %495 = vector.load %arg35[%c0_293, %c0_294, %c0_295] : memref<2x64x64xbf16, #tpu.memory_space<vmem>>, vector<1x64x64xbf16>
      %496 = vector.shape_cast %495 : vector<1x64x64xbf16> to vector<64x64xbf16>
      %c0_296 = arith.constant 0 : index
      %c0_297 = arith.constant 0 : index
      %c0_298 = arith.constant 0 : index
      %497 = vector.load %arg36[%c0_296, %c0_297, %c0_298] : memref<2x1x64xf32, #tpu.memory_space<vmem>>, vector<1x1x64xf32>
      %498 = vector.shape_cast %497 : vector<1x1x64xf32> to vector<1x64xf32>
      %c0_299 = arith.constant 0 : index
      %c0_300 = arith.constant 0 : index
      %c0_301 = arith.constant 0 : index
      %499 = vector.load %arg37[%c0_299, %c0_300, %c0_301] : memref<2x64x64xbf16, #tpu.memory_space<vmem>>, vector<1x64x64xbf16>
      %500 = vector.shape_cast %499 : vector<1x64x64xbf16> to vector<64x64xbf16>
      %c0_302 = arith.constant 0 : index
      %c0_303 = arith.constant 0 : index
      %c0_304 = arith.constant 0 : index
      %501 = vector.load %arg38[%c0_302, %c0_303, %c0_304] : memref<2x1x64xf32, #tpu.memory_space<vmem>>, vector<1x1x64xf32>
      %502 = vector.shape_cast %501 : vector<1x1x64xf32> to vector<1x64xf32>
      %c0_305 = arith.constant 0 : index
      %c0_306 = arith.constant 0 : index
      %c0_307 = arith.constant 0 : index
      %503 = vector.load %arg39[%c0_305, %c0_306, %c0_307] : memref<2x64x64xbf16, #tpu.memory_space<vmem>>, vector<1x64x64xbf16>
      %504 = vector.shape_cast %503 : vector<1x64x64xbf16> to vector<64x64xbf16>
      %c0_308 = arith.constant 0 : index
      %c0_309 = arith.constant 0 : index
      %c0_310 = arith.constant 0 : index
      %505 = vector.load %arg40[%c0_308, %c0_309, %c0_310] : memref<2x1x64xf32, #tpu.memory_space<vmem>>, vector<1x1x64xf32>
      %506 = vector.shape_cast %505 : vector<1x1x64xf32> to vector<1x64xf32>
      %c0_311 = arith.constant 0 : index
      %c0_312 = arith.constant 0 : index
      %c0_313 = arith.constant 0 : index
      %507 = vector.load %arg41[%c0_311, %c0_312, %c0_313] : memref<2x1x64xf32, #tpu.memory_space<vmem>>, vector<1x1x64xf32>
      %508 = vector.shape_cast %507 : vector<1x1x64xf32> to vector<1x64xf32>
      %c0_314 = arith.constant 0 : index
      %c0_315 = arith.constant 0 : index
      %c0_316 = arith.constant 0 : index
      %509 = vector.load %arg42[%c0_314, %c0_315, %c0_316] : memref<2x1x64xf32, #tpu.memory_space<vmem>>, vector<1x1x64xf32>
      %510 = vector.shape_cast %509 : vector<1x1x64xf32> to vector<1x64xf32>
      %c0_317 = arith.constant 0 : index
      %c0_318 = arith.constant 0 : index
      %c0_319 = arith.constant 0 : index
      %511 = vector.load %arg43[%c0_317, %c0_318, %c0_319] : memref<2x64x256xbf16, #tpu.memory_space<vmem>>, vector<1x64x256xbf16>
      %512 = vector.shape_cast %511 : vector<1x64x256xbf16> to vector<64x256xbf16>
      %c0_320 = arith.constant 0 : index
      %c0_321 = arith.constant 0 : index
      %c0_322 = arith.constant 0 : index
      %513 = vector.load %arg44[%c0_320, %c0_321, %c0_322] : memref<2x1x256xf32, #tpu.memory_space<vmem>>, vector<1x1x256xf32>
      %514 = vector.shape_cast %513 : vector<1x1x256xf32> to vector<1x256xf32>
      %c0_323 = arith.constant 0 : index
      %c0_324 = arith.constant 0 : index
      %c0_325 = arith.constant 0 : index
      %515 = vector.load %arg45[%c0_323, %c0_324, %c0_325] : memref<2x256x64xbf16, #tpu.memory_space<vmem>>, vector<1x256x64xbf16>
      %516 = vector.shape_cast %515 : vector<1x256x64xbf16> to vector<256x64xbf16>
      %c0_326 = arith.constant 0 : index
      %c0_327 = arith.constant 0 : index
      %c0_328 = arith.constant 0 : index
      %517 = vector.load %arg46[%c0_326, %c0_327, %c0_328] : memref<2x1x64xf32, #tpu.memory_space<vmem>>, vector<1x1x64xf32>
      %518 = vector.shape_cast %517 : vector<1x1x64xf32> to vector<1x64xf32>
      %cst_329 = arith.constant dense<0.000000e+00> : vector<24xf32>
      %519 = vector.multi_reduction <add>, %485, %cst_329 [1] : vector<24x64xf32> to vector<24xf32>
      %520 = vector.shape_cast %519 : vector<24xf32> to vector<24x1xf32>
      %cst_330 = arith.constant 6.400000e+01 : f32
      %521 = vector.broadcast %cst_330 : f32 to vector<24x1xf32>
      %522 = arith.divf %520, %521 : vector<24x1xf32>
      %523 = vector.broadcast %522 : vector<24x1xf32> to vector<24x64xf32>
      %524 = arith.subf %485, %523 : vector<24x64xf32>
      %525 = arith.mulf %524, %524 : vector<24x64xf32>
      %cst_331 = arith.constant dense<0.000000e+00> : vector<24xf32>
      %526 = vector.multi_reduction <add>, %525, %cst_331 [1] : vector<24x64xf32> to vector<24xf32>
      %527 = vector.shape_cast %526 : vector<24xf32> to vector<24x1xf32>
      %cst_332 = arith.constant 6.400000e+01 : f32
      %528 = vector.broadcast %cst_332 : f32 to vector<24x1xf32>
      %529 = arith.divf %527, %528 : vector<24x1xf32>
      %cst_333 = arith.constant 9.99999974E-6 : f32
      %530 = vector.broadcast %cst_333 : f32 to vector<24x1xf32>
      %531 = arith.addf %529, %530 : vector<24x1xf32>
      %532 = math.rsqrt %531 : vector<24x1xf32>
      %533 = vector.broadcast %532 : vector<24x1xf32> to vector<24x64xf32>
      %534 = arith.mulf %524, %533 : vector<24x64xf32>
      %535 = vector.broadcast %488 : vector<1x64xf32> to vector<24x64xf32>
      %536 = arith.mulf %534, %535 : vector<24x64xf32>
      %537 = vector.broadcast %490 : vector<1x64xf32> to vector<24x64xf32>
      %538 = arith.addf %536, %537 : vector<24x64xf32>
      %539 = arith.truncf %538 : vector<24x64xf32> to vector<24x64xbf16>
      %cst_334 = arith.constant dense<0.000000e+00> : vector<24x64xf32>
      %540 = tpu.matmul %539, %492, %cst_334 {dimension_numbers = #tpu.dot_dimension_numbers<[1], [0], [0], [1], [0, 0, 1, 1], [], []>} : vector<24x64xbf16>, vector<64x64xbf16>, vector<24x64xf32> -> vector<24x64xf32>
      %541 = vector.broadcast %494 : vector<1x64xf32> to vector<24x64xf32>
      %542 = arith.addf %540, %541 : vector<24x64xf32>
      %543 = arith.truncf %538 : vector<24x64xf32> to vector<24x64xbf16>
      %cst_335 = arith.constant dense<0.000000e+00> : vector<24x64xf32>
      %544 = tpu.matmul %543, %496, %cst_335 {dimension_numbers = #tpu.dot_dimension_numbers<[1], [0], [0], [1], [0, 0, 1, 1], [], []>} : vector<24x64xbf16>, vector<64x64xbf16>, vector<24x64xf32> -> vector<24x64xf32>
      %545 = vector.broadcast %498 : vector<1x64xf32> to vector<24x64xf32>
      %546 = arith.addf %544, %545 : vector<24x64xf32>
      %547 = arith.truncf %538 : vector<24x64xf32> to vector<24x64xbf16>
      %cst_336 = arith.constant dense<0.000000e+00> : vector<24x64xf32>
      %548 = tpu.matmul %547, %500, %cst_336 {dimension_numbers = #tpu.dot_dimension_numbers<[1], [0], [0], [1], [0, 0, 1, 1], [], []>} : vector<24x64xbf16>, vector<64x64xbf16>, vector<24x64xf32> -> vector<24x64xf32>
      %549 = vector.broadcast %502 : vector<1x64xf32> to vector<24x64xf32>
      %550 = arith.addf %548, %549 : vector<24x64xf32>
      %551 = vector.extract_strided_slice %542 {offsets = [0, 0], sizes = [24, 16], strides = [1, 1]} : vector<24x64xf32> to vector<24x16xf32>
      %552 = arith.truncf %551 : vector<24x16xf32> to vector<24x16xbf16>
      %553 = vector.extract_strided_slice %546 {offsets = [0, 0], sizes = [24, 16], strides = [1, 1]} : vector<24x64xf32> to vector<24x16xf32>
      %554 = arith.truncf %553 : vector<24x16xf32> to vector<24x16xbf16>
      %cst_337 = arith.constant dense<0.000000e+00> : vector<24x24xf32>
      %555 = tpu.matmul %552, %554, %cst_337 {dimension_numbers = #tpu.dot_dimension_numbers<[1], [1], [0], [0], [0, 0, 1, 0], [], []>} : vector<24x16xbf16>, vector<24x16xbf16>, vector<24x24xf32> -> vector<24x24xf32>
      %cst_338 = arith.constant 2.500000e-01 : f32
      %556 = vector.broadcast %cst_338 : f32 to vector<24x24xf32>
      %557 = arith.mulf %555, %556 : vector<24x24xf32>
      %558 = arith.addf %557, %486 : vector<24x24xf32>
      %cst_339 = arith.constant dense<0xFF800000> : vector<24xf32>
      %559 = vector.multi_reduction <maximumf>, %558, %cst_339 [1] : vector<24x24xf32> to vector<24xf32>
      %560 = vector.shape_cast %559 : vector<24xf32> to vector<24x1xf32>
      %561 = vector.broadcast %560 : vector<24x1xf32> to vector<24x24xf32>
      %562 = arith.subf %558, %561 : vector<24x24xf32>
      %563 = math.exp %562 : vector<24x24xf32>
      %cst_340 = arith.constant dense<0.000000e+00> : vector<24xf32>
      %564 = vector.multi_reduction <add>, %563, %cst_340 [1] : vector<24x24xf32> to vector<24xf32>
      %565 = vector.shape_cast %564 : vector<24xf32> to vector<24x1xf32>
      %566 = tpu.reciprocal %565 {approx = true} : vector<24x1xf32> -> vector<24x1xf32>
      %567 = vector.broadcast %566 : vector<24x1xf32> to vector<24x24xf32>
      %568 = arith.mulf %563, %567 : vector<24x24xf32>
      %569 = vector.extract_strided_slice %550 {offsets = [0, 0], sizes = [24, 16], strides = [1, 1]} : vector<24x64xf32> to vector<24x16xf32>
      %570 = arith.truncf %568 : vector<24x24xf32> to vector<24x24xbf16>
      %571 = arith.truncf %569 : vector<24x16xf32> to vector<24x16xbf16>
      %cst_341 = arith.constant dense<0.000000e+00> : vector<24x16xf32>
      %572 = tpu.matmul %570, %571, %cst_341 {dimension_numbers = #tpu.dot_dimension_numbers<[1], [0], [0], [1], [0, 0, 1, 1], [], []>} : vector<24x24xbf16>, vector<24x16xbf16>, vector<24x16xf32> -> vector<24x16xf32>
      %c0_342 = arith.constant 0 : index
      %c0_343 = arith.constant 0 : index
      %573 = vector.load %arg51[%c0_342, %c0_343] : memref<24x64xf32, #tpu.memory_space<vmem>>, vector<24x16xf32>
      tpu.vector_store %arg51[%c0_342, %c0_343], %572 {strides = array<i32>} : memref<24x64xf32, #tpu.memory_space<vmem>>, vector<24x16xf32>,
      %574 = vector.extract_strided_slice %542 {offsets = [0, 16], sizes = [24, 16], strides = [1, 1]} : vector<24x64xf32> to vector<24x16xf32>
      %575 = arith.truncf %574 : vector<24x16xf32> to vector<24x16xbf16>
      %576 = vector.extract_strided_slice %546 {offsets = [0, 16], sizes = [24, 16], strides = [1, 1]} : vector<24x64xf32> to vector<24x16xf32>
      %577 = arith.truncf %576 : vector<24x16xf32> to vector<24x16xbf16>
      %cst_344 = arith.constant dense<0.000000e+00> : vector<24x24xf32>
      %578 = tpu.matmul %575, %577, %cst_344 {dimension_numbers = #tpu.dot_dimension_numbers<[1], [1], [0], [0], [0, 0, 1, 0], [], []>} : vector<24x16xbf16>, vector<24x16xbf16>, vector<24x24xf32> -> vector<24x24xf32>
      %cst_345 = arith.constant 2.500000e-01 : f32
      %579 = vector.broadcast %cst_345 : f32 to vector<24x24xf32>
      %580 = arith.mulf %578, %579 : vector<24x24xf32>
      %581 = arith.addf %580, %486 : vector<24x24xf32>
      %cst_346 = arith.constant dense<0xFF800000> : vector<24xf32>
      %582 = vector.multi_reduction <maximumf>, %581, %cst_346 [1] : vector<24x24xf32> to vector<24xf32>
      %583 = vector.shape_cast %582 : vector<24xf32> to vector<24x1xf32>
      %584 = vector.broadcast %583 : vector<24x1xf32> to vector<24x24xf32>
      %585 = arith.subf %581, %584 : vector<24x24xf32>
      %586 = math.exp %585 : vector<24x24xf32>
      %cst_347 = arith.constant dense<0.000000e+00> : vector<24xf32>
      %587 = vector.multi_reduction <add>, %586, %cst_347 [1] : vector<24x24xf32> to vector<24xf32>
      %588 = vector.shape_cast %587 : vector<24xf32> to vector<24x1xf32>
      %589 = tpu.reciprocal %588 {approx = true} : vector<24x1xf32> -> vector<24x1xf32>
      %590 = vector.broadcast %589 : vector<24x1xf32> to vector<24x24xf32>
      %591 = arith.mulf %586, %590 : vector<24x24xf32>
      %592 = vector.extract_strided_slice %550 {offsets = [0, 16], sizes = [24, 16], strides = [1, 1]} : vector<24x64xf32> to vector<24x16xf32>
      %593 = arith.truncf %591 : vector<24x24xf32> to vector<24x24xbf16>
      %594 = arith.truncf %592 : vector<24x16xf32> to vector<24x16xbf16>
      %cst_348 = arith.constant dense<0.000000e+00> : vector<24x16xf32>
      %595 = tpu.matmul %593, %594, %cst_348 {dimension_numbers = #tpu.dot_dimension_numbers<[1], [0], [0], [1], [0, 0, 1, 1], [], []>} : vector<24x24xbf16>, vector<24x16xbf16>, vector<24x16xf32> -> vector<24x16xf32>
      %c0_349 = arith.constant 0 : index
      %c16_350 = arith.constant 16 : index
      %596 = vector.load %arg51[%c0_349, %c16_350] : memref<24x64xf32, #tpu.memory_space<vmem>>, vector<24x16xf32>
      tpu.vector_store %arg51[%c0_349, %c16_350], %595 {strides = array<i32>} : memref<24x64xf32, #tpu.memory_space<vmem>>, vector<24x16xf32>,
      %597 = vector.extract_strided_slice %542 {offsets = [0, 32], sizes = [24, 16], strides = [1, 1]} : vector<24x64xf32> to vector<24x16xf32>
      %598 = arith.truncf %597 : vector<24x16xf32> to vector<24x16xbf16>
      %599 = vector.extract_strided_slice %546 {offsets = [0, 32], sizes = [24, 16], strides = [1, 1]} : vector<24x64xf32> to vector<24x16xf32>
      %600 = arith.truncf %599 : vector<24x16xf32> to vector<24x16xbf16>
      %cst_351 = arith.constant dense<0.000000e+00> : vector<24x24xf32>
      %601 = tpu.matmul %598, %600, %cst_351 {dimension_numbers = #tpu.dot_dimension_numbers<[1], [1], [0], [0], [0, 0, 1, 0], [], []>} : vector<24x16xbf16>, vector<24x16xbf16>, vector<24x24xf32> -> vector<24x24xf32>
      %cst_352 = arith.constant 2.500000e-01 : f32
      %602 = vector.broadcast %cst_352 : f32 to vector<24x24xf32>
      %603 = arith.mulf %601, %602 : vector<24x24xf32>
      %604 = arith.addf %603, %486 : vector<24x24xf32>
      %cst_353 = arith.constant dense<0xFF800000> : vector<24xf32>
      %605 = vector.multi_reduction <maximumf>, %604, %cst_353 [1] : vector<24x24xf32> to vector<24xf32>
      %606 = vector.shape_cast %605 : vector<24xf32> to vector<24x1xf32>
      %607 = vector.broadcast %606 : vector<24x1xf32> to vector<24x24xf32>
      %608 = arith.subf %604, %607 : vector<24x24xf32>
      %609 = math.exp %608 : vector<24x24xf32>
      %cst_354 = arith.constant dense<0.000000e+00> : vector<24xf32>
      %610 = vector.multi_reduction <add>, %609, %cst_354 [1] : vector<24x24xf32> to vector<24xf32>
      %611 = vector.shape_cast %610 : vector<24xf32> to vector<24x1xf32>
      %612 = tpu.reciprocal %611 {approx = true} : vector<24x1xf32> -> vector<24x1xf32>
      %613 = vector.broadcast %612 : vector<24x1xf32> to vector<24x24xf32>
      %614 = arith.mulf %609, %613 : vector<24x24xf32>
      %615 = vector.extract_strided_slice %550 {offsets = [0, 32], sizes = [24, 16], strides = [1, 1]} : vector<24x64xf32> to vector<24x16xf32>
      %616 = arith.truncf %614 : vector<24x24xf32> to vector<24x24xbf16>
      %617 = arith.truncf %615 : vector<24x16xf32> to vector<24x16xbf16>
      %cst_355 = arith.constant dense<0.000000e+00> : vector<24x16xf32>
      %618 = tpu.matmul %616, %617, %cst_355 {dimension_numbers = #tpu.dot_dimension_numbers<[1], [0], [0], [1], [0, 0, 1, 1], [], []>} : vector<24x24xbf16>, vector<24x16xbf16>, vector<24x16xf32> -> vector<24x16xf32>
      %c0_356 = arith.constant 0 : index
      %c32_357 = arith.constant 32 : index
      %619 = vector.load %arg51[%c0_356, %c32_357] : memref<24x64xf32, #tpu.memory_space<vmem>>, vector<24x16xf32>
      tpu.vector_store %arg51[%c0_356, %c32_357], %618 {strides = array<i32>} : memref<24x64xf32, #tpu.memory_space<vmem>>, vector<24x16xf32>,
      %620 = vector.extract_strided_slice %542 {offsets = [0, 48], sizes = [24, 16], strides = [1, 1]} : vector<24x64xf32> to vector<24x16xf32>
      %621 = arith.truncf %620 : vector<24x16xf32> to vector<24x16xbf16>
      %622 = vector.extract_strided_slice %546 {offsets = [0, 48], sizes = [24, 16], strides = [1, 1]} : vector<24x64xf32> to vector<24x16xf32>
      %623 = arith.truncf %622 : vector<24x16xf32> to vector<24x16xbf16>
      %cst_358 = arith.constant dense<0.000000e+00> : vector<24x24xf32>
      %624 = tpu.matmul %621, %623, %cst_358 {dimension_numbers = #tpu.dot_dimension_numbers<[1], [1], [0], [0], [0, 0, 1, 0], [], []>} : vector<24x16xbf16>, vector<24x16xbf16>, vector<24x24xf32> -> vector<24x24xf32>
      %cst_359 = arith.constant 2.500000e-01 : f32
      %625 = vector.broadcast %cst_359 : f32 to vector<24x24xf32>
      %626 = arith.mulf %624, %625 : vector<24x24xf32>
      %627 = arith.addf %626, %486 : vector<24x24xf32>
      %cst_360 = arith.constant dense<0xFF800000> : vector<24xf32>
      %628 = vector.multi_reduction <maximumf>, %627, %cst_360 [1] : vector<24x24xf32> to vector<24xf32>
      %629 = vector.shape_cast %628 : vector<24xf32> to vector<24x1xf32>
      %630 = vector.broadcast %629 : vector<24x1xf32> to vector<24x24xf32>
      %631 = arith.subf %627, %630 : vector<24x24xf32>
      %632 = math.exp %631 : vector<24x24xf32>
      %cst_361 = arith.constant dense<0.000000e+00> : vector<24xf32>
      %633 = vector.multi_reduction <add>, %632, %cst_361 [1] : vector<24x24xf32> to vector<24xf32>
      %634 = vector.shape_cast %633 : vector<24xf32> to vector<24x1xf32>
      %635 = tpu.reciprocal %634 {approx = true} : vector<24x1xf32> -> vector<24x1xf32>
      %636 = vector.broadcast %635 : vector<24x1xf32> to vector<24x24xf32>
      %637 = arith.mulf %632, %636 : vector<24x24xf32>
      %638 = vector.extract_strided_slice %550 {offsets = [0, 48], sizes = [24, 16], strides = [1, 1]} : vector<24x64xf32> to vector<24x16xf32>
      %639 = arith.truncf %637 : vector<24x24xf32> to vector<24x24xbf16>
      %640 = arith.truncf %638 : vector<24x16xf32> to vector<24x16xbf16>
      %cst_362 = arith.constant dense<0.000000e+00> : vector<24x16xf32>
      %641 = tpu.matmul %639, %640, %cst_362 {dimension_numbers = #tpu.dot_dimension_numbers<[1], [0], [0], [1], [0, 0, 1, 1], [], []>} : vector<24x24xbf16>, vector<24x16xbf16>, vector<24x16xf32> -> vector<24x16xf32>
      %c0_363 = arith.constant 0 : index
      %c48_364 = arith.constant 48 : index
      %642 = vector.load %arg51[%c0_363, %c48_364] : memref<24x64xf32, #tpu.memory_space<vmem>>, vector<24x16xf32>
      tpu.vector_store %arg51[%c0_363, %c48_364], %641 {strides = array<i32>} : memref<24x64xf32, #tpu.memory_space<vmem>>, vector<24x16xf32>,
      %c0_365 = arith.constant 0 : index
      %c0_366 = arith.constant 0 : index
      %643 = vector.load %arg51[%c0_365, %c0_366] : memref<24x64xf32, #tpu.memory_space<vmem>>, vector<24x64xf32>
      %644 = arith.truncf %643 : vector<24x64xf32> to vector<24x64xbf16>
      %cst_367 = arith.constant dense<0.000000e+00> : vector<24x64xf32>
      %645 = tpu.matmul %644, %504, %cst_367 {dimension_numbers = #tpu.dot_dimension_numbers<[1], [0], [0], [1], [0, 0, 1, 1], [], []>} : vector<24x64xbf16>, vector<64x64xbf16>, vector<24x64xf32> -> vector<24x64xf32>
      %646 = arith.addf %485, %645 : vector<24x64xf32>
      %647 = vector.broadcast %506 : vector<1x64xf32> to vector<24x64xf32>
      %648 = arith.addf %646, %647 : vector<24x64xf32>
      %cst_368 = arith.constant dense<0.000000e+00> : vector<24xf32>
      %649 = vector.multi_reduction <add>, %648, %cst_368 [1] : vector<24x64xf32> to vector<24xf32>
      %650 = vector.shape_cast %649 : vector<24xf32> to vector<24x1xf32>
      %cst_369 = arith.constant 6.400000e+01 : f32
      %651 = vector.broadcast %cst_369 : f32 to vector<24x1xf32>
      %652 = arith.divf %650, %651 : vector<24x1xf32>
      %653 = vector.broadcast %652 : vector<24x1xf32> to vector<24x64xf32>
      %654 = arith.subf %648, %653 : vector<24x64xf32>
      %655 = arith.mulf %654, %654 : vector<24x64xf32>
      %cst_370 = arith.constant dense<0.000000e+00> : vector<24xf32>
      %656 = vector.multi_reduction <add>, %655, %cst_370 [1] : vector<24x64xf32> to vector<24xf32>
      %657 = vector.shape_cast %656 : vector<24xf32> to vector<24x1xf32>
      %cst_371 = arith.constant 6.400000e+01 : f32
      %658 = vector.broadcast %cst_371 : f32 to vector<24x1xf32>
      %659 = arith.divf %657, %658 : vector<24x1xf32>
      %cst_372 = arith.constant 9.99999974E-6 : f32
      %660 = vector.broadcast %cst_372 : f32 to vector<24x1xf32>
      %661 = arith.addf %659, %660 : vector<24x1xf32>
      %662 = math.rsqrt %661 : vector<24x1xf32>
      %663 = vector.broadcast %662 : vector<24x1xf32> to vector<24x64xf32>
      %664 = arith.mulf %654, %663 : vector<24x64xf32>
      %665 = vector.broadcast %508 : vector<1x64xf32> to vector<24x64xf32>
      %666 = arith.mulf %664, %665 : vector<24x64xf32>
      %667 = vector.broadcast %510 : vector<1x64xf32> to vector<24x64xf32>
      %668 = arith.addf %666, %667 : vector<24x64xf32>
      %669 = arith.truncf %668 : vector<24x64xf32> to vector<24x64xbf16>
      %cst_373 = arith.constant dense<0.000000e+00> : vector<24x256xf32>
      %670 = tpu.matmul %669, %512, %cst_373 {dimension_numbers = #tpu.dot_dimension_numbers<[1], [0], [0], [1], [0, 0, 1, 1], [], []>} : vector<24x64xbf16>, vector<64x256xbf16>, vector<24x256xf32> -> vector<24x256xf32>
      %671 = vector.broadcast %514 : vector<1x256xf32> to vector<24x256xf32>
      %672 = arith.addf %670, %671 : vector<24x256xf32>
      %cst_374 = arith.constant 1.702000e+00 : f32
      %673 = vector.broadcast %cst_374 : f32 to vector<24x256xf32>
      %674 = arith.mulf %673, %672 : vector<24x256xf32>
      %675 = arith.negf %674 : vector<24x256xf32>
      %676 = math.exp %675 : vector<24x256xf32>
      %cst_375 = arith.constant 1.000000e+00 : f32
      %677 = vector.broadcast %cst_375 : f32 to vector<24x256xf32>
      %678 = arith.addf %677, %676 : vector<24x256xf32>
      %679 = arith.divf %677, %678 : vector<24x256xf32>
      %680 = arith.mulf %672, %679 : vector<24x256xf32>
      %681 = arith.truncf %680 : vector<24x256xf32> to vector<24x256xbf16>
      %cst_376 = arith.constant dense<0.000000e+00> : vector<24x64xf32>
      %682 = tpu.matmul %681, %516, %cst_376 {dimension_numbers = #tpu.dot_dimension_numbers<[1], [0], [0], [1], [0, 0, 1, 1], [], []>} : vector<24x256xbf16>, vector<256x64xbf16>, vector<24x64xf32> -> vector<24x64xf32>
      %683 = arith.addf %648, %682 : vector<24x64xf32>
      %684 = vector.broadcast %518 : vector<1x64xf32> to vector<24x64xf32>
      %685 = arith.addf %683, %684 : vector<24x64xf32>
      %c1_377 = arith.constant 1 : index
      %c0_378 = arith.constant 0 : index
      %c0_379 = arith.constant 0 : index
      %686 = vector.load %arg31[%c1_377, %c0_378, %c0_379] : memref<2x1x64xf32, #tpu.memory_space<vmem>>, vector<1x1x64xf32>
      %687 = vector.shape_cast %686 : vector<1x1x64xf32> to vector<1x64xf32>
      %c1_380 = arith.constant 1 : index
      %c0_381 = arith.constant 0 : index
      %c0_382 = arith.constant 0 : index
      %688 = vector.load %arg32[%c1_380, %c0_381, %c0_382] : memref<2x1x64xf32, #tpu.memory_space<vmem>>, vector<1x1x64xf32>
      %689 = vector.shape_cast %688 : vector<1x1x64xf32> to vector<1x64xf32>
      %c1_383 = arith.constant 1 : index
      %c0_384 = arith.constant 0 : index
      %c0_385 = arith.constant 0 : index
      %690 = vector.load %arg33[%c1_383, %c0_384, %c0_385] : memref<2x64x64xbf16, #tpu.memory_space<vmem>>, vector<1x64x64xbf16>
      %691 = vector.shape_cast %690 : vector<1x64x64xbf16> to vector<64x64xbf16>
      %c1_386 = arith.constant 1 : index
      %c0_387 = arith.constant 0 : index
      %c0_388 = arith.constant 0 : index
      %692 = vector.load %arg34[%c1_386, %c0_387, %c0_388] : memref<2x1x64xf32, #tpu.memory_space<vmem>>, vector<1x1x64xf32>
      %693 = vector.shape_cast %692 : vector<1x1x64xf32> to vector<1x64xf32>
      %c1_389 = arith.constant 1 : index
      %c0_390 = arith.constant 0 : index
      %c0_391 = arith.constant 0 : index
      %694 = vector.load %arg35[%c1_389, %c0_390, %c0_391] : memref<2x64x64xbf16, #tpu.memory_space<vmem>>, vector<1x64x64xbf16>
      %695 = vector.shape_cast %694 : vector<1x64x64xbf16> to vector<64x64xbf16>
      %c1_392 = arith.constant 1 : index
      %c0_393 = arith.constant 0 : index
      %c0_394 = arith.constant 0 : index
      %696 = vector.load %arg36[%c1_392, %c0_393, %c0_394] : memref<2x1x64xf32, #tpu.memory_space<vmem>>, vector<1x1x64xf32>
      %697 = vector.shape_cast %696 : vector<1x1x64xf32> to vector<1x64xf32>
      %c1_395 = arith.constant 1 : index
      %c0_396 = arith.constant 0 : index
      %c0_397 = arith.constant 0 : index
      %698 = vector.load %arg37[%c1_395, %c0_396, %c0_397] : memref<2x64x64xbf16, #tpu.memory_space<vmem>>, vector<1x64x64xbf16>
      %699 = vector.shape_cast %698 : vector<1x64x64xbf16> to vector<64x64xbf16>
      %c1_398 = arith.constant 1 : index
      %c0_399 = arith.constant 0 : index
      %c0_400 = arith.constant 0 : index
      %700 = vector.load %arg38[%c1_398, %c0_399, %c0_400] : memref<2x1x64xf32, #tpu.memory_space<vmem>>, vector<1x1x64xf32>
      %701 = vector.shape_cast %700 : vector<1x1x64xf32> to vector<1x64xf32>
      %c1_401 = arith.constant 1 : index
      %c0_402 = arith.constant 0 : index
      %c0_403 = arith.constant 0 : index
      %702 = vector.load %arg39[%c1_401, %c0_402, %c0_403] : memref<2x64x64xbf16, #tpu.memory_space<vmem>>, vector<1x64x64xbf16>
      %703 = vector.shape_cast %702 : vector<1x64x64xbf16> to vector<64x64xbf16>
      %c1_404 = arith.constant 1 : index
      %c0_405 = arith.constant 0 : index
      %c0_406 = arith.constant 0 : index
      %704 = vector.load %arg40[%c1_404, %c0_405, %c0_406] : memref<2x1x64xf32, #tpu.memory_space<vmem>>, vector<1x1x64xf32>
      %705 = vector.shape_cast %704 : vector<1x1x64xf32> to vector<1x64xf32>
      %c1_407 = arith.constant 1 : index
      %c0_408 = arith.constant 0 : index
      %c0_409 = arith.constant 0 : index
      %706 = vector.load %arg41[%c1_407, %c0_408, %c0_409] : memref<2x1x64xf32, #tpu.memory_space<vmem>>, vector<1x1x64xf32>
      %707 = vector.shape_cast %706 : vector<1x1x64xf32> to vector<1x64xf32>
      %c1_410 = arith.constant 1 : index
      %c0_411 = arith.constant 0 : index
      %c0_412 = arith.constant 0 : index
      %708 = vector.load %arg42[%c1_410, %c0_411, %c0_412] : memref<2x1x64xf32, #tpu.memory_space<vmem>>, vector<1x1x64xf32>
      %709 = vector.shape_cast %708 : vector<1x1x64xf32> to vector<1x64xf32>
      %c1_413 = arith.constant 1 : index
      %c0_414 = arith.constant 0 : index
      %c0_415 = arith.constant 0 : index
      %710 = vector.load %arg43[%c1_413, %c0_414, %c0_415] : memref<2x64x256xbf16, #tpu.memory_space<vmem>>, vector<1x64x256xbf16>
      %711 = vector.shape_cast %710 : vector<1x64x256xbf16> to vector<64x256xbf16>
      %c1_416 = arith.constant 1 : index
      %c0_417 = arith.constant 0 : index
      %c0_418 = arith.constant 0 : index
      %712 = vector.load %arg44[%c1_416, %c0_417, %c0_418] : memref<2x1x256xf32, #tpu.memory_space<vmem>>, vector<1x1x256xf32>
      %713 = vector.shape_cast %712 : vector<1x1x256xf32> to vector<1x256xf32>
      %c1_419 = arith.constant 1 : index
      %c0_420 = arith.constant 0 : index
      %c0_421 = arith.constant 0 : index
      %714 = vector.load %arg45[%c1_419, %c0_420, %c0_421] : memref<2x256x64xbf16, #tpu.memory_space<vmem>>, vector<1x256x64xbf16>
      %715 = vector.shape_cast %714 : vector<1x256x64xbf16> to vector<256x64xbf16>
      %c1_422 = arith.constant 1 : index
      %c0_423 = arith.constant 0 : index
      %c0_424 = arith.constant 0 : index
      %716 = vector.load %arg46[%c1_422, %c0_423, %c0_424] : memref<2x1x64xf32, #tpu.memory_space<vmem>>, vector<1x1x64xf32>
      %717 = vector.shape_cast %716 : vector<1x1x64xf32> to vector<1x64xf32>
      %cst_425 = arith.constant dense<0.000000e+00> : vector<24xf32>
      %718 = vector.multi_reduction <add>, %685, %cst_425 [1] : vector<24x64xf32> to vector<24xf32>
      %719 = vector.shape_cast %718 : vector<24xf32> to vector<24x1xf32>
      %cst_426 = arith.constant 6.400000e+01 : f32
      %720 = vector.broadcast %cst_426 : f32 to vector<24x1xf32>
      %721 = arith.divf %719, %720 : vector<24x1xf32>
      %722 = vector.broadcast %721 : vector<24x1xf32> to vector<24x64xf32>
      %723 = arith.subf %685, %722 : vector<24x64xf32>
      %724 = arith.mulf %723, %723 : vector<24x64xf32>
      %cst_427 = arith.constant dense<0.000000e+00> : vector<24xf32>
      %725 = vector.multi_reduction <add>, %724, %cst_427 [1] : vector<24x64xf32> to vector<24xf32>
      %726 = vector.shape_cast %725 : vector<24xf32> to vector<24x1xf32>
      %cst_428 = arith.constant 6.400000e+01 : f32
      %727 = vector.broadcast %cst_428 : f32 to vector<24x1xf32>
      %728 = arith.divf %726, %727 : vector<24x1xf32>
      %cst_429 = arith.constant 9.99999974E-6 : f32
      %729 = vector.broadcast %cst_429 : f32 to vector<24x1xf32>
      %730 = arith.addf %728, %729 : vector<24x1xf32>
      %731 = math.rsqrt %730 : vector<24x1xf32>
      %732 = vector.broadcast %731 : vector<24x1xf32> to vector<24x64xf32>
      %733 = arith.mulf %723, %732 : vector<24x64xf32>
      %734 = vector.broadcast %687 : vector<1x64xf32> to vector<24x64xf32>
      %735 = arith.mulf %733, %734 : vector<24x64xf32>
      %736 = vector.broadcast %689 : vector<1x64xf32> to vector<24x64xf32>
      %737 = arith.addf %735, %736 : vector<24x64xf32>
      %738 = arith.truncf %737 : vector<24x64xf32> to vector<24x64xbf16>
      %cst_430 = arith.constant dense<0.000000e+00> : vector<24x64xf32>
      %739 = tpu.matmul %738, %691, %cst_430 {dimension_numbers = #tpu.dot_dimension_numbers<[1], [0], [0], [1], [0, 0, 1, 1], [], []>} : vector<24x64xbf16>, vector<64x64xbf16>, vector<24x64xf32> -> vector<24x64xf32>
      %740 = vector.broadcast %693 : vector<1x64xf32> to vector<24x64xf32>
      %741 = arith.addf %739, %740 : vector<24x64xf32>
      %742 = arith.truncf %737 : vector<24x64xf32> to vector<24x64xbf16>
      %cst_431 = arith.constant dense<0.000000e+00> : vector<24x64xf32>
      %743 = tpu.matmul %742, %695, %cst_431 {dimension_numbers = #tpu.dot_dimension_numbers<[1], [0], [0], [1], [0, 0, 1, 1], [], []>} : vector<24x64xbf16>, vector<64x64xbf16>, vector<24x64xf32> -> vector<24x64xf32>
      %744 = vector.broadcast %697 : vector<1x64xf32> to vector<24x64xf32>
      %745 = arith.addf %743, %744 : vector<24x64xf32>
      %746 = arith.truncf %737 : vector<24x64xf32> to vector<24x64xbf16>
      %cst_432 = arith.constant dense<0.000000e+00> : vector<24x64xf32>
      %747 = tpu.matmul %746, %699, %cst_432 {dimension_numbers = #tpu.dot_dimension_numbers<[1], [0], [0], [1], [0, 0, 1, 1], [], []>} : vector<24x64xbf16>, vector<64x64xbf16>, vector<24x64xf32> -> vector<24x64xf32>
      %748 = vector.broadcast %701 : vector<1x64xf32> to vector<24x64xf32>
      %749 = arith.addf %747, %748 : vector<24x64xf32>
      %750 = vector.extract_strided_slice %741 {offsets = [0, 0], sizes = [24, 16], strides = [1, 1]} : vector<24x64xf32> to vector<24x16xf32>
      %751 = arith.truncf %750 : vector<24x16xf32> to vector<24x16xbf16>
      %752 = vector.extract_strided_slice %745 {offsets = [0, 0], sizes = [24, 16], strides = [1, 1]} : vector<24x64xf32> to vector<24x16xf32>
      %753 = arith.truncf %752 : vector<24x16xf32> to vector<24x16xbf16>
      %cst_433 = arith.constant dense<0.000000e+00> : vector<24x24xf32>
      %754 = tpu.matmul %751, %753, %cst_433 {dimension_numbers = #tpu.dot_dimension_numbers<[1], [1], [0], [0], [0, 0, 1, 0], [], []>} : vector<24x16xbf16>, vector<24x16xbf16>, vector<24x24xf32> -> vector<24x24xf32>
      %cst_434 = arith.constant 2.500000e-01 : f32
      %755 = vector.broadcast %cst_434 : f32 to vector<24x24xf32>
      %756 = arith.mulf %754, %755 : vector<24x24xf32>
      %757 = arith.addf %756, %486 : vector<24x24xf32>
      %cst_435 = arith.constant dense<0xFF800000> : vector<24xf32>
      %758 = vector.multi_reduction <maximumf>, %757, %cst_435 [1] : vector<24x24xf32> to vector<24xf32>
      %759 = vector.shape_cast %758 : vector<24xf32> to vector<24x1xf32>
      %760 = vector.broadcast %759 : vector<24x1xf32> to vector<24x24xf32>
      %761 = arith.subf %757, %760 : vector<24x24xf32>
      %762 = math.exp %761 : vector<24x24xf32>
      %cst_436 = arith.constant dense<0.000000e+00> : vector<24xf32>
      %763 = vector.multi_reduction <add>, %762, %cst_436 [1] : vector<24x24xf32> to vector<24xf32>
      %764 = vector.shape_cast %763 : vector<24xf32> to vector<24x1xf32>
      %765 = tpu.reciprocal %764 {approx = true} : vector<24x1xf32> -> vector<24x1xf32>
      %766 = vector.broadcast %765 : vector<24x1xf32> to vector<24x24xf32>
      %767 = arith.mulf %762, %766 : vector<24x24xf32>
      %768 = vector.extract_strided_slice %749 {offsets = [0, 0], sizes = [24, 16], strides = [1, 1]} : vector<24x64xf32> to vector<24x16xf32>
      %769 = arith.truncf %767 : vector<24x24xf32> to vector<24x24xbf16>
      %770 = arith.truncf %768 : vector<24x16xf32> to vector<24x16xbf16>
      %cst_437 = arith.constant dense<0.000000e+00> : vector<24x16xf32>
      %771 = tpu.matmul %769, %770, %cst_437 {dimension_numbers = #tpu.dot_dimension_numbers<[1], [0], [0], [1], [0, 0, 1, 1], [], []>} : vector<24x24xbf16>, vector<24x16xbf16>, vector<24x16xf32> -> vector<24x16xf32>
      %c0_438 = arith.constant 0 : index
      %c0_439 = arith.constant 0 : index
      %772 = vector.load %arg51[%c0_438, %c0_439] : memref<24x64xf32, #tpu.memory_space<vmem>>, vector<24x16xf32>
      tpu.vector_store %arg51[%c0_438, %c0_439], %771 {strides = array<i32>} : memref<24x64xf32, #tpu.memory_space<vmem>>, vector<24x16xf32>,
      %773 = vector.extract_strided_slice %741 {offsets = [0, 16], sizes = [24, 16], strides = [1, 1]} : vector<24x64xf32> to vector<24x16xf32>
      %774 = arith.truncf %773 : vector<24x16xf32> to vector<24x16xbf16>
      %775 = vector.extract_strided_slice %745 {offsets = [0, 16], sizes = [24, 16], strides = [1, 1]} : vector<24x64xf32> to vector<24x16xf32>
      %776 = arith.truncf %775 : vector<24x16xf32> to vector<24x16xbf16>
      %cst_440 = arith.constant dense<0.000000e+00> : vector<24x24xf32>
      %777 = tpu.matmul %774, %776, %cst_440 {dimension_numbers = #tpu.dot_dimension_numbers<[1], [1], [0], [0], [0, 0, 1, 0], [], []>} : vector<24x16xbf16>, vector<24x16xbf16>, vector<24x24xf32> -> vector<24x24xf32>
      %cst_441 = arith.constant 2.500000e-01 : f32
      %778 = vector.broadcast %cst_441 : f32 to vector<24x24xf32>
      %779 = arith.mulf %777, %778 : vector<24x24xf32>
      %780 = arith.addf %779, %486 : vector<24x24xf32>
      %cst_442 = arith.constant dense<0xFF800000> : vector<24xf32>
      %781 = vector.multi_reduction <maximumf>, %780, %cst_442 [1] : vector<24x24xf32> to vector<24xf32>
      %782 = vector.shape_cast %781 : vector<24xf32> to vector<24x1xf32>
      %783 = vector.broadcast %782 : vector<24x1xf32> to vector<24x24xf32>
      %784 = arith.subf %780, %783 : vector<24x24xf32>
      %785 = math.exp %784 : vector<24x24xf32>
      %cst_443 = arith.constant dense<0.000000e+00> : vector<24xf32>
      %786 = vector.multi_reduction <add>, %785, %cst_443 [1] : vector<24x24xf32> to vector<24xf32>
      %787 = vector.shape_cast %786 : vector<24xf32> to vector<24x1xf32>
      %788 = tpu.reciprocal %787 {approx = true} : vector<24x1xf32> -> vector<24x1xf32>
      %789 = vector.broadcast %788 : vector<24x1xf32> to vector<24x24xf32>
      %790 = arith.mulf %785, %789 : vector<24x24xf32>
      %791 = vector.extract_strided_slice %749 {offsets = [0, 16], sizes = [24, 16], strides = [1, 1]} : vector<24x64xf32> to vector<24x16xf32>
      %792 = arith.truncf %790 : vector<24x24xf32> to vector<24x24xbf16>
      %793 = arith.truncf %791 : vector<24x16xf32> to vector<24x16xbf16>
      %cst_444 = arith.constant dense<0.000000e+00> : vector<24x16xf32>
      %794 = tpu.matmul %792, %793, %cst_444 {dimension_numbers = #tpu.dot_dimension_numbers<[1], [0], [0], [1], [0, 0, 1, 1], [], []>} : vector<24x24xbf16>, vector<24x16xbf16>, vector<24x16xf32> -> vector<24x16xf32>
      %c0_445 = arith.constant 0 : index
      %c16_446 = arith.constant 16 : index
      %795 = vector.load %arg51[%c0_445, %c16_446] : memref<24x64xf32, #tpu.memory_space<vmem>>, vector<24x16xf32>
      tpu.vector_store %arg51[%c0_445, %c16_446], %794 {strides = array<i32>} : memref<24x64xf32, #tpu.memory_space<vmem>>, vector<24x16xf32>,
      %796 = vector.extract_strided_slice %741 {offsets = [0, 32], sizes = [24, 16], strides = [1, 1]} : vector<24x64xf32> to vector<24x16xf32>
      %797 = arith.truncf %796 : vector<24x16xf32> to vector<24x16xbf16>
      %798 = vector.extract_strided_slice %745 {offsets = [0, 32], sizes = [24, 16], strides = [1, 1]} : vector<24x64xf32> to vector<24x16xf32>
      %799 = arith.truncf %798 : vector<24x16xf32> to vector<24x16xbf16>
      %cst_447 = arith.constant dense<0.000000e+00> : vector<24x24xf32>
      %800 = tpu.matmul %797, %799, %cst_447 {dimension_numbers = #tpu.dot_dimension_numbers<[1], [1], [0], [0], [0, 0, 1, 0], [], []>} : vector<24x16xbf16>, vector<24x16xbf16>, vector<24x24xf32> -> vector<24x24xf32>
      %cst_448 = arith.constant 2.500000e-01 : f32
      %801 = vector.broadcast %cst_448 : f32 to vector<24x24xf32>
      %802 = arith.mulf %800, %801 : vector<24x24xf32>
      %803 = arith.addf %802, %486 : vector<24x24xf32>
      %cst_449 = arith.constant dense<0xFF800000> : vector<24xf32>
      %804 = vector.multi_reduction <maximumf>, %803, %cst_449 [1] : vector<24x24xf32> to vector<24xf32>
      %805 = vector.shape_cast %804 : vector<24xf32> to vector<24x1xf32>
      %806 = vector.broadcast %805 : vector<24x1xf32> to vector<24x24xf32>
      %807 = arith.subf %803, %806 : vector<24x24xf32>
      %808 = math.exp %807 : vector<24x24xf32>
      %cst_450 = arith.constant dense<0.000000e+00> : vector<24xf32>
      %809 = vector.multi_reduction <add>, %808, %cst_450 [1] : vector<24x24xf32> to vector<24xf32>
      %810 = vector.shape_cast %809 : vector<24xf32> to vector<24x1xf32>
      %811 = tpu.reciprocal %810 {approx = true} : vector<24x1xf32> -> vector<24x1xf32>
      %812 = vector.broadcast %811 : vector<24x1xf32> to vector<24x24xf32>
      %813 = arith.mulf %808, %812 : vector<24x24xf32>
      %814 = vector.extract_strided_slice %749 {offsets = [0, 32], sizes = [24, 16], strides = [1, 1]} : vector<24x64xf32> to vector<24x16xf32>
      %815 = arith.truncf %813 : vector<24x24xf32> to vector<24x24xbf16>
      %816 = arith.truncf %814 : vector<24x16xf32> to vector<24x16xbf16>
      %cst_451 = arith.constant dense<0.000000e+00> : vector<24x16xf32>
      %817 = tpu.matmul %815, %816, %cst_451 {dimension_numbers = #tpu.dot_dimension_numbers<[1], [0], [0], [1], [0, 0, 1, 1], [], []>} : vector<24x24xbf16>, vector<24x16xbf16>, vector<24x16xf32> -> vector<24x16xf32>
      %c0_452 = arith.constant 0 : index
      %c32_453 = arith.constant 32 : index
      %818 = vector.load %arg51[%c0_452, %c32_453] : memref<24x64xf32, #tpu.memory_space<vmem>>, vector<24x16xf32>
      tpu.vector_store %arg51[%c0_452, %c32_453], %817 {strides = array<i32>} : memref<24x64xf32, #tpu.memory_space<vmem>>, vector<24x16xf32>,
      %819 = vector.extract_strided_slice %741 {offsets = [0, 48], sizes = [24, 16], strides = [1, 1]} : vector<24x64xf32> to vector<24x16xf32>
      %820 = arith.truncf %819 : vector<24x16xf32> to vector<24x16xbf16>
      %821 = vector.extract_strided_slice %745 {offsets = [0, 48], sizes = [24, 16], strides = [1, 1]} : vector<24x64xf32> to vector<24x16xf32>
      %822 = arith.truncf %821 : vector<24x16xf32> to vector<24x16xbf16>
      %cst_454 = arith.constant dense<0.000000e+00> : vector<24x24xf32>
      %823 = tpu.matmul %820, %822, %cst_454 {dimension_numbers = #tpu.dot_dimension_numbers<[1], [1], [0], [0], [0, 0, 1, 0], [], []>} : vector<24x16xbf16>, vector<24x16xbf16>, vector<24x24xf32> -> vector<24x24xf32>
      %cst_455 = arith.constant 2.500000e-01 : f32
      %824 = vector.broadcast %cst_455 : f32 to vector<24x24xf32>
      %825 = arith.mulf %823, %824 : vector<24x24xf32>
      %826 = arith.addf %825, %486 : vector<24x24xf32>
      %cst_456 = arith.constant dense<0xFF800000> : vector<24xf32>
      %827 = vector.multi_reduction <maximumf>, %826, %cst_456 [1] : vector<24x24xf32> to vector<24xf32>
      %828 = vector.shape_cast %827 : vector<24xf32> to vector<24x1xf32>
      %829 = vector.broadcast %828 : vector<24x1xf32> to vector<24x24xf32>
      %830 = arith.subf %826, %829 : vector<24x24xf32>
      %831 = math.exp %830 : vector<24x24xf32>
      %cst_457 = arith.constant dense<0.000000e+00> : vector<24xf32>
      %832 = vector.multi_reduction <add>, %831, %cst_457 [1] : vector<24x24xf32> to vector<24xf32>
      %833 = vector.shape_cast %832 : vector<24xf32> to vector<24x1xf32>
      %834 = tpu.reciprocal %833 {approx = true} : vector<24x1xf32> -> vector<24x1xf32>
      %835 = vector.broadcast %834 : vector<24x1xf32> to vector<24x24xf32>
      %836 = arith.mulf %831, %835 : vector<24x24xf32>
      %837 = vector.extract_strided_slice %749 {offsets = [0, 48], sizes = [24, 16], strides = [1, 1]} : vector<24x64xf32> to vector<24x16xf32>
      %838 = arith.truncf %836 : vector<24x24xf32> to vector<24x24xbf16>
      %839 = arith.truncf %837 : vector<24x16xf32> to vector<24x16xbf16>
      %cst_458 = arith.constant dense<0.000000e+00> : vector<24x16xf32>
      %840 = tpu.matmul %838, %839, %cst_458 {dimension_numbers = #tpu.dot_dimension_numbers<[1], [0], [0], [1], [0, 0, 1, 1], [], []>} : vector<24x24xbf16>, vector<24x16xbf16>, vector<24x16xf32> -> vector<24x16xf32>
      %c0_459 = arith.constant 0 : index
      %c48_460 = arith.constant 48 : index
      %841 = vector.load %arg51[%c0_459, %c48_460] : memref<24x64xf32, #tpu.memory_space<vmem>>, vector<24x16xf32>
      tpu.vector_store %arg51[%c0_459, %c48_460], %840 {strides = array<i32>} : memref<24x64xf32, #tpu.memory_space<vmem>>, vector<24x16xf32>,
      %c0_461 = arith.constant 0 : index
      %c0_462 = arith.constant 0 : index
      %842 = vector.load %arg51[%c0_461, %c0_462] : memref<24x64xf32, #tpu.memory_space<vmem>>, vector<24x64xf32>
      %843 = arith.truncf %842 : vector<24x64xf32> to vector<24x64xbf16>
      %cst_463 = arith.constant dense<0.000000e+00> : vector<24x64xf32>
      %844 = tpu.matmul %843, %703, %cst_463 {dimension_numbers = #tpu.dot_dimension_numbers<[1], [0], [0], [1], [0, 0, 1, 1], [], []>} : vector<24x64xbf16>, vector<64x64xbf16>, vector<24x64xf32> -> vector<24x64xf32>
      %845 = arith.addf %685, %844 : vector<24x64xf32>
      %846 = vector.broadcast %705 : vector<1x64xf32> to vector<24x64xf32>
      %847 = arith.addf %845, %846 : vector<24x64xf32>
      %cst_464 = arith.constant dense<0.000000e+00> : vector<24xf32>
      %848 = vector.multi_reduction <add>, %847, %cst_464 [1] : vector<24x64xf32> to vector<24xf32>
      %849 = vector.shape_cast %848 : vector<24xf32> to vector<24x1xf32>
      %cst_465 = arith.constant 6.400000e+01 : f32
      %850 = vector.broadcast %cst_465 : f32 to vector<24x1xf32>
      %851 = arith.divf %849, %850 : vector<24x1xf32>
      %852 = vector.broadcast %851 : vector<24x1xf32> to vector<24x64xf32>
      %853 = arith.subf %847, %852 : vector<24x64xf32>
      %854 = arith.mulf %853, %853 : vector<24x64xf32>
      %cst_466 = arith.constant dense<0.000000e+00> : vector<24xf32>
      %855 = vector.multi_reduction <add>, %854, %cst_466 [1] : vector<24x64xf32> to vector<24xf32>
      %856 = vector.shape_cast %855 : vector<24xf32> to vector<24x1xf32>
      %cst_467 = arith.constant 6.400000e+01 : f32
      %857 = vector.broadcast %cst_467 : f32 to vector<24x1xf32>
      %858 = arith.divf %856, %857 : vector<24x1xf32>
      %cst_468 = arith.constant 9.99999974E-6 : f32
      %859 = vector.broadcast %cst_468 : f32 to vector<24x1xf32>
      %860 = arith.addf %858, %859 : vector<24x1xf32>
      %861 = math.rsqrt %860 : vector<24x1xf32>
      %862 = vector.broadcast %861 : vector<24x1xf32> to vector<24x64xf32>
      %863 = arith.mulf %853, %862 : vector<24x64xf32>
      %864 = vector.broadcast %707 : vector<1x64xf32> to vector<24x64xf32>
      %865 = arith.mulf %863, %864 : vector<24x64xf32>
      %866 = vector.broadcast %709 : vector<1x64xf32> to vector<24x64xf32>
      %867 = arith.addf %865, %866 : vector<24x64xf32>
      %868 = arith.truncf %867 : vector<24x64xf32> to vector<24x64xbf16>
      %cst_469 = arith.constant dense<0.000000e+00> : vector<24x256xf32>
      %869 = tpu.matmul %868, %711, %cst_469 {dimension_numbers = #tpu.dot_dimension_numbers<[1], [0], [0], [1], [0, 0, 1, 1], [], []>} : vector<24x64xbf16>, vector<64x256xbf16>, vector<24x256xf32> -> vector<24x256xf32>
      %870 = vector.broadcast %713 : vector<1x256xf32> to vector<24x256xf32>
      %871 = arith.addf %869, %870 : vector<24x256xf32>
      %cst_470 = arith.constant 1.702000e+00 : f32
      %872 = vector.broadcast %cst_470 : f32 to vector<24x256xf32>
      %873 = arith.mulf %872, %871 : vector<24x256xf32>
      %874 = arith.negf %873 : vector<24x256xf32>
      %875 = math.exp %874 : vector<24x256xf32>
      %cst_471 = arith.constant 1.000000e+00 : f32
      %876 = vector.broadcast %cst_471 : f32 to vector<24x256xf32>
      %877 = arith.addf %876, %875 : vector<24x256xf32>
      %878 = arith.divf %876, %877 : vector<24x256xf32>
      %879 = arith.mulf %871, %878 : vector<24x256xf32>
      %880 = arith.truncf %879 : vector<24x256xf32> to vector<24x256xbf16>
      %cst_472 = arith.constant dense<0.000000e+00> : vector<24x64xf32>
      %881 = tpu.matmul %880, %715, %cst_472 {dimension_numbers = #tpu.dot_dimension_numbers<[1], [0], [0], [1], [0, 0, 1, 1], [], []>} : vector<24x256xbf16>, vector<256x64xbf16>, vector<24x64xf32> -> vector<24x64xf32>
      %882 = arith.addf %847, %881 : vector<24x64xf32>
      %883 = vector.broadcast %717 : vector<1x64xf32> to vector<24x64xf32>
      %884 = arith.addf %882, %883 : vector<24x64xf32>
      %c0_473 = arith.constant 0 : index
      %c0_474 = arith.constant 0 : index
      %885 = vector.load %arg47[%c0_473, %c0_474] : memref<1x64xf32, #tpu.memory_space<vmem>>, vector<1x64xf32>
      %c0_475 = arith.constant 0 : index
      %c0_476 = arith.constant 0 : index
      %886 = vector.load %arg48[%c0_475, %c0_476] : memref<1x64xf32, #tpu.memory_space<vmem>>, vector<1x64xf32>
      %cst_477 = arith.constant dense<0.000000e+00> : vector<24xf32>
      %887 = vector.multi_reduction <add>, %884, %cst_477 [1] : vector<24x64xf32> to vector<24xf32>
      %888 = vector.shape_cast %887 : vector<24xf32> to vector<24x1xf32>
      %cst_478 = arith.constant 6.400000e+01 : f32
      %889 = vector.broadcast %cst_478 : f32 to vector<24x1xf32>
      %890 = arith.divf %888, %889 : vector<24x1xf32>
      %891 = vector.broadcast %890 : vector<24x1xf32> to vector<24x64xf32>
      %892 = arith.subf %884, %891 : vector<24x64xf32>
      %893 = arith.mulf %892, %892 : vector<24x64xf32>
      %cst_479 = arith.constant dense<0.000000e+00> : vector<24xf32>
      %894 = vector.multi_reduction <add>, %893, %cst_479 [1] : vector<24x64xf32> to vector<24xf32>
      %895 = vector.shape_cast %894 : vector<24xf32> to vector<24x1xf32>
      %cst_480 = arith.constant 6.400000e+01 : f32
      %896 = vector.broadcast %cst_480 : f32 to vector<24x1xf32>
      %897 = arith.divf %895, %896 : vector<24x1xf32>
      %cst_481 = arith.constant 9.99999974E-6 : f32
      %898 = vector.broadcast %cst_481 : f32 to vector<24x1xf32>
      %899 = arith.addf %897, %898 : vector<24x1xf32>
      %900 = math.rsqrt %899 : vector<24x1xf32>
      %901 = vector.broadcast %900 : vector<24x1xf32> to vector<24x64xf32>
      %902 = arith.mulf %892, %901 : vector<24x64xf32>
      %903 = vector.broadcast %885 : vector<1x64xf32> to vector<24x64xf32>
      %904 = arith.mulf %902, %903 : vector<24x64xf32>
      %905 = vector.broadcast %886 : vector<1x64xf32> to vector<24x64xf32>
      %906 = arith.addf %904, %905 : vector<24x64xf32>
      %c0_482 = arith.constant 0 : index
      %c0_483 = arith.constant 0 : index
      %907 = vector.load %arg51[%c0_482, %c0_483] : memref<24x64xf32, #tpu.memory_space<vmem>>, vector<24x64xf32>
      tpu.vector_store %arg51[%c0_482, %c0_483], %906 {strides = array<i32>} : memref<24x64xf32, #tpu.memory_space<vmem>>, vector<24x64xf32>,
      %c0_484 = arith.constant 0 : index
      %908 = memref.load %arg1[%c0_484] : memref<3xi32, #tpu.memory_space<smem>>
      %909 = arith.index_cast %908 : i32 to index
      %c0_485 = arith.constant 0 : index
      %910 = vector.load %arg51[%909, %c0_485] : memref<24x64xf32, #tpu.memory_space<vmem>>, vector<1x64xf32>
      %c0_486 = arith.constant 0 : index
      %c0_487 = arith.constant 0 : index
      %911 = vector.load %arg52[%c0_486, %c0_487] : memref<8x64xf32, #tpu.memory_space<vmem>>, vector<1x64xf32>
      tpu.vector_store %arg52[%c0_486, %c0_487], %910 {strides = array<i32>} : memref<8x64xf32, #tpu.memory_space<vmem>>, vector<1x64xf32>,
      %c1_488 = arith.constant 1 : index
      %912 = memref.load %arg1[%c1_488] : memref<3xi32, #tpu.memory_space<smem>>
      %913 = arith.index_cast %912 : i32 to index
      %c0_489 = arith.constant 0 : index
      %914 = vector.load %arg51[%913, %c0_489] : memref<24x64xf32, #tpu.memory_space<vmem>>, vector<1x64xf32>
      %c1_490 = arith.constant 1 : index
      %c0_491 = arith.constant 0 : index
      %915 = vector.load %arg52[%c1_490, %c0_491] : memref<8x64xf32, #tpu.memory_space<vmem>>, vector<1x64xf32>
      tpu.vector_store %arg52[%c1_490, %c0_491], %914 {strides = array<i32>} : memref<8x64xf32, #tpu.memory_space<vmem>>, vector<1x64xf32>,
      %c2 = arith.constant 2 : index
      %916 = memref.load %arg1[%c2] : memref<3xi32, #tpu.memory_space<smem>>
      %917 = arith.index_cast %916 : i32 to index
      %c0_492 = arith.constant 0 : index
      %918 = vector.load %arg51[%917, %c0_492] : memref<24x64xf32, #tpu.memory_space<vmem>>, vector<1x64xf32>
      %c2_493 = arith.constant 2 : index
      %c0_494 = arith.constant 0 : index
      %919 = vector.load %arg52[%c2_493, %c0_494] : memref<8x64xf32, #tpu.memory_space<vmem>>, vector<1x64xf32>
      tpu.vector_store %arg52[%c2_493, %c0_494], %918 {strides = array<i32>} : memref<8x64xf32, #tpu.memory_space<vmem>>, vector<1x64xf32>,
      %c0_495 = arith.constant 0 : index
      %c0_496 = arith.constant 0 : index
      %920 = vector.load %arg52[%c0_495, %c0_496] : memref<8x64xf32, #tpu.memory_space<vmem>>, vector<3x64xf32>
      %c0_497 = arith.constant 0 : index
      %c0_498 = arith.constant 0 : index
      %921 = vector.load %arg49[%c0_497, %c0_498] : memref<64x32xbf16, #tpu.memory_space<vmem>>, vector<64x32xbf16>
      %922 = arith.truncf %920 : vector<3x64xf32> to vector<3x64xbf16>
      %cst_499 = arith.constant dense<0.000000e+00> : vector<3x32xf32>
      %923 = tpu.matmul %922, %921, %cst_499 {dimension_numbers = #tpu.dot_dimension_numbers<[1], [0], [0], [1], [0, 0, 1, 1], [], []>} : vector<3x64xbf16>, vector<64x32xbf16>, vector<3x32xf32> -> vector<3x32xf32>
      %924 = arith.mulf %923, %923 : vector<3x32xf32>
      %cst_500 = arith.constant dense<0.000000e+00> : vector<3xf32>
      %925 = vector.multi_reduction <add>, %924, %cst_500 [1] : vector<3x32xf32> to vector<3xf32>
      %926 = vector.shape_cast %925 : vector<3xf32> to vector<3x1xf32>
      %927 = math.rsqrt %926 : vector<3x1xf32>
      %928 = vector.broadcast %927 : vector<3x1xf32> to vector<3x32xf32>
      %929 = arith.mulf %923, %928 : vector<3x32xf32>
      %cst_501 = arith.constant dense<0.000000e+00> : vector<2x3xf32>
      %930 = tpu.matmul %475, %929, %cst_501 {dimension_numbers = #tpu.dot_dimension_numbers<[1], [1], [0], [0], [0, 0, 1, 0], [], []>} : vector<2x32xf32>, vector<3x32xf32>, vector<2x3xf32> -> vector<2x3xf32>
      %931 = vector.broadcast %0 : f32 to vector<2x3xf32>
      %932 = arith.mulf %931, %930 : vector<2x3xf32>
      %c0_502 = arith.constant 0 : index
      %c2_503 = arith.constant 2 : index
      %c0_504 = arith.constant 0 : index
      %933 = vector.load %arg50[%c0_502, %c2_503, %c0_504] : memref<1x8x128xf32, #tpu.memory_space<vmem>>, vector<1x3x32xf32>
      %934 = vector.shape_cast %933 : vector<1x3x32xf32> to vector<3x32xf32>
      %935 = vector.shape_cast %929 : vector<3x32xf32> to vector<1x3x32xf32>
      tpu.vector_store %arg50[%c0_502, %c2_503, %c0_504], %935 {strides = array<i32>} : memref<1x8x128xf32, #tpu.memory_space<vmem>>, vector<1x3x32xf32>,
      %c0_505 = arith.constant 0 : index
      %c5_506 = arith.constant 5 : index
      %c0_507 = arith.constant 0 : index
      %936 = vector.load %arg50[%c0_505, %c5_506, %c0_507] : memref<1x8x128xf32, #tpu.memory_space<vmem>>, vector<1x2x3xf32>
      %937 = vector.shape_cast %936 : vector<1x2x3xf32> to vector<2x3xf32>
      %938 = vector.shape_cast %932 : vector<2x3xf32> to vector<1x2x3xf32>
      tpu.vector_store %arg50[%c0_505, %c5_506, %c0_507], %938 {strides = array<i32>} : memref<1x8x128xf32, #tpu.memory_space<vmem>>, vector<1x2x3xf32>,
    } else {
    }
    %c1_i32 = arith.constant 1 : i32
    %482 = arith.cmpi eq, %arg0, %c1_i32 : i32
    %483 = arith.extui %482 : i1 to i32
    %c0_i32_276 = arith.constant 0 : i32
    %484 = arith.cmpi ne, %483, %c0_i32_276 : i32
    scf.if %484 {
      %c0_277 = arith.constant 0 : index
      %c0_278 = arith.constant 0 : index
      %485 = vector.load %arg7[%c0_277, %c0_278] : memref<3x32xf32, #tpu.memory_space<vmem>>, vector<3x32xf32>
      %486 = arith.mulf %485, %485 : vector<3x32xf32>
      %cst_279 = arith.constant dense<0.000000e+00> : vector<3xf32>
      %487 = vector.multi_reduction <add>, %486, %cst_279 [1] : vector<3x32xf32> to vector<3xf32>
      %488 = vector.shape_cast %487 : vector<3xf32> to vector<3x1xf32>
      %489 = math.rsqrt %488 : vector<3x1xf32>
      %490 = vector.broadcast %489 : vector<3x1xf32> to vector<3x32xf32>
      %491 = arith.mulf %485, %490 : vector<3x32xf32>
      %cst_280 = arith.constant dense<0.000000e+00> : vector<2x3xf32>
      %492 = tpu.matmul %475, %491, %cst_280 {dimension_numbers = #tpu.dot_dimension_numbers<[1], [1], [0], [0], [0, 0, 1, 0], [], []>} : vector<2x32xf32>, vector<3x32xf32>, vector<2x3xf32> -> vector<2x3xf32>
      %493 = vector.broadcast %0 : f32 to vector<2x3xf32>
      %494 = arith.mulf %493, %492 : vector<2x3xf32>
      %c0_281 = arith.constant 0 : index
      %c2 = arith.constant 2 : index
      %c0_282 = arith.constant 0 : index
      %495 = vector.load %arg50[%c0_281, %c2, %c0_282] : memref<1x8x128xf32, #tpu.memory_space<vmem>>, vector<1x3x32xf32>
      %496 = vector.shape_cast %495 : vector<1x3x32xf32> to vector<3x32xf32>
      %497 = vector.shape_cast %491 : vector<3x32xf32> to vector<1x3x32xf32>
      tpu.vector_store %arg50[%c0_281, %c2, %c0_282], %497 {strides = array<i32>} : memref<1x8x128xf32, #tpu.memory_space<vmem>>, vector<1x3x32xf32>,
      %c0_283 = arith.constant 0 : index
      %c5_284 = arith.constant 5 : index
      %c0_285 = arith.constant 0 : index
      %498 = vector.load %arg50[%c0_283, %c5_284, %c0_285] : memref<1x8x128xf32, #tpu.memory_space<vmem>>, vector<1x2x3xf32>
      %499 = vector.shape_cast %498 : vector<1x2x3xf32> to vector<2x3xf32>
      %500 = vector.shape_cast %494 : vector<2x3xf32> to vector<1x2x3xf32>
      tpu.vector_store %arg50[%c0_283, %c5_284, %c0_285], %500 {strides = array<i32>} : memref<1x8x128xf32, #tpu.memory_space<vmem>>, vector<1x2x3xf32>,
    } else {
    }
    return
  }
  func.func @transform_0(%arg0: i32) -> i32 {
    %c0_i32 = arith.constant 0 : i32
    %c0_i32_0 = arith.constant 0 : i32
    return %c0_i32 : i32
  }
  func.func @transform_1(%arg0: i32) -> i32 {
    %c0_i32 = arith.constant 0 : i32
    %c0_i32_0 = arith.constant 0 : i32
    return %c0_i32 : i32
  }
  func.func @transform_2(%arg0: i32) -> (i32, i32) {
    %c0_i32 = arith.constant 0 : i32
    %c0_i32_0 = arith.constant 0 : i32
    %c0_i32_1 = arith.constant 0 : i32
    return %c0_i32, %c0_i32_0 : i32, i32
  }
  func.func @transform_3(%arg0: i32) -> (i32, i32) {
    %c0_i32 = arith.constant 0 : i32
    %c0_i32_0 = arith.constant 0 : i32
    %c0_i32_1 = arith.constant 0 : i32
    return %c0_i32, %c0_i32_0 : i32, i32
  }
  func.func @transform_4(%arg0: i32) -> (i32, i32) {
    %c0_i32 = arith.constant 0 : i32
    %c0_i32_0 = arith.constant 0 : i32
    %c0_i32_1 = arith.constant 0 : i32
    return %c0_i32, %c0_i32_0 : i32, i32
  }
  func.func @transform_5(%arg0: i32) -> (i32, i32) {
    %c0_i32 = arith.constant 0 : i32
    %c0_i32_0 = arith.constant 0 : i32
    %c0_i32_1 = arith.constant 0 : i32
    return %c0_i32, %c0_i32_0 : i32, i32
  }
  func.func @transform_6(%arg0: i32) -> (i32, i32) {
    %c0_i32 = arith.constant 0 : i32
    %c0_i32_0 = arith.constant 0 : i32
    %c0_i32_1 = arith.constant 0 : i32
    return %c0_i32, %c0_i32_0 : i32, i32
  }
  func.func @transform_7(%arg0: i32) -> (i32, i32, i32) {
    %c0_i32 = arith.constant 0 : i32
    %c0_i32_0 = arith.constant 0 : i32
    %c0_i32_1 = arith.constant 0 : i32
    return %arg0, %c0_i32, %c0_i32_0 : i32, i32, i32
  }
  func.func @transform_8(%arg0: i32) -> (i32, i32, i32) {
    %c0_i32 = arith.constant 0 : i32
    %c0_i32_0 = arith.constant 0 : i32
    %c0_i32_1 = arith.constant 0 : i32
    return %arg0, %c0_i32, %c0_i32_0 : i32, i32, i32
  }
  func.func @transform_9(%arg0: i32) -> (i32, i32, i32) {
    %c0_i32 = arith.constant 0 : i32
    %c0_i32_0 = arith.constant 0 : i32
    %c0_i32_1 = arith.constant 0 : i32
    return %arg0, %c0_i32, %c0_i32_0 : i32, i32, i32
  }
  func.func @transform_10(%arg0: i32) -> (i32, i32, i32) {
    %c0_i32 = arith.constant 0 : i32
    %c0_i32_0 = arith.constant 0 : i32
    %c0_i32_1 = arith.constant 0 : i32
    return %arg0, %c0_i32, %c0_i32_0 : i32, i32, i32
  }
  func.func @transform_11(%arg0: i32) -> (i32, i32, i32) {
    %c0_i32 = arith.constant 0 : i32
    %c0_i32_0 = arith.constant 0 : i32
    %c0_i32_1 = arith.constant 0 : i32
    return %arg0, %c0_i32, %c0_i32_0 : i32, i32, i32
  }
  func.func @transform_12(%arg0: i32) -> (i32, i32, i32) {
    %c0_i32 = arith.constant 0 : i32
    %c0_i32_0 = arith.constant 0 : i32
    %c0_i32_1 = arith.constant 0 : i32
    return %arg0, %c0_i32, %c0_i32_0 : i32, i32, i32
  }
  func.func @transform_13(%arg0: i32) -> (i32, i32, i32) {
    %c0_i32 = arith.constant 0 : i32
    %c0_i32_0 = arith.constant 0 : i32
    %c0_i32_1 = arith.constant 0 : i32
    return %arg0, %c0_i32, %c0_i32_0 : i32, i32, i32
  }
  func.func @transform_14(%arg0: i32) -> (i32, i32, i32, i32) {
    %c0_i32 = arith.constant 0 : i32
    %c0_i32_0 = arith.constant 0 : i32
    %c0_i32_1 = arith.constant 0 : i32
    %c0_i32_2 = arith.constant 0 : i32
    return %arg0, %c0_i32, %c0_i32_0, %c0_i32_1 : i32, i32, i32, i32
  }
  func.func @transform_15(%arg0: i32) -> (i32, i32, i32, i32) {
    %c0_i32 = arith.constant 0 : i32
    %c0_i32_0 = arith.constant 0 : i32
    %c0_i32_1 = arith.constant 0 : i32
    %c0_i32_2 = arith.constant 0 : i32
    return %arg0, %c0_i32, %c0_i32_0, %c0_i32_1 : i32, i32, i32, i32
  }
  func.func @transform_16(%arg0: i32) -> (i32, i32, i32, i32) {
    %c0_i32 = arith.constant 0 : i32
    %c0_i32_0 = arith.constant 0 : i32
    %c0_i32_1 = arith.constant 0 : i32
    %c0_i32_2 = arith.constant 0 : i32
    return %arg0, %c0_i32, %c0_i32_0, %c0_i32_1 : i32, i32, i32, i32
  }
  func.func @transform_17(%arg0: i32) -> (i32, i32, i32, i32) {
    %c0_i32 = arith.constant 0 : i32
    %c0_i32_0 = arith.constant 0 : i32
    %c0_i32_1 = arith.constant 0 : i32
    %c0_i32_2 = arith.constant 0 : i32
    return %arg0, %c0_i32, %c0_i32_0, %c0_i32_1 : i32, i32, i32, i32
  }
  func.func @transform_18(%arg0: i32) -> (i32, i32, i32, i32) {
    %c0_i32 = arith.constant 0 : i32
    %c0_i32_0 = arith.constant 0 : i32
    %c0_i32_1 = arith.constant 0 : i32
    %c0_i32_2 = arith.constant 0 : i32
    return %arg0, %c0_i32, %c0_i32_0, %c0_i32_1 : i32, i32, i32, i32
  }
  func.func @transform_19(%arg0: i32) -> (i32, i32, i32, i32) {
    %c0_i32 = arith.constant 0 : i32
    %c0_i32_0 = arith.constant 0 : i32
    %c0_i32_1 = arith.constant 0 : i32
    %c0_i32_2 = arith.constant 0 : i32
    return %arg0, %c0_i32, %c0_i32_0, %c0_i32_1 : i32, i32, i32, i32
  }
  func.func @transform_20(%arg0: i32) -> (i32, i32, i32, i32) {
    %c0_i32 = arith.constant 0 : i32
    %c0_i32_0 = arith.constant 0 : i32
    %c0_i32_1 = arith.constant 0 : i32
    %c0_i32_2 = arith.constant 0 : i32
    return %arg0, %c0_i32, %c0_i32_0, %c0_i32_1 : i32, i32, i32, i32
  }
  func.func @transform_21(%arg0: i32) -> (i32, i32, i32, i32) {
    %c0_i32 = arith.constant 0 : i32
    %c0_i32_0 = arith.constant 0 : i32
    %c0_i32_1 = arith.constant 0 : i32
    %c0_i32_2 = arith.constant 0 : i32
    return %arg0, %c0_i32, %c0_i32_0, %c0_i32_1 : i32, i32, i32, i32
  }
  func.func @transform_22(%arg0: i32) -> (i32, i32, i32, i32) {
    %c0_i32 = arith.constant 0 : i32
    %c0_i32_0 = arith.constant 0 : i32
    %c0_i32_1 = arith.constant 0 : i32
    %c0_i32_2 = arith.constant 0 : i32
    return %arg0, %c0_i32, %c0_i32_0, %c0_i32_1 : i32, i32, i32, i32
  }
  func.func @transform_23(%arg0: i32) -> (i32, i32, i32, i32) {
    %c0_i32 = arith.constant 0 : i32
    %c0_i32_0 = arith.constant 0 : i32
    %c0_i32_1 = arith.constant 0 : i32
    %c0_i32_2 = arith.constant 0 : i32
    return %arg0, %c0_i32, %c0_i32_0, %c0_i32_1 : i32, i32, i32, i32
  }
  func.func @transform_24(%arg0: i32) -> (i32, i32, i32, i32) {
    %c0_i32 = arith.constant 0 : i32
    %c0_i32_0 = arith.constant 0 : i32
    %c0_i32_1 = arith.constant 0 : i32
    %c0_i32_2 = arith.constant 0 : i32
    return %arg0, %c0_i32, %c0_i32_0, %c0_i32_1 : i32, i32, i32, i32
  }
  func.func @transform_25(%arg0: i32) -> (i32, i32, i32, i32) {
    %c0_i32 = arith.constant 0 : i32
    %c0_i32_0 = arith.constant 0 : i32
    %c0_i32_1 = arith.constant 0 : i32
    %c0_i32_2 = arith.constant 0 : i32
    return %arg0, %c0_i32, %c0_i32_0, %c0_i32_1 : i32, i32, i32, i32
  }
  func.func @transform_26(%arg0: i32) -> (i32, i32, i32, i32) {
    %c0_i32 = arith.constant 0 : i32
    %c0_i32_0 = arith.constant 0 : i32
    %c0_i32_1 = arith.constant 0 : i32
    %c0_i32_2 = arith.constant 0 : i32
    return %arg0, %c0_i32, %c0_i32_0, %c0_i32_1 : i32, i32, i32, i32
  }
  func.func @transform_27(%arg0: i32) -> (i32, i32, i32, i32) {
    %c0_i32 = arith.constant 0 : i32
    %c0_i32_0 = arith.constant 0 : i32
    %c0_i32_1 = arith.constant 0 : i32
    %c0_i32_2 = arith.constant 0 : i32
    return %arg0, %c0_i32, %c0_i32_0, %c0_i32_1 : i32, i32, i32, i32
  }
  func.func @transform_28(%arg0: i32) -> (i32, i32, i32, i32) {
    %c0_i32 = arith.constant 0 : i32
    %c0_i32_0 = arith.constant 0 : i32
    %c0_i32_1 = arith.constant 0 : i32
    %c0_i32_2 = arith.constant 0 : i32
    return %arg0, %c0_i32, %c0_i32_0, %c0_i32_1 : i32, i32, i32, i32
  }
  func.func @transform_29(%arg0: i32) -> (i32, i32, i32, i32) {
    %c0_i32 = arith.constant 0 : i32
    %c0_i32_0 = arith.constant 0 : i32
    %c0_i32_1 = arith.constant 0 : i32
    %c0_i32_2 = arith.constant 0 : i32
    return %arg0, %c0_i32, %c0_i32_0, %c0_i32_1 : i32, i32, i32, i32
  }
  func.func @transform_30(%arg0: i32) -> (i32, i32, i32) {
    %c0_i32 = arith.constant 0 : i32
    %c0_i32_0 = arith.constant 0 : i32
    %c0_i32_1 = arith.constant 0 : i32
    %c0_i32_2 = arith.constant 0 : i32
    return %c0_i32, %c0_i32_0, %c0_i32_1 : i32, i32, i32
  }
  func.func @transform_31(%arg0: i32) -> (i32, i32, i32) {
    %c0_i32 = arith.constant 0 : i32
    %c0_i32_0 = arith.constant 0 : i32
    %c0_i32_1 = arith.constant 0 : i32
    %c0_i32_2 = arith.constant 0 : i32
    return %c0_i32, %c0_i32_0, %c0_i32_1 : i32, i32, i32
  }
  func.func @transform_32(%arg0: i32) -> (i32, i32, i32) {
    %c0_i32 = arith.constant 0 : i32
    %c0_i32_0 = arith.constant 0 : i32
    %c0_i32_1 = arith.constant 0 : i32
    %c0_i32_2 = arith.constant 0 : i32
    return %c0_i32, %c0_i32_0, %c0_i32_1 : i32, i32, i32
  }
  func.func @transform_33(%arg0: i32) -> (i32, i32, i32) {
    %c0_i32 = arith.constant 0 : i32
    %c0_i32_0 = arith.constant 0 : i32
    %c0_i32_1 = arith.constant 0 : i32
    %c0_i32_2 = arith.constant 0 : i32
    return %c0_i32, %c0_i32_0, %c0_i32_1 : i32, i32, i32
  }
  func.func @transform_34(%arg0: i32) -> (i32, i32, i32) {
    %c0_i32 = arith.constant 0 : i32
    %c0_i32_0 = arith.constant 0 : i32
    %c0_i32_1 = arith.constant 0 : i32
    %c0_i32_2 = arith.constant 0 : i32
    return %c0_i32, %c0_i32_0, %c0_i32_1 : i32, i32, i32
  }
  func.func @transform_35(%arg0: i32) -> (i32, i32, i32) {
    %c0_i32 = arith.constant 0 : i32
    %c0_i32_0 = arith.constant 0 : i32
    %c0_i32_1 = arith.constant 0 : i32
    %c0_i32_2 = arith.constant 0 : i32
    return %c0_i32, %c0_i32_0, %c0_i32_1 : i32, i32, i32
  }
  func.func @transform_36(%arg0: i32) -> (i32, i32, i32) {
    %c0_i32 = arith.constant 0 : i32
    %c0_i32_0 = arith.constant 0 : i32
    %c0_i32_1 = arith.constant 0 : i32
    %c0_i32_2 = arith.constant 0 : i32
    return %c0_i32, %c0_i32_0, %c0_i32_1 : i32, i32, i32
  }
  func.func @transform_37(%arg0: i32) -> (i32, i32, i32) {
    %c0_i32 = arith.constant 0 : i32
    %c0_i32_0 = arith.constant 0 : i32
    %c0_i32_1 = arith.constant 0 : i32
    %c0_i32_2 = arith.constant 0 : i32
    return %c0_i32, %c0_i32_0, %c0_i32_1 : i32, i32, i32
  }
  func.func @transform_38(%arg0: i32) -> (i32, i32, i32) {
    %c0_i32 = arith.constant 0 : i32
    %c0_i32_0 = arith.constant 0 : i32
    %c0_i32_1 = arith.constant 0 : i32
    %c0_i32_2 = arith.constant 0 : i32
    return %c0_i32, %c0_i32_0, %c0_i32_1 : i32, i32, i32
  }
  func.func @transform_39(%arg0: i32) -> (i32, i32, i32) {
    %c0_i32 = arith.constant 0 : i32
    %c0_i32_0 = arith.constant 0 : i32
    %c0_i32_1 = arith.constant 0 : i32
    %c0_i32_2 = arith.constant 0 : i32
    return %c0_i32, %c0_i32_0, %c0_i32_1 : i32, i32, i32
  }
  func.func @transform_40(%arg0: i32) -> (i32, i32, i32) {
    %c0_i32 = arith.constant 0 : i32
    %c0_i32_0 = arith.constant 0 : i32
    %c0_i32_1 = arith.constant 0 : i32
    %c0_i32_2 = arith.constant 0 : i32
    return %c0_i32, %c0_i32_0, %c0_i32_1 : i32, i32, i32
  }
  func.func @transform_41(%arg0: i32) -> (i32, i32, i32) {
    %c0_i32 = arith.constant 0 : i32
    %c0_i32_0 = arith.constant 0 : i32
    %c0_i32_1 = arith.constant 0 : i32
    %c0_i32_2 = arith.constant 0 : i32
    return %c0_i32, %c0_i32_0, %c0_i32_1 : i32, i32, i32
  }
  func.func @transform_42(%arg0: i32) -> (i32, i32, i32) {
    %c0_i32 = arith.constant 0 : i32
    %c0_i32_0 = arith.constant 0 : i32
    %c0_i32_1 = arith.constant 0 : i32
    %c0_i32_2 = arith.constant 0 : i32
    return %c0_i32, %c0_i32_0, %c0_i32_1 : i32, i32, i32
  }
  func.func @transform_43(%arg0: i32) -> (i32, i32, i32) {
    %c0_i32 = arith.constant 0 : i32
    %c0_i32_0 = arith.constant 0 : i32
    %c0_i32_1 = arith.constant 0 : i32
    %c0_i32_2 = arith.constant 0 : i32
    return %c0_i32, %c0_i32_0, %c0_i32_1 : i32, i32, i32
  }
  func.func @transform_44(%arg0: i32) -> (i32, i32, i32) {
    %c0_i32 = arith.constant 0 : i32
    %c0_i32_0 = arith.constant 0 : i32
    %c0_i32_1 = arith.constant 0 : i32
    %c0_i32_2 = arith.constant 0 : i32
    return %c0_i32, %c0_i32_0, %c0_i32_1 : i32, i32, i32
  }
  func.func @transform_45(%arg0: i32) -> (i32, i32, i32) {
    %c0_i32 = arith.constant 0 : i32
    %c0_i32_0 = arith.constant 0 : i32
    %c0_i32_1 = arith.constant 0 : i32
    %c0_i32_2 = arith.constant 0 : i32
    return %c0_i32, %c0_i32_0, %c0_i32_1 : i32, i32, i32
  }
  func.func @transform_46(%arg0: i32) -> (i32, i32) {
    %c0_i32 = arith.constant 0 : i32
    %c0_i32_0 = arith.constant 0 : i32
    %c0_i32_1 = arith.constant 0 : i32
    return %c0_i32, %c0_i32_0 : i32, i32
  }
  func.func @transform_47(%arg0: i32) -> (i32, i32) {
    %c0_i32 = arith.constant 0 : i32
    %c0_i32_0 = arith.constant 0 : i32
    %c0_i32_1 = arith.constant 0 : i32
    return %c0_i32, %c0_i32_0 : i32, i32
  }
  func.func @transform_48(%arg0: i32) -> (i32, i32) {
    %c0_i32 = arith.constant 0 : i32
    %c0_i32_0 = arith.constant 0 : i32
    %c0_i32_1 = arith.constant 0 : i32
    return %c0_i32, %c0_i32_0 : i32, i32
  }
  func.func @transform_49(%arg0: i32) -> (i32, i32, i32) {
    %c0_i32 = arith.constant 0 : i32
    %c0_i32_0 = arith.constant 0 : i32
    %c0_i32_1 = arith.constant 0 : i32
    return %arg0, %c0_i32, %c0_i32_0 : i32, i32, i32
  }
}

</mosaic_0001>

<bundles_post_ra>
// kernel: custom_clip_forward.1
= control target key start
LH: loop header
LB: loop body
LE: loop exit
PB: predicated region body
PF: predicated region fallthrough
CT: control target
= control target key end

     0   :  { %s11186_s6 = smov 1   ;;  %s11187_s10 = smov 2   ;;  %s12748_s0 = inlined_call_operand.smem [shape: u32[50], index: -1, kind: input, shape index: {}] }
   0x1   :  { %s11265_s5 = sld [smem:[%s12748_s0]]   ;;  %s11188_s14 = smov 3  }
   0x2   :  { %s11270_s9 = sld [smem:[%s12748_s0 + %s11186_s6]]   ;;  %s11189_s18 = smov 4  }
   0x3   :  { %s11275_s13 = sld [smem:[%s12748_s0 + %s11187_s10]]   ;;  %s11190_s22 = smov 5  }
   0x4   :  { %s11280_s17 = sld [smem:[%s12748_s0 + %s11188_s14]]   ;;  %s11191_s26 = smov 6  }
   0x5   :  { %s11285_s21 = sld [smem:[%s12748_s0 + %s11189_s18]]   ;;  %s11192_s30 = smov 7  }
   0x6   :  { %s11290_s25 = sld [smem:[%s12748_s0 + %s11190_s22]]   ;;  %s11193_s4 = smov 8  }
   0x7   :  { %12799 = sst [smem:[#allocation11_spill]] %s11265_s5  ;;  %s11194_s10 = smov 9  }
   0x8   :  { %s11295_s29 = sld [smem:[%s12748_s0 + %s11191_s26]]   ;;  %s11195_s15 = smov 10  }
   0x9   :  { %12800 = sst [smem:[#allocation12_spill]] %s11275_s13  ;;  %s11196_s20 = smov 11  }
   0xa   :  { %12801 = sst [smem:[#allocation13_spill]] %s11280_s17  ;;  %s11197_s26 = smov 12  }
   0xb   :  { %12802 = sst [smem:[#allocation14_spill]] %s11285_s21  ;;  %s11198_s1 = smov 13  }
   0xc   :  { %12803 = sst [smem:[#allocation15_spill]] %s11290_s25  ;;  %s11199_s7 = smov 14  }
   0xd   :  { %s11300_s3 = sld [smem:[%s12748_s0 + %s11192_s30]]   ;;  %s11201_s22 = smov 16  }
   0xe   :  { %12804 = sst [smem:[#allocation16_spill]] %s11295_s29  ;;  %s11202_s28 = smov 17  }
   0xf   :  { %s11305_s8 = sld [smem:[%s12748_s0 + %s11193_s4]]  }
  0x10   :  { %s11310_s14 = sld [smem:[%s12748_s0 + %s11194_s10]]  }
  0x11   :  { %s11315_s19 = sld [smem:[%s12748_s0 + %s11195_s15]]   ;;  %s11200_s15 = smov 15  }
  0x12   :  { %s11320_s24 = sld [smem:[%s12748_s0 + %s11196_s20]]  }
  0x13   :  { %12805 = sst [smem:[#allocation17_spill]] %s11300_s3 }
  0x14   :  { %s11325_s30 = sld [smem:[%s12748_s0 + %s11197_s26]]  }
  0x15   :  { %12806 = sst [smem:[#allocation18_spill]] %s11305_s8 }
  0x16   :  { %12807 = sst [smem:[#allocation19_spill]] %s11310_s14 }
  0x17   :  { %12808 = sst [smem:[#allocation20_spill]] %s11315_s19 }
  0x18   :  { %12809 = sst [smem:[#allocation21_spill]] %s11320_s24 }
  0x19   :  { %s11330_s6 = sld [smem:[%s12748_s0 + %s11198_s1]]  }
  0x1a   :  { %12810 = sst [smem:[#allocation22_spill]] %s11325_s30 }
  0x1b   :  { %s11335_s12 = sld [smem:[%s12748_s0 + %s11199_s7]]   ;;  %s11203_s7 = smov 18  }
  0x1c   :  { %s11340_s20 = sld [smem:[%s12748_s0 + %s11200_s15]]   ;;  %s11204_s15 = smov 19  }
  0x1d   :  { %s11345_s27 = sld [smem:[%s12748_s0 + %s11201_s22]]   ;;  %s11205_s22 = smov 20  }
  0x1e   :  { %s11350_s4 = sld [smem:[%s12748_s0 + %s11202_s28]]   ;;  %s11206_s28 = smov 21  }
  0x1f   :  { %12811 = sst [smem:[#allocation23_spill]] %s11330_s6 }
  0x20   :  { %s11355_s29 = sld [smem:[%s12748_s0 + %s11203_s7]]   ;;  %s11207_s7 = smov 22  }
  0x21   :  { %12812 = sst [smem:[#allocation24_spill]] %s11335_s12 }
  0x22   :  { %12813 = sst [smem:[#allocation25_spill]] %s11340_s20 }
  0x23   :  { %s11360_s25 = sld [smem:[%s12748_s0 + %s11204_s15]]   ;;  %s11208_s15 = smov 23  }
  0x24   :  { %12814 = sst [smem:[#allocation26_spill]] %s11350_s4 }
  0x25   :  { %s11365_s21 = sld [smem:[%s12748_s0 + %s11205_s22]]   ;;  %s11209_s22 = smov 24  }
  0x26   :  { %s11370_s30 = sld [smem:[%s12748_s0 + %s11206_s28]]   ;;  %s11210_s28 = smov 25  }
  0x27   :  { %s11375_s24 = sld [smem:[%s12748_s0 + %s11207_s7]]   ;;  %s11211_s7 = smov 26  }
  0x28   :  { %s11380_s6 = sld [smem:[%s12748_s0 + %s11208_s15]]   ;;  %s11212_s15 = smov 27  }
  0x29   :  { %12815 = sst [smem:[#allocation27_spill]] %s11360_s25 }
  0x2a   :  { %s11385_s17 = sld [smem:[%s12748_s0 + %s11209_s22]]   ;;  %s11213_s22 = smov 28  }
  0x2b   :  { %s11390_s25 = sld [smem:[%s12748_s0 + %s11210_s28]]   ;;  %s11214_s28 = smov 29  }
  0x2c   :  { %104 = sst [smem:[#allocation4]] %s11270_s9 }
  0x2d   :  { %12816 = sst [smem:[#allocation28_spill]] %s11375_s24 }
  0x2e   :  { %12817 = sst [smem:[#allocation29_spill]] %s11380_s6 }
  0x2f   :  { %s11395_s24 = sld [smem:[%s12748_s0 + %s11211_s7]]   ;;  %s11215_s7 = smov 30  }
  0x30   :  { %12818 = sst [smem:[#allocation30_spill]] %s11385_s17 }
  0x31   :  { %12819 = sst [smem:[#allocation31_spill]] %s11390_s25 }
  0x32   :  { %s11400_s6 = sld [smem:[%s12748_s0 + %s11212_s15]]   ;;  %s11216_s15 = smov 31  }
  0x33   :  { %s11405_s17 = sld [smem:[%s12748_s0 + %s11213_s22]]   ;;  %s11217_s22 = smov 32  }
  0x34   :  { %s11410_s25 = sld [smem:[%s12748_s0 + %s11214_s28]]   ;;  %s11218_s28 = smov 33  }
  0x35   :  { %12820 = sst [smem:[#allocation32_spill]] %s11395_s24 }
  0x36   :  { %s11415_s24 = sld [smem:[%s12748_s0 + %s11215_s7]]   ;;  %s11219_s7 = smov 34  }
  0x38   :  { %12821 = sst [smem:[#allocation33_spill]] %s11400_s6 }
  0x39   :  { %12822 = sst [smem:[#allocation34_spill]] %s11405_s17 }
  0x3a   :  { %12823 = sst [smem:[#allocation35_spill]] %s11410_s25 }
  0x3b   :  { %s11420_s6 = sld [smem:[%s12748_s0 + %s11216_s15]]   ;;  %s11220_s15 = smov 35  }
  0x3c   :  { %12824 = sst [smem:[#allocation36_spill]] %s11415_s24 }
  0x3d   :  { %s11425_s17 = sld [smem:[%s12748_s0 + %s11217_s22]]   ;;  %s11221_s22 = smov 36  }
  0x3e   :  { %s11430_s25 = sld [smem:[%s12748_s0 + %s11218_s28]]   ;;  %s11222_s28 = smov 37  }
  0x3f   :  { %s11435_s24 = sld [smem:[%s12748_s0 + %s11219_s7]]   ;;  %s11223_s7 = smov 38  }
  0x41   :  { %12825 = sst [smem:[#allocation37_spill]] %s11420_s6 }
  0x42   :  { %s11440_s6 = sld [smem:[%s12748_s0 + %s11220_s15]]   ;;  %s11224_s15 = smov 39  }
  0x43   :  { %12826 = sst [smem:[#allocation38_spill]] %s11425_s17 }
  0x44   :  { %12827 = sst [smem:[#allocation39_spill]] %s11430_s25 }
  0x45   :  { %12828 = sst [smem:[#allocation40_spill]] %s11435_s24 }
  0x46   :  { %s11445_s17 = sld [smem:[%s12748_s0 + %s11221_s22]]   ;;  %s11225_s22 = smov 40  }
  0x47   :  { %s11450_s25 = sld [smem:[%s12748_s0 + %s11222_s28]]   ;;  %s11226_s28 = smov 41  }
  0x48   :  { %12829 = sst [smem:[#allocation41_spill]] %s11440_s6 }
  0x49   :  { %s11455_s24 = sld [smem:[%s12748_s0 + %s11223_s7]]   ;;  %s11227_s7 = smov 42  }
  0x4a   :  { %s11460_s6 = sld [smem:[%s12748_s0 + %s11224_s15]]   ;;  %s11228_s15 = smov 43  }
  0x4b   :  { %s11475_s16 = sld [smem:[%s12748_s0 + %s11227_s7]]   ;;  %s11231_s7 = smov 46  }
  0x4c   :  { %12830 = sst [smem:[#allocation42_spill]] %s11445_s17 }
  0x4d   :  { %12831 = sst [smem:[#allocation43_spill]] %s11450_s25 }
  0x4e   :  { %s11465_s17 = sld [smem:[%s12748_s0 + %s11225_s22]]   ;;  %s11229_s22 = smov 44  }
  0x4f   :  { %12832 = sst [smem:[#allocation44_spill]] %s11455_s24 }
  0x50   :  { %12833 = sst [smem:[#allocation45_spill]] %s11460_s6  ;;  %s11232_s6 = smov 47  }
  0x51   :  { %s11470_s25 = sld [smem:[%s12748_s0 + %s11226_s28]]   ;;  %s11230_s28 = smov 45  }
  0x52   :  { %12836 = sst [smem:[#allocation48_spill]] %s11475_s16 }
  0x53   :  { %s11480_s23 = sld [smem:[%s12748_s0 + %s11228_s15]]  }
  0x54   :  { %12834 = sst [smem:[#allocation46_spill]] %s11465_s17  ;;  %s11233_s17 = smov 48  }
  0x55   :  { %s11485_s1 = sld [smem:[%s12748_s0 + %s11229_s22]]  }
  0x56   :  { %s11490_s10 = sld [smem:[%s12748_s0 + %s11230_s28]]  }
  0x57   :  { %12835 = sst [smem:[#allocation47_spill]] %s11470_s25  ;;  %s11234_s25 = smov 49  }
  0x58   :  { %s11495_s24 = sld [smem:[%s12748_s0 + %s11231_s7]]  }
  0x59   :  { %12837 = sst [smem:[#allocation49_spill]] %s11480_s23 }
  0x5a   :  { %s11500_s23 = sld [smem:[%s12748_s0 + %s11232_s6]]  }
  0x5b   :  { %12838 = sst [smem:[#allocation50_spill]] %s11485_s1 }
  0x5c   :  { %12839 = sst [smem:[#allocation51_spill]] %s11490_s10 }
  0x5d   :  { %s11505_s1 = sld [smem:[%s12748_s0 + %s11233_s17]]  }
  0x5e   :  { %s11510_s10 = sld [smem:[%s12748_s0 + %s11234_s25]]  }
  0x63   :  { %12840 = sst [smem:[#allocation52_spill]] %s11505_s1 }
  0x64   :  { %105 = vsyncpa [#allocation7], 0 }
  0x65   :  { %106 = vsyncpa [#allocation6], 0  ;;  %s11513_s16 = smov 0  }
  0x66 LB: > { %s12841_s1 = sld [smem:[#allocation52_spill]]  ;;  %s12843_s5 = sld [smem:[#allocation11_spill]]  ;;  %s11184_s16 = sphi %s11513_s16, %s112_s16  }
  0x67   : > { %s12842_s13 = sld [smem:[#allocation12_spill]]  ;;  %s11519_s7 = sadd.s32 4294967295, %s11184_s16  }
  0x68   : > { %p9077_p0 = scmp.ge.s32.totalorder %s11184_s16, 1  ;;  %p1287_p1 = scmp.lt.s32.totalorder %s11184_s16, 3 }
  0x69   : > { %p10506_p3 = scmp.eq.s32.totalorder %s11519_s7, 0  ;;  %s11235_s11 = smov [#allocation8]  }
  0x6a   : > { %p11526_p4 = pnand %p9077_p0, %p1287_p1  ;;  %s1380_s6 = sshll.u32 %s11235_s11, 4  ;;  %s11538_s6 = int_to_ptr.vmem [resolvable:$true] %s1380_s6 }
  0x6c   : > { %s1300_s0 = sshll.u32 %s12843_s5, 4  ;;  %p10499_p5 = pneg %p11526_p4  ;;  %s1301_s0 = int_to_ptr.vmem [resolvable:$true] %s1300_s0 }
  0x6d   : > { %s11127_s18 = scalar_lea.vmem %s1301_s0, 16  ;;  %p11135_p11 = scmp.lt.s32.totalorder %s1301_s0, %s1301_s0 }
  0x6e   : > { %p11534_p6 = pnand %p10506_p3, %p10499_p5  ;;  %p11128_p7 = scmp.ne.s32.totalorder %s1301_s0, %s11127_s18 }
  0x6f   : > { %p11136_p12 = scmp.lt.s32.totalorder %s11127_s18, %s11127_s18 }
  0x70   : > { %p11129_p8 = pneg %p11534_p6 }
  0x71   : > { %p11137_p13 = por %p11136_p12, %p11135_p11 }
  0x72   : > { %p11130_p9 = pnand %p11129_p8, %p11128_p7 }
  0x74   : > { %p11131_p10 = pneg %p11130_p9 }
  0x76   : > { %p11138_p0 = pnand %p11137_p13, %p11131_p10 }
  0x78   : > { %11141 = shalt.err (!%p11138_p0)
}
  0x79   : > { %s11236_s17 = smov [#allocation5]   ;;  %s11142_s22 = scalar_lea.hbm %s11500_s23, 16 }
  0x7a   : > { %10502 = dma.vmem_to_smem (!%p11534_p6), %s1301_s0, 16, %s11236_s17, [#allocation7]  }
  0x7b   : > { %p11143_p1 = scmp.ne.s32.totalorder %s11500_s23, %s11142_s22  ;;  %p11149_p9 = scmp.lt.u32.totalorder %s11142_s22, %s11500_s23 }
  0x7d   : > { %p11145_p5 = pnand %p11143_p1, %p11129_p8 }
  0x7f   : > { %p11146_p7 = pneg %p11145_p5 }
  0x81   : > { %p11151_p2 = pnand %p11149_p9, %p11146_p7 }
  0x83   : > { %11154 = shalt.err (!%p11151_p2)
}
  0x84   : > { %s11155_s26 = scalar_lea.vmem %s11538_s6, 16  ;;  %s11162_s25 = scalar_lea.vmem %s11538_s6, 32 }
  0x85   : > { %p11156_p10 = scmp.ne.s32.totalorder %s11538_s6, %s11155_s26  ;;  %p11163_p13 = scmp.lt.s32.totalorder %s11538_s6, %s11538_s6 }
  0x86   : > { %p11164_p0 = scmp.lt.s32.totalorder %s11162_s25, %s11155_s26 }
  0x87   : > { %p11158_p11 = pnand %p11156_p10, %p11129_p8 }
  0x88   : > { %p11165_p1 = por %p11164_p0, %p11163_p13 }
  0x89   : > { %p11159_p12 = pneg %p11158_p11 }
  0x8b   : > { %p11166_p5 = pnand %p11165_p1, %p11159_p12 }
  0x8d   : > { %11169 = shalt.err (!%p11166_p5)
}
  0x8e   : > { %10505 = dma.hbm_to_vmem [thread:$0]  (!%p11534_p6), %s11500_s23, 16, %s11538_s6, [#allocation6]  }
  0x8f   : > { %1562 = sbr.rel (%p11526_p4) target bundleno = 15999 (0x3e7f), region = 216 }
  0x96   : > { %11175 = dma.done.wait (%p10506_p3), [#allocation7], 16  }
  0x97   : > { %11177 = vsyncadd (%p10506_p3), [#allocation7], 4294967280 }
  0x98   : > { %11179 = dma.done.wait (%p10506_p3), [#allocation6], 16  }
  0x99   : > { %11181 = vsyncadd (%p10506_p3), [#allocation6], 4294967280 }
  0x9a   : > { %1572 = sfence }
  0x9b   : > { %s12846_s3 = sld [smem:[#allocation17_spill]]  ;;  %p1774_p2 = scmp.lt.s32.totalorder %s11519_s7, 1  ;;  %v1879_v0 = vld [vmem:[%s12842_s13 + $0x8] sm:$0xff]  ;;  %v1885_v1 = vld [vmem:[%s12842_s13 + $0x38] sm:$0x3]  ;;  %v1878_v32 = vld [vmem:[%s12842_s13] sm:$0xff] }
  0x9c   : > { %s11576_s28 = sld [smem:[#allocation4]]  ;;  %v1989_v2 = vpack.c.bf16 %v1885_v1, %v1879_v0  ;;  %v1881_v3 = vld [vmem:[%s12842_s13 + $0x18] sm:$0xff]  ;;  %v1887_v4 = vld [vmem:[%s12842_s13 + $0x48] sm:$0x3]  ;;  %v1884_v33 = vld [vmem:[%s12842_s13 + $0x30] sm:$0x3] }
  0x9d   : > { %s11582_s2 = scalar_select %p1774_p2, %s11519_s7, 1  ;;  %v1991_v5 = vpack.c.bf16 %v1887_v4, %v1881_v3  ;;  %v1883_v35 = vld [vmem:[%s12842_s13 + $0x28] sm:$0xff]  ;;  %v1889_v36 = vld [vmem:[%s12842_s13 + $0x58] sm:$0x3]  ;;  %v1880_v38 = vld [vmem:[%s12842_s13 + $0x10] sm:$0xff]  ;;  %v1988_v43 = vpack.c.bf16 %v1884_v33, %v1878_v32  ;;  %vm2409_vm0 = vcmask 523264  }
  0x9e   : > { %2316 = vmatprep.mubr.bf16.mxu0 %v1989_v2  ;;  %v1886_v39 = vld [vmem:[%s12842_s13 + $0x40] sm:$0x3]  ;;  %v1993_v45 = vpack.c.bf16 %v1889_v36, %v1883_v35  ;;  %s12847_s8 = sld [smem:[#allocation18_spill]]  ;;  %v1888_v0 = vld [vmem:[%s12842_s13 + $0x50] sm:$0x3]  ;;  %vm2413_vm1 = vcmask 517120  }
  0x9f   : > { %s10490_s0 = smul.u32 384, %s11582_s2  ;;  %2357 = vmatprep.mubr.bf16.mxu1 %v1991_v5  ;;  %v1990_v47 = vpack.c.bf16 %v1886_v39, %v1880_v38  ;;  %v1882_v63 = vld [vmem:[%s12842_s13 + $0x20] sm:$0xff]  ;;  %s9644_s11 = sshll.u32 %s11582_s2, 4  ;;  %vm11238_vm2 = vmmov 0   ;;  %vm2797_vm3 = vcmask 130048   ;;  %vm2878_vm4 = vcmask 1044480  }
  0xa0   : > { %v1992_v1 = vpack.c.bf16 %v1888_v0, %v1882_v63  ;;  %s12848_s14 = sld [smem:[#allocation19_spill]]  ;;  %s12849_s19 = sld [smem:[#allocation20_spill]]  ;;  %vm2849_vm5 = vcmask 80896   ;;  %vm2853_vm6 = vcmask 74752   ;;  %vm2924_vm7 = vcmask 123904  }
  0xa1   : > { %s11587_s9 = scalar_lea.vmem %s12846_s3, %s10490_s0  ;;  %s11668_s17 = sshll.u32 %s11582_s2, 6  ;;  %vm3064_vm8 = vcmask 261248   ;;  %vm3066_vm9 = vcmask 255104   ;;  %vm3203_vm10 = vcmask 392448   ;;  %vm3205_vm11 = vcmask 386304  }
  0xa2   : > { %v10589_v6 = vld [vmem:[%s11587_s9 + $0x40] sm:$0xff]   ;;  %v10593_v10 = vld [vmem:[%s11587_s9 + $0x48] sm:$0xff]   ;;  %v10597_v14 = vld [vmem:[%s11587_s9 + $0x50] sm:$0xff]   ;;  %s11672_s22 = scalar_lea.vmem %s11345_s27, %s11668_s17  ;;  %s11677_s26 = scalar_lea.vmem %s11365_s21, %s11668_s17  ;;  %vm3342_vm12 = vcmask 523648   ;;  %vm3344_vm13 = vcmask 517504   ;;  %vm5050_vm14 = vcmask 516096  }
  0xa3   : > { %v10590_v7 = vld [vmem:[%s11587_s9] sm:$0xff]   ;;  %9652 = vmatprep.subr.bf16.mxu0 %v10589_v6  ;;  %v10594_v11 = vld [vmem:[%s11587_s9 + $0x8] sm:$0xff]   ;;  %v10598_v15 = vld [vmem:[%s11587_s9 + $0x10] sm:$0xff]   ;;  %s12850_s12 = sld [smem:[#allocation24_spill]]  ;;  %s12851_s20 = sld [smem:[#allocation25_spill]]  ;;  %vm5161_vm15 = vcmask 254976  }
  0xa4   : > { %v10591_v8 = vld [vmem:[%s11587_s9 + $0xc0] sm:$0xff]   ;;  %9653 = vmatpush3.bf16.msra.mxu0 %v10590_v7  ;;  %v10595_v12 = vld [vmem:[%s11587_s9 + $0xc8] sm:$0xff]   ;;  %v10599_v16 = vld [vmem:[%s11587_s9 + $0xd0] sm:$0xff]   ;;  %s1783_s6 = scalar_lea.vmem %s12847_s8, %s9644_s11  ;;  %s11701_s25 = scalar_lea.vmem %s11355_s29, %s11668_s17 }
  0xa5   : > { %v10592_v9 = vld [vmem:[%s11587_s9 + $0x80] sm:$0xff]   ;;  %9674 = vmatprep.subr.bf16.mxu1 %v10591_v8  ;;  %9654 = vmatprep.subr.bf16.mxu0 %v10593_v10  ;;  %v10596_v13 = vld [vmem:[%s11587_s9 + $0x88] sm:$0xff]   ;;  %v10600_v17 = vld [vmem:[%s11587_s9 + $0x90] sm:$0xff]   ;;  %s11705_s0 = sshll.u32 %s11582_s2, 1  ;;  %s12852_s4 = sld [smem:[#allocation26_spill]] }
  0xa6   : > { %9675 = vmatpush3.bf16.msra.mxu1 %v10592_v9  ;;  %v10601_v18 = vld [vmem:[%s11587_s9 + $0x58] sm:$0xff]   ;;  %v10605_v22 = vld [vmem:[%s11587_s9 + $0x60] sm:$0xff]   ;;  %v10609_v26 = vld [vmem:[%s11587_s9 + $0x68] sm:$0xff]   ;;  %s1786_s15 = scalar_lea.vmem %s12848_s14, %s11582_s2  ;;  %s1789_s18 = scalar_lea.vmem %s12849_s19, %s11582_s2 }
  0xa7   : > { %9676 = vmatprep.subr.bf16.mxu1 %v10595_v12  ;;  %v10602_v19 = vld [vmem:[%s11587_s9 + $0x18] sm:$0xff]   ;;  %v10606_v23 = vld [vmem:[%s11587_s9 + $0x20] sm:$0xff]   ;;  %v10610_v27 = vld [vmem:[%s11587_s9 + $0x28] sm:$0xff]   ;;  %s12768_s5 = smov 96   ;;  %s12770_s8 = smov 80  }
  0xa8   : > { %9655 = vmatpush3.bf16.msra.mxu0 %v10594_v11  ;;  %v10603_v20 = vld [vmem:[%s11587_s9 + $0xd8] sm:$0xff]   ;;  %v10607_v24 = vld [vmem:[%s11587_s9 + $0xe0] sm:$0xff]   ;;  %v10611_v28 = vld [vmem:[%s11587_s9 + $0xe8] sm:$0xff]   ;;  %s12860_s14 = sld [smem:[#allocation34_spill]]  ;;  %p12872_p3 = scmp.ne.s32.totalorder %s11519_s7, 0 }
  0xa9   : > { %9656 = vmatprep.subr.bf16.mxu0 %v10597_v14  ;;  %v10604_v21 = vld [vmem:[%s11587_s9 + $0x98] sm:$0xff]   ;;  %v10608_v25 = vld [vmem:[%s11587_s9 + $0xa0] sm:$0xff]   ;;  %v10612_v29 = vld [vmem:[%s11587_s9 + $0xa8] sm:$0xff]   ;;  %s11714_s11 = scalar_lea.vmem %s12851_s20, %s11705_s0 }
  0xaa   : > { %9677 = vmatpush3.bf16.msra.mxu1 %v10596_v13  ;;  %v10613_v30 = vld [vmem:[%s11587_s9 + $0x70] sm:$0xff]   ;;  %v10617_v40 = vld [vmem:[%s11587_s9 + $0x78] sm:$0xff]   ;;  %v10621_v46 = vld [vmem:[%s11587_s9 + $0x140] sm:$0xff]  }
  0xab   : > { %9678 = vmatprep.subr.bf16.mxu1 %v10599_v16  ;;  %v10614_v31 = vld [vmem:[%s11587_s9 + $0x30] sm:$0xff]   ;;  %v10618_v41 = vld [vmem:[%s11587_s9 + $0x38] sm:$0xff]   ;;  %v10622_v48 = vld [vmem:[%s11587_s9 + $0x100] sm:$0xff]  }
  0xac   : > { %9657 = vmatpush3.bf16.msra.mxu0 %v10598_v15  ;;  %v10615_v34 = vld [vmem:[%s11587_s9 + $0xf0] sm:$0xff]   ;;  %v10619_v42 = vld [vmem:[%s11587_s9 + $0xf8] sm:$0xff]   ;;  %v10623_v49 = vld [vmem:[%s11587_s9 + $0x148] sm:$0xff]  }
  0xad   : > { %9658 = vmatprep.subr.bf16.mxu0 %v10601_v18  ;;  %v10616_v37 = vld [vmem:[%s11587_s9 + $0xb0] sm:$0xff]   ;;  %v10620_v44 = vld [vmem:[%s11587_s9 + $0xb8] sm:$0xff]   ;;  %v10624_v50 = vld [vmem:[%s11587_s9 + $0x108] sm:$0xff]  }
  0xae   : > { %9679 = vmatpush3.bf16.msra.mxu1 %v10600_v17  ;;  %v10625_v51 = vld [vmem:[%s11587_s9 + $0x150] sm:$0xff]   ;;  %v10627_v53 = vld [vmem:[%s11587_s9 + $0x158] sm:$0xff]   ;;  %v10629_v55 = vld [vmem:[%s11587_s9 + $0x160] sm:$0xff]  }
  0xaf   : > { %9680 = vmatprep.subr.bf16.mxu1 %v10603_v20  ;;  %v10626_v52 = vld [vmem:[%s11587_s9 + $0x110] sm:$0xff]   ;;  %v10628_v54 = vld [vmem:[%s11587_s9 + $0x118] sm:$0xff]   ;;  %v10630_v56 = vld [vmem:[%s11587_s9 + $0x120] sm:$0xff]  }
  0xb0   : > { %9659 = vmatpush3.bf16.msra.mxu0 %v10602_v19  ;;  %v10631_v57 = vld [vmem:[%s11587_s9 + $0x168] sm:$0xff]   ;;  %v10633_v59 = vld [vmem:[%s11587_s9 + $0x170] sm:$0xff]   ;;  %v10635_v61 = vld [vmem:[%s11587_s9 + $0x178] sm:$0xff]  }
  0xb1   : > { %9660 = vmatprep.subr.bf16.mxu0 %v10605_v22  ;;  %v10632_v58 = vld [vmem:[%s11587_s9 + $0x128] sm:$0xff]   ;;  %v10634_v60 = vld [vmem:[%s11587_s9 + $0x130] sm:$0xff]   ;;  %v10636_v62 = vld [vmem:[%s11587_s9 + $0x138] sm:$0xff]   ;;  %s11709_s9 = scalar_lea.vmem %s12850_s12, %s11705_s0 }
  0xb2   : > { %9681 = vmatpush3.bf16.msra.mxu1 %v10604_v21  ;;  %v1994_v3 = vld [vmem:[%s1783_s6] sm:$0xff]  ;;  %v1995_v8 = vld [vmem:[%s1783_s6 + $0x8] sm:$0x3]  ;;  %s11736_s6 = scalar_lea.vmem %s12852_s4, %s11705_s0  ;;  %s12854_s4 = sld [smem:[#allocation13_spill]] }
  0xb3   : > { %9682 = vmatprep.subr.bf16.mxu1 %v10607_v24 }
  0xb4   : > { %9661 = vmatpush3.bf16.msra.mxu0 %v10606_v23 }
  0xb5   : > { %9662 = vmatprep.subr.bf16.mxu0 %v10609_v26 }
  0xb6   : > { %9683 = vmatpush3.bf16.msra.mxu1 %v10608_v25 }
  0xb7   : > { %9684 = vmatprep.subr.bf16.mxu1 %v10611_v28 }
  0xb8   : > { %9663 = vmatpush3.bf16.msra.mxu0 %v10610_v27 }
  0xb9   : > { %9664 = vmatprep.subr.bf16.mxu0 %v10613_v30 }
  0xba   : > { %9685 = vmatpush3.bf16.msra.mxu1 %v10612_v29 }
  0xbb   : > { %9686 = vmatprep.subr.bf16.mxu1 %v10615_v34 }
  0xbc   : > { %9665 = vmatpush3.bf16.msra.mxu0 %v10614_v31 }
  0xbd   : > { %9666 = vmatprep.subr.bf16.mxu0 %v10617_v40 }
  0xbe   : > { %9687 = vmatpush3.bf16.msra.mxu1 %v10616_v37 }
  0xbf   : > { %9688 = vmatprep.subr.bf16.mxu1 %v10619_v42 }
  0xc0   : > { %9667 = vmatpush3.bf16.msra.mxu0 %v10618_v41 }
  0xc1   : > { %9696 = vmatprep.subr.bf16.mxu0 %v10621_v46 }
  0xc2   : > { %9689 = vmatpush3.bf16.msra.mxu1 %v10620_v44 }
  0xc3   : > { %2317 = vmatmul.mubr.bf16.vlgmr.msra.gmra.mrb[0].mxu0 %v1988_v43 }
  0xc4   : > { %9697 = vmatpush3.bf16.msra.mxu0 %v10622_v48  ;;  %2398 = vmatprep.mubr.bf16.mxu0 %v1993_v45 }
  0xc5   : > { %2358 = vmatmul.mubr.bf16.vlgmr.msra.gmra.mrb[0].mxu1 %v1990_v47  ;;  %9698 = vmatprep.subr.bf16.mxu0 %v10623_v49  ;;  %v9160_v47 = vld [vmem:[%s1786_s15] ss:$0 sm:$0xff]  ;;  %s11740_s15 = scalar_lea.vmem %s11370_s30, %s11705_s0 }
  0xc6   : > { %v9161_v49 = vld [vmem:[%s1789_s18] ss:$0 sm:$0xff]  ;;  %s12853_s18 = sld [smem:[#allocation27_spill]] }
  0xc8   : > { %9699 = vmatpush3.bf16.msra.mxu0 %v10624_v50 }
  0xc9   : > { %9700 = vmatprep.subr.bf16.mxu0 %v10625_v51 }
  0xcc   : > { %9701 = vmatpush3.bf16.msra.mxu0 %v10626_v52  ;;  %s11748_s3 = scalar_lea.vmem %s12853_s18, %s11705_s0  ;;  %s12772_s18 = smov 112  }
  0xcd   : > { %9702 = vmatprep.subr.bf16.mxu0 %v10627_v53 }
  0xd0   : > { %9703 = vmatpush3.bf16.msra.mxu0 %v10628_v54 }
  0xd1   : > { %9704 = vmatprep.subr.bf16.mxu0 %v10629_v55 }
  0xd4   : > { %9705 = vmatpush3.bf16.msra.mxu0 %v10630_v56 }
  0xd5   : > { %9706 = vmatprep.subr.bf16.mxu0 %v10631_v57 }
  0xd8   : > { %9707 = vmatpush3.bf16.msra.mxu0 %v10632_v58 }
  0xd9   : > { %9708 = vmatprep.subr.bf16.mxu0 %v10633_v59 }
  0xdc   : > { %9709 = vmatpush3.bf16.msra.mxu0 %v10634_v60 }
  0xdd   : > { %9710 = vmatprep.subr.bf16.mxu0 %v10635_v61 }
  0xe0   : > { %9711 = vmatpush3.bf16.msra.mxu0 %v10636_v62 }
  0xe3   : > { %2399 = vmatmul.mubr.bf16.vlgmr.msra.gmra.mrb[4].mxu0 %v1992_v1 }
 0x196   : > { %v9668_v2 = vpop.f32.mrb[0].mxu0 }
 0x197   : > { %v9669_v4 = vpop.f32.mrb[1].mxu0 }
 0x198   : > { %v9670_v5 = vadd.f32 %v9669_v4, %v9668_v2  ;;  %v9671_v6 = vpop.f32.mrb[2].mxu0  ;;  %v9690_v7 = vpop.f32.mrb[0].mxu1  ;;  %v10637_v4 = vld [vmem:[%s11672_s22] sm:$0xff]  }
 0x199   : > { %v9672_v9 = vpop.f32.mrb[3].mxu0  ;;  %v9691_v10 = vpop.f32.mrb[1].mxu1 }
 0x19a   : > { %v2319_v11 = vadd.f32 %v9670_v5, %v1994_v3  ;;  %v9673_v12 = vadd.f32 %v9672_v9, %v9671_v6  ;;  %v9692_v13 = vadd.f32 %v9691_v10, %v9690_v7  ;;  %v9693_v14 = vpop.f32.mrb[2].mxu1  ;;  %v11237_v5 = vmov 0.0   ;;  %v10638_v6 = vld [vmem:[%s11677_s26] sm:$0xff]   ;;  %v10639_v7 = vld [vmem:[%s11672_s22 + $0x8] sm:$0xff]   ;;  %v10641_v9 = vld [vmem:[%s11672_s22 + $0x10] sm:$0xff]  }
 0x19b   : > { %v9694_v15 = vpop.f32.mrb[3].mxu1  ;;  %10016 = vmatprep.subr.bf16.mxu1 %v11237_v5  ;;  %10040 = vmatprep.subr.bf16.mxu0 %v11237_v5  ;;  %v10642_v10 = vld [vmem:[%s11677_s26 + $0x10] sm:$0xff]  }
 0x19c   : > { %v2322_v16 = vadd.f32 %v9673_v12, %v1995_v8  ;;  %v2360_v17 = vadd.f32 %v9692_v13, %v2319_v11  ;;  %v9695_v18 = vadd.f32 %v9694_v15, %v9693_v14  ;;  %10017 = vmatpush3.bf16.msra.mxu1 %v10637_v4  ;;  %10041 = vmatpush3.bf16.msra.mxu0 %v10638_v6  ;;  %v10640_v8 = vld [vmem:[%s11677_s26 + $0x8] sm:$0xff]   ;;  %v10643_v11 = vld [vmem:[%s11672_s22 + $0x18] sm:$0xff]  }
 0x19d   : > { %10018 = vmatprep.subr.bf16.mxu1 %v11237_v5  ;;  %10042 = vmatprep.subr.bf16.mxu0 %v11237_v5  ;;  %v10644_v12 = vld [vmem:[%s11677_s26 + $0x18] sm:$0xff]  }
 0x19e   : > { %v2363_v19 = vadd.f32 %v9695_v18, %v2322_v16  ;;  %10024 = vmatprep.mubr.msk.bf16.mxu1 %vm11238_vm2, %v11237_v5  ;;  %10048 = vmatprep.mubr.msk.bf16.mxu0 %vm11238_vm2, %v11237_v5 }
 0x1a0   : > { %10019 = vmatpush3.bf16.msra.mxu1 %v10639_v7  ;;  %10043 = vmatpush3.bf16.msra.mxu0 %v10640_v8 }
 0x1a1   : > { %10020 = vmatprep.subr.bf16.mxu1 %v11237_v5  ;;  %10044 = vmatprep.subr.bf16.mxu0 %v11237_v5 }
 0x1a4   : > { %10021 = vmatpush3.bf16.msra.mxu1 %v10641_v9  ;;  %10045 = vmatpush3.bf16.msra.mxu0 %v10642_v10 }
 0x1a5   : > { %10022 = vmatprep.subr.bf16.mxu1 %v11237_v5  ;;  %10046 = vmatprep.subr.bf16.mxu0 %v11237_v5 }
 0x1a8   : > { %10023 = vmatpush3.bf16.msra.mxu1 %v10643_v11  ;;  %10047 = vmatpush3.bf16.msra.mxu0 %v10644_v12 }
 0x1a9   : > { %10028 = vmatprep.subr.bf16.mxu1 %v11237_v5  ;;  %10076 = vmatprep.subr.bf16.mxu0 %v11237_v5 }
 0x1b6   : > { %v9712_v20 = vpop.f32.mrb[4].mxu0 }
 0x1b7   : > { %v9713_v21 = vpop.f32.mrb[5].mxu0 }
 0x1b8   : > { %v9714_v22 = vadd.f32 %v9713_v21, %v9712_v20  ;;  %v9715_v23 = vpop.f32.mrb[6].mxu0  ;;  %v9162_v21 = vld [vmem:[%s11709_s9] ss:$0 sm:$0xff] }
 0x1b9   : > { %v9716_v24 = vpop.f32.mrb[7].mxu0 }
 0x1ba   : > { %v9717_v25 = vadd.f32 %v9716_v24, %v9715_v23  ;;  %v2401_v26 = vadd.f32 %v9714_v22, %v2360_v17 }
 0x1bc   : > { %v2410_v27 = vsel %vm2409_vm0, %v2401_v26, 0.0  ;;  %v2404_v28 = vadd.f32 %v9717_v25, %v2363_v19  ;;  %v9163_v25 = vld [vmem:[%s11714_s11] ss:$0 sm:$0xff] }
 0x1bd   : > { %2411 = vadd.xlane.f32.xlu0 %v2410_v27 }
 0x1be   : > { %v2414_v29 = vsel %vm2413_vm1, %v2404_v28, 0.0 }
 0x1c1   : > { %2415 = vadd.xlane.f32.xlu0 %v2414_v29  ;;  %v10645_v29 = vld [vmem:[%s11701_s25] sm:$0xff]  }
 0x24a   : > { %v2412_v30 = vpop.xlane.xlu0 %2411 }
 0x24b   : > { %v2418_v31 = vmul.f32 0.015625, %v2412_v30 }
 0x24d   : > { %v2420_v32 = vsub.f32 %v2401_v26, %v2418_v31  ;;  %v10646_v31 = vld [vmem:[%s11701_s25 + $0x8] sm:$0xff]  }
 0x24e   : > { %v2416_v33 = vpop.xlane.xlu0 %2415 }
 0x24f   : > { %v2419_v34 = vmul.f32 0.015625, %v2416_v33  ;;  %v2422_v35 = vmul.f32 %v2420_v32, %v2420_v32  ;;  %v10648_v33 = vld [vmem:[%s11701_s25 + $0x18] sm:$0xff]  }
 0x251   : > { %v2421_v36 = vsub.f32 %v2404_v28, %v2419_v34  ;;  %v2424_v37 = vsel %vm2409_vm0, %v2422_v35, 0.0  ;;  %v9164_v34 = vld [vmem:[%s11736_s6] ss:$0 sm:$0xff] }
 0x252   : > { %2425 = vadd.xlane.f32.xlu1 %v2424_v37 }
 0x253   : > { %v2423_v38 = vmul.f32 %v2421_v36, %v2421_v36 }
 0x255   : > { %v2427_v39 = vsel %vm2413_vm1, %v2423_v38, 0.0 }
 0x256   : > { %2428 = vadd.xlane.f32.xlu1 %v2427_v39 }
 0x2df   : > { %v2426_v40 = vpop.xlane.xlu1 %2425 }
 0x2e0   : > { %v2430_v41 = vmul.f32 0.015625, %v2426_v40 }
 0x2e2   : > { %v2432_v42 = vadd.f32 1e-05, %v2430_v41 }
 0x2e3   : > { %v2429_v43 = vpop.xlane.xlu1 %2428 }
 0x2e4   : > { %10729 = vrsqrt.f32 %v2432_v42  ;;  %v2431_v44 = vmul.f32 0.015625, %v2429_v43 }
 0x2e6   : > { %v2433_v45 = vadd.f32 1e-05, %v2431_v44 }
 0x2e8   : > { %10731 = vrsqrt.f32 %v2433_v45 }
 0x2ee   : > { %v10730_v46 = vpop.eup %10729 }
 0x2ef   : > { %v2436_v48 = vmul.f32 %v10730_v46, %v2420_v32  ;;  %v10647_v32 = vld [vmem:[%s11701_s25 + $0x10] sm:$0xff]  }
 0x2f1   : > { %v2444_v50 = vmul.f32 %v9160_v47, %v2436_v48 }
 0x2f2   : > { %v10732_v51 = vpop.eup %10731 }
 0x2f3   : > { %v11655_v52 = vadd.f32 %v9161_v49, %v2444_v50  ;;  %v2437_v53 = vmul.f32 %v10732_v51, %v2421_v36  ;;  %v9176_v36 = vld [vmem:[%s11740_s15] ss:$0 sm:$0xff] }
 0x2f4   : > { %v9170_v50 = vld [vmem:[%s11748_s3] ss:$0 sm:$0xff] }
 0x2f5   : > { %v2536_v54 = vsel %vm2409_vm0, %v11655_v52, 0.0  ;;  %v2445_v55 = vmul.f32 %v9160_v47, %v2437_v53 }
 0x2f6   : > { %2537 = vadd.xlane.f32.xlu0 %v2536_v54 }
 0x2f7   : > { %v11659_v56 = vadd.f32 %v9161_v49, %v2445_v55 }
 0x2f9   : > { %v2539_v57 = vsel %vm2413_vm1, %v11659_v56, 0.0 }
 0x2fa   : > { %2540 = vadd.xlane.f32.xlu1 %v2539_v57 }
 0x383   : > { %v2538_v58 = vpop.xlane.xlu0 %2537 }
 0x384   : > { %v2542_v59 = vmul.f32 0.015625, %v2538_v58 }
 0x386   : > { %v2544_v60 = vsub.f32 %v11655_v52, %v2542_v59 }
 0x387   : > { %v2541_v61 = vpop.xlane.xlu1 %2540 }
 0x388   : > { %v2543_v62 = vmul.f32 0.015625, %v2541_v61  ;;  %v2546_v63 = vmul.f32 %v2544_v60, %v2544_v60 }
 0x38a   : > { %v2545_v0 = vsub.f32 %v11659_v56, %v2543_v62  ;;  %v2548_v1 = vsel %vm2409_vm0, %v2546_v63, 0.0  ;;  %v11760_v63 = vld [vmem:[%s12854_s4] sm:$0xff] }
 0x38b   : > { %2549 = vadd.xlane.f32.xlu0 %v2548_v1 }
 0x38c   : > { %v2547_v2 = vmul.f32 %v2545_v0, %v2545_v0 }
 0x38e   : > { %v2551_v3 = vsel %vm2413_vm1, %v2547_v2, 0.0 }
 0x38f   : > { %2552 = vadd.xlane.f32.xlu1 %v2551_v3  ;;  %v11763_v3 = vld [vmem:[%s12854_s4 + $0x8] sm:$0x3] }
 0x418   : > { %v2550_v13 = vpop.xlane.xlu0 %2549 }
 0x419   : > { %v2554_v14 = vmul.f32 0.015625, %v2550_v13 }
 0x41b   : > { %v2556_v15 = vadd.f32 1e-05, %v2554_v14 }
 0x41c   : > { %v2553_v16 = vpop.xlane.xlu1 %2552 }
 0x41d   : > { %10733 = vrsqrt.f32 %v2556_v15  ;;  %v2555_v17 = vmul.f32 0.015625, %v2553_v16 }
 0x41f   : > { %v2557_v18 = vadd.f32 1e-05, %v2555_v17 }
 0x421   : > { %10735 = vrsqrt.f32 %v2557_v18 }
 0x427   : > { %v10734_v19 = vpop.eup %10733 }
 0x428   : > { %v2560_v20 = vmul.f32 %v10734_v19, %v2544_v60 }
 0x42a   : > { %v2568_v23 = vmul.f32 %v9162_v21, %v2560_v20 }
 0x42b   : > { %v10736_v22 = vpop.eup %10735 }
 0x42c   : > { %v2561_v24 = vmul.f32 %v10736_v22, %v2545_v0  ;;  %v2576_v27 = vadd.f32 %v9163_v25, %v2568_v23 }
 0x42e   : > { %v2569_v26 = vmul.f32 %v9162_v21, %v2561_v24 }
 0x430   : > { %v2577_v28 = vadd.f32 %v9163_v25, %v2569_v26 }
 0x432   : > { %v2578_v30 = vpack.c.bf16 %v2577_v28, %v2576_v27 }
 0x434   : > { %10025 = vmatmul.mubr.msk.bf16.vlgmr.msra.gmra.mrb[4].mxu1 %vm2409_vm0, %v2578_v30  ;;  %10049 = vmatmul.mubr.msk.bf16.vlgmr.msra.gmra.mrb[8].mxu0 %vm2409_vm0, %v2578_v30 }
 0x435   : > { %10029 = vmatpush3.bf16.msra.mxu1 %v10645_v29  ;;  %10036 = vmatprep.mubr.msk.bf16.mxu1 %vm11238_vm2, %v11237_v5 }
 0x436   : > { %10030 = vmatprep.subr.bf16.mxu1 %v11237_v5  ;;  %10078 = vmatprep.mubr.msk.bf16.mxu0 %vm11238_vm2, %v11237_v5 }
 0x439   : > { %10031 = vmatpush3.bf16.msra.mxu1 %v10646_v31 }
 0x43a   : > { %10032 = vmatprep.subr.bf16.mxu1 %v11237_v5 }
 0x43d   : > { %10033 = vmatpush3.bf16.msra.mxu1 %v10647_v32 }
 0x43e   : > { %10034 = vmatprep.subr.bf16.mxu1 %v11237_v5 }
 0x441   : > { %10035 = vmatpush3.bf16.msra.mxu1 %v10648_v33 }
 0x442   : > { %10052 = vmatprep.subr.bf16.mxu1 %v11237_v5 }
 0x444   : > { %10037 = vmatmul.mubr.msk.bf16.vlgmr.msra.gmra.mrb[8].mxu1 %vm2409_vm0, %v2578_v30 }
 0x445   : > { %10054 = vmatprep.mubr.msk.bf16.mxu1 %vm11238_vm2, %v11237_v5 }
 0x507   : > { %v2646_v35 = vpop.f32.mrb[4].mxu1  ;;  %v2788_v37 = vpop.f32.mrb[8].mxu0 }
 0x508   : > { %v10026_v38 = vpop.f32.mrb[5].mxu1  ;;  %v10050_v39 = vpop.f32.mrb[9].mxu0  ;;  %v2647_v42 = vadd.f32 %v9164_v34, %v2646_v35  ;;  %v2789_v43 = vadd.f32 %v9176_v36, %v2788_v37 }
 0x509   : > { %v2649_v40 = vpop.f32.mrb[6].mxu1  ;;  %v2791_v41 = vpop.f32.mrb[10].mxu0 }
 0x50a   : > { %v2650_v44 = vadd.f32 %v9164_v34, %v2649_v40  ;;  %v2792_v45 = vadd.f32 %v9176_v36, %v2791_v41  ;;  %v10027_v46 = vpop.f32.mrb[7].mxu1  ;;  %v10051_v47 = vpop.f32.mrb[11].mxu0 }
 0x50c   : > { %v2795_v48 = vpack.c.bf16 %v2650_v44, %v2647_v42  ;;  %v11744_v49 = vpack.c.bf16 %v2792_v45, %v2789_v43 }
 0x50e   : > { %v2880_v61 = vsel %vm2878_vm4, %v11744_v49, 0 }
 0x517   : > { %v2717_v51 = vpop.f32.mrb[8].mxu1 }
 0x518   : > { %v10038_v53 = vpop.f32.mrb[9].mxu1  ;;  %v2718_v55 = vadd.f32 %v9170_v50, %v2717_v51 }
 0x519   : > { %v2720_v54 = vpop.f32.mrb[10].mxu1 }
 0x51a   : > { %v2721_v57 = vadd.f32 %v9170_v50, %v2720_v54  ;;  %v10039_v58 = vpop.f32.mrb[11].mxu1 }
 0x51c   : > { %v2796_v59 = vpack.c.bf16 %v2721_v57, %v2718_v55 }
 0x51e   : > { %v2802_v60 = vsel %vm2797_vm3, %v2796_v59, 0 }
 0x51f   : > { %10053 = vmatpush3.bf16.xpose.msra.mxu1 %v2802_v60 }
 0x520   : > { %10058 = vmatprep.subr.bf16.mxu1 %v11237_v5 }
 0x526   : > { %10055 = vmatmul.mubr.msk.bf16.vlgmr.msra.gmra.mrb[12].mxu1 %vm2797_vm3, %v2795_v48 }
 0x527   : > { %10059 = vmatpush3.bf16.msra.mxu1 %v2880_v61  ;;  %10060 = vmatprep.mubr.msk.bf16.mxu1 %vm11238_vm2, %v11237_v5 }
 0x528   : > { %10064 = vmatprep.subr.bf16.mxu1 %v11237_v5 }
 0x5f9   : > { %v2838_v62 = vpop.f32.mrb[12].mxu1 }
 0x5fa   : > { %v2845_v0 = vmul.f32 0.25, %v2838_v62  ;;  %v10056_v1 = vpop.f32.mrb[13].mxu1 }
 0x5fb   : > { %v2841_v2 = vpop.f32.mrb[14].mxu1 }
 0x5fc   : > { %v2846_v4 = vmul.f32 0.25, %v2841_v2  ;;  %v10057_v6 = vpop.f32.mrb[15].mxu1  ;;  %v2847_v7 = vadd.f32 %v2845_v0, %v11760_v63 }
 0x5fe   : > { %v2850_v8 = vsel %vm2849_vm5, %v2847_v7, -inf  ;;  %v2848_v9 = vadd.f32 %v2846_v4, %v11763_v3 }
 0x5ff   : > { %2851 = vmax.xlane.f32.xlu0 %v2850_v8 }
 0x600   : > { %v2854_v10 = vsel %vm2853_vm6, %v2848_v9, -inf }
 0x601   : > { %2855 = vmax.xlane.f32.xlu1 %v2854_v10 }
 0x68c   : > { %v2852_v11 = vpop.xlane.xlu0 %2851 }
 0x68d   : > { %v2857_v12 = vsub.f32 %v2847_v7, %v2852_v11 }
 0x68e   : > { %v2856_v13 = vpop.xlane.xlu1 %2855 }
 0x68f   : > { %v2859_v14 = vmul.f32 1.442695, %v2857_v12  ;;  %v2858_v15 = vsub.f32 %v2848_v9, %v2856_v13 }
 0x691   : > { %10737 = vpow2.f32 %v2859_v14  ;;  %v2861_v16 = vmul.f32 1.442695, %v2858_v15 }
 0x693   : > { %10739 = vpow2.f32 %v2861_v16 }
 0x69b   : > { %v10738_v17 = vpop.eup %10737 }
 0x69c   : > { %v2863_v18 = vsel %vm2849_vm5, %v10738_v17, 0.0 }
 0x69d   : > { %v10740_v19 = vpop.eup %10739  ;;  %2864 = vadd.xlane.f32.xlu0 %v2863_v18 }
 0x69e   : > { %v2866_v20 = vsel %vm2853_vm6, %v10740_v19, 0.0 }
 0x69f   : > { %2867 = vadd.xlane.f32.xlu1 %v2866_v20 }
 0x6b0   : > { %2927 = vrot.lane.b32.xlu1 %v2795_v48, %s12772_s18 }
 0x6b3   : > { %2930 = vrot.lane.b32.xlu0 %v2796_v59, %s12772_s18 }
 0x6b4   : > { %3070 = vrot.lane.b32.xlu1 %v2796_v59, %s12768_s5 }
 0x6b7   : > { %3209 = vrot.lane.b32.xlu0 %v2796_v59, %s12770_s8 }
 0x6b8   : > { %3068 = vrot.lane.b32.xlu1 %v2795_v48, %s12768_s5 }
 0x6bc   : > { %3207 = vrot.lane.b32.xlu1 %v2795_v48, %s12770_s8 }
 0x72a   : > { %v2865_v21 = vpop.xlane.xlu0 %2864 }
 0x72b   : > { %10741 = vrcp.f32 %v2865_v21 }
 0x72c   : > { %v2868_v22 = vpop.xlane.xlu1 %2867 }
 0x72d   : > { %10743 = vrcp.f32 %v2868_v22 }
 0x72e   : > { %v2931_v24 = vpop.permute.xlu0 %2930 }
 0x72f   : > { %v2936_v33 = vsel %vm2797_vm3, %v2931_v24, 0 }
 0x730   : > { %v2928_v23 = vpop.permute.xlu1 %2927 }
 0x732   : > { %v3210_v31 = vpop.permute.xlu0 %3209 }
 0x733   : > { %v3215_v35 = vsel %vm2797_vm3, %v3210_v31, 0 }
 0x734   : > { %v3071_v25 = vpop.permute.xlu1 %3070 }
 0x735   : > { %v10742_v26 = vpop.eup %10741  ;;  %v3076_v27 = vsel %vm2797_vm3, %v3071_v25, 0 }
 0x736   : > { %10077 = vmatpush3.bf16.xpose.msra.mxu0 %v3076_v27  ;;  %v2871_v29 = vmul.f32 %v10742_v26, %v10738_v17 }
 0x737   : > { %v10744_v28 = vpop.eup %10743  ;;  %10088 = vmatprep.subr.bf16.mxu0 %v11237_v5 }
 0x738   : > { %v2872_v30 = vmul.f32 %v10744_v28, %v10740_v19  ;;  %v3069_v34 = vpop.permute.xlu1 %3068 }
 0x73a   : > { %v2873_v32 = vpack.c.bf16 %v2872_v30, %v2871_v29 }
 0x73c   : > { %10061 = vmatmul.mubr.msk.bf16.vlgmr.msra.gmra.mrb[16].mxu1 %vm2849_vm5, %v2873_v32  ;;  %v3208_v36 = vpop.permute.xlu1 %3207 }
 0x73d   : > { %10065 = vmatpush3.bf16.xpose.msra.mxu1 %v2936_v33  ;;  %10079 = vmatmul.mubr.msk.bf16.vlgmr.msra.gmra.mrb[12].mxu0 %vm2797_vm3, %v3069_v34 }
 0x73e   : > { %10089 = vmatpush3.bf16.xpose.msra.mxu0 %v3215_v35  ;;  %10066 = vmatprep.mubr.msk.bf16.mxu1 %vm11238_vm2, %v11237_v5 }
 0x73f   : > { %10090 = vmatprep.mubr.msk.bf16.mxu0 %vm11238_vm2, %v11237_v5  ;;  %10070 = vmatprep.subr.bf16.mxu1 %v11237_v5 }
 0x740   : > { %10100 = vmatprep.subr.bf16.mxu0 %v11237_v5 }
 0x744   : > { %10067 = vmatmul.mubr.msk.bf16.vlgmr.msra.gmra.mrb[20].mxu1 %vm2797_vm3, %v2928_v23 }
 0x745   : > { %10091 = vmatmul.mubr.msk.bf16.vlgmr.msra.gmra.mrb[16].mxu0 %vm2797_vm3, %v3208_v36  ;;  %10072 = vmatprep.mubr.msk.bf16.mxu1 %vm11238_vm2, %v11237_v5 }
 0x746   : > { %10108 = vmatprep.mubr.msk.bf16.mxu0 %vm11238_vm2, %v11237_v5 }
 0x80f   : > { %v2916_v37 = vpop.f32.mrb[16].mxu1 }
 0x810   : > { %2923 = vst.msk [vmem:[#allocation2] sm:$0xff] %vm2797_vm3, %v2916_v37  ;;  %v10062_v38 = vpop.f32.mrb[17].mxu1  ;;  %v3112_v39 = vpop.f32.mrb[12].mxu0 }
 0x811   : > { %v2919_v40 = vpop.f32.mrb[18].mxu1  ;;  %v10080_v41 = vpop.f32.mrb[13].mxu0  ;;  %v3119_v46 = vmul.f32 0.25, %v3112_v39 }
 0x812   : > { %2925 = vst.msk [vmem:[#allocation2 + $0x8] sm:$0x3] %vm2924_vm7, %v2919_v40  ;;  %v10063_v42 = vpop.f32.mrb[19].mxu1  ;;  %v3115_v43 = vpop.f32.mrb[14].mxu0 }
 0x813   : > { %v10081_v44 = vpop.f32.mrb[15].mxu0  ;;  %v3120_v61 = vmul.f32 0.25, %v3115_v43  ;;  %v3121_v1 = vadd.f32 %v3119_v46, %v11760_v63 }
 0x815   : > { %v3123_v7 = vsel %vm2849_vm5, %v3121_v1, -inf  ;;  %v3122_v8 = vadd.f32 %v3120_v61, %v11763_v3 }
 0x817   : > { %v2972_v45 = vpop.f32.mrb[20].mxu1  ;;  %v3126_v10 = vsel %vm2853_vm6, %v3122_v8, -inf }
 0x818   : > { %v2979_v47 = vmul.f32 0.25, %v2972_v45  ;;  %v10068_v48 = vpop.f32.mrb[21].mxu1  ;;  %v3251_v50 = vpop.f32.mrb[16].mxu0 }
 0x819   : > { %v2975_v51 = vpop.f32.mrb[22].mxu1  ;;  %v10092_v53 = vpop.f32.mrb[17].mxu0  ;;  %v3258_v6 = vmul.f32 0.25, %v3251_v50 }
 0x81a   : > { %v2980_v54 = vmul.f32 0.25, %v2975_v51  ;;  %v10069_v55 = vpop.f32.mrb[23].mxu1  ;;  %v3254_v57 = vpop.f32.mrb[18].mxu0  ;;  %v2981_v58 = vadd.f32 %v2979_v47, %v11760_v63 }
 0x81b   : > { %v3259_v59 = vmul.f32 0.25, %v3254_v57  ;;  %v10093_v60 = vpop.f32.mrb[19].mxu0  ;;  %v3260_v11 = vadd.f32 %v3258_v6, %v11760_v63 }
 0x81c   : > { %v2983_v62 = vsel %vm2849_vm5, %v2981_v58, -inf  ;;  %v2982_v0 = vadd.f32 %v2980_v54, %v11763_v3 }
 0x81d   : > { %2984 = vmax.xlane.f32.xlu0 %v2983_v62  ;;  %v3261_v4 = vadd.f32 %v3259_v59, %v11763_v3  ;;  %v3262_v12 = vsel %vm2849_vm5, %v3260_v11, -inf }
 0x81e   : > { %v2986_v2 = vsel %vm2853_vm6, %v2982_v0, -inf }
 0x81f   : > { %2987 = vmax.xlane.f32.xlu1 %v2986_v2  ;;  %v3265_v9 = vsel %vm2853_vm6, %v3261_v4, -inf }
 0x821   : > { %3124 = vmax.xlane.f32.xlu0 %v3123_v7 }
 0x823   : > { %3266 = vmax.xlane.f32.xlu1 %v3265_v9 }
 0x825   : > { %3127 = vmax.xlane.f32.xlu0 %v3126_v10 }
 0x829   : > { %3263 = vmax.xlane.f32.xlu0 %v3262_v12 }
 0x8aa   : > { %v2985_v13 = vpop.xlane.xlu0 %2984 }
 0x8ab   : > { %v2989_v21 = vsub.f32 %v2981_v58, %v2985_v13 }
 0x8ac   : > { %v2988_v14 = vpop.xlane.xlu1 %2987 }
 0x8ad   : > { %v2990_v22 = vsub.f32 %v2982_v0, %v2988_v14  ;;  %v2991_v26 = vmul.f32 1.442695, %v2989_v21 }
 0x8ae   : > { %v3125_v15 = vpop.xlane.xlu0 %3124 }
 0x8af   : > { %v3129_v16 = vsub.f32 %v3121_v1, %v3125_v15  ;;  %v2993_v27 = vmul.f32 1.442695, %v2990_v22 }
 0x8b0   : > { %v3267_v17 = vpop.xlane.xlu1 %3266 }
 0x8b1   : > { %v3131_v18 = vmul.f32 1.442695, %v3129_v16  ;;  %v3269_v19 = vsub.f32 %v3261_v4, %v3267_v17 }
 0x8b2   : > { %v3128_v3 = vpop.xlane.xlu0 %3127 }
 0x8b3   : > { %10745 = vpow2.f32 %v3131_v18  ;;  %v3130_v20 = vsub.f32 %v3122_v8, %v3128_v3  ;;  %v3272_v23 = vmul.f32 1.442695, %v3269_v19 }
 0x8b5   : > { %v3133_v24 = vmul.f32 1.442695, %v3130_v20 }
 0x8b6   : > { %v3264_v25 = vpop.xlane.xlu0 %3263 }
 0x8b7   : > { %10747 = vpow2.f32 %v3133_v24  ;;  %v3268_v63 = vsub.f32 %v3260_v11, %v3264_v25 }
 0x8b8   : > { %10749 = vpow2.f32 %v3272_v23 }
 0x8b9   : > { %v3270_v28 = vmul.f32 1.442695, %v3268_v63 }
 0x8bb   : > { %10751 = vpow2.f32 %v3270_v28 }
 0x8bc   : > { %10753 = vpow2.f32 %v2991_v26 }
 0x8bd   : > { %v10746_v29 = vpop.eup %10745  ;;  %10755 = vpow2.f32 %v2993_v27 }
 0x8be   : > { %v3135_v30 = vsel %vm2849_vm5, %v10746_v29, 0.0 }
 0x8bf   : > { %3136 = vadd.xlane.f32.xlu0 %v3135_v30 }
 0x8c1   : > { %v10748_v31 = vpop.eup %10747 }
 0x8c2   : > { %v3138_v32 = vsel %vm2853_vm6, %v10748_v31, 0.0  ;;  %v10750_v33 = vpop.eup %10749 }
 0x8c3   : > { %3139 = vadd.xlane.f32.xlu1 %v3138_v32  ;;  %v3277_v37 = vsel %vm2853_vm6, %v10750_v33, 0.0 }
 0x8c5   : > { %v10752_v34 = vpop.eup %10751 }
 0x8c6   : > { %v10754_v35 = vpop.eup %10753  ;;  %v3274_v36 = vsel %vm2849_vm5, %v10752_v34, 0.0 }
 0x8c7   : > { %v10756_v38 = vpop.eup %10755  ;;  %3275 = vadd.xlane.f32.xlu0 %v3274_v36  ;;  %3278 = vadd.xlane.f32.xlu1 %v3277_v37  ;;  %v2995_v39 = vsel %vm2849_vm5, %v10754_v35, 0.0 }
 0x8c8   : > { %v2998_v40 = vsel %vm2853_vm6, %v10756_v38, 0.0 }
 0x8cb   : > { %2996 = vadd.xlane.f32.xlu0 %v2995_v39  ;;  %2999 = vadd.xlane.f32.xlu1 %v2998_v40 }
 0x8dc   : > { %3146 = vrot.lane.b32.xlu1 %v11744_v49, %s12768_s5  ;;  %s12855_s5 = sld [smem:[#allocation28_spill]] }
 0x8e0   : > { %3285 = vrot.lane.b32.xlu1 %v11744_v49, %s12770_s8 }
 0x8e1   : > { %3007 = vrot.lane.b32.xlu0 %v11744_v49, %s12772_s18  ;;  %s12778_s18 = smov 16  }
 0x8e2   : > { %s11835_s8 = scalar_lea.vmem %s12855_s5, %s11668_s17  ;;  %s12774_s5 = smov 32  }
 0x8e3   : > { %v10649_v9 = vld [vmem:[%s11835_s8] sm:$0xff]   ;;  %v10650_v14 = vld [vmem:[%s11835_s8 + $0x8] sm:$0xff]   ;;  %v10651_v15 = vld [vmem:[%s11835_s8 + $0x10] sm:$0xff]   ;;  %s12776_s17 = smov 48  }
 0x8e4   : > { %10101 = vmatpush3.bf16.msra.mxu0 %v10649_v9  ;;  %v10652_v19 = vld [vmem:[%s11835_s8 + $0x18] sm:$0xff]  }
 0x8e5   : > { %10102 = vmatprep.subr.bf16.mxu0 %v11237_v5 }
 0x8e8   : > { %10103 = vmatpush3.bf16.msra.mxu0 %v10650_v14 }
 0x8e9   : > { %10104 = vmatprep.subr.bf16.mxu0 %v11237_v5 }
 0x8ec   : > { %10105 = vmatpush3.bf16.msra.mxu0 %v10651_v15 }
 0x8ed   : > { %10106 = vmatprep.subr.bf16.mxu0 %v11237_v5 }
 0x8f0   : > { %10107 = vmatpush3.bf16.msra.mxu0 %v10652_v19 }
 0x94c   : > { %v3137_v41 = vpop.xlane.xlu0 %3136 }
 0x950   : > { %v3140_v42 = vpop.xlane.xlu1 %3139 }
 0x954   : > { %v3276_v43 = vpop.xlane.xlu0 %3275  ;;  %v3279_v44 = vpop.xlane.xlu1 %3278 }
 0x958   : > { %v2997_v45 = vpop.xlane.xlu0 %2996  ;;  %v3000_v46 = vpop.xlane.xlu1 %2999 }
 0x959   : > { %10757 = vrcp.f32 %v2997_v45 }
 0x95a   : > { %10759 = vrcp.f32 %v3000_v46 }
 0x95b   : > { %10761 = vrcp.f32 %v3140_v42 }
 0x95c   : > { %v3008_v47 = vpop.permute.xlu0 %3007  ;;  %10763 = vrcp.f32 %v3137_v41  ;;  %v3147_v54 = vpop.permute.xlu1 %3146 }
 0x95d   : > { %v3013_v48 = vsel %vm2878_vm4, %v3008_v47, 0  ;;  %10765 = vrcp.f32 %v3276_v43  ;;  %v3152_v58 = vsel %vm2878_vm4, %v3147_v54, 0 }
 0x95e   : > { %10071 = vmatpush3.bf16.msra.mxu1 %v3013_v48  ;;  %10767 = vrcp.f32 %v3279_v44 }
 0x95f   : > { %10082 = vmatprep.subr.bf16.mxu1 %v11237_v5 }
 0x960   : > { %v3286_v62 = vpop.permute.xlu1 %3285 }
 0x961   : > { %v3291_v4 = vsel %vm2878_vm4, %v3286_v62, 0 }
 0x963   : > { %v10758_v50 = vpop.eup %10757 }
 0x964   : > { %v10760_v51 = vpop.eup %10759  ;;  %v3003_v53 = vmul.f32 %v10758_v50, %v10754_v35 }
 0x965   : > { %v3004_v49 = vmul.f32 %v10760_v51, %v10756_v38  ;;  %v10762_v57 = vpop.eup %10761 }
 0x966   : > { %v10764_v59 = vpop.eup %10763  ;;  %v3144_v60 = vmul.f32 %v10762_v57, %v10748_v31 }
 0x967   : > { %v3005_v55 = vpack.c.bf16 %v3004_v49, %v3003_v53  ;;  %v3143_v61 = vmul.f32 %v10764_v59, %v10746_v29  ;;  %v10766_v0 = vpop.eup %10765 }
 0x968   : > { %v10768_v2 = vpop.eup %10767  ;;  %v3282_v6 = vmul.f32 %v10766_v0, %v10752_v34 }
 0x969   : > { %10073 = vmatmul.mubr.msk.bf16.vlgmr.msra.gmra.mrb[24].mxu1 %vm2849_vm5, %v3005_v55  ;;  %v3145_v1 = vpack.c.bf16 %v3144_v60, %v3143_v61  ;;  %v3283_v7 = vmul.f32 %v10768_v2, %v10750_v33  ;;  %v11245_v61 = vmov 0  }
 0x96a   : > { %10083 = vmatpush3.bf16.msra.mxu1 %v3152_v58  ;;  %10084 = vmatprep.mubr.msk.bf16.mxu1 %vm11238_vm2, %v11237_v5 }
 0x96b   : > { %10094 = vmatprep.subr.bf16.mxu1 %v11237_v5  ;;  %v3284_v8 = vpack.c.bf16 %v3283_v7, %v3282_v6 }
 0x971   : > { %10085 = vmatmul.mubr.msk.bf16.vlgmr.msra.gmra.mrb[28].mxu1 %vm2849_vm5, %v3145_v1 }
 0x972   : > { %10095 = vmatpush3.bf16.msra.mxu1 %v3291_v4  ;;  %10096 = vmatprep.mubr.msk.bf16.mxu1 %vm11238_vm2, %v11237_v5 }
 0x979   : > { %10097 = vmatmul.mubr.msk.bf16.vlgmr.msra.gmra.mrb[32].mxu1 %vm2849_vm5, %v3284_v8 }
 0x97a   : > { %3556 = vmatprep.mubr.bf16.mxu1 %v11245_v61 }
 0xa3c   : > { %v3049_v10 = vpop.f32.mrb[24].mxu1 }
 0xa3d   : > { %3058 = vrot.lane.b32.xlu1 %v3049_v10, %s12778_s18  ;;  %v10074_v11 = vpop.f32.mrb[25].mxu1 }
 0xa3e   : > { %v3052_v12 = vpop.f32.mrb[26].mxu1 }
 0xa3f   : > { %3060 = vrot.lane.b32.xlu0 %v3052_v12, %s12778_s18  ;;  %v10075_v13 = vpop.f32.mrb[27].mxu1  ;;  %s9650_s18 = sshll.u32 %s11582_s2, 7 }
 0xa44   : > { %v3188_v16 = vpop.f32.mrb[28].mxu1 }
 0xa45   : > { %3197 = vrot.lane.b32.xlu1 %v3188_v16, %s12774_s5  ;;  %v10086_v17 = vpop.f32.mrb[29].mxu1 }
 0xa46   : > { %v3191_v18 = vpop.f32.mrb[30].mxu1 }
 0xa47   : > { %3199 = vrot.lane.b32.xlu0 %v3191_v18, %s12774_s5  ;;  %v10087_v3 = vpop.f32.mrb[31].mxu1  ;;  %s12856_s5 = sld [smem:[#allocation29_spill]] }
 0xa4c   : > { %v3327_v20 = vpop.f32.mrb[32].mxu1 }
 0xa4d   : > { %3336 = vrot.lane.b32.xlu1 %v3327_v20, %s12776_s17  ;;  %v10098_v21 = vpop.f32.mrb[33].mxu1 }
 0xa4e   : > { %v3330_v22 = vpop.f32.mrb[34].mxu1 }
 0xa4f   : > { %3338 = vrot.lane.b32.xlu0 %v3330_v22, %s12776_s17  ;;  %v10099_v23 = vpop.f32.mrb[35].mxu1  ;;  %s11859_s17 = scalar_lea.vmem %s12856_s5, %s11705_s0  ;;  %s12857_s5 = sld [smem:[#allocation32_spill]] }
 0xa50   : > { %v9195_v32 = vld [vmem:[%s11859_s17] ss:$0 sm:$0xff] }
 0xa55   : > { %s11878_s12 = scalar_lea.vmem %s12857_s5, %s9650_s18  ;;  %s12858_s18 = sld [smem:[#allocation30_spill]] }
 0xa56   : > { %v10655_v53 = vld [vmem:[%s11878_s12 + $0x4] ss:$8 sps:$4 sm:$0xff]   ;;  %v10653_v49 = vld [vmem:[%s11878_s12] ss:$8 sps:$4 sm:$0xff]   ;;  %v10658_v54 = vld [vmem:[%s11878_s12 + $0x14] ss:$8 sps:$4 sm:$0xff]  }
 0xa57   : > { %3524 = vmatprep.subr.bf16.mxu1 %v10655_v53  ;;  %v10656_v55 = vld [vmem:[%s11878_s12 + $0x10] ss:$8 sps:$4 sm:$0xff]   ;;  %v10661_v57 = vld [vmem:[%s11878_s12 + $0x24] ss:$8 sps:$4 sm:$0xff]   ;;  %v10659_v58 = vld [vmem:[%s11878_s12 + $0x20] ss:$8 sps:$4 sm:$0xff]  }
 0xa58   : > { %3525 = vmatpush1.bf16.msra.mxu1 %v10653_v49  ;;  %v10662_v59 = vld [vmem:[%s11878_s12 + $0x30] ss:$8 sps:$4 sm:$0xff]   ;;  %v10664_v60 = vld [vmem:[%s11878_s12 + $0x34] ss:$8 sps:$4 sm:$0xff]   ;;  %s12859_s5 = sld [smem:[#allocation31_spill]] }
 0xa59   : > { %3526 = vmatprep.subr.bf16.mxu1 %v10658_v54 }
 0xa5b   : > { %s11892_s13 = scalar_lea.vmem %s12858_s18, %s11705_s0  ;;  %s9651_s18 = sshll.u32 %s11582_s2, 8 }
 0xa5c   : > { %3527 = vmatpush1.bf16.msra.mxu1 %v10656_v55  ;;  %v9196_v9 = vld [vmem:[%s11892_s13] ss:$0 sm:$0xff]  ;;  %s11905_s20 = scalar_lea.vmem %s12860_s14, %s9651_s18  ;;  %s12861_s14 = sld [smem:[#allocation33_spill]] }
 0xa5d   : > { %3528 = vmatprep.subr.bf16.mxu1 %v10661_v57  ;;  %v10665_v18 = vld [vmem:[%s11905_s20 + $0x40] sm:$0xff]   ;;  %v10667_v3 = vld [vmem:[%s11905_s20 + $0x48] sm:$0xff]   ;;  %v10669_v21 = vld [vmem:[%s11905_s20 + $0x50] sm:$0xff]  }
 0xa5e   : > { %s11897_s19 = scalar_lea.vmem %s12859_s5, %s11705_s0  ;;  %v10666_v19 = vld [vmem:[%s11905_s20] sm:$0xff]   ;;  %9754 = vmatprep.subr.bf16.mxu0 %v10665_v18  ;;  %v10668_v20 = vld [vmem:[%s11905_s20 + $0x8] sm:$0xff]   ;;  %v10670_v22 = vld [vmem:[%s11905_s20 + $0x10] sm:$0xff]   ;;  %s9107_s5 = sshll.u32 %s11582_s2, 2 }
 0xa5f   : > { %v9197_v13 = vld [vmem:[%s11897_s19] ss:$0 sm:$0xff]  ;;  %v10671_v23 = vld [vmem:[%s11905_s20 + $0x58] sm:$0xff]  }
 0xa60   : > { %3529 = vmatpush1.bf16.msra.mxu1 %v10659_v58 }
 0xa61   : > { %3530 = vmatprep.subr.bf16.mxu1 %v10664_v60 }
 0xa62   : > { %s11926_s18 = scalar_lea.vmem %s12861_s14, %s9107_s5  ;;  %s12862_s14 = sld [smem:[#allocation35_spill]] }
 0xa64   : > { %3531 = vmatpush1.bf16.msra.mxu1 %v10662_v59 }
 0xa65   : > { %10112 = vmatprep.subr.bf16.mxu1 %v11237_v5 }
 0xa68   : > { %s11939_s5 = scalar_lea.vmem %s12862_s14, %s11705_s0  ;;  %s12867_s0 = smov 32  }
 0xa69   : > { %s12875_s14 = sld [smem:[#allocation40_spill]] (!%p12872_p3) }
 0xaaf   : > { %v3059_v24 = vpop.permute.xlu1 %3058 }
 0xab0   : > { %3065 = vst.msk [vmem:[#allocation2] sm:$0xff] %vm3064_vm8, %v3059_v24  ;;  %v10672_v24 = vld [vmem:[%s11905_s20 + $0x18] sm:$0xff]  }
 0xab1   : > { %v3061_v25 = vpop.permute.xlu0 %3060 }
 0xab2   : > { %3067 = vst.msk [vmem:[#allocation2 + $0x8] sm:$0x3] %vm3066_vm9, %v3061_v25  ;;  %v10673_v25 = vld [vmem:[%s11905_s20 + $0x60] sm:$0xff]  }
 0xab7   : > { %v3198_v63 = vpop.permute.xlu1 %3197 }
 0xab8   : > { %3204 = vst.msk [vmem:[#allocation2] sm:$0xff] %vm3203_vm10, %v3198_v63  ;;  %v10674_v63 = vld [vmem:[%s11905_s20 + $0x20] sm:$0xff]  }
 0xab9   : > { %v3200_v26 = vpop.permute.xlu0 %3199 }
 0xaba   : > { %3206 = vst.msk [vmem:[#allocation2 + $0x8] sm:$0x3] %vm3205_vm11, %v3200_v26  ;;  %v10675_v26 = vld [vmem:[%s11905_s20 + $0x68] sm:$0xff]  }
 0xabf   : > { %v3337_v27 = vpop.permute.xlu1 %3336 }
 0xac0   : > { %3343 = vst.msk [vmem:[#allocation2] sm:$0xff] %vm3342_vm12, %v3337_v27  ;;  %v10676_v27 = vld [vmem:[%s11905_s20 + $0x28] sm:$0xff]  }
 0xac1   : > { %v3339_v28 = vpop.permute.xlu0 %3338 }
 0xac2   : > { %3345 = vst.msk [vmem:[#allocation2 + $0x8] sm:$0x3] %vm3344_vm13, %v3339_v28  ;;  %v10677_v28 = vld [vmem:[%s11905_s20 + $0x70] sm:$0xff]  }
 0xac7   : > { %v3346_v29 = vld [vmem:[#allocation2] sm:$0xff] }
 0xac9   : > { %v3347_v30 = vld [vmem:[#allocation2 + $0x8] sm:$0x3] }
 0xaca   : > { %v3348_v31 = vpack.c.bf16 %v3347_v30, %v3346_v29  ;;  %v10678_v29 = vld [vmem:[%s11905_s20 + $0x30] sm:$0xff]   ;;  %v10679_v30 = vld [vmem:[%s11905_s20 + $0x78] sm:$0xff]  }
 0xacc   : > { %10109 = vmatmul.mubr.msk.bf16.vlgmr.msra.gmra.mrb[20].mxu0 %vm2409_vm0, %v3348_v31  ;;  %v10680_v31 = vld [vmem:[%s11905_s20 + $0x38] sm:$0xff]  }
 0xacd   : > { %9755 = vmatpush3.bf16.msra.mxu0 %v10666_v19  ;;  %v9227_v19 = vld [vmem:[%s11939_s5] ss:$0 sm:$0xff] }
 0xace   : > { %9756 = vmatprep.subr.bf16.mxu0 %v10667_v3 }
 0xad1   : > { %9757 = vmatpush3.bf16.msra.mxu0 %v10668_v20 }
 0xad2   : > { %9758 = vmatprep.subr.bf16.mxu0 %v10669_v21 }
 0xad5   : > { %9759 = vmatpush3.bf16.msra.mxu0 %v10670_v22 }
 0xad6   : > { %9760 = vmatprep.subr.bf16.mxu0 %v10671_v23 }
 0xad9   : > { %9761 = vmatpush3.bf16.msra.mxu0 %v10672_v24 }
 0xada   : > { %9762 = vmatprep.subr.bf16.mxu0 %v10673_v25 }
 0xadd   : > { %9763 = vmatpush3.bf16.msra.mxu0 %v10674_v63 }
 0xade   : > { %9764 = vmatprep.subr.bf16.mxu0 %v10675_v26 }
 0xae1   : > { %9765 = vmatpush3.bf16.msra.mxu0 %v10676_v27 }
 0xae2   : > { %9766 = vmatprep.subr.bf16.mxu0 %v10677_v28 }
 0xae5   : > { %9767 = vmatpush3.bf16.msra.mxu0 %v10678_v29 }
 0xae6   : > { %9768 = vmatprep.subr.bf16.mxu0 %v10679_v30 }
 0xae9   : > { %9769 = vmatpush3.bf16.msra.mxu0 %v10680_v31 }
 0xaea   : > { %10136 = vmatprep.subr.bf16.mxu0 %v11237_v5 }
 0xb9f   : > { %v3410_v33 = vpop.f32.mrb[20].mxu0 }
 0xba0   : > { %v3417_v34 = vadd.f32 %v3410_v33, %v11655_v52  ;;  %v10110_v35 = vpop.f32.mrb[21].mxu0 }
 0xba1   : > { %v3413_v36 = vpop.f32.mrb[22].mxu0  ;;  %v2502_v35 = vld [vmem:[%s11926_s18] sm:$0x3] }
 0xba2   : > { %v11863_v37 = vadd.f32 %v9195_v32, %v3417_v34  ;;  %v3418_v38 = vadd.f32 %v3413_v36, %v11659_v56  ;;  %v10111_v39 = vpop.f32.mrb[23].mxu0 }
 0xba4   : > { %v11866_v40 = vadd.f32 %v9195_v32, %v3418_v38  ;;  %v3427_v41 = vsel %vm2409_vm0, %v11863_v37, 0.0  ;;  %v3471_v32 = vlaneseq }
 0xba5   : > { %3428 = vadd.xlane.f32.xlu1 %v3427_v41 }
 0xba6   : > { %v3430_v42 = vsel %vm2413_vm1, %v11866_v40, 0.0  ;;  %v3472_v33 = vshrl.u32 %v3471_v32, 7 }
 0xba7   : > { %3431 = vadd.xlane.f32.xlu0 %v3430_v42 }
 0xba8   : > { %v11928_v34 = vsub.s32 0, %v3472_v33  ;;  %v11931_v36 = vsub.s32 1, %v3472_v33 }
 0xbaa   : > { %v3474_v38 = vrot.slane %v2502_v35, %v11928_v34  ;;  %v3478_v39 = vrot.slane %v2502_v35, %v11931_v36  ;;  %v10681_v35 = vld [vmem:[%s11672_s22 + $0x20] sm:$0xff]  }
 0xc32   : > { %v3429_v52 = vpop.xlane.xlu1 %3428 }
 0xc33   : > { %v3433_v43 = vmul.f32 0.015625, %v3429_v52 }
 0xc34   : > { %v3432_v44 = vpop.xlane.xlu0 %3431 }
 0xc35   : > { %v3435_v45 = vsub.f32 %v11863_v37, %v3433_v43  ;;  %v3434_v46 = vmul.f32 0.015625, %v3432_v44 }
 0xc37   : > { %v3436_v56 = vsub.f32 %v11866_v40, %v3434_v46  ;;  %v3437_v47 = vmul.f32 %v3435_v45, %v3435_v45 }
 0xc39   : > { %v3439_v48 = vsel %vm2409_vm0, %v3437_v47, 0.0  ;;  %v3438_v50 = vmul.f32 %v3436_v56, %v3436_v56 }
 0xc3a   : > { %3440 = vadd.xlane.f32.xlu0 %v3439_v48 }
 0xc3b   : > { %v3442_v51 = vsel %vm2413_vm1, %v3438_v50, 0.0 }
 0xc3e   : > { %3443 = vadd.xlane.f32.xlu0 %v3442_v51 }
 0xcc7   : > { %v3441_v62 = vpop.xlane.xlu0 %3440 }
 0xcc8   : > { %v3445_v0 = vmul.f32 0.015625, %v3441_v62 }
 0xcca   : > { %v3447_v1 = vadd.f32 1e-05, %v3445_v0 }
 0xccb   : > { %v3444_v2 = vpop.xlane.xlu0 %3443 }
 0xccc   : > { %10769 = vrsqrt.f32 %v3447_v1  ;;  %v3446_v4 = vmul.f32 0.015625, %v3444_v2 }
 0xcce   : > { %v3448_v6 = vadd.f32 1e-05, %v3446_v4 }
 0xcd0   : > { %10771 = vrsqrt.f32 %v3448_v6 }
 0xcd6   : > { %v10770_v7 = vpop.eup %10769 }
 0xcd7   : > { %v3451_v8 = vmul.f32 %v10770_v7, %v3435_v45 }
 0xcd9   : > { %v3459_v11 = vmul.f32 %v9196_v9, %v3451_v8 }
 0xcda   : > { %v10772_v10 = vpop.eup %10771 }
 0xcdb   : > { %v3452_v12 = vmul.f32 %v10772_v10, %v3436_v56  ;;  %v3467_v15 = vadd.f32 %v9197_v13, %v3459_v11 }
 0xcdd   : > { %v3460_v14 = vmul.f32 %v9196_v9, %v3452_v12 }
 0xcdf   : > { %v3468_v16 = vadd.f32 %v9197_v13, %v3460_v14 }
 0xce1   : > { %v3469_v17 = vpack.c.bf16 %v3468_v16, %v3467_v15 }
 0xce3   : > { %9206 = vmatmul.mubr.msk.bf16.vlgmr.msra.gmra.mrb[36].mxu1 %vm2409_vm0, %v3469_v17 }
 0xce4   : > { %10120 = vmatprep.mubr.msk.bf16.mxu1 %vm11238_vm2, %v11237_v5  ;;  %10113 = vmatpush3.bf16.msra.mxu1 %v10681_v35 }
 0xce5   : > { %10114 = vmatprep.subr.bf16.mxu1 %v11237_v5 }
 0xdb6   : > { %v3558_v41 = vpop.f32.mrb[36].mxu1 }
 0xdb7   : > { %v3559_v42 = vadd.f32 %v3558_v41, %v3474_v38  ;;  %v3560_v52 = vpop.f32.mrb[37].mxu1  ;;  %v10684_v41 = vld [vmem:[%s11677_s26 + $0x28] sm:$0xff]  }
 0xdb8   : > { %v3561_v43 = vadd.f32 %v3560_v52, %v3478_v39  ;;  %v3562_v44 = vpop.f32.mrb[38].mxu1  ;;  %v10686_v52 = vld [vmem:[%s11677_s26 + $0x30] sm:$0xff]  }
 0xdb9   : > { %v9207_v45 = vmul.f32 -1.702, %v3559_v42  ;;  %v3563_v46 = vadd.f32 %v3562_v44, %v3474_v38  ;;  %v3564_v56 = vpop.f32.mrb[39].mxu1  ;;  %v10682_v38 = vld [vmem:[%s11677_s26 + $0x20] sm:$0xff]   ;;  %v10688_v44 = vld [vmem:[%s11677_s26 + $0x38] sm:$0xff]   ;;  %s12864_s26 = smov 80  }
 0xdba   : > { %v9208_v47 = vmul.f32 -1.702, %v3561_v43  ;;  %v3565_v48 = vadd.f32 %v3564_v56, %v3478_v39  ;;  %v10683_v39 = vld [vmem:[%s11672_s22 + $0x28] sm:$0xff]  }
 0xdbb   : > { %v3575_v50 = vmul.f32 1.442695, %v9207_v45  ;;  %v9209_v51 = vmul.f32 -1.702, %v3563_v46  ;;  %10115 = vmatpush3.bf16.msra.mxu1 %v10683_v39 }
 0xdbc   : > { %v3577_v53 = vmul.f32 1.442695, %v9208_v47  ;;  %v9210_v49 = vmul.f32 -1.702, %v3565_v48  ;;  %10116 = vmatprep.subr.bf16.mxu1 %v11237_v5 }
 0xdbd   : > { %10773 = vpow2.f32 %v3575_v50  ;;  %v3579_v54 = vmul.f32 1.442695, %v9209_v51 }
 0xdbe   : > { %10775 = vpow2.f32 %v3577_v53  ;;  %v3581_v55 = vmul.f32 1.442695, %v9210_v49  ;;  %v9310_v53 = vld [vmem:[%s11709_s9 + $0x1] ss:$0 sm:$0xff]  ;;  %s12868_s9 = smov 48  }
 0xdbf   : > { %10777 = vpow2.f32 %v3579_v54 }
 0xdc0   : > { %10779 = vpow2.f32 %v3581_v55 }
 0xdc7   : > { %v10774_v57 = vpop.eup %10773 }
 0xdc8   : > { %v10776_v58 = vpop.eup %10775  ;;  %v3583_v59 = vadd.f32 1.0, %v10774_v57 }
 0xdc9   : > { %v10778_v60 = vpop.eup %10777  ;;  %v3584_v62 = vadd.f32 1.0, %v10776_v58  ;;  %v9311_v58 = vld [vmem:[%s11714_s11 + $0x1] ss:$0 sm:$0xff] }
 0xdca   : > { %v10780_v0 = vpop.eup %10779  ;;  %10781 = vrcp.f32 %v3583_v59  ;;  %v3585_v1 = vadd.f32 1.0, %v10778_v60 }
 0xdcb   : > { %10783 = vrcp.f32 %v3584_v62  ;;  %v3586_v2 = vadd.f32 1.0, %v10780_v0  ;;  %v10689_v0 = vld [vmem:[%s11701_s25 + $0x20] sm:$0xff]  }
 0xdcc   : > { %10785 = vrcp.f32 %v3585_v1 }
 0xdcd   : > { %10787 = vrcp.f32 %v3586_v2  ;;  %v10690_v2 = vld [vmem:[%s11701_s25 + $0x28] sm:$0xff]  }
 0xdd4   : > { %v10782_v4 = vpop.eup %10781 }
 0xdd5   : > { %v10784_v6 = vpop.eup %10783  ;;  %v3595_v9 = vmul.f32 %v10782_v4, %v3559_v42  ;;  %v10685_v42 = vld [vmem:[%s11672_s22 + $0x30] sm:$0xff]  }
 0xdd6   : > { %v10786_v7 = vpop.eup %10785  ;;  %v3596_v11 = vmul.f32 %v10784_v6, %v3561_v43  ;;  %10117 = vmatpush3.bf16.msra.mxu1 %v10685_v42  ;;  %v10687_v43 = vld [vmem:[%s11672_s22 + $0x38] sm:$0xff]   ;;  %v10691_v4 = vld [vmem:[%s11701_s25 + $0x30] sm:$0xff]   ;;  %s12863_s22 = smov 112  }
 0xdd7   : > { %v10788_v8 = vpop.eup %10787  ;;  %v3597_v10 = vmul.f32 %v10786_v7, %v3563_v46  ;;  %10118 = vmatprep.subr.bf16.mxu1 %v11237_v5  ;;  %v10692_v6 = vld [vmem:[%s11701_s25 + $0x38] sm:$0xff]   ;;  %v9312_v7 = vld [vmem:[%s11736_s6 + $0x1] ss:$0 sm:$0xff]  ;;  %s12865_s25 = smov 96  }
 0xdd8   : > { %v3598_v12 = vmul.f32 %v10788_v8, %v3565_v48 }
 0xdd9   : > { %v3599_v13 = vpack.c.bf16 %v3597_v10, %v3595_v9  ;;  %v9324_v9 = vld [vmem:[%s11740_s15 + $0x1] ss:$0 sm:$0xff]  ;;  %s9111_s15 = sshll.u32 %s11582_s2, 3 }
 0xdda   : > { %v3600_v14 = vpack.c.bf16 %v3598_v12, %v3596_v11  ;;  %10119 = vmatpush3.bf16.msra.mxu1 %v10687_v43 }
 0xddb   : > { %10124 = vmatprep.subr.bf16.mxu1 %v11237_v5 }
 0xddc   : > { %3729 = vmatprep.mubr.bf16.mxu0 %v3600_v14 }
 0xddd   : > { %3730 = vmatmul.mubr.bf16.vlgmr.msra.gmra.mrb[24].mxu0 %v3599_v13 }
 0xdde   : > { %10144 = vmatprep.mubr.msk.bf16.mxu0 %vm11238_vm2, %v11237_v5  ;;  %10137 = vmatpush3.bf16.msra.mxu0 %v10682_v38 }
 0xddf   : > { %10138 = vmatprep.subr.bf16.mxu0 %v11237_v5 }
 0xde2   : > { %10139 = vmatpush3.bf16.msra.mxu0 %v10684_v41 }
 0xde3   : > { %10140 = vmatprep.subr.bf16.mxu0 %v11237_v5 }
 0xde6   : > { %10141 = vmatpush3.bf16.msra.mxu0 %v10686_v52 }
 0xde7   : > { %10142 = vmatprep.subr.bf16.mxu0 %v11237_v5 }
 0xdea   : > { %10143 = vmatpush3.bf16.msra.mxu0 %v10688_v44 }
 0xdeb   : > { %10160 = vmatprep.subr.bf16.mxu0 %v11237_v5 }
 0xeb0   : > { %v9770_v15 = vpop.f32.mrb[24].mxu0 }
 0xeb1   : > { %v9771_v16 = vpop.f32.mrb[25].mxu0 }
 0xeb2   : > { %v9772_v17 = vadd.f32 %v9771_v16, %v9770_v15  ;;  %v9773_v18 = vpop.f32.mrb[26].mxu0 }
 0xeb3   : > { %v9774_v3 = vpop.f32.mrb[27].mxu0 }
 0xeb4   : > { %v3738_v20 = vadd.f32 %v9772_v17, %v11863_v37  ;;  %v9775_v21 = vadd.f32 %v9774_v3, %v9773_v18 }
 0xeb6   : > { %v11943_v22 = vadd.f32 %v9227_v19, %v3738_v20  ;;  %v3739_v23 = vadd.f32 %v9775_v21, %v11866_v40 }
 0xeb8   : > { %v11946_v24 = vadd.f32 %v9227_v19, %v3739_v23  ;;  %v3846_v25 = vsel %vm2409_vm0, %v11943_v22, 0.0  ;;  %v9318_v23 = vld [vmem:[%s11748_s3 + $0x1] ss:$0 sm:$0xff]  ;;  %s12866_s3 = smov 16  }
 0xeb9   : > { %3847 = vadd.xlane.f32.xlu1 %v3846_v25 }
 0xeba   : > { %v3849_v63 = vsel %vm2413_vm1, %v11946_v24, 0.0 }
 0xebb   : > { %3850 = vadd.xlane.f32.xlu0 %v3849_v63 }
 0xf46   : > { %v3848_v26 = vpop.xlane.xlu1 %3847 }
 0xf47   : > { %v3852_v27 = vmul.f32 0.015625, %v3848_v26 }
 0xf48   : > { %v3851_v37 = vpop.xlane.xlu0 %3850 }
 0xf49   : > { %v3854_v28 = vsub.f32 %v11943_v22, %v3852_v27  ;;  %v3853_v40 = vmul.f32 0.015625, %v3851_v37 }
 0xf4b   : > { %v3855_v29 = vsub.f32 %v11946_v24, %v3853_v40  ;;  %v3856_v30 = vmul.f32 %v3854_v28, %v3854_v28 }
 0xf4d   : > { %v3858_v31 = vsel %vm2409_vm0, %v3856_v30, 0.0  ;;  %v3857_v32 = vmul.f32 %v3855_v29, %v3855_v29 }
 0xf4e   : > { %3859 = vadd.xlane.f32.xlu1 %v3858_v31 }
 0xf4f   : > { %v3861_v33 = vsel %vm2413_vm1, %v3857_v32, 0.0 }
 0xf50   : > { %3862 = vadd.xlane.f32.xlu0 %v3861_v33 }
 0xfdb   : > { %v3860_v45 = vpop.xlane.xlu1 %3859 }
 0xfdc   : > { %v3864_v46 = vmul.f32 0.015625, %v3860_v45 }
 0xfdd   : > { %v3863_v56 = vpop.xlane.xlu0 %3862 }
 0xfde   : > { %v3866_v47 = vadd.f32 1e-05, %v3864_v46  ;;  %v3865_v48 = vmul.f32 0.015625, %v3863_v56 }
 0xfe0   : > { %10789 = vrsqrt.f32 %v3866_v47  ;;  %v3867_v50 = vadd.f32 1e-05, %v3865_v48  ;;  %v10849_v48 = vld [vmem:[%s12854_s4] sm:$0xff] }
 0xfe2   : > { %10791 = vrsqrt.f32 %v3867_v50 }
 0xfea   : > { %v10790_v51 = vpop.eup %10789 }
 0xfeb   : > { %v3870_v49 = vmul.f32 %v10790_v51, %v3854_v28 }
 0xfec   : > { %v10792_v54 = vpop.eup %10791 }
 0xfed   : > { %v3878_v55 = vmul.f32 %v9310_v53, %v3870_v49  ;;  %v3871_v57 = vmul.f32 %v10792_v54, %v3855_v29 }
 0xfef   : > { %v3879_v59 = vmul.f32 %v9310_v53, %v3871_v57  ;;  %v3886_v60 = vadd.f32 %v9311_v58, %v3878_v55  ;;  %v10850_v53 = vld [vmem:[%s12854_s4 + $0x8] sm:$0x3] }
 0xff1   : > { %v3887_v62 = vadd.f32 %v9311_v58, %v3879_v59 }
 0xff3   : > { %v3888_v1 = vpack.c.bf16 %v3887_v62, %v3886_v60 }
 0xff5   : > { %10121 = vmatmul.mubr.msk.bf16.vlgmr.msra.gmra.mrb[40].mxu1 %vm2409_vm0, %v3888_v1  ;;  %10145 = vmatmul.mubr.msk.bf16.vlgmr.msra.gmra.mrb[28].mxu0 %vm2409_vm0, %v3888_v1 }
 0xff6   : > { %10125 = vmatpush3.bf16.msra.mxu1 %v10689_v0  ;;  %10132 = vmatprep.mubr.msk.bf16.mxu1 %vm11238_vm2, %v11237_v5 }
 0xff7   : > { %10126 = vmatprep.subr.bf16.mxu1 %v11237_v5  ;;  %10162 = vmatprep.mubr.msk.bf16.mxu0 %vm11238_vm2, %v11237_v5 }
 0xffa   : > { %10127 = vmatpush3.bf16.msra.mxu1 %v10690_v2 }
 0xffb   : > { %10128 = vmatprep.subr.bf16.mxu1 %v11237_v5 }
 0xffe   : > { %10129 = vmatpush3.bf16.msra.mxu1 %v10691_v4 }
 0xfff   : > { %10130 = vmatprep.subr.bf16.mxu1 %v11237_v5 }
0x1002   : > { %10131 = vmatpush3.bf16.msra.mxu1 %v10692_v6 }
0x1003   : > { %10148 = vmatprep.subr.bf16.mxu1 %v11237_v5 }
0x1005   : > { %10133 = vmatmul.mubr.msk.bf16.vlgmr.msra.gmra.mrb[44].mxu1 %vm2409_vm0, %v3888_v1 }
0x1006   : > { %10150 = vmatprep.mubr.msk.bf16.mxu1 %vm11238_vm2, %v11237_v5 }
0x10c8   : > { %v3956_v8 = vpop.f32.mrb[40].mxu1  ;;  %v4098_v10 = vpop.f32.mrb[28].mxu0 }
0x10c9   : > { %v10122_v11 = vpop.f32.mrb[41].mxu1  ;;  %v10146_v12 = vpop.f32.mrb[29].mxu0  ;;  %v3957_v15 = vadd.f32 %v9312_v7, %v3956_v8  ;;  %v4099_v16 = vadd.f32 %v9324_v9, %v4098_v10 }
0x10ca   : > { %v3959_v13 = vpop.f32.mrb[42].mxu1  ;;  %v4101_v14 = vpop.f32.mrb[30].mxu0 }
0x10cb   : > { %v3960_v17 = vadd.f32 %v9312_v7, %v3959_v13  ;;  %v4102_v18 = vadd.f32 %v9324_v9, %v4101_v14  ;;  %v10123_v19 = vpop.f32.mrb[43].mxu1  ;;  %v10147_v3 = vpop.f32.mrb[31].mxu0 }
0x10cd   : > { %v4105_v20 = vpack.c.bf16 %v3960_v17, %v3957_v15  ;;  %v11993_v21 = vpack.c.bf16 %v4102_v18, %v4099_v16 }
0x10cf   : > { %4232 = vrot.lane.b32.xlu0 %v4105_v20, %s12863_s22  ;;  %v4186_v30 = vsel %vm2878_vm4, %v11993_v21, 0 }
0x10d3   : > { %4508 = vrot.lane.b32.xlu0 %v4105_v20, %s12864_s26 }
0x10d8   : > { %v4027_v25 = vpop.f32.mrb[44].mxu1 }
0x10d9   : > { %v10134_v63 = vpop.f32.mrb[45].mxu1  ;;  %v4028_v27 = vadd.f32 %v9318_v23, %v4027_v25 }
0x10da   : > { %v4030_v26 = vpop.f32.mrb[46].mxu1 }
0x10db   : > { %v4031_v37 = vadd.f32 %v9318_v23, %v4030_v26  ;;  %v10135_v28 = vpop.f32.mrb[47].mxu1 }
0x10dd   : > { %v4106_v40 = vpack.c.bf16 %v4031_v37, %v4028_v27 }
0x10df   : > { %4235 = vrot.lane.b32.xlu1 %v4106_v40, %s12863_s22  ;;  %v4111_v29 = vsel %vm2797_vm3, %v4106_v40, 0 }
0x10e0   : > { %10149 = vmatpush3.bf16.xpose.msra.mxu1 %v4111_v29 }
0x10e1   : > { %10154 = vmatprep.subr.bf16.mxu1 %v11237_v5 }
0x10e3   : > { %4373 = vrot.lane.b32.xlu1 %v4106_v40, %s12865_s25 }
0x10e7   : > { %4371 = vrot.lane.b32.xlu1 %v4105_v20, %s12865_s25  ;;  %10151 = vmatmul.mubr.msk.bf16.vlgmr.msra.gmra.mrb[48].mxu1 %vm2797_vm3, %v4105_v20 }
0x10e8   : > { %10155 = vmatpush3.bf16.msra.mxu1 %v4186_v30  ;;  %10156 = vmatprep.mubr.msk.bf16.mxu1 %vm11238_vm2, %v11237_v5 }
0x10e9   : > { %10166 = vmatprep.subr.bf16.mxu1 %v11237_v5 }
0x10eb   : > { %4510 = vrot.lane.b32.xlu1 %v4106_v40, %s12864_s26 }
0x1141   : > { %v4233_v35 = vpop.permute.xlu0 %4232 }
0x1145   : > { %v4509_v52 = vpop.permute.xlu0 %4508 }
0x1151   : > { %v4236_v31 = vpop.permute.xlu1 %4235 }
0x1152   : > { %v4241_v32 = vsel %vm2797_vm3, %v4236_v31, 0 }
0x1153   : > { %10161 = vmatpush3.bf16.xpose.msra.mxu0 %v4241_v32 }
0x1154   : > { %10172 = vmatprep.subr.bf16.mxu0 %v11237_v5 }
0x1155   : > { %v4374_v33 = vpop.permute.xlu1 %4373 }
0x1156   : > { %v4379_v39 = vsel %vm2797_vm3, %v4374_v33, 0 }
0x1159   : > { %v4372_v38 = vpop.permute.xlu1 %4371 }
0x115a   : > { %10163 = vmatmul.mubr.msk.bf16.vlgmr.msra.gmra.mrb[32].mxu0 %vm2797_vm3, %v4233_v35 }
0x115b   : > { %10173 = vmatpush3.bf16.xpose.msra.mxu0 %v4379_v39  ;;  %10174 = vmatprep.mubr.msk.bf16.mxu0 %vm11238_vm2, %v11237_v5 }
0x115c   : > { %10184 = vmatprep.subr.bf16.mxu0 %v11237_v5 }
0x115d   : > { %v4511_v41 = vpop.permute.xlu1 %4510 }
0x115e   : > { %v4516_v42 = vsel %vm2797_vm3, %v4511_v41, 0 }
0x1162   : > { %10175 = vmatmul.mubr.msk.bf16.vlgmr.msra.gmra.mrb[36].mxu0 %vm2797_vm3, %v4372_v38 }
0x1163   : > { %10185 = vmatpush3.bf16.xpose.msra.mxu0 %v4516_v42  ;;  %10186 = vmatprep.mubr.msk.bf16.mxu0 %vm11238_vm2, %v11237_v5 }
0x1164   : > { %10196 = vmatprep.subr.bf16.mxu0 %v11237_v5 }
0x116a   : > { %10187 = vmatmul.mubr.msk.bf16.vlgmr.msra.gmra.mrb[40].mxu0 %vm2797_vm3, %v4509_v52 }
0x116b   : > { %10204 = vmatprep.mubr.msk.bf16.mxu0 %vm11238_vm2, %v11237_v5 }
0x11ba   : > { %v4147_v43 = vpop.f32.mrb[48].mxu1 }
0x11bb   : > { %v4154_v44 = vmul.f32 0.25, %v4147_v43  ;;  %v10152_v45 = vpop.f32.mrb[49].mxu1 }
0x11bc   : > { %v4150_v46 = vpop.f32.mrb[50].mxu1 }
0x11bd   : > { %v4155_v56 = vmul.f32 0.25, %v4150_v46  ;;  %v10153_v47 = vpop.f32.mrb[51].mxu1  ;;  %v4156_v50 = vadd.f32 %v10849_v48, %v4154_v44 }
0x11bf   : > { %v4158_v51 = vsel %vm2849_vm5, %v4156_v50, -inf  ;;  %v4157_v49 = vadd.f32 %v10850_v53, %v4155_v56 }
0x11c0   : > { %4159 = vmax.xlane.f32.xlu1 %v4158_v51 }
0x11c1   : > { %v4161_v54 = vsel %vm2853_vm6, %v4157_v49, -inf }
0x11c2   : > { %4162 = vmax.xlane.f32.xlu0 %v4161_v54 }
0x122d   : > { %v4277_v55 = vpop.f32.mrb[32].mxu0 }
0x122e   : > { %v4284_v57 = vmul.f32 0.25, %v4277_v55  ;;  %v10164_v58 = vpop.f32.mrb[33].mxu0 }
0x122f   : > { %v4280_v59 = vpop.f32.mrb[34].mxu0 }
0x1230   : > { %v4285_v60 = vmul.f32 0.25, %v4280_v59  ;;  %v10165_v62 = vpop.f32.mrb[35].mxu0  ;;  %v4286_v0 = vadd.f32 %v10849_v48, %v4284_v57 }
0x1232   : > { %v4288_v1 = vsel %vm2849_vm5, %v4286_v0, -inf  ;;  %v4287_v2 = vadd.f32 %v10850_v53, %v4285_v60 }
0x1233   : > { %4289 = vmax.xlane.f32.xlu0 %v4288_v1 }
0x1234   : > { %v4291_v8 = vsel %vm2853_vm6, %v4287_v2, -inf }
0x1235   : > { %v4415_v4 = vpop.f32.mrb[36].mxu0 }
0x1236   : > { %v4422_v6 = vmul.f32 0.25, %v4415_v4  ;;  %v10176_v7 = vpop.f32.mrb[37].mxu0 }
0x1237   : > { %v4418_v9 = vpop.f32.mrb[38].mxu0  ;;  %4292 = vmax.xlane.f32.xlu0 %v4291_v8 }
0x1238   : > { %v4423_v10 = vmul.f32 0.25, %v4418_v9  ;;  %v10177_v11 = vpop.f32.mrb[39].mxu0  ;;  %v4424_v12 = vadd.f32 %v10849_v48, %v4422_v6 }
0x123a   : > { %v4426_v13 = vsel %vm2849_vm5, %v4424_v12, -inf  ;;  %v4425_v14 = vadd.f32 %v10850_v53, %v4423_v10 }
0x123b   : > { %4427 = vmax.xlane.f32.xlu1 %v4426_v13 }
0x123c   : > { %v4429_v15 = vsel %vm2853_vm6, %v4425_v14, -inf }
0x123d   : > { %v4552_v16 = vpop.f32.mrb[40].mxu0  ;;  %4430 = vmax.xlane.f32.xlu0 %v4429_v15 }
0x123e   : > { %v4559_v17 = vmul.f32 0.25, %v4552_v16  ;;  %v10188_v18 = vpop.f32.mrb[41].mxu0 }
0x123f   : > { %v4555_v19 = vpop.f32.mrb[42].mxu0 }
0x1240   : > { %v4560_v3 = vmul.f32 0.25, %v4555_v19  ;;  %v10189_v20 = vpop.f32.mrb[43].mxu0  ;;  %v4561_v23 = vadd.f32 %v10849_v48, %v4559_v17 }
0x1242   : > { %v4563_v25 = vsel %vm2849_vm5, %v4561_v23, -inf  ;;  %v4562_v63 = vadd.f32 %v10850_v53, %v4560_v3 }
0x1243   : > { %4564 = vmax.xlane.f32.xlu1 %v4563_v25 }
0x1244   : > { %v4566_v26 = vsel %vm2853_vm6, %v4562_v63, -inf }
0x1245   : > { %4567 = vmax.xlane.f32.xlu0 %v4566_v26 }
0x124d   : > { %v4160_v27 = vpop.xlane.xlu1 %4159 }
0x124e   : > { %v4164_v37 = vsub.f32 %v4156_v50, %v4160_v27 }
0x124f   : > { %v4163_v28 = vpop.xlane.xlu0 %4162 }
0x1250   : > { %v4166_v40 = vmul.f32 1.442695, %v4164_v37  ;;  %v4165_v29 = vsub.f32 %v4157_v49, %v4163_v28 }
0x1252   : > { %10793 = vpow2.f32 %v4166_v40  ;;  %v4168_v30 = vmul.f32 1.442695, %v4165_v29 }
0x1254   : > { %10795 = vpow2.f32 %v4168_v30 }
0x125c   : > { %v10794_v31 = vpop.eup %10793 }
0x125d   : > { %v4170_v32 = vsel %vm2849_vm5, %v10794_v31, 0.0 }
0x125e   : > { %v10796_v33 = vpop.eup %10795  ;;  %4171 = vadd.xlane.f32.xlu1 %v4170_v32 }
0x125f   : > { %v4173_v35 = vsel %vm2853_vm6, %v10796_v33, 0.0 }
0x1260   : > { %4174 = vadd.xlane.f32.xlu0 %v4173_v35 }
0x126f   : > { %4312 = vrot.lane.b32.xlu1 %v11993_v21, %s12863_s22  ;;  %s12877_s22 = sld [smem:[#allocation36_spill]] (!%p12872_p3) }
0x12c0   : > { %v4290_v38 = vpop.xlane.xlu0 %4289 }
0x12c1   : > { %v4294_v39 = vsub.f32 %v4286_v0, %v4290_v38 }
0x12c3   : > { %v4296_v41 = vmul.f32 1.442695, %v4294_v39 }
0x12c4   : > { %v4293_v42 = vpop.xlane.xlu0 %4292 }
0x12c5   : > { %10797 = vpow2.f32 %v4296_v41  ;;  %v4295_v52 = vsub.f32 %v4287_v2, %v4293_v42 }
0x12c7   : > { %v4298_v43 = vmul.f32 1.442695, %v4295_v52 }
0x12c8   : > { %v4428_v44 = vpop.xlane.xlu1 %4427 }
0x12c9   : > { %10799 = vpow2.f32 %v4298_v43  ;;  %v4432_v45 = vsub.f32 %v4424_v12, %v4428_v44 }
0x12ca   : > { %v4431_v46 = vpop.xlane.xlu0 %4430 }
0x12cb   : > { %v4434_v56 = vmul.f32 1.442695, %v4432_v45  ;;  %v4433_v47 = vsub.f32 %v4425_v14, %v4431_v46 }
0x12cd   : > { %10801 = vpow2.f32 %v4434_v56  ;;  %v4436_v48 = vmul.f32 1.442695, %v4433_v47  ;;  %v10693_v47 = vld [vmem:[%s11835_s8 + $0x20] sm:$0xff]  }
0x12ce   : > { %10197 = vmatpush3.bf16.msra.mxu0 %v10693_v47 }
0x12cf   : > { %v10798_v50 = vpop.eup %10797  ;;  %10803 = vpow2.f32 %v4436_v48  ;;  %10198 = vmatprep.subr.bf16.mxu0 %v11237_v5 }
0x12d0   : > { %v4565_v51 = vpop.xlane.xlu1 %4564  ;;  %v4300_v53 = vsel %vm2849_vm5, %v10798_v50, 0.0 }
0x12d1   : > { %v4569_v49 = vsub.f32 %v4561_v23, %v4565_v51  ;;  %4301 = vadd.xlane.f32.xlu1 %v4300_v53  ;;  %v10694_v53 = vld [vmem:[%s11835_s8 + $0x28] sm:$0xff]  }
0x12d2   : > { %v4568_v54 = vpop.xlane.xlu0 %4567  ;;  %10199 = vmatpush3.bf16.msra.mxu0 %v10694_v53  ;;  %v9345_v53 = vld [vmem:[%s11897_s19 + $0x1] ss:$0 sm:$0xff] }
0x12d3   : > { %v10800_v55 = vpop.eup %10799  ;;  %v4571_v57 = vmul.f32 1.442695, %v4569_v49  ;;  %v4570_v58 = vsub.f32 %v4562_v63, %v4568_v54  ;;  %v10695_v49 = vld [vmem:[%s11835_s8 + $0x30] sm:$0xff]   ;;  %10200 = vmatprep.subr.bf16.mxu0 %v11237_v5 }
0x12d4   : > { %v4303_v59 = vsel %vm2853_vm6, %v10800_v55, 0.0 }
0x12d5   : > { %10805 = vpow2.f32 %v4571_v57  ;;  %v4573_v60 = vmul.f32 1.442695, %v4570_v58  ;;  %4304 = vadd.xlane.f32.xlu0 %v4303_v59  ;;  %v10696_v58 = vld [vmem:[%s11835_s8 + $0x38] sm:$0xff]   ;;  %s9645_s8 = sshll.u32 %s11582_s2, 5 }
0x12d6   : > { %10201 = vmatpush3.bf16.msra.mxu0 %v10695_v49 }
0x12d7   : > { %v10802_v62 = vpop.eup %10801  ;;  %10807 = vpow2.f32 %v4573_v60  ;;  %10202 = vmatprep.subr.bf16.mxu0 %v11237_v5 }
0x12d8   : > { %v4438_v0 = vsel %vm2849_vm5, %v10802_v62, 0.0 }
0x12d9   : > { %v10804_v1 = vpop.eup %10803  ;;  %4439 = vadd.xlane.f32.xlu1 %v4438_v0 }
0x12da   : > { %v4441_v2 = vsel %vm2853_vm6, %v10804_v1, 0.0  ;;  %10203 = vmatpush3.bf16.msra.mxu0 %v10696_v58  ;;  %v10709_v58 = vld [vmem:[%s11905_s20 + $0xc0] sm:$0xff]  }
0x12db   : > { %4442 = vadd.xlane.f32.xlu0 %v4441_v2  ;;  %9812 = vmatprep.subr.bf16.mxu0 %v10709_v58 }
0x12df   : > { %v10806_v4 = vpop.eup %10805 }
0x12e0   : > { %v4575_v6 = vsel %vm2849_vm5, %v10806_v4, 0.0 }
0x12e1   : > { %v10808_v7 = vpop.eup %10807  ;;  %4576 = vadd.xlane.f32.xlu1 %v4575_v6 }
0x12e2   : > { %v4578_v8 = vsel %vm2853_vm6, %v10808_v7, 0.0 }
0x12e3   : > { %4579 = vadd.xlane.f32.xlu0 %v4578_v8 }
0x12eb   : > { %v4172_v9 = vpop.xlane.xlu1 %4171 }
0x12ec   : > { %10809 = vrcp.f32 %v4172_v9 }
0x12ed   : > { %v4175_v10 = vpop.xlane.xlu0 %4174 }
0x12ee   : > { %10811 = vrcp.f32 %v4175_v10 }
0x12ef   : > { %v4313_v15 = vpop.permute.xlu1 %4312 }
0x12f0   : > { %v4318_v17 = vsel %vm2878_vm4, %v4313_v15, 0 }
0x12f2   : > { %4586 = vrot.lane.b32.xlu1 %v11993_v21, %s12864_s26  ;;  %s12878_s26 = sld [smem:[#allocation37_spill]] (!%p12872_p3) }
0x12f6   : > { %v10810_v11 = vpop.eup %10809 }
0x12f7   : > { %v4178_v13 = vmul.f32 %v10810_v11, %v10794_v31 }
0x12f8   : > { %v10812_v12 = vpop.eup %10811 }
0x12f9   : > { %v4179_v14 = vmul.f32 %v10812_v12, %v10796_v33  ;;  %4449 = vrot.lane.b32.xlu0 %v11993_v21, %s12865_s25  ;;  %s12879_s25 = sld [smem:[#allocation41_spill]] (!%p12872_p3) }
0x12fb   : > { %v4180_v16 = vpack.c.bf16 %v4179_v14, %v4178_v13  ;;  %v9343_v13 = vld [vmem:[%s11859_s17 + $0x1] ss:$0 sm:$0xff]  ;;  %s12156_s17 = scalar_lea.vmem %s11510_s10, %s9111_s15  ;;  %s12884_s15 = sld [smem:[#allocation45_spill]] (!%p12872_p3) }
0x12fc   : > { %1877 = vst [vmem:[%s12156_s17] sm:$0xff] %v11237_v5 }
0x12fd   : > { %10157 = vmatmul.mubr.msk.bf16.vlgmr.msra.gmra.mrb[52].mxu1 %vm2849_vm5, %v4180_v16 }
0x12fe   : > { %10167 = vmatpush3.bf16.msra.mxu1 %v4318_v17  ;;  %10168 = vmatprep.mubr.msk.bf16.mxu1 %vm11238_vm2, %v11237_v5 }
0x12ff   : > { %10178 = vmatprep.subr.bf16.mxu1 %v11237_v5 }
0x135e   : > { %v4302_v18 = vpop.xlane.xlu1 %4301 }
0x135f   : > { %10813 = vrcp.f32 %v4302_v18 }
0x1362   : > { %v4305_v19 = vpop.xlane.xlu0 %4304 }
0x1363   : > { %10815 = vrcp.f32 %v4305_v19 }
0x1366   : > { %v4440_v3 = vpop.xlane.xlu1 %4439 }
0x1367   : > { %10817 = vrcp.f32 %v4440_v3 }
0x1368   : > { %v4443_v20 = vpop.xlane.xlu0 %4442 }
0x1369   : > { %10819 = vrcp.f32 %v4443_v20  ;;  %v10814_v21 = vpop.eup %10813 }
0x136a   : > { %v4308_v25 = vmul.f32 %v10814_v21, %v10798_v50 }
0x136d   : > { %v10816_v23 = vpop.eup %10815 }
0x136e   : > { %v4309_v63 = vmul.f32 %v10816_v23, %v10800_v55  ;;  %v4577_v26 = vpop.xlane.xlu1 %4576 }
0x136f   : > { %10821 = vrcp.f32 %v4577_v26 }
0x1370   : > { %v4580_v27 = vpop.xlane.xlu0 %4579  ;;  %v4310_v37 = vpack.c.bf16 %v4309_v63, %v4308_v25 }
0x1371   : > { %10823 = vrcp.f32 %v4580_v27  ;;  %v10818_v28 = vpop.eup %10817 }
0x1372   : > { %10169 = vmatmul.mubr.msk.bf16.vlgmr.msra.gmra.mrb[56].mxu1 %vm2849_vm5, %v4310_v37  ;;  %v4446_v32 = vmul.f32 %v10818_v28, %v10802_v62  ;;  %v4587_v33 = vpop.permute.xlu1 %4586 }
0x1373   : > { %v10820_v40 = vpop.eup %10819  ;;  %10180 = vmatprep.mubr.msk.bf16.mxu1 %vm11238_vm2, %v11237_v5  ;;  %v4592_v39 = vsel %vm2878_vm4, %v4587_v33, 0  ;;  %v10700_v33 = vld [vmem:[%s11878_s12 + $0x50] ss:$8 sps:$4 sm:$0xff]  }
0x1374   : > { %v4447_v29 = vmul.f32 %v10820_v40, %v10804_v1  ;;  %v4450_v30 = vpop.permute.xlu0 %4449 }
0x1375   : > { %v4455_v31 = vsel %vm2878_vm4, %v4450_v30, 0  ;;  %v10699_v30 = vld [vmem:[%s11878_s12 + $0x44] ss:$8 sps:$4 sm:$0xff]   ;;  %vm8512_vm4 = vcmask (!%p12872_p3), 256000  }
0x1376   : > { %10179 = vmatpush3.bf16.msra.mxu1 %v4455_v31  ;;  %v4448_v35 = vpack.c.bf16 %v4447_v29, %v4446_v32  ;;  %v10697_v31 = vld [vmem:[%s11878_s12 + $0x40] ss:$8 sps:$4 sm:$0xff]   ;;  %v10702_v32 = vld [vmem:[%s11878_s12 + $0x54] ss:$8 sps:$4 sm:$0xff]  }
0x1377   : > { %10190 = vmatprep.subr.bf16.mxu1 %v11237_v5 }
0x1379   : > { %v10822_v38 = vpop.eup %10821 }
0x137a   : > { %10181 = vmatmul.mubr.msk.bf16.vlgmr.msra.gmra.mrb[60].mxu1 %vm2849_vm5, %v4448_v35  ;;  %v4583_v52 = vmul.f32 %v10822_v38, %v10806_v4  ;;  %v10705_v35 = vld [vmem:[%s11878_s12 + $0x64] ss:$8 sps:$4 sm:$0xff]   ;;  %v10703_v38 = vld [vmem:[%s11878_s12 + $0x60] ss:$8 sps:$4 sm:$0xff]  }
0x137b   : > { %v10824_v41 = vpop.eup %10823  ;;  %10191 = vmatpush3.bf16.msra.mxu1 %v4592_v39  ;;  %10192 = vmatprep.mubr.msk.bf16.mxu1 %vm11238_vm2, %v11237_v5  ;;  %v10706_v39 = vld [vmem:[%s11878_s12 + $0x70] ss:$8 sps:$4 sm:$0xff]  }
0x137c   : > { %v4584_v42 = vmul.f32 %v10824_v41, %v10808_v7  ;;  %4823 = vmatprep.subr.bf16.mxu1 %v10699_v30  ;;  %v10708_v41 = vld [vmem:[%s11878_s12 + $0x74] ss:$8 sps:$4 sm:$0xff]   ;;  %s12870_s12 = sld [smem:[#allocation21_spill]] }
0x137e   : > { %v4585_v43 = vpack.c.bf16 %v4584_v42, %v4583_v52 }
0x1382   : > { %10193 = vmatmul.mubr.msk.bf16.vlgmr.msra.gmra.mrb[64].mxu1 %vm2849_vm5, %v4585_v43  ;;  %s1792_s11 = scalar_lea.vmem %s12870_s12, %s11582_s2  ;;  %s12785_s12 = smov (!%p12872_p3), 16   ;;  %vm8518_vm5 = vcmask (!%p12872_p3), 261120  }
0x1383   : > { %4855 = vmatprep.mubr.bf16.mxu1 %v11245_v61  ;;  %4824 = vmatpush1.bf16.msra.mxu1 %v10697_v31 }
0x1384   : > { %4825 = vmatprep.subr.bf16.mxu1 %v10702_v32 }
0x1387   : > { %4826 = vmatpush1.bf16.msra.mxu1 %v10700_v33 }
0x1388   : > { %4827 = vmatprep.subr.bf16.mxu1 %v10705_v35 }
0x138b   : > { %4828 = vmatpush1.bf16.msra.mxu1 %v10703_v38 }
0x138c   : > { %4829 = vmatprep.subr.bf16.mxu1 %v10708_v41 }
0x138f   : > { %4830 = vmatpush1.bf16.msra.mxu1 %v10706_v39 }
0x1390   : > { %10208 = vmatprep.subr.bf16.mxu1 %v11237_v5 }
0x13d0   : > { %v4222_v44 = vpop.f32.mrb[52].mxu1 }
0x13d1   : > { %4229 = vst.msk [vmem:[#allocation2] sm:$0xff] %vm2797_vm3, %v4222_v44  ;;  %v10158_v45 = vpop.f32.mrb[53].mxu1 }
0x13d2   : > { %v4225_v46 = vpop.f32.mrb[54].mxu1 }
0x13d3   : > { %4230 = vst.msk [vmem:[#allocation2 + $0x8] sm:$0x3] %vm2924_vm7, %v4225_v46  ;;  %v10159_v56 = vpop.f32.mrb[55].mxu1 }
0x1445   : > { %v4354_v48 = vpop.f32.mrb[56].mxu1 }
0x1446   : > { %4363 = vrot.lane.b32.xlu1 %v4354_v48, %s12866_s3  ;;  %v10170_v50 = vpop.f32.mrb[57].mxu1  ;;  %v9344_v48 = vld [vmem:[%s11892_s13 + $0x1] ss:$0 sm:$0xff]  ;;  %s12869_s13 = sld [smem:[#allocation23_spill]] }
0x1447   : > { %v4357_v51 = vpop.f32.mrb[58].mxu1 }
0x1448   : > { %v10171_v61 = vpop.f32.mrb[59].mxu1 }
0x144a   : > { %4365 = vrot.lane.b32.xlu1 %v4357_v51, %s12866_s3  ;;  %s12880_s3 = sld [smem:[#allocation39_spill]] (!%p12872_p3) }
0x144c   : > { %s1800_s19 = scalar_lea.vmem %s12869_s13, %s9645_s8  ;;  %s12791_s13 = smov (!%p12872_p3), 112  }
0x144d   : > { %v4491_v54 = vpop.f32.mrb[60].mxu1  ;;  %s12789_s8 = smov (!%p12872_p3), 96  }
0x144e   : > { %4500 = vrot.lane.b32.xlu0 %v4491_v54, %s12867_s0  ;;  %v10182_v55 = vpop.f32.mrb[61].mxu1 }
0x144f   : > { %v4494_v57 = vpop.f32.mrb[62].mxu1 }
0x1450   : > { %4502 = vrot.lane.b32.xlu1 %v4494_v57, %s12867_s0  ;;  %v10183_v59 = vpop.f32.mrb[63].mxu1  ;;  %s12881_s0 = sld [smem:[#allocation43_spill]] (!%p12872_p3) }
0x1451   : > { %v10710_v59 = vld [vmem:[%s11905_s20 + $0x80] sm:$0xff]  }
0x1455   : > { %v4628_v60 = vpop.f32.mrb[64].mxu1 }
0x1456   : > { %4637 = vrot.lane.b32.xlu0 %v4628_v60, %s12868_s9  ;;  %v10194_v62 = vpop.f32.mrb[65].mxu1  ;;  %v10711_v60 = vld [vmem:[%s11905_s20 + $0xc8] sm:$0xff]  }
0x1457   : > { %v4631_v0 = vpop.f32.mrb[66].mxu1  ;;  %v10712_v62 = vld [vmem:[%s11905_s20 + $0x88] sm:$0xff]  }
0x1458   : > { %4639 = vrot.lane.b32.xlu1 %v4631_v0, %s12868_s9  ;;  %v10195_v1 = vpop.f32.mrb[67].mxu1  ;;  %v10713_v0 = vld [vmem:[%s11905_s20 + $0xd0] sm:$0xff]   ;;  %s12882_s9 = sld [smem:[#allocation15_spill]] (!%p12872_p3) }
0x1459   : > { %v10714_v1 = vld [vmem:[%s11905_s20 + $0x90] sm:$0xff]  }
0x14b8   : > { %v4364_v2 = vpop.permute.xlu1 %4363 }
0x14b9   : > { %4369 = vst.msk [vmem:[#allocation2] sm:$0xff] %vm3064_vm8, %v4364_v2  ;;  %v10715_v2 = vld [vmem:[%s11905_s20 + $0xd8] sm:$0xff]  }
0x14bc   : > { %v4366_v4 = vpop.permute.xlu1 %4365 }
0x14bd   : > { %4370 = vst.msk [vmem:[#allocation2 + $0x8] sm:$0x3] %vm3066_vm9, %v4366_v4  ;;  %v10716_v4 = vld [vmem:[%s11905_s20 + $0x98] sm:$0xff]  }
0x14c0   : > { %v4501_v6 = vpop.permute.xlu0 %4500 }
0x14c1   : > { %4506 = vst.msk [vmem:[#allocation2] sm:$0xff] %vm3203_vm10, %v4501_v6  ;;  %v10717_v6 = vld [vmem:[%s11905_s20 + $0xe0] sm:$0xff]  }
0x14c2   : > { %v4503_v7 = vpop.permute.xlu1 %4502 }
0x14c3   : > { %4507 = vst.msk [vmem:[#allocation2 + $0x8] sm:$0x3] %vm3205_vm11, %v4503_v7  ;;  %v10718_v7 = vld [vmem:[%s11905_s20 + $0xa0] sm:$0xff]  }
0x14c8   : > { %v4638_v8 = vpop.permute.xlu0 %4637 }
0x14c9   : > { %4643 = vst.msk [vmem:[#allocation2] sm:$0xff] %vm3342_vm12, %v4638_v8  ;;  %v10719_v8 = vld [vmem:[%s11905_s20 + $0xe8] sm:$0xff]  }
0x14ca   : > { %v4640_v9 = vpop.permute.xlu1 %4639 }
0x14cb   : > { %4644 = vst.msk [vmem:[#allocation2 + $0x8] sm:$0x3] %vm3344_vm13, %v4640_v9  ;;  %v10720_v9 = vld [vmem:[%s11905_s20 + $0xa8] sm:$0xff]  }
0x14d0   : > { %v4645_v10 = vld [vmem:[#allocation2] sm:$0xff] }
0x14d2   : > { %v4646_v11 = vld [vmem:[#allocation2 + $0x8] sm:$0x3] }
0x14d3   : > { %v4647_v12 = vpack.c.bf16 %v4646_v11, %v4645_v10  ;;  %v10721_v10 = vld [vmem:[%s11905_s20 + $0xf0] sm:$0xff]  }
0x14d4   : > { %v10722_v11 = vld [vmem:[%s11905_s20 + $0xb0] sm:$0xff]  }
0x14d5   : > { %10205 = vmatmul.mubr.msk.bf16.vlgmr.msra.gmra.mrb[44].mxu0 %vm2409_vm0, %v4647_v12  ;;  %v10723_v12 = vld [vmem:[%s11905_s20 + $0xf8] sm:$0xff]  }
0x14d6   : > { %9813 = vmatpush3.bf16.msra.mxu0 %v10710_v59 }
0x14d7   : > { %9814 = vmatprep.subr.bf16.mxu0 %v10711_v60 }
0x14da   : > { %9815 = vmatpush3.bf16.msra.mxu0 %v10712_v62 }
0x14db   : > { %9816 = vmatprep.subr.bf16.mxu0 %v10713_v0 }
0x14de   : > { %9817 = vmatpush3.bf16.msra.mxu0 %v10714_v1 }
0x14df   : > { %9818 = vmatprep.subr.bf16.mxu0 %v10715_v2 }
0x14e2   : > { %9819 = vmatpush3.bf16.msra.mxu0 %v10716_v4 }
0x14e3   : > { %9820 = vmatprep.subr.bf16.mxu0 %v10717_v6 }
0x14e6   : > { %9821 = vmatpush3.bf16.msra.mxu0 %v10718_v7 }
0x14e7   : > { %9822 = vmatprep.subr.bf16.mxu0 %v10719_v8 }
0x14ea   : > { %9823 = vmatpush3.bf16.msra.mxu0 %v10720_v9 }
0x14eb   : > { %9824 = vmatprep.subr.bf16.mxu0 %v10721_v10  ;;  %v10725_v10 = vld [vmem:[%s1800_s19] sm:$0xff]  }
0x14ee   : > { %9825 = vmatpush3.bf16.msra.mxu0 %v10722_v11  ;;  %v10726_v11 = vld [vmem:[%s1800_s19 + $0x8] sm:$0xff]  }
0x14ef   : > { %9826 = vmatprep.subr.bf16.mxu0 %v10723_v12  ;;  %v10727_v12 = vld [vmem:[%s1800_s19 + $0x10] sm:$0xff]  }
0x15a8   : > { %v4709_v14 = vpop.f32.mrb[44].mxu0 }
0x15a9   : > { %v4716_v15 = vadd.f32 %v4709_v14, %v11943_v22  ;;  %v10206_v16 = vpop.f32.mrb[45].mxu0  ;;  %v9276_v14 = vld [vmem:[%s11926_s18 + $0x2] sm:$0x3]  ;;  %s12874_s18 = sld [smem:[#allocation38_spill]] (!%p12872_p3) }
0x15aa   : > { %v4712_v17 = vpop.f32.mrb[46].mxu0  ;;  %v4777_v16 = vrot.slane %v9276_v14, %v11931_v36 }
0x15ab   : > { %v12089_v18 = vadd.f32 %v9343_v13, %v4716_v15  ;;  %v4717_v19 = vadd.f32 %v4712_v17, %v11946_v24  ;;  %v10207_v3 = vpop.f32.mrb[47].mxu0  ;;  %v4773_v15 = vrot.slane %v9276_v14, %v11928_v34 }
0x15ad   : > { %v12092_v20 = vadd.f32 %v9343_v13, %v4717_v19  ;;  %v4726_v21 = vsel %vm2409_vm0, %v12089_v18, 0.0  ;;  %v10724_v13 = vld [vmem:[%s11905_s20 + $0xb8] sm:$0xff]   ;;  %s12871_s20 = sld [smem:[#allocation22_spill]] }
0x15ae   : > { %4727 = vadd.xlane.f32.xlu0 %v4726_v21  ;;  %9827 = vmatpush3.bf16.msra.mxu0 %v10724_v13  ;;  %v10728_v13 = vld [vmem:[%s1800_s19 + $0x18] sm:$0xff]   ;;  %s12787_s19 = smov (!%p12872_p3), 80  }
0x15af   : > { %v4729_v23 = vsel %vm2413_vm1, %v12092_v20, 0.0 }
0x15b0   : > { %4730 = vadd.xlane.f32.xlu1 %v4729_v23 }
0x15b3   : > { %s1795_s6 = scalar_lea.vmem %s12871_s20, %s11582_s2  ;;  %s12873_s2 = sld [smem:[#allocation14_spill]] (!%p12872_p3) }
0x15b4   : > { %s12783_s20 = smov (!%p12872_p3), 32  }
0x163b   : > { %v4728_v22 = vpop.xlane.xlu0 %4727 }
0x163c   : > { %v4732_v25 = vmul.f32 0.015625, %v4728_v22 }
0x163d   : > { %v4731_v63 = vpop.xlane.xlu1 %4730 }
0x163e   : > { %v4734_v24 = vsub.f32 %v12089_v18, %v4732_v25  ;;  %v4733_v26 = vmul.f32 0.015625, %v4731_v63 }
0x1640   : > { %v4735_v27 = vsub.f32 %v12092_v20, %v4733_v26  ;;  %v4736_v37 = vmul.f32 %v4734_v24, %v4734_v24 }
0x1642   : > { %v4738_v28 = vsel %vm2409_vm0, %v4736_v37, 0.0  ;;  %v4737_v40 = vmul.f32 %v4735_v27, %v4735_v27 }
0x1643   : > { %4739 = vadd.xlane.f32.xlu0 %v4738_v28 }
0x1644   : > { %v4741_v29 = vsel %vm2413_vm1, %v4737_v40, 0.0 }
0x1647   : > { %4742 = vadd.xlane.f32.xlu0 %v4741_v29 }
0x16d0   : > { %v4740_v42 = vpop.xlane.xlu0 %4739 }
0x16d1   : > { %v4744_v52 = vmul.f32 0.015625, %v4740_v42 }
0x16d3   : > { %v4746_v43 = vadd.f32 1e-05, %v4744_v52 }
0x16d4   : > { %v4743_v44 = vpop.xlane.xlu0 %4742 }
0x16d5   : > { %10825 = vrsqrt.f32 %v4746_v43  ;;  %v4745_v45 = vmul.f32 0.015625, %v4743_v44 }
0x16d7   : > { %v4747_v46 = vadd.f32 1e-05, %v4745_v45 }
0x16d9   : > { %10827 = vrsqrt.f32 %v4747_v46 }
0x16df   : > { %v10826_v56 = vpop.eup %10825 }
0x16e0   : > { %v4750_v47 = vmul.f32 %v10826_v56, %v4734_v24 }
0x16e2   : > { %v4758_v51 = vmul.f32 %v9344_v48, %v4750_v47 }
0x16e3   : > { %v10828_v50 = vpop.eup %10827 }
0x16e4   : > { %v4751_v61 = vmul.f32 %v10828_v50, %v4735_v27  ;;  %v4766_v54 = vadd.f32 %v9345_v53, %v4758_v51 }
0x16e6   : > { %v4759_v49 = vmul.f32 %v9344_v48, %v4751_v61 }
0x16e8   : > { %v4767_v55 = vadd.f32 %v9345_v53, %v4759_v49 }
0x16ea   : > { %v4768_v57 = vpack.c.bf16 %v4767_v55, %v4766_v54  ;;  %v9375_v55 = vld [vmem:[%s11939_s5 + $0x1] ss:$0 sm:$0xff]  ;;  %s12876_s5 = sld [smem:[#allocation42_spill]] (!%p12872_p3) }
0x16ec   : > { %9354 = vmatmul.mubr.msk.bf16.vlgmr.msra.gmra.mrb[68].mxu1 %vm2409_vm0, %v4768_v57 }
0x16ed   : > { %10216 = vmatprep.mubr.msk.bf16.mxu1 %vm11238_vm2, %v11237_v5  ;;  %10209 = vmatpush3.bf16.msra.mxu1 %v10725_v10  ;;  %vm5629_vm2 = vcmask (!%p12872_p3), 195584  }
0x16ee   : > { %10210 = vmatprep.subr.bf16.mxu1 %v11237_v5 }
0x16f1   : > { %10211 = vmatpush3.bf16.msra.mxu1 %v10726_v11 }
0x16f2   : > { %10212 = vmatprep.subr.bf16.mxu1 %v11237_v5 }
0x16f5   : > { %10213 = vmatpush3.bf16.msra.mxu1 %v10727_v12  ;;  %v9384_v12 = vld [vmem:[%s12877_s22] ss:$0 sm:$0xff] (!%p12872_p3) }
0x16f6   : > { %10214 = vmatprep.subr.bf16.mxu1 %v11237_v5  ;;  %v5172_v5 = vld [vmem:[%s12873_s2] sm:$0xff] (!%p12872_p3) }
0x16f9   : > { %10215 = vmatpush3.bf16.msra.mxu1 %v10728_v13 }
0x17bf   : > { %v4857_v17 = vpop.f32.mrb[68].mxu1 }
0x17c0   : > { %v4858_v19 = vadd.f32 %v4857_v17, %v4773_v15  ;;  %v4859_v3 = vpop.f32.mrb[69].mxu1 }
0x17c1   : > { %v4860_v21 = vadd.f32 %v4859_v3, %v4777_v16  ;;  %v4861_v23 = vpop.f32.mrb[70].mxu1 }
0x17c2   : > { %v9355_v22 = vmul.f32 -1.702, %v4858_v19  ;;  %v4862_v25 = vadd.f32 %v4861_v23, %v4773_v15  ;;  %v4863_v63 = vpop.f32.mrb[71].mxu1 }
0x17c3   : > { %v9356_v24 = vmul.f32 -1.702, %v4860_v21  ;;  %v4864_v26 = vadd.f32 %v4863_v63, %v4777_v16 }
0x17c4   : > { %v4874_v27 = vmul.f32 1.442695, %v9355_v22  ;;  %v9357_v37 = vmul.f32 -1.702, %v4862_v25 }
0x17c5   : > { %v4876_v28 = vmul.f32 1.442695, %v9356_v24  ;;  %v9358_v40 = vmul.f32 -1.702, %v4864_v26 }
0x17c6   : > { %10829 = vpow2.f32 %v4874_v27  ;;  %v4878_v29 = vmul.f32 1.442695, %v9357_v37 }
0x17c7   : > { %10831 = vpow2.f32 %v4876_v28  ;;  %v4880_v30 = vmul.f32 1.442695, %v9358_v40 }
0x17c8   : > { %10833 = vpow2.f32 %v4878_v29 }
0x17c9   : > { %10835 = vpow2.f32 %v4880_v30 }
0x17d0   : > { %v10830_v31 = vpop.eup %10829 }
0x17d1   : > { %v10832_v32 = vpop.eup %10831  ;;  %v4882_v33 = vadd.f32 1.0, %v10830_v31  ;;  %v5174_v31 = vld [vmem:[%s12873_s2 + $0x10] sm:$0xff] (!%p12872_p3) }
0x17d2   : > { %v10834_v35 = vpop.eup %10833  ;;  %v4883_v38 = vadd.f32 1.0, %v10832_v32  ;;  %v5173_v32 = vld [vmem:[%s12873_s2 + $0x8] sm:$0xff] (!%p12872_p3) }
0x17d3   : > { %v10836_v39 = vpop.eup %10835  ;;  %10837 = vrcp.f32 %v4882_v33  ;;  %v4884_v41 = vadd.f32 1.0, %v10834_v35  ;;  %v5260_v33 = vsel (!%p12872_p3), %vm2409_vm0, %v5172_v5, 0.0  ;;  %v5266_v35 = vsel (!%p12872_p3), %vm2409_vm0, %v5174_v31, 0.0 }
0x17d4   : > { %10839 = vrcp.f32 %v4883_v38  ;;  %v4885_v42 = vadd.f32 1.0, %v10836_v39  ;;  %v5263_v38 = vsel (!%p12872_p3), %vm2409_vm0, %v5173_v32, 0.0 }
0x17d5   : > { %10841 = vrcp.f32 %v4884_v41 }
0x17d6   : > { %10843 = vrcp.f32 %v4885_v42 }
0x17dd   : > { %v10838_v52 = vpop.eup %10837 }
0x17de   : > { %v10840_v43 = vpop.eup %10839  ;;  %v4894_v46 = vmul.f32 %v10838_v52, %v4858_v19  ;;  %v9376_v19 = vld [vmem:[%s1792_s11] ss:$0 sm:$0xff]  ;;  %s12883_s11 = sld [smem:[#allocation44_spill]] (!%p12872_p3) }
0x17df   : > { %v10842_v44 = vpop.eup %10841  ;;  %v4895_v47 = vmul.f32 %v10840_v43, %v4860_v21  ;;  %v9377_v21 = vld [vmem:[%s1795_s6] ss:$0 sm:$0xff]  ;;  %s12781_s6 = smov (!%p12872_p3), 48  }
0x17e0   : > { %v10844_v45 = vpop.eup %10843  ;;  %v4896_v56 = vmul.f32 %v10842_v44, %v4862_v25 }
0x17e1   : > { %v4897_v48 = vmul.f32 %v10844_v45, %v4864_v26 }
0x17e2   : > { %v4898_v50 = vpack.c.bf16 %v4896_v56, %v4894_v46 }
0x17e3   : > { %v4899_v51 = vpack.c.bf16 %v4897_v48, %v4895_v47 }
0x17e5   : > { %5028 = vmatprep.mubr.bf16.mxu0 %v4899_v51 }
0x17e6   : > { %5029 = vmatmul.mubr.bf16.vlgmr.msra.gmra.mrb[48].mxu0 %v4898_v50 }
0x18b9   : > { %v9828_v61 = vpop.f32.mrb[48].mxu0 }
0x18ba   : > { %v9829_v53 = vpop.f32.mrb[49].mxu0 }
0x18bb   : > { %v9830_v49 = vadd.f32 %v9829_v53, %v9828_v61  ;;  %v9831_v54 = vpop.f32.mrb[50].mxu0 }
0x18bc   : > { %v9832_v57 = vpop.f32.mrb[51].mxu0 }
0x18bd   : > { %v5037_v58 = vadd.f32 %v9830_v49, %v12089_v18  ;;  %v9833_v59 = vadd.f32 %v9832_v57, %v9831_v54  ;;  %v10851_v49 = vld [vmem:[%s12874_s18] sm:$0xff] (!%p12872_p3)   ;;  %v10854_v57 = vld [vmem:[%s12875_s14 + $0x8] sm:$0xff] (!%p12872_p3)  }
0x18be   : > { %v10852_v54 = vld [vmem:[%s12875_s14] sm:$0xff] (!%p12872_p3)   ;;  %10220 = vmatprep.subr.bf16.mxu0 (!%p12872_p3), %v10851_v49 }
0x18bf   : > { %v5045_v60 = vadd.f32 %v9375_v55, %v5037_v58  ;;  %v5038_v62 = vadd.f32 %v9833_v59, %v12092_v20  ;;  %10232 = vmatprep.subr.bf16.mxu1 (!%p12872_p3), %v10852_v54  ;;  %10221 = vmatpush3.bf16.msra.mxu0 (!%p12872_p3), %v10851_v49  ;;  %v10855_v58 = vld [vmem:[%s12874_s18 + $0x10] sm:$0xff] (!%p12872_p3)  }
0x18c0   : > { %v10856_v59 = vld [vmem:[%s12875_s14 + $0x10] sm:$0xff] (!%p12872_p3)  }
0x18c1   : > { %5047 = vst.msk [vmem:[#allocation2] sm:$0xff] %vm2409_vm0, %v5045_v60  ;;  %v5046_v0 = vadd.f32 %v9375_v55, %v5038_v62  ;;  %v10853_v55 = vld [vmem:[%s12874_s18 + $0x8] sm:$0xff] (!%p12872_p3)   ;;  %v10857_v60 = vld [vmem:[%s12874_s18 + $0x18] sm:$0xff] (!%p12872_p3)  }
0x18c2   : > { %10222 = vmatprep.subr.bf16.mxu0 (!%p12872_p3), %v10853_v55  ;;  %v10858_v62 = vld [vmem:[%s12875_s14 + $0x18] sm:$0xff] (!%p12872_p3)  }
0x18c3   : > { %5048 = vst.msk [vmem:[#allocation2 + $0x8] sm:$0x3] %vm2413_vm1, %v5046_v0  ;;  %10223 = vmatpush3.bf16.msra.mxu0 (!%p12872_p3), %v10853_v55  ;;  %v10859_v0 = vld [vmem:[%s12876_s5] sm:$0xff] (!%p12872_p3)  }
0x18c4   : > { %10224 = vmatprep.subr.bf16.mxu0 (!%p12872_p3), %v10855_v58 }
0x18c7   : > { %10225 = vmatpush3.bf16.msra.mxu0 (!%p12872_p3), %v10855_v58 }
0x18c8   : > { %v5049_v1 = vld [vmem:[#allocation2] sm:$0x1]  ;;  %v5052_v2 = vld [vmem:[#allocation2 + $0x5] sm:$0x1]  ;;  %10226 = vmatprep.subr.bf16.mxu0 (!%p12872_p3), %v10857_v60 }
0x18c9   : > { %5051 = vst.msk [vmem:[#allocation3] sm:$0x1] %vm5050_vm14, %v5049_v1  ;;  %5053 = vst.msk [vmem:[#allocation3 + $0x1] sm:$0x1] %vm5050_vm14, %v5052_v2 }
0x18cb   : > { %10227 = vmatpush3.bf16.msra.mxu0 (!%p12872_p3), %v10857_v60 }
0x18cc   : > { %10244 = vmatprep.subr.bf16.mxu0 (!%p12872_p3), %v10859_v0 }
0x18d0   : > { %v5054_v4 = vld [vmem:[#allocation3] sm:$0x3] }
0x18d1   : > { %v5057_v18 = vsel %vm2413_vm1, %v5054_v4, 0.0 }
0x18d2   : > { %5058 = vadd.xlane.f32.xlu0 %v5057_v18 }
0x195f   : > { %v5059_v6 = vpop.xlane.xlu0 %5058 }
0x1960   : > { %v5060_v20 = vmul.f32 0.015625, %v5059_v6 }
0x1962   : > { %v5061_v7 = vsub.f32 %v5054_v4, %v5060_v20 }
0x1964   : > { %v5062_v8 = vmul.f32 %v5061_v7, %v5061_v7 }
0x1966   : > { %v5063_v9 = vsel %vm2413_vm1, %v5062_v8, 0.0  ;;  %vm5673_vm1 = vcmask (!%p12872_p3), 1043456  }
0x1967   : > { %5064 = vadd.xlane.f32.xlu1 %v5063_v9 }
0x196b   : > { %5267 = vadd.xlane.f32.xlu1 (!%p12872_p3), %v5266_v35 }
0x19f4   : > { %v5065_v14 = vpop.xlane.xlu1 %5064 }
0x19f5   : > { %v5066_v15 = vmul.f32 0.015625, %v5065_v14 }
0x19f7   : > { %v5067_v16 = vadd.f32 1e-05, %v5066_v15 }
0x19f8   : > { %v5268_v41 = vpop.xlane.xlu1 (!%p12872_p3), %5267 }
0x19f9   : > { %10845 = vrsqrt.f32 %v5067_v16  ;;  %v5271_v52 = vmul.f32 (!%p12872_p3), 0.015625, %v5268_v41 }
0x19fb   : > { %v5274_v44 = vsub.f32 (!%p12872_p3), %v5174_v31, %v5271_v52 }
0x19fd   : > { %v5277_v47 = vmul.f32 (!%p12872_p3), %v5274_v44, %v5274_v44 }
0x19ff   : > { %v5284_v51 = vsel (!%p12872_p3), %vm2409_vm0, %v5277_v47, 0.0 }
0x1a03   : > { %v10846_v17 = vpop.eup %10845 }
0x1a04   : > { %v5069_v3 = vmul.f32 %v10846_v17, %v5061_v7 }
0x1a06   : > { %v5076_v23 = vmul.f32 %v9376_v19, %v5069_v3  ;;  %v9385_v19 = vld [vmem:[%s12878_s26] ss:$0 sm:$0xff] (!%p12872_p3) }
0x1a08   : > { %v5083_v22 = vadd.f32 %v9377_v21, %v5076_v23 }
0x1a0a   : > { %v5092_v25 = vpack.c.bf16 %v5083_v22, %v5083_v22 }
0x1a0c   : > { %10217 = vmatmul.mubr.msk.bf16.vlgmr.msra.gmra.mrb[72].mxu1 %vm2409_vm0, %v5092_v25 }
0x1a0d   : > { %10233 = vmatpush3.bf16.msra.mxu1 (!%p12872_p3), %v10852_v54 }
0x1a0e   : > { %10234 = vmatprep.subr.bf16.mxu1 (!%p12872_p3), %v10854_v57 }
0x1a11   : > { %10235 = vmatpush3.bf16.msra.mxu1 (!%p12872_p3), %v10854_v57 }
0x1a12   : > { %10236 = vmatprep.subr.bf16.mxu1 (!%p12872_p3), %v10856_v59 }
0x1a15   : > { %10237 = vmatpush3.bf16.msra.mxu1 (!%p12872_p3), %v10856_v59 }
0x1a16   : > { %10238 = vmatprep.subr.bf16.mxu1 (!%p12872_p3), %v10858_v62 }
0x1a19   : > { %10239 = vmatpush3.bf16.msra.mxu1 (!%p12872_p3), %v10858_v62 }
0x1adf   : > { %v5154_v63 = vpop.f32.mrb[72].mxu1 }
0x1ae0   : > { %v5160_v24 = vmul.f32 %v5154_v63, %v5154_v63  ;;  %v10218_v26 = vpop.f32.mrb[73].mxu1 }
0x1ae1   : > { %v5157_v27 = vpop.f32.mrb[74].mxu1  ;;  %v10860_v26 = vld [vmem:[%s12876_s5 + $0x8] sm:$0xff] (!%p12872_p3)  }
0x1ae2   : > { %v10219_v37 = vpop.f32.mrb[75].mxu1  ;;  %v5162_v28 = vsel %vm5161_vm15, %v5160_v24, 0.0  ;;  %v10861_v27 = vld [vmem:[%s12876_s5 + $0x10] sm:$0xff] (!%p12872_p3)  }
0x1ae3   : > { %5163 = vadd.xlane.f32.xlu0 %v5162_v28  ;;  %v10862_v37 = vld [vmem:[%s12876_s5 + $0x18] sm:$0xff] (!%p12872_p3)  }
0x1ae7   : > { %5261 = vadd.xlane.f32.xlu0 (!%p12872_p3), %v5260_v33 }
0x1aeb   : > { %5264 = vadd.xlane.f32.xlu0 (!%p12872_p3), %v5263_v38 }
0x1b70   : > { %v5164_v40 = vpop.xlane.xlu0 %5163 }
0x1b71   : > { %10847 = vrsqrt.f32 %v5164_v40 }
0x1b74   : > { %v5262_v39 = vpop.xlane.xlu0 (!%p12872_p3), %5261 }
0x1b75   : > { %v5269_v42 = vmul.f32 (!%p12872_p3), 0.015625, %v5262_v39 }
0x1b77   : > { %v5272_v43 = vsub.f32 (!%p12872_p3), %v5172_v5, %v5269_v42  ;;  %v9386_v5 = vld [vmem:[%s12880_s3] ss:$0 sm:$0xff] (!%p12872_p3) }
0x1b78   : > { %5171 = sbr.rel (%p12872_p3) target bundleno = 15615 (0x3cff), region = 228  ;;  %v5265_v45 = vpop.xlane.xlu0 (!%p12872_p3), %5264 }
0x1b79   : > { %v5270_v46 = vmul.f32 (!%p12872_p3), 0.015625, %v5265_v45  ;;  %v5275_v56 = vmul.f32 (!%p12872_p3), %v5272_v43, %v5272_v43 }
0x1b7b   : > { %v10848_v29 = vpop.eup %10847  ;;  %v5278_v48 = vsel (!%p12872_p3), %vm2409_vm0, %v5275_v56, 0.0  ;;  %v5273_v50 = vsub.f32 (!%p12872_p3), %v5173_v32, %v5270_v46 }
0x1b7c   : > { %v12160_v30 = vmul.f32 %v10848_v29, %v5154_v63  ;;  %5279 = vadd.xlane.f32.xlu1 (!%p12872_p3), %v5278_v48  ;;  %v9393_v29 = vld [vmem:[%s12879_s25] ss:$0 sm:$0xff] (!%p12872_p3) }
0x1b7d   : > { %v5276_v61 = vmul.f32 (!%p12872_p3), %v5273_v50, %v5273_v50 }
0x1b7e   : > { %5167 = vst.msk [vmem:[%s12156_s17] sm:$0x3] %vm5161_vm15, %v12160_v30 }
0x1b7f   : > { %v5281_v53 = vsel %vm2409_vm0, %v5276_v61, 0.0 }
0x1b80   : > { %5285 = vadd.xlane.f32.xlu1 %v5284_v51  ;;  %5282 = vadd.xlane.f32.xlu0 %v5281_v53  ;;  %v9400_v51 = vld [vmem:[%s12881_s0] ss:$0 sm:$0xff] }
0x1c09   : > { %v5280_v1 = vpop.xlane.xlu1 %5279 }
0x1c0a   : > { %v5287_v2 = vmul.f32 0.015625, %v5280_v1 }
0x1c0c   : > { %v5290_v4 = vadd.f32 1e-05, %v5287_v2 }
0x1c0d   : > { %v5286_v18 = vpop.xlane.xlu1 %5285  ;;  %v5283_v6 = vpop.xlane.xlu0 %5282 }
0x1c0e   : > { %10943 = vrsqrt.f32 %v5290_v4  ;;  %v5289_v20 = vmul.f32 0.015625, %v5286_v18  ;;  %v5288_v7 = vmul.f32 0.015625, %v5283_v6  ;;  %v12229_v4 = vld [vmem:[%s12882_s9] sm:$0xff] }
0x1c10   : > { %v5292_v8 = vadd.f32 1e-05, %v5289_v20  ;;  %v5291_v9 = vadd.f32 1e-05, %v5288_v7 }
0x1c12   : > { %10945 = vrsqrt.f32 %v5292_v8  ;;  %v12232_v8 = vld [vmem:[%s12882_s9 + $0x8] sm:$0xff] }
0x1c13   : > { %10947 = vrsqrt.f32 %v5291_v9  ;;  %v12235_v9 = vld [vmem:[%s12882_s9 + $0x10] sm:$0xff] }
0x1c18   : > { %v10944_v10 = vpop.eup %10943 }
0x1c19   : > { %v5296_v11 = vmul.f32 %v10944_v10, %v5272_v43 }
0x1c1b   : > { %v5305_v17 = vmul.f32 %v9384_v12, %v5296_v11 }
0x1c1c   : > { %v10946_v13 = vpop.eup %10945 }
0x1c1d   : > { %v10948_v14 = vpop.eup %10947  ;;  %v5298_v15 = vmul.f32 %v10946_v13, %v5274_v44  ;;  %v5314_v22 = vadd.f32 %v9385_v19, %v5305_v17 }
0x1c1e   : > { %v5297_v16 = vmul.f32 %v10948_v14, %v5273_v50 }
0x1c1f   : > { %v5307_v3 = vmul.f32 %v9384_v12, %v5298_v15 }
0x1c20   : > { %v5306_v21 = vmul.f32 %v9384_v12, %v5297_v16 }
0x1c21   : > { %v5316_v23 = vadd.f32 %v9385_v19, %v5307_v3 }
0x1c22   : > { %v5315_v25 = vadd.f32 %v9385_v19, %v5306_v21 }
0x1c23   : > { %v5318_v63 = vpack.c.bf16 %v5316_v23, %v5316_v23 }
0x1c24   : > { %v5317_v24 = vpack.c.bf16 %v5315_v25, %v5314_v22 }
0x1c26   : > { %10228 = vmatprep.mubr.msk.bf16.mxu0 %vm2409_vm0, %v5317_v24  ;;  %10240 = vmatprep.mubr.msk.bf16.mxu1 %vm2409_vm0, %v5317_v24 }
0x1c27   : > { %10229 = vmatmul.mubr.msk.bf16.vlgmr.msra.gmra.mrb[0].mxu0 %vm2409_vm0, %v5318_v63  ;;  %10241 = vmatmul.mubr.msk.bf16.vlgmr.msra.gmra.mrb[0].mxu1 %vm2409_vm0, %v5318_v63 }
0x1c28   : > { %10245 = vmatpush3.bf16.msra.mxu0 %v10859_v0  ;;  %10252 = vmatprep.mubr.msk.bf16.mxu0 %vm2409_vm0, %v5317_v24 }
0x1c29   : > { %10246 = vmatprep.subr.bf16.mxu0 %v10860_v26 }
0x1c2c   : > { %10247 = vmatpush3.bf16.msra.mxu0 %v10860_v26 }
0x1c2d   : > { %10248 = vmatprep.subr.bf16.mxu0 %v10861_v27 }
0x1c30   : > { %10249 = vmatpush3.bf16.msra.mxu0 %v10861_v27 }
0x1c31   : > { %10250 = vmatprep.subr.bf16.mxu0 %v10862_v37 }
0x1c34   : > { %10251 = vmatpush3.bf16.msra.mxu0 %v10862_v37 }
0x1c37   : > { %10253 = vmatmul.mubr.msk.bf16.vlgmr.msra.gmra.mrb[4].mxu0 %vm2409_vm0, %v5318_v63 }
0x1cfa   : > { %v10230_v28 = vpop.f32.mrb[0].mxu0  ;;  %v10242_v40 = vpop.f32.mrb[0].mxu1 }
0x1cfb   : > { %v5389_v31 = vpop.f32.mrb[1].mxu0  ;;  %v5467_v32 = vpop.f32.mrb[1].mxu1  ;;  %v5476_v38 = vadd.f32 %v10242_v40, %v9393_v29  ;;  %v5398_v53 = vadd.f32 %v10230_v28, %v9386_v5 }
0x1cfc   : > { %v10231_v33 = vpop.f32.mrb[2].mxu0  ;;  %v10243_v35 = vpop.f32.mrb[2].mxu1  ;;  %v5390_v42 = vadd.f32 %v9386_v5, %v5389_v31  ;;  %v5468_v52 = vadd.f32 %v9393_v29, %v5467_v32 }
0x1cfd   : > { %v5392_v39 = vpop.f32.mrb[3].mxu0  ;;  %v5470_v41 = vpop.f32.mrb[3].mxu1  ;;  %v12201_v56 = vpack.c.bf16 %v5476_v38, %v5476_v38  ;;  %v12214_v59 = vpack.c.bf16 %v5398_v53, %v5398_v53 }
0x1cfe   : > { %v5393_v43 = vadd.f32 %v9386_v5, %v5392_v39  ;;  %v5471_v44 = vadd.f32 %v9393_v29, %v5470_v41 }
0x1cff   : > { %v5573_v50 = vsel %vm2797_vm3, %v12201_v56, 0 }
0x1d00   : > { %v12197_v45 = vpack.c.bf16 %v5393_v43, %v5390_v42  ;;  %v12199_v46 = vpack.c.bf16 %v5471_v44, %v5468_v52 }
0x1d02   : > { %10466 = vmatprep.subr.msk.bf16.mxu1 %vm2797_vm3, %v12199_v46  ;;  %10260 = vmatprep.mubr.msk.bf16.mxu1 %vm2797_vm3, %v12197_v45  ;;  %v5570_v47 = vsel %vm2797_vm3, %v12199_v46, 0 }
0x1d03   : > { %10257 = vmatpush3.bf16.xpose.msra.mxu1 %v5570_v47 }
0x1d04   : > { %10467 = vmatprep.subr.msk.bf16.mxu1 %vm2797_vm3, %v12201_v56 }
0x1d0a   : > { %v10254_v48 = vpop.f32.mrb[4].mxu0 }
0x1d0b   : > { %v5545_v61 = vpop.f32.mrb[5].mxu0  ;;  %10259 = vmatpush3.bf16.xpose.msra.mxu1 %v5573_v50  ;;  %v5554_v55 = vadd.f32 %v10254_v48, %v9400_v51 }
0x1d0c   : > { %v10255_v49 = vpop.f32.mrb[6].mxu0  ;;  %v5546_v57 = vadd.f32 %v9400_v51, %v5545_v61 }
0x1d0d   : > { %v5548_v54 = vpop.f32.mrb[7].mxu0  ;;  %v12218_v62 = vpack.c.bf16 %v5554_v55, %v5554_v55 }
0x1d0e   : > { %v5549_v58 = vadd.f32 %v9400_v51, %v5548_v54 }
0x1d0f   : > { %v5675_v0 = vsel %vm5673_vm1, %v12218_v62, 0 }
0x1d10   : > { %v12216_v60 = vpack.c.bf16 %v5549_v58, %v5546_v57 }
0x1d12   : > { %10264 = vmatprep.subr.bf16.mxu1 %v12216_v60  ;;  %10261 = vmatmul.mubr.msk.bf16.vlgmr.msra.gmra.mrb[4].mxu1 %vm2797_vm3, %v12214_v59 }
0x1d13   : > { %10265 = vmatpush3.bf16.msra.mxu1 %v12216_v60 }
0x1d14   : > { %10468 = vmatprep.subr.msk.bf16.mxu1 %vm5673_vm1, %v12218_v62 }
0x1d17   : > { %10267 = vmatpush3.bf16.msra.mxu1 %v5675_v0 }
0x1de5   : > { %v10262_v1 = vpop.f32.mrb[4].mxu1 }
0x1de6   : > { %v5609_v2 = vpop.f32.mrb[5].mxu1  ;;  %v5625_v18 = vmul.f32 0.25, %v10262_v1 }
0x1de7   : > { %v5623_v6 = vmul.f32 0.25, %v5609_v2  ;;  %v10263_v20 = vpop.f32.mrb[6].mxu1 }
0x1de8   : > { %v5612_v7 = vpop.f32.mrb[7].mxu1  ;;  %v5628_v14 = vadd.f32 %v5625_v18, %v12235_v9 }
0x1de9   : > { %v5624_v10 = vmul.f32 0.25, %v5612_v7  ;;  %v5626_v11 = vadd.f32 %v5623_v6, %v12229_v4 }
0x1dea   : > { %v5636_v16 = vsel %vm5629_vm2, %v5628_v14, -inf }
0x1deb   : > { %v5630_v12 = vsel %vm5629_vm2, %v5626_v11, -inf  ;;  %v5627_v13 = vadd.f32 %v5624_v10, %v12232_v8 }
0x1dec   : > { %5631 = vmax.xlane.f32.xlu0 %v5630_v12 }
0x1ded   : > { %v5633_v15 = vsel %vm5629_vm2, %v5627_v13, -inf }
0x1dee   : > { %5634 = vmax.xlane.f32.xlu1 %v5633_v15 }
0x1df0   : > { %5637 = vmax.xlane.f32.xlu0 %v5636_v16 }
0x1e79   : > { %v5632_v17 = vpop.xlane.xlu0 %5631 }
0x1e7a   : > { %v5639_v19 = vsub.f32 %v5626_v11, %v5632_v17 }
0x1e7b   : > { %v5635_v3 = vpop.xlane.xlu1 %5634 }
0x1e7c   : > { %v5642_v21 = vmul.f32 1.442695, %v5639_v19  ;;  %v5640_v23 = vsub.f32 %v5627_v13, %v5635_v3 }
0x1e7d   : > { %v5638_v22 = vpop.xlane.xlu0 %5637 }
0x1e7e   : > { %10949 = vpow2.f32 %v5642_v21  ;;  %v5644_v25 = vmul.f32 1.442695, %v5640_v23  ;;  %v5641_v63 = vsub.f32 %v5628_v14, %v5638_v22 }
0x1e80   : > { %10951 = vpow2.f32 %v5644_v25  ;;  %v5646_v24 = vmul.f32 1.442695, %v5641_v63 }
0x1e82   : > { %10953 = vpow2.f32 %v5646_v24 }
0x1e88   : > { %v10950_v26 = vpop.eup %10949 }
0x1e89   : > { %v5648_v27 = vsel %vm5629_vm2, %v10950_v26, 0.0 }
0x1e8a   : > { %v10952_v37 = vpop.eup %10951  ;;  %5649 = vadd.xlane.f32.xlu1 %v5648_v27 }
0x1e8b   : > { %v5651_v28 = vsel %vm5629_vm2, %v10952_v37, 0.0 }
0x1e8c   : > { %v10954_v40 = vpop.eup %10953  ;;  %5652 = vadd.xlane.f32.xlu0 %v5651_v28 }
0x1e8d   : > { %v5654_v29 = vsel %vm5629_vm2, %v10954_v40, 0.0 }
0x1e8e   : > { %5655 = vadd.xlane.f32.xlu1 %v5654_v29 }
0x1e9f   : > { %5738 = vrot.lane.b32.xlu1 %v12201_v56, %s12791_s13 }
0x1ea2   : > { %5736 = vrot.lane.b32.xlu0 %v12199_v46, %s12791_s13 }
0x1ea3   : > { %5730 = vrot.lane.b32.xlu1 %v12197_v45, %s12791_s13 }
0x1ea7   : > { %5732 = vrot.lane.b32.xlu1 %v12214_v59, %s12791_s13 }
0x1f17   : > { %v5650_v5 = vpop.xlane.xlu1 %5649 }
0x1f18   : > { %10955 = vrcp.f32 %v5650_v5 }
0x1f19   : > { %v5653_v31 = vpop.xlane.xlu0 %5652 }
0x1f1a   : > { %10957 = vrcp.f32 %v5653_v31 }
0x1f1b   : > { %v5656_v32 = vpop.xlane.xlu1 %5655 }
0x1f1c   : > { %10959 = vrcp.f32 %v5656_v32 }
0x1f1d   : > { %v5737_v33 = vpop.permute.xlu0 %5736 }
0x1f1e   : > { %10469 = vmatprep.subr.msk.bf16.mxu1 %vm2797_vm3, %v5737_v33  ;;  %v5747_v50 = vsel %vm2797_vm3, %v5737_v33, 0 }
0x1f1f   : > { %v5739_v39 = vpop.permute.xlu1 %5738 }
0x1f20   : > { %v5750_v51 = vsel %vm2797_vm3, %v5739_v39, 0 }
0x1f22   : > { %v10956_v35 = vpop.eup %10955 }
0x1f23   : > { %v5660_v41 = vmul.f32 %v10956_v35, %v10950_v26  ;;  %v5731_v48 = vpop.permute.xlu1 %5730 }
0x1f24   : > { %v10958_v38 = vpop.eup %10957 }
0x1f25   : > { %v5661_v42 = vmul.f32 %v10958_v38, %v10952_v37 }
0x1f26   : > { %v10960_v52 = vpop.eup %10959 }
0x1f27   : > { %v5663_v43 = vpack.c.bf16 %v5661_v42, %v5660_v41  ;;  %v5662_v44 = vmul.f32 %v10960_v52, %v10954_v40  ;;  %v5733_v61 = vpop.permute.xlu1 %5732 }
0x1f29   : > { %10268 = vmatprep.mubr.msk.bf16.mxu1 %vm5629_vm2, %v5663_v43  ;;  %v5664_v47 = vpack.c.bf16 %v5662_v44, %v5662_v44 }
0x1f2b   : > { %10269 = vmatmul.mubr.msk.bf16.vlgmr.msra.gmra.mrb[8].mxu1 %vm5629_vm2, %v5664_v47 }
0x1f2c   : > { %10273 = vmatpush3.bf16.xpose.msra.mxu1 %v5747_v50  ;;  %10276 = vmatprep.mubr.msk.bf16.mxu1 %vm2797_vm3, %v5731_v48 }
0x1f2d   : > { %10470 = vmatprep.subr.msk.bf16.mxu1 %vm2797_vm3, %v5739_v39 }
0x1f34   : > { %10275 = vmatpush3.bf16.xpose.msra.mxu1 %v5750_v51 }
0x1f3b   : > { %10277 = vmatmul.mubr.msk.bf16.vlgmr.msra.gmra.mrb[12].mxu1 %vm2797_vm3, %v5733_v61 }
0x1ffe   : > { %v10270_v53 = vpop.f32.mrb[8].mxu1 }
0x1fff   : > { %5727 = vst.msk [vmem:[#allocation2 + $0x10] sm:$0xff] %vm2797_vm3, %v10270_v53  ;;  %v5711_v49 = vpop.f32.mrb[9].mxu1 }
0x2000   : > { %5725 = vst.msk [vmem:[#allocation2] sm:$0xff] %vm2797_vm3, %v5711_v49  ;;  %v10271_v54 = vpop.f32.mrb[10].mxu1 }
0x2001   : > { %v5714_v55 = vpop.f32.mrb[11].mxu1 }
0x2002   : > { %5726 = vst.msk [vmem:[#allocation2 + $0x8] sm:$0xff] %vm2797_vm3, %v5714_v55 }
0x200e   : > { %v10278_v57 = vpop.f32.mrb[12].mxu1 }
0x200f   : > { %v5786_v58 = vpop.f32.mrb[13].mxu1  ;;  %v5802_v0 = vmul.f32 0.25, %v10278_v57 }
0x2010   : > { %v5800_v1 = vmul.f32 0.25, %v5786_v58  ;;  %v10279_v2 = vpop.f32.mrb[14].mxu1 }
0x2011   : > { %v5789_v18 = vpop.f32.mrb[15].mxu1  ;;  %v5805_v11 = vadd.f32 %v5802_v0, %v12235_v9 }
0x2012   : > { %v5801_v6 = vmul.f32 0.25, %v5789_v18  ;;  %v5803_v20 = vadd.f32 %v5800_v1, %v12229_v4 }
0x2013   : > { %v5812_v13 = vsel %vm5629_vm2, %v5805_v11, -inf }
0x2014   : > { %v5806_v7 = vsel %vm5629_vm2, %v5803_v20, -inf  ;;  %v5804_v10 = vadd.f32 %v5801_v6, %v12232_v8 }
0x2015   : > { %5807 = vmax.xlane.f32.xlu0 %v5806_v7 }
0x2016   : > { %v5809_v12 = vsel %vm5629_vm2, %v5804_v10, -inf }
0x2017   : > { %5810 = vmax.xlane.f32.xlu1 %v5809_v12 }
0x2019   : > { %5813 = vmax.xlane.f32.xlu0 %v5812_v13 }
0x20a2   : > { %v5808_v14 = vpop.xlane.xlu0 %5807 }
0x20a3   : > { %v5815_v15 = vsub.f32 %v5803_v20, %v5808_v14 }
0x20a4   : > { %v5811_v16 = vpop.xlane.xlu1 %5810 }
0x20a5   : > { %v5818_v17 = vmul.f32 1.442695, %v5815_v15  ;;  %v5816_v19 = vsub.f32 %v5804_v10, %v5811_v16 }
0x20a6   : > { %v5814_v3 = vpop.xlane.xlu0 %5813 }
0x20a7   : > { %10961 = vpow2.f32 %v5818_v17  ;;  %v5820_v21 = vmul.f32 1.442695, %v5816_v19  ;;  %v5817_v23 = vsub.f32 %v5805_v11, %v5814_v3 }
0x20a9   : > { %10963 = vpow2.f32 %v5820_v21  ;;  %v5822_v22 = vmul.f32 1.442695, %v5817_v23 }
0x20ab   : > { %10965 = vpow2.f32 %v5822_v22 }
0x20b1   : > { %v10962_v25 = vpop.eup %10961 }
0x20b2   : > { %v5824_v63 = vsel %vm5629_vm2, %v10962_v25, 0.0 }
0x20b3   : > { %v10964_v24 = vpop.eup %10963  ;;  %5825 = vadd.xlane.f32.xlu0 %v5824_v63 }
0x20b4   : > { %v5827_v37 = vsel %vm5629_vm2, %v10964_v24, 0.0 }
0x20b5   : > { %v10966_v26 = vpop.eup %10965 }
0x20b6   : > { %v5830_v27 = vsel %vm5629_vm2, %v10966_v26, 0.0 }
0x20b7   : > { %5831 = vadd.xlane.f32.xlu1 %v5830_v27  ;;  %5828 = vadd.xlane.f32.xlu0 %v5827_v37 }
0x20c8   : > { %5845 = vrot.lane.b32.xlu1 %v12218_v62, %s12791_s13 }
0x20cc   : > { %5924 = vrot.lane.b32.xlu1 %v12199_v46, %s12789_s8 }
0x20cd   : > { %5843 = vrot.lane.b32.xlu0 %v12216_v60, %s12791_s13  ;;  %s12890_s13 = sld [smem:[#allocation51_spill]] }
0x20d0   : > { %5926 = vrot.lane.b32.xlu1 %v12201_v56, %s12789_s8 }
0x20d1   : > { %5920 = vrot.lane.b32.xlu0 %v12197_v45, %s12789_s8 }
0x20d4   : > { %5922 = vrot.lane.b32.xlu1 %v12214_v59, %s12789_s8 }
0x2140   : > { %v5826_v28 = vpop.xlane.xlu0 %5825 }
0x2141   : > { %10967 = vrcp.f32 %v5826_v28 }
0x2144   : > { %v5829_v40 = vpop.xlane.xlu0 %5828  ;;  %v5832_v29 = vpop.xlane.xlu1 %5831 }
0x2145   : > { %10969 = vrcp.f32 %v5829_v40 }
0x2146   : > { %10971 = vrcp.f32 %v5832_v29 }
0x2148   : > { %v5844_v5 = vpop.permute.xlu0 %5843  ;;  %v5846_v31 = vpop.permute.xlu1 %5845 }
0x2149   : > { %10280 = vmatprep.subr.bf16.mxu0 %v5844_v5  ;;  %v5855_v33 = vsel %vm5673_vm1, %v5846_v31, 0 }
0x214a   : > { %10281 = vmatpush3.bf16.msra.mxu0 %v5844_v5 }
0x214b   : > { %10471 = vmatprep.subr.msk.bf16.mxu0 %vm5673_vm1, %v5846_v31  ;;  %v10968_v32 = vpop.eup %10967 }
0x214c   : > { %v5925_v35 = vpop.permute.xlu1 %5924  ;;  %v5836_v41 = vmul.f32 %v10968_v32, %v10962_v25  ;;  %v5921_v47 = vpop.permute.xlu0 %5920 }
0x214d   : > { %v5935_v48 = vsel %vm2797_vm3, %v5925_v35, 0 }
0x214e   : > { %10283 = vmatpush3.bf16.msra.mxu0 %v5855_v33 }
0x214f   : > { %v10970_v38 = vpop.eup %10969  ;;  %10472 = vmatprep.subr.msk.bf16.mxu0 %vm2797_vm3, %v5925_v35 }
0x2150   : > { %v10972_v39 = vpop.eup %10971  ;;  %v5837_v42 = vmul.f32 %v10970_v38, %v10964_v24  ;;  %v5927_v50 = vpop.permute.xlu1 %5926 }
0x2151   : > { %v5838_v52 = vmul.f32 %v10972_v39, %v10966_v26  ;;  %v5938_v51 = vsel %vm2797_vm3, %v5927_v50, 0 }
0x2152   : > { %v5839_v43 = vpack.c.bf16 %v5837_v42, %v5836_v41 }
0x2153   : > { %v5840_v44 = vpack.c.bf16 %v5838_v52, %v5838_v52 }
0x2154   : > { %10284 = vmatprep.mubr.msk.bf16.mxu0 %vm5629_vm2, %v5839_v43  ;;  %v5923_v61 = vpop.permute.xlu1 %5922 }
0x2155   : > { %10285 = vmatmul.mubr.msk.bf16.vlgmr.msra.gmra.mrb[8].mxu0 %vm5629_vm2, %v5840_v44 }
0x2156   : > { %10292 = vmatprep.mubr.msk.bf16.mxu0 %vm2797_vm3, %v5921_v47 }
0x2157   : > { %10289 = vmatpush3.bf16.xpose.msra.mxu0 %v5935_v48 }
0x2158   : > { %10473 = vmatprep.subr.msk.bf16.mxu0 %vm2797_vm3, %v5927_v50 }
0x215f   : > { %10291 = vmatpush3.bf16.xpose.msra.mxu0 %v5938_v51 }
0x2166   : > { %10293 = vmatmul.mubr.msk.bf16.vlgmr.msra.gmra.mrb[12].mxu0 %vm2797_vm3, %v5923_v61 }
0x2228   : > { %v12296_v53 = vpop.f32.mrb[8].mxu0 }
0x2229   : > { %v12298_v49 = vpop.f32.mrb[9].mxu0 }
0x222a   : > { %v10287_v54 = vpop.f32.mrb[10].mxu0 }
0x222b   : > { %v12300_v55 = vpop.f32.mrb[11].mxu0 }
0x2239   : > { %v10294_v57 = vpop.f32.mrb[12].mxu0 }
0x223a   : > { %v5974_v58 = vpop.f32.mrb[13].mxu0  ;;  %v5990_v0 = vmul.f32 0.25, %v10294_v57 }
0x223b   : > { %v5988_v1 = vmul.f32 0.25, %v5974_v58  ;;  %v10295_v2 = vpop.f32.mrb[14].mxu0 }
0x223c   : > { %v5977_v18 = vpop.f32.mrb[15].mxu0  ;;  %v5993_v11 = vadd.f32 %v5990_v0, %v12235_v9 }
0x223d   : > { %v5989_v6 = vmul.f32 0.25, %v5977_v18  ;;  %v5991_v20 = vadd.f32 %v5988_v1, %v12229_v4 }
0x223e   : > { %v6000_v13 = vsel %vm5629_vm2, %v5993_v11, -inf }
0x223f   : > { %v5994_v7 = vsel %vm5629_vm2, %v5991_v20, -inf  ;;  %v5992_v10 = vadd.f32 %v5989_v6, %v12232_v8 }
0x2240   : > { %5995 = vmax.xlane.f32.xlu0 %v5994_v7 }
0x2241   : > { %v5997_v12 = vsel %vm5629_vm2, %v5992_v10, -inf }
0x2242   : > { %5998 = vmax.xlane.f32.xlu1 %v5997_v12 }
0x2244   : > { %6001 = vmax.xlane.f32.xlu0 %v6000_v13 }
0x22cd   : > { %v5996_v14 = vpop.xlane.xlu0 %5995 }
0x22ce   : > { %v6003_v15 = vsub.f32 %v5991_v20, %v5996_v14 }
0x22cf   : > { %v5999_v16 = vpop.xlane.xlu1 %5998 }
0x22d0   : > { %v6006_v17 = vmul.f32 1.442695, %v6003_v15  ;;  %v6004_v19 = vsub.f32 %v5992_v10, %v5999_v16 }
0x22d1   : > { %v6002_v3 = vpop.xlane.xlu0 %6001 }
0x22d2   : > { %10973 = vpow2.f32 %v6006_v17  ;;  %v6008_v21 = vmul.f32 1.442695, %v6004_v19  ;;  %v6005_v23 = vsub.f32 %v5993_v11, %v6002_v3 }
0x22d4   : > { %10975 = vpow2.f32 %v6008_v21  ;;  %v6010_v22 = vmul.f32 1.442695, %v6005_v23 }
0x22d6   : > { %10977 = vpow2.f32 %v6010_v22 }
0x22dc   : > { %v10974_v25 = vpop.eup %10973 }
0x22dd   : > { %v6012_v63 = vsel %vm5629_vm2, %v10974_v25, 0.0 }
0x22de   : > { %v10976_v24 = vpop.eup %10975  ;;  %6013 = vadd.xlane.f32.xlu0 %v6012_v63 }
0x22df   : > { %v6015_v37 = vsel %vm5629_vm2, %v10976_v24, 0.0 }
0x22e0   : > { %v10978_v26 = vpop.eup %10977 }
0x22e1   : > { %v6018_v27 = vsel %vm5629_vm2, %v10978_v26, 0.0 }
0x22e2   : > { %6019 = vadd.xlane.f32.xlu1 %v6018_v27  ;;  %6016 = vadd.xlane.f32.xlu0 %v6015_v37 }
0x22f3   : > { %6031 = vrot.lane.b32.xlu1 %v12218_v62, %s12789_s8 }
0x22f7   : > { %6110 = vrot.lane.b32.xlu1 %v12199_v46, %s12787_s19 }
0x22f8   : > { %6029 = vrot.lane.b32.xlu0 %v12216_v60, %s12789_s8  ;;  %s12889_s8 = sld [smem:[#allocation49_spill]] }
0x22fb   : > { %6112 = vrot.lane.b32.xlu1 %v12201_v56, %s12787_s19 }
0x22fc   : > { %6106 = vrot.lane.b32.xlu0 %v12197_v45, %s12787_s19 }
0x22ff   : > { %6108 = vrot.lane.b32.xlu1 %v12214_v59, %s12787_s19 }
0x236b   : > { %v6014_v28 = vpop.xlane.xlu0 %6013 }
0x236c   : > { %10979 = vrcp.f32 %v6014_v28 }
0x236f   : > { %v6017_v40 = vpop.xlane.xlu0 %6016  ;;  %v6020_v29 = vpop.xlane.xlu1 %6019 }
0x2370   : > { %10981 = vrcp.f32 %v6017_v40 }
0x2371   : > { %10983 = vrcp.f32 %v6020_v29 }
0x2373   : > { %v6030_v5 = vpop.permute.xlu0 %6029  ;;  %v6032_v46 = vpop.permute.xlu1 %6031 }
0x2374   : > { %10296 = vmatprep.subr.bf16.mxu1 %v6030_v5  ;;  %v6041_v56 = vsel %vm5673_vm1, %v6032_v46, 0 }
0x2375   : > { %10297 = vmatpush3.bf16.msra.mxu1 %v6030_v5 }
0x2376   : > { %10474 = vmatprep.subr.msk.bf16.mxu1 %vm5673_vm1, %v6032_v46  ;;  %v10980_v31 = vpop.eup %10979 }
0x2377   : > { %v6111_v32 = vpop.permute.xlu1 %6110  ;;  %v6024_v33 = vmul.f32 %v10980_v31, %v10974_v25  ;;  %v6107_v42 = vpop.permute.xlu0 %6106 }
0x2378   : > { %v6121_v52 = vsel %vm2797_vm3, %v6111_v32, 0 }
0x2379   : > { %10299 = vmatpush3.bf16.msra.mxu1 %v6041_v56 }
0x237a   : > { %v10982_v45 = vpop.eup %10981  ;;  %10475 = vmatprep.subr.msk.bf16.mxu1 %vm2797_vm3, %v6111_v32 }
0x237b   : > { %v10984_v59 = vpop.eup %10983  ;;  %v6025_v35 = vmul.f32 %v10982_v45, %v10976_v24  ;;  %v6113_v43 = vpop.permute.xlu1 %6112 }
0x237c   : > { %v6026_v38 = vmul.f32 %v10984_v59, %v10978_v26  ;;  %v6124_v44 = vsel %vm2797_vm3, %v6113_v43, 0 }
0x237d   : > { %v6027_v39 = vpack.c.bf16 %v6025_v35, %v6024_v33  ;;  %v10863_v35 = vld [vmem:[%s12883_s11] sm:$0xff]  }
0x237e   : > { %v6028_v41 = vpack.c.bf16 %v6026_v38, %v6026_v38  ;;  %v10864_v38 = vld [vmem:[%s12883_s11 + $0x8] sm:$0xff]  }
0x237f   : > { %10300 = vmatprep.mubr.msk.bf16.mxu1 %vm5629_vm2, %v6027_v39  ;;  %v6109_v47 = vpop.permute.xlu1 %6108  ;;  %v10865_v39 = vld [vmem:[%s12883_s11 + $0x10] sm:$0xff]  }
0x2380   : > { %10301 = vmatmul.mubr.msk.bf16.vlgmr.msra.gmra.mrb[16].mxu1 %vm5629_vm2, %v6028_v41  ;;  %v10866_v41 = vld [vmem:[%s12883_s11 + $0x18] sm:$0xff]  }
0x2381   : > { %10308 = vmatprep.mubr.msk.bf16.mxu1 %vm2797_vm3, %v6107_v42 }
0x2382   : > { %10305 = vmatpush3.bf16.xpose.msra.mxu1 %v6121_v52 }
0x2383   : > { %10476 = vmatprep.subr.msk.bf16.mxu1 %vm2797_vm3, %v6113_v43 }
0x238a   : > { %10307 = vmatpush3.bf16.xpose.msra.mxu1 %v6124_v44 }
0x2391   : > { %10309 = vmatmul.mubr.msk.bf16.vlgmr.msra.gmra.mrb[20].mxu1 %vm2797_vm3, %v6109_v47 }
0x2453   : > { %v10302_v48 = vpop.f32.mrb[16].mxu1 }
0x2454   : > { %v6077_v50 = vpop.f32.mrb[17].mxu1 }
0x2455   : > { %v10303_v51 = vpop.f32.mrb[18].mxu1 }
0x2456   : > { %v6080_v61 = vpop.f32.mrb[19].mxu1 }
0x2464   : > { %v10310_v54 = vpop.f32.mrb[20].mxu1 }
0x2465   : > { %v6160_v57 = vpop.f32.mrb[21].mxu1  ;;  %v6176_v58 = vmul.f32 0.25, %v10310_v54 }
0x2466   : > { %v6174_v0 = vmul.f32 0.25, %v6160_v57  ;;  %v10311_v1 = vpop.f32.mrb[22].mxu1 }
0x2467   : > { %v6163_v2 = vpop.f32.mrb[23].mxu1  ;;  %v6179_v10 = vadd.f32 %v6176_v58, %v12235_v9  ;;  %v9429_v1 = vld [vmem:[%s12884_s15] ss:$0 sm:$0xff] }
0x2468   : > { %v6175_v18 = vmul.f32 0.25, %v6163_v2  ;;  %v6177_v6 = vadd.f32 %v6174_v0, %v12229_v4 }
0x2469   : > { %v6186_v12 = vsel %vm5629_vm2, %v6179_v10, -inf }
0x246a   : > { %v6180_v20 = vsel %vm5629_vm2, %v6177_v6, -inf  ;;  %v6178_v7 = vadd.f32 %v6175_v18, %v12232_v8  ;;  %v11119_v18 = vld [vmem:[%s12873_s2] sm:$0xff] }
0x246b   : > { %6181 = vmax.xlane.f32.xlu0 %v6180_v20 }
0x246c   : > { %v6183_v11 = vsel %vm5629_vm2, %v6178_v7, -inf }
0x246d   : > { %6184 = vmax.xlane.f32.xlu1 %v6183_v11 }
0x246f   : > { %6187 = vmax.xlane.f32.xlu0 %v6186_v12 }
0x24f8   : > { %v6182_v13 = vpop.xlane.xlu0 %6181 }
0x24f9   : > { %v6189_v14 = vsub.f32 %v6177_v6, %v6182_v13  ;;  %v11121_v13 = vld [vmem:[%s12873_s2 + $0x8] sm:$0xff] }
0x24fa   : > { %v6185_v15 = vpop.xlane.xlu1 %6184 }
0x24fb   : > { %v6192_v16 = vmul.f32 1.442695, %v6189_v14  ;;  %v6190_v17 = vsub.f32 %v6178_v7, %v6185_v15 }
0x24fc   : > { %v6188_v19 = vpop.xlane.xlu0 %6187 }
0x24fd   : > { %10985 = vpow2.f32 %v6192_v16  ;;  %v6194_v4 = vmul.f32 1.442695, %v6190_v17  ;;  %v6191_v3 = vsub.f32 %v6179_v10, %v6188_v19  ;;  %v11120_v10 = vld [vmem:[%s12873_s2 + $0x10] sm:$0xff]  ;;  %s12892_s2 = smov 96  }
0x24ff   : > { %10987 = vpow2.f32 %v6194_v4  ;;  %v6196_v8 = vmul.f32 1.442695, %v6191_v3 }
0x2501   : > { %10989 = vpow2.f32 %v6196_v8 }
0x2507   : > { %v10986_v9 = vpop.eup %10985 }
0x2508   : > { %v6198_v21 = vsel %vm5629_vm2, %v10986_v9, 0.0 }
0x2509   : > { %v10988_v23 = vpop.eup %10987  ;;  %6199 = vadd.xlane.f32.xlu0 %v6198_v21 }
0x250a   : > { %v6201_v63 = vsel %vm5629_vm2, %v10988_v23, 0.0 }
0x250b   : > { %v10990_v22 = vpop.eup %10989 }
0x250c   : > { %v6204_v25 = vsel %vm5629_vm2, %v10990_v22, 0.0 }
0x250d   : > { %6205 = vadd.xlane.f32.xlu1 %v6204_v25  ;;  %6202 = vadd.xlane.f32.xlu0 %v6201_v63 }
0x251e   : > { %6217 = vrot.lane.b32.xlu1 %v12218_v62, %s12787_s19 }
0x2522   : > { %5908 = vrot.lane.b32.xlu1 %v12298_v49, %s12785_s12 }
0x2523   : > { %6215 = vrot.lane.b32.xlu0 %v12216_v60, %s12787_s19  ;;  %s12888_s19 = sld [smem:[#allocation50_spill]] }
0x2526   : > { %5910 = vrot.lane.b32.xlu1 %v12300_v55, %s12785_s12 }
0x2527   : > { %5912 = vrot.lane.b32.xlu0 %v12296_v53, %s12785_s12  ;;  %s12887_s12 = sld [smem:[#allocation47_spill]] }
0x252a   : > { %6094 = vrot.lane.b32.xlu1 %v6077_v50, %s12783_s20 }
0x252b   : > { %6096 = vrot.lane.b32.xlu0 %v6080_v61, %s12783_s20 }
0x252e   : > { %6098 = vrot.lane.b32.xlu1 %v10302_v48, %s12783_s20  ;;  %s12886_s20 = sld [smem:[#allocation46_spill]] }
0x2596   : > { %v6200_v62 = vpop.xlane.xlu0 %6199 }
0x2597   : > { %10991 = vrcp.f32 %v6200_v62 }
0x259a   : > { %v6203_v24 = vpop.xlane.xlu0 %6202  ;;  %v6206_v49 = vpop.xlane.xlu1 %6205 }
0x259b   : > { %10993 = vrcp.f32 %v6203_v24 }
0x259c   : > { %10995 = vrcp.f32 %v6206_v49 }
0x259e   : > { %v6216_v60 = vpop.permute.xlu0 %6215  ;;  %v6218_v26 = vpop.permute.xlu1 %6217 }
0x259f   : > { %10312 = vmatprep.subr.bf16.mxu0 %v6216_v60  ;;  %v6227_v37 = vsel %vm5673_vm1, %v6218_v26, 0 }
0x25a0   : > { %10313 = vmatpush3.bf16.msra.mxu0 %v6216_v60 }
0x25a1   : > { %10477 = vmatprep.subr.msk.bf16.mxu0 %vm5673_vm1, %v6218_v26  ;;  %v10992_v27 = vpop.eup %10991 }
0x25a2   : > { %v5913_v53 = vpop.permute.xlu0 %5912  ;;  %v5909_v55 = vpop.permute.xlu1 %5908  ;;  %v6210_v46 = vmul.f32 %v10992_v27, %v10986_v9 }
0x25a3   : > { %5919 = vst.msk [vmem:[#allocation2 + $0x10] sm:$0xff] %vm3064_vm8, %v5913_v53  ;;  %5917 = vst.msk [vmem:[#allocation2] sm:$0xff] %vm3064_vm8, %v5909_v55 }
0x25a4   : > { %10315 = vmatpush3.bf16.msra.mxu0 %v6227_v37 }
0x25a5   : > { %v10994_v28 = vpop.eup %10993  ;;  %10320 = vmatprep.subr.bf16.mxu0 %v10863_v35 }
0x25a6   : > { %v10996_v40 = vpop.eup %10995  ;;  %v6097_v29 = vpop.permute.xlu0 %6096  ;;  %v6211_v31 = vmul.f32 %v10994_v28, %v10988_v23 }
0x25a7   : > { %v5911_v5 = vpop.permute.xlu1 %5910  ;;  %v6212_v56 = vmul.f32 %v10996_v40, %v10990_v22 }
0x25a8   : > { %5918 = vst.msk [vmem:[#allocation2 + $0x8] sm:$0xff] %vm3064_vm8, %v5911_v5  ;;  %v6213_v32 = vpack.c.bf16 %v6211_v31, %v6210_v46 }
0x25a9   : > { %6104 = vst.msk [vmem:[#allocation2 + $0x8] sm:$0xff] %vm3203_vm10, %v6097_v29  ;;  %v6214_v45 = vpack.c.bf16 %v6212_v56, %v6212_v56  ;;  %v11252_v56 = vmov 0  }
0x25aa   : > { %10316 = vmatprep.mubr.msk.bf16.mxu0 %vm5629_vm2, %v6213_v32  ;;  %6535 = vmatprep.mubr.bf16.mxu1 %v11252_v56 }
0x25ab   : > { %v6095_v59 = vpop.permute.xlu1 %6094  ;;  %10317 = vmatmul.mubr.msk.bf16.vlgmr.msra.gmra.mrb[16].mxu0 %vm5629_vm2, %v6214_v45 }
0x25ac   : > { %6103 = vst.msk [vmem:[#allocation2] sm:$0xff] %vm3203_vm10, %v6095_v59  ;;  %10321 = vmatpush3.bf16.msra.mxu0 %v10863_v35 }
0x25ad   : > { %10322 = vmatprep.subr.bf16.mxu0 %v10864_v38 }
0x25af   : > { %v6099_v33 = vpop.permute.xlu1 %6098 }
0x25b0   : > { %6105 = vst.msk [vmem:[#allocation2 + $0x10] sm:$0xff] %vm3203_vm10, %v6099_v33  ;;  %10323 = vmatpush3.bf16.msra.mxu0 %v10864_v38 }
0x25b1   : > { %10324 = vmatprep.subr.bf16.mxu0 %v10865_v39 }
0x25b4   : > { %10325 = vmatpush3.bf16.msra.mxu0 %v10865_v39 }
0x25b5   : > { %10326 = vmatprep.subr.bf16.mxu0 %v10866_v41 }
0x25b8   : > { %10327 = vmatpush3.bf16.msra.mxu0 %v10866_v41 }
0x267e   : > { %v10318_v42 = vpop.f32.mrb[16].mxu0 }
0x267f   : > { %v6263_v52 = vpop.f32.mrb[17].mxu0 }
0x2680   : > { %6280 = vrot.lane.b32.xlu0 %v6263_v52, %s12781_s6  ;;  %v10319_v43 = vpop.f32.mrb[18].mxu0 }
0x2681   : > { %v6266_v44 = vpop.f32.mrb[19].mxu0  ;;  %v9430_v43 = vld [vmem:[%s12886_s20] ss:$0 sm:$0xff] }
0x2682   : > { %6282 = vrot.lane.b32.xlu1 %v6266_v44, %s12781_s6 }
0x2684   : > { %6284 = vrot.lane.b32.xlu0 %v10318_v42, %s12781_s6  ;;  %s12885_s6 = sld [smem:[#allocation48_spill]] }
0x268a   : > { %v10869_v27 = vld [vmem:[%s12885_s6 + $0x4] ss:$8 sps:$4 sm:$0xff]   ;;  %v10867_v37 = vld [vmem:[%s12885_s6] ss:$8 sps:$4 sm:$0xff]   ;;  %v10872_v28 = vld [vmem:[%s12885_s6 + $0x14] ss:$8 sps:$4 sm:$0xff]  }
0x268b   : > { %6503 = vmatprep.subr.bf16.mxu1 %v10869_v27  ;;  %v10870_v40 = vld [vmem:[%s12885_s6 + $0x10] ss:$8 sps:$4 sm:$0xff]   ;;  %v10875_v29 = vld [vmem:[%s12885_s6 + $0x24] ss:$8 sps:$4 sm:$0xff]   ;;  %v10873_v5 = vld [vmem:[%s12885_s6 + $0x20] ss:$8 sps:$4 sm:$0xff]  }
0x268c   : > { %6504 = vmatpush1.bf16.msra.mxu1 %v10867_v37  ;;  %v10878_v46 = vld [vmem:[%s12885_s6 + $0x34] ss:$8 sps:$4 sm:$0xff]   ;;  %v10876_v31 = vld [vmem:[%s12885_s6 + $0x30] ss:$8 sps:$4 sm:$0xff]  }
0x268d   : > { %6505 = vmatprep.subr.bf16.mxu1 %v10872_v28 }
0x2690   : > { %6506 = vmatpush1.bf16.msra.mxu1 %v10870_v40 }
0x2691   : > { %6507 = vmatprep.subr.bf16.mxu1 %v10875_v29 }
0x2694   : > { %6508 = vmatpush1.bf16.msra.mxu1 %v10873_v5 }
0x2695   : > { %6509 = vmatprep.subr.bf16.mxu1 %v10878_v46 }
0x2698   : > { %6510 = vmatpush1.bf16.msra.mxu1 %v10876_v31 }
0x26f2   : > { %v6281_v47 = vpop.permute.xlu0 %6280 }
0x26f3   : > { %6289 = vst.msk [vmem:[#allocation2] sm:$0xff] %vm3342_vm12, %v6281_v47 }
0x26f4   : > { %v6283_v48 = vpop.permute.xlu1 %6282 }
0x26f5   : > { %6290 = vst.msk [vmem:[#allocation2 + $0x8] sm:$0xff] %vm3342_vm12, %v6283_v48 }
0x26f6   : > { %v6285_v50 = vpop.permute.xlu0 %6284 }
0x26f7   : > { %6291 = vst.msk [vmem:[#allocation2 + $0x10] sm:$0xff] %vm3342_vm12, %v6285_v50 }
0x26fa   : > { %v6292_v51 = vld [vmem:[#allocation2] sm:$0xff] }
0x26fc   : > { %v6293_v61 = vld [vmem:[#allocation2 + $0x8] sm:$0xff] }
0x26fd   : > { %v6295_v54 = vpack.c.bf16 %v6293_v61, %v6292_v51  ;;  %v9431_v51 = vld [vmem:[%s12887_s12] ss:$0 sm:$0xff] }
0x26fe   : > { %v6294_v57 = vld [vmem:[#allocation2 + $0x10] sm:$0xff] }
0x26ff   : > { %10328 = vmatprep.mubr.msk.bf16.mxu0 %vm2409_vm0, %v6295_v54  ;;  %v6296_v58 = vpack.c.bf16 %v6294_v57, %v6294_v57 }
0x2701   : > { %10329 = vmatmul.mubr.msk.bf16.vlgmr.msra.gmra.mrb[20].mxu0 %vm2409_vm0, %v6296_v58 }
0x27d4   : > { %v10330_v0 = vpop.f32.mrb[20].mxu0 }
0x27d5   : > { %v6361_v2 = vpop.f32.mrb[21].mxu0  ;;  %v6377_v11 = vadd.f32 %v11120_v10, %v10330_v0  ;;  %v10881_v10 = vld [vmem:[%s12888_s19 + $0x48] sm:$0xff]  }
0x27d6   : > { %v6375_v6 = vadd.f32 %v11119_v18, %v6361_v2  ;;  %v10331_v20 = vpop.f32.mrb[22].mxu0 }
0x27d7   : > { %v6364_v7 = vpop.f32.mrb[23].mxu0  ;;  %v12387_v17 = vadd.f32 %v9429_v1, %v6377_v11  ;;  %v10879_v20 = vld [vmem:[%s12888_s19 + $0x40] sm:$0xff]   ;;  %v10882_v11 = vld [vmem:[%s12888_s19 + $0x8] sm:$0xff]  }
0x27d8   : > { %v12380_v12 = vadd.f32 %v9429_v1, %v6375_v6  ;;  %v6376_v14 = vadd.f32 %v11121_v13, %v6364_v7  ;;  %v10880_v7 = vld [vmem:[%s12888_s19] sm:$0xff]   ;;  %9895 = vmatprep.subr.bf16.mxu0 %v10879_v20  ;;  %v10883_v13 = vld [vmem:[%s12888_s19 + $0x50] sm:$0xff]  }
0x27d9   : > { %v6393_v4 = vsel %vm2409_vm0, %v12387_v17, 0.0  ;;  %9896 = vmatpush3.bf16.msra.mxu0 %v10880_v7 }
0x27da   : > { %v12383_v15 = vadd.f32 %v9429_v1, %v6376_v14  ;;  %v6387_v16 = vsel %vm2409_vm0, %v12380_v12, 0.0  ;;  %9897 = vmatprep.subr.bf16.mxu0 %v10881_v10  ;;  %v10884_v14 = vld [vmem:[%s12888_s19 + $0x10] sm:$0xff]  }
0x27db   : > { %6388 = vadd.xlane.f32.xlu1 %v6387_v16  ;;  %v10885_v16 = vld [vmem:[%s12888_s19 + $0x58] sm:$0xff]  }
0x27dc   : > { %v6390_v19 = vsel %vm2409_vm0, %v12383_v15, 0.0 }
0x27dd   : > { %6391 = vadd.xlane.f32.xlu0 %v6390_v19  ;;  %9898 = vmatpush3.bf16.msra.mxu0 %v10882_v11  ;;  %v10886_v19 = vld [vmem:[%s12888_s19 + $0x18] sm:$0xff]  }
0x27de   : > { %9899 = vmatprep.subr.bf16.mxu0 %v10883_v13 }
0x27e1   : > { %6394 = vadd.xlane.f32.xlu0 %v6393_v4  ;;  %9900 = vmatpush3.bf16.msra.mxu0 %v10884_v14  ;;  %v10887_v4 = vld [vmem:[%s12888_s19 + $0x60] sm:$0xff]  }
0x27e2   : > { %9901 = vmatprep.subr.bf16.mxu0 %v10885_v16 }
0x27e5   : > { %9902 = vmatpush3.bf16.msra.mxu0 %v10886_v19 }
0x27e6   : > { %9903 = vmatprep.subr.bf16.mxu0 %v10887_v4 }
0x2868   : > { %v6389_v3 = vpop.xlane.xlu1 %6388 }
0x2869   : > { %v6396_v8 = vmul.f32 0.015625, %v6389_v3  ;;  %v10888_v3 = vld [vmem:[%s12888_s19 + $0x20] sm:$0xff]  }
0x286a   : > { %v6392_v9 = vpop.xlane.xlu0 %6391  ;;  %9904 = vmatpush3.bf16.msra.mxu0 %v10888_v3 }
0x286b   : > { %v6399_v21 = vsub.f32 %v12380_v12, %v6396_v8  ;;  %v6397_v23 = vmul.f32 0.015625, %v6392_v9  ;;  %v10889_v8 = vld [vmem:[%s12888_s19 + $0x68] sm:$0xff]  }
0x286c   : > { %v10890_v9 = vld [vmem:[%s12888_s19 + $0x28] sm:$0xff]   ;;  %9905 = vmatprep.subr.bf16.mxu0 %v10889_v8 }
0x286d   : > { %v6400_v22 = vsub.f32 %v12383_v15, %v6397_v23  ;;  %v6402_v25 = vmul.f32 %v6399_v21, %v6399_v21  ;;  %v10892_v23 = vld [vmem:[%s12888_s19 + $0x30] sm:$0xff]  }
0x286e   : > { %v6395_v63 = vpop.xlane.xlu0 %6394  ;;  %9906 = vmatpush3.bf16.msra.mxu0 %v10890_v9 }
0x286f   : > { %v6398_v62 = vmul.f32 0.015625, %v6395_v63  ;;  %v6405_v24 = vsel %vm2409_vm0, %v6402_v25, 0.0  ;;  %v6403_v49 = vmul.f32 %v6400_v22, %v6400_v22  ;;  %v10894_v25 = vld [vmem:[%s12888_s19 + $0x38] sm:$0xff]   ;;  %v5226_v63 = vld [vmem:[%s12889_s8] sm:$0x3] }
0x2870   : > { %6406 = vadd.xlane.f32.xlu0 %v6405_v24  ;;  %v6454_v24 = vrot.slane %v5226_v63, %v11931_v36 }
0x2871   : > { %v6401_v60 = vsub.f32 %v12387_v17, %v6398_v62  ;;  %v6408_v26 = vsel %vm2409_vm0, %v6403_v49, 0.0  ;;  %v6450_v62 = vrot.slane %v5226_v63, %v11928_v34 }
0x2872   : > { %6409 = vadd.xlane.f32.xlu1 %v6408_v26 }
0x2873   : > { %v6404_v53 = vmul.f32 %v6401_v60, %v6401_v60 }
0x2875   : > { %v6411_v55 = vsel %vm2409_vm0, %v6404_v53, 0.0 }
0x2876   : > { %6412 = vadd.xlane.f32.xlu0 %v6411_v55 }
0x28fd   : > { %v6407_v32 = vpop.xlane.xlu0 %6406 }
0x28fe   : > { %v6414_v45 = vmul.f32 0.015625, %v6407_v32 }
0x28ff   : > { %v6410_v59 = vpop.xlane.xlu1 %6409 }
0x2900   : > { %v6417_v33 = vadd.f32 1e-05, %v6414_v45  ;;  %v6415_v35 = vmul.f32 0.015625, %v6410_v59 }
0x2902   : > { %10997 = vrsqrt.f32 %v6417_v33  ;;  %v6418_v38 = vadd.f32 1e-05, %v6415_v35 }
0x2903   : > { %v6413_v39 = vpop.xlane.xlu0 %6412 }
0x2904   : > { %10999 = vrsqrt.f32 %v6418_v38  ;;  %v6416_v41 = vmul.f32 0.015625, %v6413_v39 }
0x2906   : > { %v6419_v42 = vadd.f32 1e-05, %v6416_v41 }
0x2908   : > { %11001 = vrsqrt.f32 %v6419_v42 }
0x290c   : > { %v10998_v52 = vpop.eup %10997 }
0x290d   : > { %v6423_v44 = vmul.f32 %v10998_v52, %v6399_v21  ;;  %v10891_v21 = vld [vmem:[%s12888_s19 + $0x70] sm:$0xff]  }
0x290e   : > { %v11000_v47 = vpop.eup %10999  ;;  %9907 = vmatprep.subr.bf16.mxu0 %v10891_v21 }
0x290f   : > { %v6424_v48 = vmul.f32 %v11000_v47, %v6400_v22  ;;  %v6432_v50 = vmul.f32 %v9430_v43, %v6423_v44  ;;  %9908 = vmatpush3.bf16.msra.mxu0 %v10892_v23  ;;  %v10893_v22 = vld [vmem:[%s12888_s19 + $0x78] sm:$0xff]  }
0x2910   : > { %9909 = vmatprep.subr.bf16.mxu0 %v10893_v22 }
0x2911   : > { %v6433_v61 = vmul.f32 %v9430_v43, %v6424_v48  ;;  %v6441_v57 = vadd.f32 %v9431_v51, %v6432_v50 }
0x2912   : > { %v11002_v54 = vpop.eup %11001 }
0x2913   : > { %v6442_v58 = vadd.f32 %v9431_v51, %v6433_v61  ;;  %v6425_v0 = vmul.f32 %v11002_v54, %v6401_v60  ;;  %9910 = vmatpush3.bf16.msra.mxu0 %v10894_v25 }
0x2915   : > { %v6444_v1 = vpack.c.bf16 %v6442_v58, %v6441_v57  ;;  %v6434_v2 = vmul.f32 %v9430_v43, %v6425_v0 }
0x2917   : > { %9440 = vmatmul.mubr.msk.bf16.vlgmr.msra.gmra.mrb[24].mxu1 %vm2409_vm0, %v6444_v1  ;;  %v6443_v18 = vadd.f32 %v9431_v51, %v6434_v2 }
0x2918   : > { %6545 = vmatprep.mubr.bf16.mxu1 %v11252_v56 }
0x2919   : > { %v6445_v6 = vpack.c.bf16 %v6443_v18, %v6443_v18 }
0x291f   : > { %9441 = vmatmul.mubr.msk.bf16.gmra.mrb[28].mxu1 %vm2409_vm0, %v6445_v6 }
0x29ea   : > { %v6537_v49 = vpop.f32.mrb[24].mxu1 }
0x29eb   : > { %v6538_v60 = vadd.f32 %v6537_v49, %v6450_v62  ;;  %v6539_v26 = vpop.f32.mrb[25].mxu1 }
0x29ec   : > { %v6540_v53 = vadd.f32 %v6539_v26, %v6454_v24  ;;  %v6541_v55 = vpop.f32.mrb[26].mxu1 }
0x29ed   : > { %v9442_v27 = vmul.f32 -1.702, %v6538_v60  ;;  %v6542_v37 = vadd.f32 %v6541_v55, %v6450_v62  ;;  %v6543_v28 = vpop.f32.mrb[27].mxu1 }
0x29ee   : > { %v9443_v40 = vmul.f32 -1.702, %v6540_v53  ;;  %v6544_v29 = vadd.f32 %v6543_v28, %v6454_v24 }
0x29ef   : > { %v6566_v5 = vmul.f32 1.442695, %v9442_v27  ;;  %v9444_v46 = vmul.f32 -1.702, %v6542_v37 }
0x29f0   : > { %v6568_v31 = vmul.f32 1.442695, %v9443_v40  ;;  %v9445_v32 = vmul.f32 -1.702, %v6544_v29 }
0x29f1   : > { %11003 = vpow2.f32 %v6566_v5  ;;  %v6570_v45 = vmul.f32 1.442695, %v9444_v46 }
0x29f2   : > { %11005 = vpow2.f32 %v6568_v31  ;;  %v6572_v59 = vmul.f32 1.442695, %v9445_v32  ;;  %v6547_v33 = vpop.f32.mrb[28].mxu1 }
0x29f3   : > { %11007 = vpow2.f32 %v6570_v45  ;;  %v6548_v35 = vadd.f32 %v6547_v33, %v6450_v62  ;;  %v6549_v38 = vpop.f32.mrb[29].mxu1 }
0x29f4   : > { %11009 = vpow2.f32 %v6572_v59  ;;  %v6550_v39 = vadd.f32 %v6549_v38, %v6454_v24  ;;  %v6551_v41 = vpop.f32.mrb[30].mxu1 }
0x29f5   : > { %v9446_v42 = vmul.f32 -1.702, %v6548_v35  ;;  %v6552_v52 = vpop.f32.mrb[31].mxu1 }
0x29f6   : > { %v9447_v43 = vmul.f32 -1.702, %v6550_v39 }
0x29f7   : > { %v6574_v44 = vmul.f32 1.442695, %v9446_v42 }
0x29f8   : > { %v6576_v47 = vmul.f32 1.442695, %v9447_v43 }
0x29f9   : > { %11011 = vpow2.f32 %v6574_v44 }
0x29fa   : > { %11013 = vpow2.f32 %v6576_v47 }
0x29fb   : > { %v11004_v48 = vpop.eup %11003 }
0x29fc   : > { %v11006_v50 = vpop.eup %11005  ;;  %v6578_v51 = vadd.f32 1.0, %v11004_v48 }
0x29fd   : > { %v11008_v61 = vpop.eup %11007  ;;  %v6579_v54 = vadd.f32 1.0, %v11006_v50 }
0x29fe   : > { %v11010_v57 = vpop.eup %11009  ;;  %11015 = vrcp.f32 %v6578_v51  ;;  %v6580_v58 = vadd.f32 1.0, %v11008_v61 }
0x29ff   : > { %11017 = vrcp.f32 %v6579_v54  ;;  %v6581_v0 = vadd.f32 1.0, %v11010_v57  ;;  %v10895_v54 = vld [vmem:[%s12874_s18 + $0x20] sm:$0xff]  }
0x2a00   : > { %11019 = vrcp.f32 %v6580_v58  ;;  %v10896_v57 = vld [vmem:[%s12876_s5 + $0x20] sm:$0xff]   ;;  %10332 = vmatprep.subr.bf16.mxu1 %v10895_v54  ;;  %v10897_v58 = vld [vmem:[%s12874_s18 + $0x28] sm:$0xff]  }
0x2a01   : > { %11021 = vrcp.f32 %v6581_v0  ;;  %10333 = vmatpush3.bf16.msra.mxu1 %v10895_v54  ;;  %10356 = vmatprep.subr.bf16.mxu0 %v10896_v57  ;;  %v10898_v0 = vld [vmem:[%s12876_s5 + $0x28] sm:$0xff]  }
0x2a02   : > { %10334 = vmatprep.subr.bf16.mxu1 %v10897_v58 }
0x2a03   : > { %v11012_v1 = vpop.eup %11011 }
0x2a04   : > { %v11014_v2 = vpop.eup %11013  ;;  %v6582_v18 = vadd.f32 1.0, %v11012_v1  ;;  %v10899_v1 = vld [vmem:[%s12874_s18 + $0x30] sm:$0xff]  }
0x2a05   : > { %v6583_v6 = vadd.f32 1.0, %v11014_v2  ;;  %10335 = vmatpush3.bf16.msra.mxu1 %v10897_v58  ;;  %v10900_v2 = vld [vmem:[%s12876_s5 + $0x30] sm:$0xff]  }
0x2a06   : > { %11023 = vrcp.f32 %v6582_v18  ;;  %10336 = vmatprep.subr.bf16.mxu1 %v10899_v1  ;;  %v10901_v18 = vld [vmem:[%s12874_s18 + $0x38] sm:$0xff]  }
0x2a07   : > { %11025 = vrcp.f32 %v6583_v6  ;;  %v10902_v6 = vld [vmem:[%s12876_s5 + $0x38] sm:$0xff]  }
0x2a08   : > { %v11016_v20 = vpop.eup %11015 }
0x2a09   : > { %v11018_v7 = vpop.eup %11017  ;;  %v6596_v13 = vmul.f32 %v11016_v20, %v6538_v60  ;;  %v9464_v60 = vld [vmem:[%s12890_s13] ss:$0 sm:$0xff]  ;;  %10337 = vmatpush3.bf16.msra.mxu1 %v10899_v1 }
0x2a0a   : > { %v11020_v10 = vpop.eup %11019  ;;  %v6597_v16 = vmul.f32 %v11018_v7, %v6540_v53  ;;  %10338 = vmatprep.subr.bf16.mxu1 %v10901_v18  ;;  %v10903_v20 = vld [vmem:[%s12875_s14 + $0x20] sm:$0xff]  }
0x2a0b   : > { %v11022_v11 = vpop.eup %11021  ;;  %v6598_v14 = vmul.f32 %v11020_v10, %v6542_v37 }
0x2a0c   : > { %v6599_v19 = vmul.f32 %v11022_v11, %v6544_v29 }
0x2a0d   : > { %v6602_v4 = vpack.c.bf16 %v6598_v14, %v6596_v13  ;;  %10339 = vmatpush3.bf16.msra.mxu1 %v10901_v18 }
0x2a0e   : > { %v6603_v3 = vpack.c.bf16 %v6599_v19, %v6597_v16  ;;  %10344 = vmatprep.subr.bf16.mxu1 %v10903_v20 }
0x2a10   : > { %v11024_v8 = vpop.eup %11023  ;;  %6734 = vmatprep.mubr.bf16.mxu0 %v6603_v3 }
0x2a11   : > { %v11026_v9 = vpop.eup %11025  ;;  %6735 = vmatmul.mubr.bf16.vlgmr.msra.gmra.mrb[24].mxu0 %v6602_v4  ;;  %v6600_v23 = vmul.f32 %v11024_v8, %v6548_v35 }
0x2a12   : > { %v6601_v21 = vmul.f32 %v11026_v9, %v6550_v39  ;;  %10357 = vmatpush3.bf16.msra.mxu0 %v10896_v57  ;;  %v9547_v9 = vld [vmem:[%s12877_s22 + $0x1] ss:$0 sm:$0xff] }
0x2a13   : > { %v6604_v25 = vpack.c.bf16 %v6600_v23, %v6600_v23  ;;  %10358 = vmatprep.subr.bf16.mxu0 %v10898_v0 }
0x2a14   : > { %v6605_v22 = vpack.c.bf16 %v6601_v21, %v6601_v21 }
0x2a16   : > { %6742 = vmatprep.mubr.bf16.mxu0 %v6605_v22  ;;  %10359 = vmatpush3.bf16.msra.mxu0 %v10898_v0 }
0x2a17   : > { %10360 = vmatprep.subr.bf16.mxu0 %v10900_v2 }
0x2a19   : > { %6743 = vmatmul.mubr.bf16.gmra.mrb[28].mxu0 %v6604_v25 }
0x2a1a   : > { %10361 = vmatpush3.bf16.msra.mxu0 %v10900_v2 }
0x2a1b   : > { %10362 = vmatprep.subr.bf16.mxu0 %v10902_v6 }
0x2a1e   : > { %10363 = vmatpush3.bf16.msra.mxu0 %v10902_v6 }
0x2ae4   : > { %v9911_v63 = vpop.f32.mrb[24].mxu0 }
0x2ae5   : > { %v9912_v62 = vpop.f32.mrb[25].mxu0 }
0x2ae6   : > { %v9913_v24 = vadd.f32 %v9912_v62, %v9911_v63  ;;  %v9914_v49 = vpop.f32.mrb[26].mxu0  ;;  %v9548_v63 = vld [vmem:[%s12878_s26 + $0x1] ss:$0 sm:$0xff] }
0x2ae7   : > { %v9915_v26 = vpop.f32.mrb[27].mxu0 }
0x2ae8   : > { %v6750_v53 = vadd.f32 %v9913_v24, %v12380_v12  ;;  %v9916_v55 = vadd.f32 %v9915_v26, %v9914_v49 }
0x2aea   : > { %v12434_v27 = vadd.f32 %v9464_v60, %v6750_v53  ;;  %v6751_v37 = vadd.f32 %v9916_v55, %v12383_v15 }
0x2aec   : > { %v12437_v28 = vadd.f32 %v9464_v60, %v6751_v37  ;;  %v9917_v40 = vpop.f32.mrb[28].mxu0  ;;  %v6860_v29 = vsel %vm2409_vm0, %v12434_v27, 0.0 }
0x2aed   : > { %6861 = vadd.xlane.f32.xlu1 %v6860_v29  ;;  %v9918_v5 = vpop.f32.mrb[29].mxu0  ;;  %v10904_v29 = vld [vmem:[%s12875_s14 + $0x28] sm:$0xff]  }
0x2aee   : > { %v9919_v46 = vadd.f32 %v9918_v5, %v9917_v40  ;;  %v9920_v31 = vpop.f32.mrb[30].mxu0  ;;  %v6863_v32 = vsel %vm2409_vm0, %v12437_v28, 0.0  ;;  %v10905_v5 = vld [vmem:[%s12875_s14 + $0x30] sm:$0xff]  }
0x2aef   : > { %6864 = vadd.xlane.f32.xlu0 %v6863_v32  ;;  %v9921_v12 = vpop.f32.mrb[31].mxu0 }
0x2af0   : > { %v6752_v45 = vadd.f32 %v9919_v46, %v12387_v17  ;;  %v10906_v46 = vld [vmem:[%s12875_s14 + $0x38] sm:$0xff]   ;;  %v9563_v12 = vld [vmem:[%s12881_s0 + $0x1] ss:$0 sm:$0xff]  ;;  %s12891_s0 = smov 112  }
0x2af2   : > { %v12444_v59 = vadd.f32 %v9464_v60, %v6752_v45  ;;  %v9549_v45 = vld [vmem:[%s12880_s3 + $0x1] ss:$0 sm:$0xff]  ;;  %s12895_s3 = smov 32  }
0x2af4   : > { %v6866_v15 = vsel %vm2409_vm0, %v12444_v59, 0.0 }
0x2af5   : > { %6867 = vadd.xlane.f32.xlu1 %v6866_v15 }
0x2b7a   : > { %v6862_v33 = vpop.xlane.xlu1 %6861 }
0x2b7b   : > { %v6869_v35 = vmul.f32 0.015625, %v6862_v33 }
0x2b7c   : > { %v6865_v38 = vpop.xlane.xlu0 %6864 }
0x2b7d   : > { %v6872_v39 = vsub.f32 %v12434_v27, %v6869_v35  ;;  %v6870_v41 = vmul.f32 0.015625, %v6865_v38 }
0x2b7f   : > { %v6873_v42 = vsub.f32 %v12437_v28, %v6870_v41  ;;  %v6875_v52 = vmul.f32 %v6872_v39, %v6872_v39 }
0x2b81   : > { %v6878_v43 = vsel %vm2409_vm0, %v6875_v52, 0.0  ;;  %v6876_v17 = vmul.f32 %v6873_v42, %v6873_v42 }
0x2b82   : > { %6879 = vadd.xlane.f32.xlu0 %v6878_v43  ;;  %v6868_v44 = vpop.xlane.xlu1 %6867 }
0x2b83   : > { %v6871_v47 = vmul.f32 0.015625, %v6868_v44  ;;  %v6881_v48 = vsel %vm2409_vm0, %v6876_v17, 0.0 }
0x2b84   : > { %6882 = vadd.xlane.f32.xlu1 %v6881_v48 }
0x2b85   : > { %v6874_v50 = vsub.f32 %v12444_v59, %v6871_v47 }
0x2b87   : > { %v6877_v51 = vmul.f32 %v6874_v50, %v6874_v50 }
0x2b89   : > { %v6884_v61 = vsel %vm2409_vm0, %v6877_v51, 0.0 }
0x2b8a   : > { %6885 = vadd.xlane.f32.xlu0 %v6884_v61  ;;  %v9556_v61 = vld [vmem:[%s12879_s25 + $0x1] ss:$0 sm:$0xff] }
0x2c0f   : > { %v6880_v7 = vpop.xlane.xlu0 %6879 }
0x2c10   : > { %v6887_v10 = vmul.f32 0.015625, %v6880_v7 }
0x2c11   : > { %v6883_v11 = vpop.xlane.xlu1 %6882 }
0x2c12   : > { %v6890_v13 = vadd.f32 1e-05, %v6887_v10  ;;  %v6888_v14 = vmul.f32 0.015625, %v6883_v11 }
0x2c14   : > { %11027 = vrsqrt.f32 %v6890_v13  ;;  %v6891_v16 = vadd.f32 1e-05, %v6888_v14 }
0x2c16   : > { %11029 = vrsqrt.f32 %v6891_v16 }
0x2c17   : > { %v6886_v19 = vpop.xlane.xlu0 %6885 }
0x2c18   : > { %v6889_v4 = vmul.f32 0.015625, %v6886_v19 }
0x2c1a   : > { %v6892_v3 = vadd.f32 1e-05, %v6889_v4 }
0x2c1c   : > { %11031 = vrsqrt.f32 %v6892_v3 }
0x2c1e   : > { %v11028_v8 = vpop.eup %11027 }
0x2c1f   : > { %v6896_v21 = vmul.f32 %v11028_v8, %v6872_v39 }
0x2c20   : > { %v11030_v23 = vpop.eup %11029 }
0x2c21   : > { %v6897_v22 = vmul.f32 %v11030_v23, %v6873_v42  ;;  %v6905_v25 = vmul.f32 %v9547_v9, %v6896_v21 }
0x2c23   : > { %v6906_v62 = vmul.f32 %v9547_v9, %v6897_v22  ;;  %v6914_v24 = vadd.f32 %v9548_v63, %v6905_v25 }
0x2c25   : > { %v6915_v49 = vadd.f32 %v9548_v63, %v6906_v62 }
0x2c26   : > { %v11032_v60 = vpop.eup %11031 }
0x2c27   : > { %v6898_v26 = vmul.f32 %v11032_v60, %v6874_v50  ;;  %v6917_v53 = vpack.c.bf16 %v6915_v49, %v6914_v24  ;;  %v12522_v24 = vld [vmem:[%s12882_s9] sm:$0xff] }
0x2c29   : > { %v6907_v55 = vmul.f32 %v9547_v9, %v6898_v26  ;;  %10340 = vmatprep.mubr.msk.bf16.mxu1 %vm2409_vm0, %v6917_v53  ;;  %10364 = vmatprep.mubr.msk.bf16.mxu0 %vm2409_vm0, %v6917_v53  ;;  %v12527_v26 = vld [vmem:[%s12882_s9 + $0x8] sm:$0xff] }
0x2c2b   : > { %v6916_v37 = vadd.f32 %v9548_v63, %v6907_v55 }
0x2c2d   : > { %v6918_v40 = vpack.c.bf16 %v6916_v37, %v6916_v37  ;;  %v12532_v37 = vld [vmem:[%s12882_s9 + $0x10] sm:$0xff] }
0x2c2f   : > { %10341 = vmatmul.mubr.msk.bf16.vlgmr.msra.gmra.mrb[32].mxu1 %vm2409_vm0, %v6918_v40  ;;  %10365 = vmatmul.mubr.msk.bf16.vlgmr.msra.gmra.mrb[32].mxu0 %vm2409_vm0, %v6918_v40 }
0x2c30   : > { %10345 = vmatpush3.bf16.msra.mxu1 %v10903_v20  ;;  %10352 = vmatprep.mubr.msk.bf16.mxu1 %vm2409_vm0, %v6917_v53 }
0x2c31   : > { %10346 = vmatprep.subr.bf16.mxu1 %v10904_v29 }
0x2c34   : > { %10347 = vmatpush3.bf16.msra.mxu1 %v10904_v29 }
0x2c35   : > { %10348 = vmatprep.subr.bf16.mxu1 %v10905_v5 }
0x2c38   : > { %10349 = vmatpush3.bf16.msra.mxu1 %v10905_v5 }
0x2c39   : > { %10350 = vmatprep.subr.bf16.mxu1 %v10906_v46 }
0x2c3c   : > { %10351 = vmatpush3.bf16.msra.mxu1 %v10906_v46 }
0x2c3f   : > { %10353 = vmatmul.mubr.msk.bf16.vlgmr.msra.gmra.mrb[36].mxu1 %vm2409_vm0, %v6918_v40 }
0x2d02   : > { %v10342_v31 = vpop.f32.mrb[32].mxu1  ;;  %v10366_v32 = vpop.f32.mrb[32].mxu0 }
0x2d03   : > { %v6989_v15 = vpop.f32.mrb[33].mxu1  ;;  %v7145_v33 = vpop.f32.mrb[33].mxu0  ;;  %v7154_v39 = vadd.f32 %v10366_v32, %v9563_v12  ;;  %v6998_v10 = vadd.f32 %v10342_v31, %v9549_v45 }
0x2d04   : > { %v10343_v35 = vpop.f32.mrb[34].mxu1  ;;  %v10367_v38 = vpop.f32.mrb[34].mxu0  ;;  %v6990_v52 = vadd.f32 %v9549_v45, %v6989_v15  ;;  %v7146_v43 = vadd.f32 %v9563_v12, %v7145_v33 }
0x2d05   : > { %v6992_v41 = vpop.f32.mrb[35].mxu1  ;;  %v7148_v42 = vpop.f32.mrb[35].mxu0  ;;  %v12480_v50 = vpack.c.bf16 %v7154_v39, %v7154_v39  ;;  %v12507_v11 = vpack.c.bf16 %v6998_v10, %v6998_v10 }
0x2d06   : > { %v6993_v17 = vadd.f32 %v9549_v45, %v6992_v41  ;;  %v7149_v44 = vadd.f32 %v9563_v12, %v7148_v42 }
0x2d07   : > { %v7273_v51 = vsel %vm5673_vm1, %v12480_v50, 0 }
0x2d08   : > { %v12476_v47 = vpack.c.bf16 %v6993_v17, %v6990_v52  ;;  %v12478_v48 = vpack.c.bf16 %v7149_v44, %v7146_v43 }
0x2d0a   : > { %10372 = vmatprep.mubr.msk.bf16.mxu1 %vm2797_vm3, %v12476_v47  ;;  %10376 = vmatprep.subr.bf16.mxu0 %v12478_v48 }
0x2d0b   : > { %10377 = vmatpush3.bf16.msra.mxu0 %v12478_v48 }
0x2d0c   : > { %10480 = vmatprep.subr.msk.bf16.mxu0 %vm5673_vm1, %v12480_v50 }
0x2d0f   : > { %10379 = vmatpush3.bf16.msra.mxu0 %v7273_v51 }
0x2d12   : > { %v10354_v54 = vpop.f32.mrb[36].mxu1 }
0x2d13   : > { %v7076_v57 = vadd.f32 %v10354_v54, %v9556_v61  ;;  %v7067_v58 = vpop.f32.mrb[37].mxu1 }
0x2d14   : > { %v10355_v0 = vpop.f32.mrb[38].mxu1  ;;  %v7068_v18 = vadd.f32 %v9556_v61, %v7067_v58 }
0x2d15   : > { %v12491_v1 = vpack.c.bf16 %v7076_v57, %v7076_v57  ;;  %v7070_v2 = vpop.f32.mrb[39].mxu1 }
0x2d16   : > { %v7071_v6 = vadd.f32 %v9556_v61, %v7070_v2 }
0x2d17   : > { %7336 = vrot.lane.b32.xlu0 %v12491_v1, %s12891_s0  ;;  %v7173_v13 = vsel %vm2797_vm3, %v12491_v1, 0 }
0x2d18   : > { %v12495_v20 = vpack.c.bf16 %v7071_v6, %v7068_v18 }
0x2d1a   : > { %7334 = vrot.lane.b32.xlu1 %v12495_v20, %s12891_s0  ;;  %10478 = vmatprep.subr.msk.bf16.mxu1 %vm2797_vm3, %v12495_v20  ;;  %v7170_v7 = vsel %vm2797_vm3, %v12495_v20, 0 }
0x2d1b   : > { %10369 = vmatpush3.bf16.xpose.msra.mxu1 %v7170_v7 }
0x2d1c   : > { %10479 = vmatprep.subr.msk.bf16.mxu1 %vm2797_vm3, %v12491_v1 }
0x2d1e   : > { %7328 = vrot.lane.b32.xlu1 %v12476_v47, %s12891_s0 }
0x2d22   : > { %7330 = vrot.lane.b32.xlu1 %v12507_v11, %s12891_s0 }
0x2d23   : > { %10371 = vmatpush3.bf16.xpose.msra.mxu1 %v7173_v13 }
0x2d2a   : > { %10373 = vmatmul.mubr.msk.bf16.vlgmr.msra.gmra.mrb[40].mxu1 %vm2797_vm3, %v12507_v11 }
0x2d89   : > { %v7337_v19 = vpop.permute.xlu0 %7336 }
0x2d8a   : > { %v7348_v3 = vsel %vm2797_vm3, %v7337_v19, 0 }
0x2d8c   : > { %v7335_v14 = vpop.permute.xlu1 %7334 }
0x2d8d   : > { %v7345_v16 = vsel %vm2797_vm3, %v7335_v14, 0  ;;  %10481 = vmatprep.subr.msk.bf16.mxu1 %vm2797_vm3, %v7335_v14 }
0x2d8e   : > { %10385 = vmatpush3.bf16.xpose.msra.mxu1 %v7345_v16 }
0x2d8f   : > { %10482 = vmatprep.subr.msk.bf16.mxu1 %vm2797_vm3, %v7337_v19 }
0x2d90   : > { %v7329_v4 = vpop.permute.xlu1 %7328 }
0x2d91   : > { %10388 = vmatprep.mubr.msk.bf16.mxu1 %vm2797_vm3, %v7329_v4 }
0x2d94   : > { %v7331_v8 = vpop.permute.xlu1 %7330 }
0x2d96   : > { %10387 = vmatpush3.bf16.xpose.msra.mxu1 %v7348_v3 }
0x2d9d   : > { %10389 = vmatmul.mubr.msk.bf16.vlgmr.msra.gmra.mrb[44].mxu1 %vm2797_vm3, %v7331_v8 }
0x2dfd   : > { %v10374_v9 = vpop.f32.mrb[40].mxu1 }
0x2dfe   : > { %v7209_v21 = vpop.f32.mrb[41].mxu1  ;;  %v7225_v63 = vmul.f32 0.25, %v10374_v9 }
0x2dff   : > { %v7223_v23 = vmul.f32 0.25, %v7209_v21  ;;  %v10375_v22 = vpop.f32.mrb[42].mxu1 }
0x2e00   : > { %v7212_v25 = vpop.f32.mrb[43].mxu1  ;;  %v7228_v40 = vadd.f32 %v12532_v37, %v7225_v63 }
0x2e01   : > { %v7224_v62 = vmul.f32 0.25, %v7212_v25  ;;  %v7226_v49 = vadd.f32 %v12522_v24, %v7223_v23 }
0x2e02   : > { %v7235_v29 = vsel %vm5629_vm2, %v7228_v40, -inf }
0x2e03   : > { %v7229_v60 = vsel %vm5629_vm2, %v7226_v49, -inf  ;;  %v7227_v53 = vadd.f32 %v12527_v26, %v7224_v62 }
0x2e04   : > { %7230 = vmax.xlane.f32.xlu1 %v7229_v60 }
0x2e05   : > { %v7232_v55 = vsel %vm5629_vm2, %v7227_v53, -inf }
0x2e06   : > { %7233 = vmax.xlane.f32.xlu0 %v7232_v55 }
0x2e0a   : > { %7236 = vmax.xlane.f32.xlu0 %v7235_v29 }
0x2e70   : > { %v10390_v5 = vpop.f32.mrb[44].mxu1 }
0x2e71   : > { %v7384_v46 = vpop.f32.mrb[45].mxu1  ;;  %v7400_v31 = vmul.f32 0.25, %v10390_v5 }
0x2e72   : > { %v7398_v32 = vmul.f32 0.25, %v7384_v46  ;;  %v10391_v12 = vpop.f32.mrb[46].mxu1 }
0x2e73   : > { %v7387_v45 = vpop.f32.mrb[47].mxu1  ;;  %v7403_v39 = vadd.f32 %v12532_v37, %v7400_v31 }
0x2e74   : > { %v7399_v15 = vmul.f32 0.25, %v7387_v45  ;;  %v7401_v33 = vadd.f32 %v12522_v24, %v7398_v32 }
0x2e75   : > { %v7410_v42 = vsel %vm5629_vm2, %v7403_v39, -inf }
0x2e76   : > { %v7404_v35 = vsel %vm5629_vm2, %v7401_v33, -inf  ;;  %v7402_v38 = vadd.f32 %v12527_v26, %v7399_v15 }
0x2e77   : > { %7405 = vmax.xlane.f32.xlu0 %v7404_v35 }
0x2e78   : > { %v7407_v41 = vsel %vm5629_vm2, %v7402_v38, -inf }
0x2e79   : > { %7408 = vmax.xlane.f32.xlu1 %v7407_v41 }
0x2e7b   : > { %7411 = vmax.xlane.f32.xlu0 %v7410_v42 }
0x2e91   : > { %v7231_v52 = vpop.xlane.xlu1 %7230 }
0x2e92   : > { %v7238_v44 = vsub.f32 %v7226_v49, %v7231_v52 }
0x2e93   : > { %v7234_v43 = vpop.xlane.xlu0 %7233 }
0x2e94   : > { %v7239_v17 = vsub.f32 %v7227_v53, %v7234_v43  ;;  %v7241_v57 = vmul.f32 1.442695, %v7238_v44 }
0x2e96   : > { %v7243_v51 = vmul.f32 1.442695, %v7239_v17 }
0x2e97   : > { %v7237_v61 = vpop.xlane.xlu0 %7236 }
0x2e98   : > { %11033 = vpow2.f32 %v7243_v51  ;;  %v7240_v54 = vsub.f32 %v7228_v40, %v7237_v61 }
0x2e9a   : > { %v7245_v58 = vmul.f32 1.442695, %v7240_v54 }
0x2e9c   : > { %11035 = vpow2.f32 %v7245_v58 }
0x2e9d   : > { %11037 = vpow2.f32 %v7241_v57 }
0x2ea2   : > { %v11034_v0 = vpop.eup %11033 }
0x2ea3   : > { %v7250_v2 = vsel %vm5629_vm2, %v11034_v0, 0.0 }
0x2ea4   : > { %7251 = vadd.xlane.f32.xlu0 %v7250_v2 }
0x2ea6   : > { %v11036_v18 = vpop.eup %11035 }
0x2ea7   : > { %v7253_v6 = vsel %vm5629_vm2, %v11036_v18, 0.0  ;;  %v11038_v7 = vpop.eup %11037 }
0x2ea8   : > { %7254 = vadd.xlane.f32.xlu1 %v7253_v6  ;;  %v7247_v10 = vsel %vm5629_vm2, %v11038_v7, 0.0 }
0x2eac   : > { %7248 = vadd.xlane.f32.xlu1 %v7247_v10 }
0x2ebd   : > { %7441 = vrot.lane.b32.xlu1 %v12478_v48, %s12891_s0 }
0x2f04   : > { %v7406_v13 = vpop.xlane.xlu0 %7405 }
0x2f05   : > { %v7413_v16 = vsub.f32 %v7401_v33, %v7406_v13 }
0x2f06   : > { %v7409_v14 = vpop.xlane.xlu1 %7408 }
0x2f07   : > { %v7414_v19 = vsub.f32 %v7402_v38, %v7409_v14  ;;  %v7416_v9 = vmul.f32 1.442695, %v7413_v16 }
0x2f08   : > { %v7412_v4 = vpop.xlane.xlu0 %7411 }
0x2f09   : > { %v7418_v3 = vmul.f32 1.442695, %v7414_v19  ;;  %v7415_v8 = vsub.f32 %v7403_v39, %v7412_v4 }
0x2f0b   : > { %11039 = vpow2.f32 %v7418_v3  ;;  %v7420_v21 = vmul.f32 1.442695, %v7415_v8 }
0x2f0d   : > { %11041 = vpow2.f32 %v7420_v21 }
0x2f0e   : > { %11043 = vpow2.f32 %v7416_v9 }
0x2f15   : > { %v11040_v23 = vpop.eup %11039 }
0x2f16   : > { %v7425_v22 = vsel %vm5629_vm2, %v11040_v23, 0.0 }
0x2f17   : > { %v11042_v25 = vpop.eup %11041  ;;  %7426 = vadd.xlane.f32.xlu1 %v7425_v22 }
0x2f18   : > { %v7428_v63 = vsel %vm5629_vm2, %v11042_v25, 0.0  ;;  %v11044_v62 = vpop.eup %11043 }
0x2f19   : > { %7429 = vadd.xlane.f32.xlu0 %v7428_v63  ;;  %v7422_v49 = vsel %vm5629_vm2, %v11044_v62, 0.0 }
0x2f1d   : > { %7423 = vadd.xlane.f32.xlu0 %v7422_v49 }
0x2f28   : > { %7522 = vrot.lane.b32.xlu1 %v12495_v20, %s12892_s2 }
0x2f2c   : > { %7524 = vrot.lane.b32.xlu1 %v12491_v1, %s12892_s2 }
0x2f30   : > { %7518 = vrot.lane.b32.xlu1 %v12476_v47, %s12892_s2 }
0x2f31   : > { %v7252_v60 = vpop.xlane.xlu0 %7251 }
0x2f33   : > { %7443 = vrot.lane.b32.xlu0 %v12480_v50, %s12891_s0  ;;  %s12893_s0 = smov 80  }
0x2f35   : > { %v7255_v53 = vpop.xlane.xlu1 %7254 }
0x2f36   : > { %11045 = vrcp.f32 %v7255_v53 }
0x2f37   : > { %7520 = vrot.lane.b32.xlu0 %v12507_v11, %s12892_s2  ;;  %11047 = vrcp.f32 %v7252_v60 }
0x2f39   : > { %v7249_v55 = vpop.xlane.xlu1 %7248 }
0x2f3a   : > { %11049 = vrcp.f32 %v7249_v55 }
0x2f3d   : > { %v7442_v40 = vpop.permute.xlu1 %7441 }
0x2f3e   : > { %10392 = vmatprep.subr.bf16.mxu0 %v7442_v40 }
0x2f40   : > { %v11046_v29 = vpop.eup %11045 }
0x2f41   : > { %v11048_v5 = vpop.eup %11047  ;;  %v7261_v31 = vmul.f32 %v11046_v29, %v11036_v18 }
0x2f42   : > { %v7260_v12 = vmul.f32 %v11048_v5, %v11034_v0 }
0x2f43   : > { %v7263_v15 = vpack.c.bf16 %v7261_v31, %v7261_v31 }
0x2f44   : > { %v11050_v46 = vpop.eup %11049 }
0x2f45   : > { %v7259_v32 = vmul.f32 %v11050_v46, %v11038_v7 }
0x2f47   : > { %v7262_v45 = vpack.c.bf16 %v7260_v12, %v7259_v32 }
0x2f49   : > { %10380 = vmatprep.mubr.msk.bf16.mxu0 %vm5629_vm2, %v7262_v45 }
0x2f4a   : > { %10381 = vmatmul.mubr.msk.bf16.vlgmr.msra.gmra.mrb[36].mxu0 %vm5629_vm2, %v7263_v15 }
0x2f4b   : > { %10393 = vmatpush3.bf16.msra.mxu0 %v7442_v40 }
0x2fa4   : > { %v7427_v33 = vpop.xlane.xlu1 %7426 }
0x2fa6   : > { %v7430_v35 = vpop.xlane.xlu0 %7429 }
0x2fa7   : > { %11051 = vrcp.f32 %v7430_v35 }
0x2fa8   : > { %11053 = vrcp.f32 %v7427_v33  ;;  %v7523_v41 = vpop.permute.xlu1 %7522 }
0x2fa9   : > { %v7533_v0 = vsel %vm2797_vm3, %v7523_v41, 0 }
0x2faa   : > { %v7424_v38 = vpop.xlane.xlu0 %7423 }
0x2fab   : > { %11055 = vrcp.f32 %v7424_v38 }
0x2fac   : > { %v7525_v51 = vpop.permute.xlu1 %7524 }
0x2fad   : > { %v7536_v18 = vsel %vm2797_vm3, %v7525_v51, 0 }
0x2fae   : > { %v7444_v39 = vpop.permute.xlu0 %7443 }
0x2faf   : > { %v7453_v42 = vsel %vm5673_vm1, %v7444_v39, 0  ;;  %10483 = vmatprep.subr.msk.bf16.mxu0 %vm5673_vm1, %v7444_v39 }
0x2fb0   : > { %10395 = vmatpush3.bf16.msra.mxu0 %v7453_v42  ;;  %v7519_v2 = vpop.permute.xlu1 %7518 }
0x2fb1   : > { %10484 = vmatprep.subr.msk.bf16.mxu0 %vm2797_vm3, %v7523_v41  ;;  %v11052_v52 = vpop.eup %11051 }
0x2fb2   : > { %v11054_v43 = vpop.eup %11053  ;;  %v7436_v44 = vmul.f32 %v11052_v52, %v11042_v25  ;;  %v7521_v6 = vpop.permute.xlu0 %7520 }
0x2fb3   : > { %v7435_v54 = vmul.f32 %v11054_v43, %v11040_v23 }
0x2fb4   : > { %v7438_v58 = vpack.c.bf16 %v7436_v44, %v7436_v44 }
0x2fb5   : > { %v11056_v17 = vpop.eup %11055 }
0x2fb6   : > { %v7434_v61 = vmul.f32 %v11056_v17, %v11044_v62 }
0x2fb8   : > { %v7437_v57 = vpack.c.bf16 %v7435_v54, %v7434_v61 }
0x2fba   : > { %10396 = vmatprep.mubr.msk.bf16.mxu0 %vm5629_vm2, %v7437_v57 }
0x2fbb   : > { %10397 = vmatmul.mubr.msk.bf16.vlgmr.msra.gmra.mrb[40].mxu0 %vm5629_vm2, %v7438_v58 }
0x2fbc   : > { %10401 = vmatpush3.bf16.xpose.msra.mxu0 %v7533_v0  ;;  %10404 = vmatprep.mubr.msk.bf16.mxu0 %vm2797_vm3, %v7519_v2 }
0x2fbd   : > { %10485 = vmatprep.subr.msk.bf16.mxu0 %vm2797_vm3, %v7525_v51 }
0x2fc4   : > { %10403 = vmatpush3.bf16.xpose.msra.mxu0 %v7536_v18 }
0x2fcb   : > { %10405 = vmatmul.mubr.msk.bf16.vlgmr.msra.gmra.mrb[44].mxu0 %vm2797_vm3, %v7521_v6 }
0x301d   : > { %v10382_v7 = vpop.f32.mrb[36].mxu0 }
0x301e   : > { %7325 = vst.msk [vmem:[#allocation2 + $0x10] sm:$0xff] %vm2797_vm3, %v10382_v7  ;;  %v7309_v10 = vpop.f32.mrb[37].mxu0 }
0x301f   : > { %7323 = vst.msk [vmem:[#allocation2] sm:$0xff] %vm2797_vm3, %v7309_v10  ;;  %v10383_v13 = vpop.f32.mrb[38].mxu0 }
0x3020   : > { %v7312_v14 = vpop.f32.mrb[39].mxu0 }
0x3021   : > { %7324 = vst.msk [vmem:[#allocation2 + $0x8] sm:$0xff] %vm2797_vm3, %v7312_v14 }
0x308e   : > { %v12575_v16 = vpop.f32.mrb[40].mxu0 }
0x308f   : > { %v12577_v19 = vpop.f32.mrb[41].mxu0 }
0x3090   : > { %v10399_v4 = vpop.f32.mrb[42].mxu0 }
0x3091   : > { %v12579_v3 = vpop.f32.mrb[43].mxu0 }
0x309e   : > { %v10406_v8 = vpop.f32.mrb[44].mxu0 }
0x309f   : > { %v7572_v9 = vpop.f32.mrb[45].mxu0  ;;  %v7588_v25 = vmul.f32 0.25, %v10406_v8 }
0x30a0   : > { %v7586_v21 = vmul.f32 0.25, %v7572_v9  ;;  %v10407_v23 = vpop.f32.mrb[46].mxu0 }
0x30a1   : > { %v7575_v22 = vpop.f32.mrb[47].mxu0  ;;  %v7591_v55 = vadd.f32 %v12532_v37, %v7588_v25 }
0x30a2   : > { %v7587_v63 = vmul.f32 0.25, %v7575_v22  ;;  %v7589_v62 = vadd.f32 %v12522_v24, %v7586_v21 }
0x30a3   : > { %v7598_v40 = vsel %vm5629_vm2, %v7591_v55, -inf }
0x30a4   : > { %v7592_v49 = vsel %vm5629_vm2, %v7589_v62, -inf  ;;  %v7590_v60 = vadd.f32 %v12527_v26, %v7587_v63 }
0x30a5   : > { %7593 = vmax.xlane.f32.xlu1 %v7592_v49 }
0x30a6   : > { %v7595_v53 = vsel %vm5629_vm2, %v7590_v60, -inf }
0x30a7   : > { %7596 = vmax.xlane.f32.xlu0 %v7595_v53 }
0x30ab   : > { %7599 = vmax.xlane.f32.xlu0 %v7598_v40 }
0x30b6   : > { %7627 = vrot.lane.b32.xlu1 %v12478_v48, %s12892_s2 }
0x3132   : > { %v7594_v29 = vpop.xlane.xlu1 %7593 }
0x3133   : > { %v7601_v32 = vsub.f32 %v7589_v62, %v7594_v29 }
0x3134   : > { %v7597_v5 = vpop.xlane.xlu0 %7596 }
0x3135   : > { %v7602_v46 = vsub.f32 %v7590_v60, %v7597_v5  ;;  %v7604_v33 = vmul.f32 1.442695, %v7601_v32 }
0x3136   : > { %v7628_v31 = vpop.permute.xlu1 %7627 }
0x3137   : > { %v7606_v12 = vmul.f32 1.442695, %v7602_v46  ;;  %10408 = vmatprep.subr.bf16.mxu1 %v7628_v31 }
0x3138   : > { %10409 = vmatpush3.bf16.msra.mxu1 %v7628_v31  ;;  %v7600_v45 = vpop.xlane.xlu0 %7599 }
0x3139   : > { %11057 = vpow2.f32 %v7606_v12  ;;  %v7603_v15 = vsub.f32 %v7591_v55, %v7600_v45 }
0x313b   : > { %v7608_v35 = vmul.f32 1.442695, %v7603_v15 }
0x313d   : > { %11059 = vpow2.f32 %v7608_v35 }
0x313e   : > { %11061 = vpow2.f32 %v7604_v33 }
0x3143   : > { %v11058_v38 = vpop.eup %11057 }
0x3144   : > { %v7613_v39 = vsel %vm5629_vm2, %v11058_v38, 0.0 }
0x3145   : > { %7614 = vadd.xlane.f32.xlu1 %v7613_v39 }
0x3147   : > { %v11060_v41 = vpop.eup %11059 }
0x3148   : > { %v7616_v42 = vsel %vm5629_vm2, %v11060_v41, 0.0  ;;  %v11062_v52 = vpop.eup %11061 }
0x3149   : > { %7617 = vadd.xlane.f32.xlu0 %v7616_v42  ;;  %v7610_v43 = vsel %vm5629_vm2, %v11062_v52, 0.0 }
0x314d   : > { %7611 = vadd.xlane.f32.xlu0 %v7610_v43 }
0x3156   : > { %7708 = vrot.lane.b32.xlu1 %v12495_v20, %s12893_s0 }
0x315a   : > { %7710 = vrot.lane.b32.xlu1 %v12491_v1, %s12893_s0 }
0x315e   : > { %7704 = vrot.lane.b32.xlu1 %v12476_v47, %s12893_s0 }
0x3163   : > { %7629 = vrot.lane.b32.xlu0 %v12480_v50, %s12892_s2  ;;  %s12894_s2 = smov 16  }
0x3167   : > { %7706 = vrot.lane.b32.xlu0 %v12507_v11, %s12893_s0 }
0x31d2   : > { %v7615_v17 = vpop.xlane.xlu1 %7614 }
0x31d6   : > { %v7618_v44 = vpop.xlane.xlu0 %7617  ;;  %v7709_v20 = vpop.permute.xlu1 %7708 }
0x31d7   : > { %11063 = vrcp.f32 %v7618_v44  ;;  %v7719_v7 = vsel %vm2797_vm3, %v7709_v20, 0 }
0x31d8   : > { %11065 = vrcp.f32 %v7615_v17 }
0x31da   : > { %v7612_v51 = vpop.xlane.xlu0 %7611  ;;  %v7711_v11 = vpop.permute.xlu1 %7710 }
0x31db   : > { %11067 = vrcp.f32 %v7612_v51  ;;  %v7722_v13 = vsel %vm2797_vm3, %v7711_v11, 0 }
0x31de   : > { %v7630_v61 = vpop.permute.xlu0 %7629  ;;  %v7705_v10 = vpop.permute.xlu1 %7704 }
0x31df   : > { %v7639_v54 = vsel %vm5673_vm1, %v7630_v61, 0  ;;  %10486 = vmatprep.subr.msk.bf16.mxu1 %vm5673_vm1, %v7630_v61 }
0x31e0   : > { %10411 = vmatpush3.bf16.msra.mxu1 %v7639_v54 }
0x31e1   : > { %10487 = vmatprep.subr.msk.bf16.mxu1 %vm2797_vm3, %v7709_v20  ;;  %v11064_v47 = vpop.eup %11063 }
0x31e2   : > { %v11066_v1 = vpop.eup %11065  ;;  %v7624_v58 = vmul.f32 %v11064_v47, %v11060_v41  ;;  %v7707_v14 = vpop.permute.xlu0 %7706 }
0x31e3   : > { %v7623_v2 = vmul.f32 %v11066_v1, %v11058_v38 }
0x31e4   : > { %v7626_v6 = vpack.c.bf16 %v7624_v58, %v7624_v58 }
0x31e5   : > { %v11068_v57 = vpop.eup %11067 }
0x31e6   : > { %v7622_v0 = vmul.f32 %v11068_v57, %v11062_v52 }
0x31e8   : > { %v7625_v18 = vpack.c.bf16 %v7623_v2, %v7622_v0 }
0x31ea   : > { %10412 = vmatprep.mubr.msk.bf16.mxu1 %vm5629_vm2, %v7625_v18 }
0x31eb   : > { %10413 = vmatmul.mubr.msk.bf16.vlgmr.msra.gmra.mrb[48].mxu1 %vm5629_vm2, %v7626_v6  ;;  %v10907_v6 = vld [vmem:[%s12883_s11 + $0x20] sm:$0xff]  }
0x31ec   : > { %10417 = vmatpush3.bf16.xpose.msra.mxu1 %v7719_v7  ;;  %10420 = vmatprep.mubr.msk.bf16.mxu1 %vm2797_vm3, %v7705_v10  ;;  %v10908_v7 = vld [vmem:[%s12883_s11 + $0x28] sm:$0xff]   ;;  %v10909_v10 = vld [vmem:[%s12883_s11 + $0x30] sm:$0xff]  }
0x31ed   : > { %10488 = vmatprep.subr.msk.bf16.mxu1 %vm2797_vm3, %v7711_v11 }
0x31f4   : > { %10419 = vmatpush3.bf16.xpose.msra.mxu1 %v7722_v13  ;;  %v10910_v13 = vld [vmem:[%s12883_s11 + $0x38] sm:$0xff]  }
0x31fb   : > { %10421 = vmatmul.mubr.msk.bf16.vlgmr.msra.gmra.mrb[52].mxu1 %vm2797_vm3, %v7707_v14  ;;  %vm11254_vm3 = vmmov 0  }
0x31fc   : > { %8133 = vmatprep.mubr.bf16.mxu1 %v11252_v56 }
0x32be   : > { %v10414_v4 = vpop.f32.mrb[48].mxu1 }
0x32bf   : > { %v7675_v8 = vpop.f32.mrb[49].mxu1 }
0x32c0   : > { %v10415_v9 = vpop.f32.mrb[50].mxu1 }
0x32c1   : > { %v7678_v21 = vpop.f32.mrb[51].mxu1 }
0x32ce   : > { %v10422_v23 = vpop.f32.mrb[52].mxu1 }
0x32cf   : > { %v7758_v22 = vpop.f32.mrb[53].mxu1  ;;  %v7774_v49 = vmul.f32 0.25, %v10422_v23 }
0x32d0   : > { %v7772_v25 = vmul.f32 0.25, %v7758_v22  ;;  %v10423_v63 = vpop.f32.mrb[54].mxu1 }
0x32d1   : > { %v7761_v62 = vpop.f32.mrb[55].mxu1  ;;  %v7777_v29 = vadd.f32 %v12532_v37, %v7774_v49 }
0x32d2   : > { %v7775_v60 = vadd.f32 %v12522_v24, %v7772_v25  ;;  %v7773_v53 = vmul.f32 0.25, %v7761_v62 }
0x32d3   : > { %v7784_v46 = vsel %vm5629_vm2, %v7777_v29, -inf }
0x32d4   : > { %v7776_v55 = vadd.f32 %v12527_v26, %v7773_v53  ;;  %v7778_v40 = vsel %vm5629_vm2, %v7775_v60, -inf }
0x32d5   : > { %7779 = vmax.xlane.f32.xlu1 %v7778_v40 }
0x32d6   : > { %v7781_v5 = vsel %vm5629_vm2, %v7776_v55, -inf }
0x32d7   : > { %7782 = vmax.xlane.f32.xlu0 %v7781_v5 }
0x32db   : > { %7785 = vmax.xlane.f32.xlu0 %v7784_v46 }
0x3362   : > { %v7780_v31 = vpop.xlane.xlu1 %7779 }
0x3363   : > { %v7787_v45 = vsub.f32 %v7775_v60, %v7780_v31 }
0x3364   : > { %v7783_v32 = vpop.xlane.xlu0 %7782 }
0x3365   : > { %v7788_v12 = vsub.f32 %v7776_v55, %v7783_v32  ;;  %v7790_v26 = vmul.f32 1.442695, %v7787_v45  ;;  %v9592_v55 = vld [vmem:[%s12884_s15 + $0x1] ss:$0 sm:$0xff] }
0x3367   : > { %v7792_v15 = vmul.f32 1.442695, %v7788_v12 }
0x3368   : > { %v7786_v24 = vpop.xlane.xlu0 %7785 }
0x3369   : > { %11069 = vpow2.f32 %v7792_v15  ;;  %v7789_v33 = vsub.f32 %v7777_v29, %v7786_v24 }
0x336b   : > { %v7794_v35 = vmul.f32 1.442695, %v7789_v33 }
0x336d   : > { %11071 = vpow2.f32 %v7794_v35 }
0x336e   : > { %11073 = vpow2.f32 %v7790_v26 }
0x3373   : > { %v11070_v38 = vpop.eup %11069 }
0x3374   : > { %v7799_v37 = vsel %vm5629_vm2, %v11070_v38, 0.0 }
0x3375   : > { %7800 = vadd.xlane.f32.xlu1 %v7799_v37 }
0x3377   : > { %v11072_v39 = vpop.eup %11071 }
0x3378   : > { %v7802_v41 = vsel %vm5629_vm2, %v11072_v39, 0.0  ;;  %v11074_v42 = vpop.eup %11073 }
0x3379   : > { %7803 = vadd.xlane.f32.xlu0 %v7802_v41  ;;  %v7796_v52 = vsel %vm5629_vm2, %v11074_v42, 0.0 }
0x337d   : > { %7797 = vadd.xlane.f32.xlu0 %v7796_v52 }
0x3386   : > { %7813 = vrot.lane.b32.xlu1 %v12478_v48, %s12893_s0 }
0x338a   : > { %7506 = vrot.lane.b32.xlu1 %v12577_v19, %s12894_s2 }
0x338e   : > { %7508 = vrot.lane.b32.xlu1 %v12579_v3, %s12894_s2 }
0x3392   : > { %7510 = vrot.lane.b32.xlu1 %v12575_v16, %s12894_s2  ;;  %s9630_s2 = sld [smem:[#allocation5 + $0x1]] }
0x3393   : > { %7815 = vrot.lane.b32.xlu0 %v12480_v50, %s12893_s0  ;;  %s8422_s0 = sld [smem:[#allocation5]] }
0x3396   : > { %7694 = vrot.lane.b32.xlu1 %v7678_v21, %s12895_s3 }
0x3397   : > { %7692 = vrot.lane.b32.xlu0 %v7675_v8, %s12895_s3 }
0x3398   : > { %s8427_s4 = scalar_lea.vmem [#allocation2], %s9630_s2 }
0x339b   : > { %7696 = vrot.lane.b32.xlu0 %v10414_v4, %s12895_s3  ;;  %s12896_s3 = smov 48  }
0x3402   : > { %v7801_v43 = vpop.xlane.xlu1 %7800 }
0x3406   : > { %v7814_v48 = vpop.permute.xlu1 %7813  ;;  %v7804_v17 = vpop.xlane.xlu0 %7803 }
0x3407   : > { %10424 = vmatprep.subr.bf16.mxu0 %v7814_v48  ;;  %11075 = vrcp.f32 %v7804_v17 }
0x3408   : > { %10425 = vmatpush3.bf16.msra.mxu0 %v7814_v48  ;;  %11077 = vrcp.f32 %v7801_v43 }
0x340a   : > { %v7507_v19 = vpop.permute.xlu1 %7506  ;;  %v7798_v3 = vpop.xlane.xlu0 %7797 }
0x340b   : > { %7515 = vst.msk [vmem:[#allocation2] sm:$0xff] %vm3064_vm8, %v7507_v19  ;;  %11079 = vrcp.f32 %v7798_v3 }
0x340e   : > { %v7509_v16 = vpop.permute.xlu1 %7508  ;;  %v7816_v50 = vpop.permute.xlu0 %7815 }
0x340f   : > { %7516 = vst.msk [vmem:[#allocation2 + $0x8] sm:$0xff] %vm3064_vm8, %v7509_v16  ;;  %v7825_v44 = vsel %vm5673_vm1, %v7816_v50, 0  ;;  %10489 = vmatprep.subr.msk.bf16.mxu0 %vm5673_vm1, %v7816_v50  ;;  %v10913_v16 = vld [vmem:[%s12885_s6 + $0x44] ss:$8 sps:$4 sm:$0xff]   ;;  %v10911_v50 = vld [vmem:[%s12885_s6 + $0x40] ss:$8 sps:$4 sm:$0xff]  }
0x3410   : > { %10427 = vmatpush3.bf16.msra.mxu0 %v7825_v44  ;;  %8101 = vmatprep.subr.bf16.mxu1 %v10913_v16  ;;  %v10916_v44 = vld [vmem:[%s12885_s6 + $0x54] ss:$8 sps:$4 sm:$0xff]  }
0x3411   : > { %v11076_v51 = vpop.eup %11075  ;;  %10432 = vmatprep.subr.bf16.mxu0 %v10907_v6  ;;  %8102 = vmatpush1.bf16.msra.mxu1 %v10911_v50 }
0x3412   : > { %v7511_v61 = vpop.permute.xlu1 %7510  ;;  %v7693_v20 = vpop.permute.xlu0 %7692  ;;  %v7810_v1 = vmul.f32 %v11076_v51, %v11072_v39  ;;  %v10914_v51 = vld [vmem:[%s12885_s6 + $0x50] ss:$8 sps:$4 sm:$0xff]   ;;  %8103 = vmatprep.subr.bf16.mxu1 %v10916_v44 }
0x3413   : > { %v11078_v54 = vpop.eup %11077  ;;  %7517 = vst.msk [vmem:[#allocation2 + $0x10] sm:$0xff] %vm3064_vm8, %v7511_v61  ;;  %v10919_v61 = vld [vmem:[%s12885_s6 + $0x64] ss:$8 sps:$4 sm:$0xff]  }
0x3414   : > { %7701 = vst.msk [vmem:[#allocation2] sm:$0xff] %vm3203_vm10, %v7693_v20  ;;  %v7809_v0 = vmul.f32 %v11078_v54, %v11070_v38  ;;  %v7812_v18 = vpack.c.bf16 %v7810_v1, %v7810_v1  ;;  %v10917_v20 = vld [vmem:[%s12885_s6 + $0x60] ss:$8 sps:$4 sm:$0xff]   ;;  %v10922_v54 = vld [vmem:[%s12885_s6 + $0x74] ss:$8 sps:$4 sm:$0xff]  }
0x3415   : > { %v11080_v47 = vpop.eup %11079  ;;  %8104 = vmatpush1.bf16.msra.mxu1 %v10914_v51 }
0x3416   : > { %v7695_v57 = vpop.permute.xlu1 %7694  ;;  %v7697_v58 = vpop.permute.xlu0 %7696  ;;  %v7808_v11 = vmul.f32 %v11080_v47, %v11074_v42  ;;  %8105 = vmatprep.subr.bf16.mxu1 %v10919_v61  ;;  %v10920_v47 = vld [vmem:[%s12885_s6 + $0x70] ss:$8 sps:$4 sm:$0xff]  }
0x3417   : > { %7702 = vst.msk [vmem:[#allocation2 + $0x8] sm:$0xff] %vm3203_vm10, %v7695_v57  ;;  %7703 = vst.msk [vmem:[#allocation2 + $0x10] sm:$0xff] %vm3203_vm10, %v7697_v58 }
0x3418   : > { %v7811_v2 = vpack.c.bf16 %v7809_v0, %v7808_v11 }
0x3419   : > { %8106 = vmatpush1.bf16.msra.mxu1 %v10917_v20 }
0x341a   : > { %10428 = vmatprep.mubr.msk.bf16.mxu0 %vm5629_vm2, %v7811_v2  ;;  %8107 = vmatprep.subr.bf16.mxu1 %v10922_v54 }
0x341b   : > { %10429 = vmatmul.mubr.msk.bf16.vlgmr.msra.gmra.mrb[48].mxu0 %vm5629_vm2, %v7812_v18 }
0x341c   : > { %10433 = vmatpush3.bf16.msra.mxu0 %v10907_v6 }
0x341d   : > { %10434 = vmatprep.subr.bf16.mxu0 %v10908_v7  ;;  %8108 = vmatpush1.bf16.msra.mxu1 %v10920_v47 }
0x3420   : > { %10435 = vmatpush3.bf16.msra.mxu0 %v10908_v7 }
0x3421   : > { %10436 = vmatprep.subr.bf16.mxu0 %v10909_v10 }
0x3424   : > { %10437 = vmatpush3.bf16.msra.mxu0 %v10909_v10 }
0x3425   : > { %10438 = vmatprep.subr.bf16.mxu0 %v10910_v13 }
0x3428   : > { %10439 = vmatpush3.bf16.msra.mxu0 %v10910_v13 }
0x34ee   : > { %v10430_v14 = vpop.f32.mrb[48].mxu0 }
0x34ef   : > { %v7861_v4 = vpop.f32.mrb[49].mxu0 }
0x34f0   : > { %7878 = vrot.lane.b32.xlu1 %v7861_v4, %s12896_s3  ;;  %v10431_v8 = vpop.f32.mrb[50].mxu0 }
0x34f1   : > { %v7864_v9 = vpop.f32.mrb[51].mxu0 }
0x34f2   : > { %7880 = vrot.lane.b32.xlu0 %v7864_v9, %s12896_s3 }
0x34f4   : > { %7882 = vrot.lane.b32.xlu1 %v10430_v14, %s12896_s3  ;;  %v9593_v14 = vld [vmem:[%s12886_s20 + $0x1] ss:$0 sm:$0xff]  ;;  %s9631_s3 = sld [smem:[#allocation5 + $0x2]] }
0x34fa   : > { %s8431_s5 = scalar_lea.vmem [#allocation2], %s9631_s3 }
0x3562   : > { %v7879_v21 = vpop.permute.xlu1 %7878 }
0x3563   : > { %7887 = vst.msk [vmem:[#allocation2] sm:$0xff] %vm3342_vm12, %v7879_v21 }
0x3564   : > { %v7881_v23 = vpop.permute.xlu0 %7880 }
0x3565   : > { %7888 = vst.msk [vmem:[#allocation2 + $0x8] sm:$0xff] %vm3342_vm12, %v7881_v23  ;;  %v9594_v23 = vld [vmem:[%s12887_s12 + $0x1] ss:$0 sm:$0xff] }
0x3566   : > { %v7883_v22 = vpop.permute.xlu1 %7882 }
0x3567   : > { %7889 = vst.msk [vmem:[#allocation2 + $0x10] sm:$0xff] %vm3342_vm12, %v7883_v22 }
0x356a   : > { %v7890_v25 = vld [vmem:[#allocation2] sm:$0xff] }
0x356c   : > { %v7891_v63 = vld [vmem:[#allocation2 + $0x8] sm:$0xff] }
0x356d   : > { %v7893_v62 = vpack.c.bf16 %v7891_v63, %v7890_v25 }
0x356e   : > { %v7892_v49 = vld [vmem:[#allocation2 + $0x10] sm:$0xff] }
0x356f   : > { %10440 = vmatprep.mubr.msk.bf16.mxu0 %vm2409_vm0, %v7893_v62  ;;  %v7894_v60 = vpack.c.bf16 %v7892_v49, %v7892_v49 }
0x3571   : > { %10441 = vmatmul.mubr.msk.bf16.vlgmr.msra.gmra.mrb[52].mxu0 %vm2409_vm0, %v7894_v60 }
0x3644   : > { %v10442_v53 = vpop.f32.mrb[52].mxu0 }
0x3645   : > { %v7959_v40 = vpop.f32.mrb[53].mxu0  ;;  %v7975_v29 = vadd.f32 %v10442_v53, %v12444_v59 }
0x3646   : > { %v7973_v5 = vadd.f32 %v7959_v40, %v12434_v27  ;;  %v10443_v46 = vpop.f32.mrb[54].mxu0  ;;  %v10923_v40 = vld [vmem:[%s12888_s19 + $0xc0] sm:$0xff]  }
0x3647   : > { %v7962_v31 = vpop.f32.mrb[55].mxu0  ;;  %v12663_v45 = vadd.f32 %v9592_v55, %v7975_v29  ;;  %v10924_v29 = vld [vmem:[%s12888_s19 + $0x80] sm:$0xff]   ;;  %9979 = vmatprep.subr.bf16.mxu0 %v10923_v40  ;;  %v10926_v46 = vld [vmem:[%s12888_s19 + $0x88] sm:$0xff]  }
0x3648   : > { %v12660_v32 = vadd.f32 %v9592_v55, %v7973_v5  ;;  %v7974_v12 = vadd.f32 %v7962_v31, %v12437_v28  ;;  %9980 = vmatpush3.bf16.msra.mxu0 %v10924_v29  ;;  %v10925_v5 = vld [vmem:[%s12888_s19 + $0xc8] sm:$0xff]   ;;  %v10927_v31 = vld [vmem:[%s12888_s19 + $0xd0] sm:$0xff]  }
0x3649   : > { %v7991_v27 = vsel %vm2409_vm0, %v12663_v45, 0.0  ;;  %9981 = vmatprep.subr.bf16.mxu0 %v10925_v5 }
0x364a   : > { %v12665_v15 = vadd.f32 %v9592_v55, %v7974_v12  ;;  %v7985_v24 = vsel %vm2409_vm0, %v12660_v32, 0.0  ;;  %v10929_v12 = vld [vmem:[%s12888_s19 + $0xd8] sm:$0xff]  }
0x364b   : > { %7986 = vadd.xlane.f32.xlu0 %v7985_v24  ;;  %v10930_v24 = vld [vmem:[%s12888_s19 + $0x98] sm:$0xff]  }
0x364c   : > { %v7988_v33 = vsel %vm2409_vm0, %v12665_v15, 0.0  ;;  %9982 = vmatpush3.bf16.msra.mxu0 %v10926_v46 }
0x364d   : > { %7989 = vadd.xlane.f32.xlu1 %v7988_v33  ;;  %9983 = vmatprep.subr.bf16.mxu0 %v10927_v31  ;;  %v10931_v33 = vld [vmem:[%s12888_s19 + $0xe0] sm:$0xff]  }
0x364f   : > { %7992 = vadd.xlane.f32.xlu0 %v7991_v27  ;;  %v10932_v27 = vld [vmem:[%s12888_s19 + $0xa0] sm:$0xff]  }
0x36d8   : > { %v7987_v59 = vpop.xlane.xlu0 %7986 }
0x36d9   : > { %v7994_v26 = vmul.f32 0.015625, %v7987_v59  ;;  %v10933_v59 = vld [vmem:[%s12888_s19 + $0xe8] sm:$0xff]  }
0x36da   : > { %v7990_v35 = vpop.xlane.xlu1 %7989 }
0x36db   : > { %v7997_v28 = vsub.f32 %v12660_v32, %v7994_v26  ;;  %v7995_v38 = vmul.f32 0.015625, %v7990_v35  ;;  %v10934_v26 = vld [vmem:[%s12888_s19 + $0xa8] sm:$0xff]   ;;  %v10935_v35 = vld [vmem:[%s12888_s19 + $0xf0] sm:$0xff]  }
0x36dc   : > { %v7993_v37 = vpop.xlane.xlu0 %7992 }
0x36dd   : > { %v7998_v39 = vsub.f32 %v12665_v15, %v7995_v38  ;;  %v7996_v41 = vmul.f32 0.015625, %v7993_v37  ;;  %v8000_v42 = vmul.f32 %v7997_v28, %v7997_v28  ;;  %v10937_v38 = vld [vmem:[%s12888_s19 + $0xf8] sm:$0xff]  }
0x36de   : > { %v10938_v37 = vld [vmem:[%s12888_s19 + $0xb8] sm:$0xff]  }
0x36df   : > { %v7999_v52 = vsub.f32 %v12663_v45, %v7996_v41  ;;  %v8003_v43 = vsel %vm2409_vm0, %v8000_v42, 0.0  ;;  %v8001_v48 = vmul.f32 %v7998_v39, %v7998_v39 }
0x36e0   : > { %8004 = vadd.xlane.f32.xlu0 %v8003_v43 }
0x36e1   : > { %v8002_v17 = vmul.f32 %v7999_v52, %v7999_v52  ;;  %v8006_v3 = vsel %vm2409_vm0, %v8001_v48, 0.0 }
0x36e3   : > { %v8009_v19 = vsel %vm2409_vm0, %v8002_v17, 0.0 }
0x36e4   : > { %8010 = vadd.xlane.f32.xlu1 %v8009_v19  ;;  %8007 = vadd.xlane.f32.xlu0 %v8006_v3 }
0x376d   : > { %v8005_v1 = vpop.xlane.xlu0 %8004 }
0x376e   : > { %v8012_v57 = vmul.f32 0.015625, %v8005_v1 }
0x3770   : > { %v8015_v58 = vadd.f32 1e-05, %v8012_v57 }
0x3771   : > { %v8008_v11 = vpop.xlane.xlu0 %8007  ;;  %v8011_v0 = vpop.xlane.xlu1 %8010 }
0x3772   : > { %11081 = vrsqrt.f32 %v8015_v58  ;;  %v8013_v2 = vmul.f32 0.015625, %v8008_v11  ;;  %v8014_v18 = vmul.f32 0.015625, %v8011_v0 }
0x3774   : > { %v8016_v6 = vadd.f32 1e-05, %v8013_v2  ;;  %v8017_v7 = vadd.f32 1e-05, %v8014_v18 }
0x3776   : > { %11083 = vrsqrt.f32 %v8016_v6 }
0x3777   : > { %11085 = vrsqrt.f32 %v8017_v7 }
0x377c   : > { %v11082_v10 = vpop.eup %11081 }
0x377d   : > { %v8021_v13 = vmul.f32 %v11082_v10, %v7997_v28  ;;  %v10936_v28 = vld [vmem:[%s12888_s19 + $0xb0] sm:$0xff]  }
0x377f   : > { %v8030_v21 = vmul.f32 %v9593_v14, %v8021_v13 }
0x3780   : > { %v11084_v4 = vpop.eup %11083 }
0x3781   : > { %v11086_v8 = vpop.eup %11085  ;;  %v8022_v9 = vmul.f32 %v11084_v4, %v7998_v39  ;;  %v8039_v63 = vadd.f32 %v9594_v23, %v8030_v21  ;;  %v9513_v39 = vld [vmem:[%s12889_s8 + $0x2] sm:$0x3] }
0x3782   : > { %v8023_v25 = vmul.f32 %v11086_v8, %v7999_v52  ;;  %v8048_v41 = vrot.slane %v9513_v39, %v11928_v34  ;;  %v8052_v42 = vrot.slane %v9513_v39, %v11931_v36 }
0x3783   : > { %v8031_v22 = vmul.f32 %v9593_v14, %v8022_v9 }
0x3784   : > { %v8032_v60 = vmul.f32 %v9593_v14, %v8023_v25 }
0x3785   : > { %v8040_v62 = vadd.f32 %v9594_v23, %v8031_v22 }
0x3786   : > { %v8041_v53 = vadd.f32 %v9594_v23, %v8032_v60 }
0x3787   : > { %v8042_v49 = vpack.c.bf16 %v8040_v62, %v8039_v63 }
0x3788   : > { %v8043_v55 = vpack.c.bf16 %v8041_v53, %v8041_v53 }
0x3789   : > { %9603 = vmatmul.mubr.msk.bf16.vlgmr.msra.gmra.mrb[56].mxu1 %vm2409_vm0, %v8042_v49 }
0x378a   : > { %8143 = vmatprep.mubr.bf16.mxu1 %v11252_v56  ;;  %v10928_v56 = vld [vmem:[%s12888_s19 + $0x90] sm:$0xff]  }
0x378b   : > { %9984 = vmatpush3.bf16.msra.mxu0 %v10928_v56 }
0x378c   : > { %9985 = vmatprep.subr.bf16.mxu0 %v10929_v12 }
0x378f   : > { %9986 = vmatpush3.bf16.msra.mxu0 %v10930_v24 }
0x3790   : > { %9987 = vmatprep.subr.bf16.mxu0 %v10931_v33 }
0x3791   : > { %9604 = vmatmul.mubr.msk.bf16.gmra.mrb[60].mxu1 %vm2409_vm0, %v8043_v55 }
0x3793   : > { %9988 = vmatpush3.bf16.msra.mxu0 %v10932_v27 }
0x3794   : > { %9989 = vmatprep.subr.bf16.mxu0 %v10933_v59 }
0x3797   : > { %9990 = vmatpush3.bf16.msra.mxu0 %v10934_v26 }
0x3798   : > { %9991 = vmatprep.subr.bf16.mxu0 %v10935_v35 }
0x379b   : > { %9992 = vmatpush3.bf16.msra.mxu0 %v10936_v28 }
0x379c   : > { %9993 = vmatprep.subr.bf16.mxu0 %v10937_v38 }
0x379f   : > { %9994 = vmatpush3.bf16.msra.mxu0 %v10938_v37 }
0x385c   : > { %v8135_v52 = vpop.f32.mrb[56].mxu1 }
0x385d   : > { %v8136_v43 = vadd.f32 %v8135_v52, %v8048_v41  ;;  %v8137_v48 = vpop.f32.mrb[57].mxu1 }
0x385e   : > { %v8138_v17 = vadd.f32 %v8137_v48, %v8052_v42  ;;  %v8139_v19 = vpop.f32.mrb[58].mxu1 }
0x385f   : > { %v9605_v3 = vmul.f32 -1.702, %v8136_v43  ;;  %v8140_v16 = vadd.f32 %v8139_v19, %v8048_v41  ;;  %v8141_v50 = vpop.f32.mrb[59].mxu1 }
0x3860   : > { %v9606_v44 = vmul.f32 -1.702, %v8138_v17  ;;  %v8142_v51 = vadd.f32 %v8141_v50, %v8052_v42 }
0x3861   : > { %v8164_v61 = vmul.f32 1.442695, %v9605_v3  ;;  %v9607_v20 = vmul.f32 -1.702, %v8140_v16 }
0x3862   : > { %v8166_v54 = vmul.f32 1.442695, %v9606_v44  ;;  %v9608_v47 = vmul.f32 -1.702, %v8142_v51 }
0x3863   : > { %11087 = vpow2.f32 %v8164_v61  ;;  %v8168_v1 = vmul.f32 1.442695, %v9607_v20 }
0x3864   : > { %11089 = vpow2.f32 %v8166_v54  ;;  %v8170_v34 = vmul.f32 1.442695, %v9608_v47  ;;  %v8145_v57 = vpop.f32.mrb[60].mxu1 }
0x3865   : > { %11091 = vpow2.f32 %v8168_v1  ;;  %v8146_v36 = vadd.f32 %v8145_v57, %v8048_v41  ;;  %v8147_v58 = vpop.f32.mrb[61].mxu1 }
0x3866   : > { %11093 = vpow2.f32 %v8170_v34  ;;  %v8148_v11 = vadd.f32 %v8147_v58, %v8052_v42  ;;  %v8149_v0 = vpop.f32.mrb[62].mxu1  ;;  %v9627_v42 = vld [vmem:[%s12890_s13 + $0x1] ss:$0 sm:$0xff] }
0x3867   : > { %v9609_v2 = vmul.f32 -1.702, %v8146_v36  ;;  %v8150_v18 = vpop.f32.mrb[63].mxu1 }
0x3868   : > { %v9610_v6 = vmul.f32 -1.702, %v8148_v11 }
0x3869   : > { %v8172_v7 = vmul.f32 1.442695, %v9609_v2 }
0x386a   : > { %v8174_v10 = vmul.f32 1.442695, %v9610_v6 }
0x386b   : > { %11095 = vpow2.f32 %v8172_v7 }
0x386c   : > { %11097 = vpow2.f32 %v8174_v10 }
0x386d   : > { %v11088_v13 = vpop.eup %11087 }
0x386e   : > { %v11090_v14 = vpop.eup %11089  ;;  %v8176_v4 = vadd.f32 1.0, %v11088_v13 }
0x386f   : > { %v11092_v8 = vpop.eup %11091  ;;  %v8177_v9 = vadd.f32 1.0, %v11090_v14  ;;  %v10939_v14 = vld [vmem:[%s12841_s1] sm:$0xff]  }
0x3870   : > { %v11094_v21 = vpop.eup %11093  ;;  %11099 = vrcp.f32 %v8176_v4  ;;  %v8178_v23 = vadd.f32 1.0, %v11092_v8  ;;  %v11253_v4 = vmov 0.0   ;;  %v10940_v8 = vld [vmem:[%s12841_s1 + $0x8] sm:$0xff]  }
0x3871   : > { %11101 = vrcp.f32 %v8177_v9  ;;  %v8179_v22 = vadd.f32 1.0, %v11094_v21  ;;  %10444 = vmatprep.subr.bf16.mxu1 %v11253_v4  ;;  %10452 = vmatprep.mubr.msk.bf16.mxu1 %vm11254_vm3, %v11253_v4  ;;  %v10941_v9 = vld [vmem:[%s12841_s1 + $0x10] sm:$0xff]   ;;  %v10942_v21 = vld [vmem:[%s12841_s1 + $0x18] sm:$0xff]   ;;  %s8423_s1 = scalar_lea.vmem [#allocation2], %s8422_s0 }
0x3872   : > { %11103 = vrcp.f32 %v8178_v23  ;;  %10445 = vmatpush3.bf16.msra.mxu1 %v10939_v14 }
0x3873   : > { %11105 = vrcp.f32 %v8179_v22  ;;  %10446 = vmatprep.subr.bf16.mxu1 %v11253_v4 }
0x3875   : > { %v11096_v25 = vpop.eup %11095 }
0x3876   : > { %v11098_v63 = vpop.eup %11097  ;;  %v8180_v62 = vadd.f32 1.0, %v11096_v25  ;;  %10447 = vmatpush3.bf16.msra.mxu1 %v10940_v8 }
0x3877   : > { %v8181_v49 = vadd.f32 1.0, %v11098_v63  ;;  %10448 = vmatprep.subr.bf16.mxu1 %v11253_v4 }
0x3878   : > { %11107 = vrcp.f32 %v8180_v62 }
0x3879   : > { %11109 = vrcp.f32 %v8181_v49 }
0x387a   : > { %v11100_v60 = vpop.eup %11099  ;;  %10449 = vmatpush3.bf16.msra.mxu1 %v10941_v9 }
0x387b   : > { %v11102_v53 = vpop.eup %11101  ;;  %v8194_v29 = vmul.f32 %v11100_v60, %v8136_v43  ;;  %10450 = vmatprep.subr.bf16.mxu1 %v11253_v4 }
0x387c   : > { %v11104_v55 = vpop.eup %11103  ;;  %v8195_v46 = vmul.f32 %v11102_v53, %v8138_v17 }
0x387d   : > { %v11106_v40 = vpop.eup %11105  ;;  %v8196_v5 = vmul.f32 %v11104_v55, %v8140_v16 }
0x387e   : > { %v8197_v31 = vmul.f32 %v11106_v40, %v8142_v51  ;;  %10451 = vmatpush3.bf16.msra.mxu1 %v10942_v21 }
0x387f   : > { %v8200_v56 = vpack.c.bf16 %v8196_v5, %v8194_v29  ;;  %10456 = vmatprep.subr.mxu1 %v11253_v4  ;;  %v9628_v29 = vld [vmem:[%s11495_s24] ss:$0 sm:$0xff] }
0x3880   : > { %v8201_v12 = vpack.c.bf16 %v8197_v31, %v8195_v46  ;;  %v9629_v31 = vld [vmem:[#allocation8] ss:$0 sm:$0xff] }
0x3882   : > { %v11108_v24 = vpop.eup %11107  ;;  %8332 = vmatprep.mubr.bf16.mxu0 %v8201_v12 }
0x3883   : > { %v11110_v33 = vpop.eup %11109  ;;  %8333 = vmatmul.mubr.bf16.vlgmr.msra.gmra.mrb[56].mxu0 %v8200_v56  ;;  %v8198_v59 = vmul.f32 %v11108_v24, %v8146_v36 }
0x3884   : > { %v8199_v27 = vmul.f32 %v11110_v33, %v8148_v11 }
0x3885   : > { %v8202_v35 = vpack.c.bf16 %v8198_v59, %v8198_v59 }
0x3886   : > { %v8203_v26 = vpack.c.bf16 %v8199_v27, %v8199_v27 }
0x3888   : > { %8340 = vmatprep.mubr.bf16.mxu0 %v8203_v26 }
0x388b   : > { %8341 = vmatmul.mubr.bf16.gmra.mrb[60].mxu0 %v8202_v35 }
0x3956   : > { %v9995_v28 = vpop.f32.mrb[56].mxu0 }
0x3957   : > { %v9996_v38 = vpop.f32.mrb[57].mxu0 }
0x3958   : > { %v9997_v37 = vadd.f32 %v9996_v38, %v9995_v28  ;;  %v9998_v39 = vpop.f32.mrb[58].mxu0 }
0x3959   : > { %v9999_v41 = vpop.f32.mrb[59].mxu0 }
0x395a   : > { %v8348_v52 = vadd.f32 %v9997_v37, %v12660_v32  ;;  %v10000_v43 = vadd.f32 %v9999_v41, %v9998_v39 }
0x395c   : > { %v8349_v48 = vadd.f32 %v10000_v43, %v12665_v15  ;;  %v8357_v17 = vadd.f32 %v9627_v42, %v8348_v52 }
0x395e   : > { %v10001_v19 = vpop.f32.mrb[60].mxu0  ;;  %v8362_v3 = vsel %vm2409_vm0, %v8357_v17, 0.0  ;;  %v8358_v16 = vadd.f32 %v9627_v42, %v8349_v48 }
0x395f   : > { %8363 = vadd.xlane.f32.xlu0 %v8362_v3  ;;  %v10002_v50 = vpop.f32.mrb[61].mxu0 }
0x3960   : > { %v10003_v44 = vadd.f32 %v10002_v50, %v10001_v19  ;;  %v10004_v51 = vpop.f32.mrb[62].mxu0  ;;  %v8365_v61 = vsel %vm2409_vm0, %v8358_v16, 0.0 }
0x3961   : > { %8366 = vadd.xlane.f32.xlu1 %v8365_v61  ;;  %v10005_v20 = vpop.f32.mrb[63].mxu0  ;;  %v8595_v51 = vstv %s11576_s28 }
0x3962   : > { %v8350_v54 = vadd.f32 %v10003_v44, %v12663_v45 }
0x3964   : > { %v8359_v47 = vadd.f32 %v9627_v42, %v8350_v54 }
0x3966   : > { %v8368_v32 = vsel %vm2409_vm0, %v8359_v47, 0.0 }
0x3967   : > { %8369 = vadd.xlane.f32.xlu0 %v8368_v32 }
0x39ec   : > { %v8364_v15 = vpop.xlane.xlu0 %8363 }
0x39ed   : > { %v8371_v1 = vmul.f32 0.015625, %v8364_v15 }
0x39ee   : > { %v8367_v34 = vpop.xlane.xlu1 %8366 }
0x39ef   : > { %v8374_v57 = vsub.f32 %v8357_v17, %v8371_v1  ;;  %v8372_v36 = vmul.f32 0.015625, %v8367_v34 }
0x39f1   : > { %v8375_v58 = vsub.f32 %v8358_v16, %v8372_v36  ;;  %v8377_v11 = vmul.f32 %v8374_v57, %v8374_v57 }
0x39f3   : > { %v8380_v0 = vsel %vm2409_vm0, %v8377_v11, 0.0  ;;  %v8378_v2 = vmul.f32 %v8375_v58, %v8375_v58 }
0x39f4   : > { %8381 = vadd.xlane.f32.xlu1 %v8380_v0  ;;  %v8370_v18 = vpop.xlane.xlu0 %8369 }
0x39f5   : > { %v8373_v6 = vmul.f32 0.015625, %v8370_v18  ;;  %v8383_v45 = vsel %vm2409_vm0, %v8378_v2, 0.0 }
0x39f6   : > { %8384 = vadd.xlane.f32.xlu0 %v8383_v45 }
0x39f7   : > { %v8376_v7 = vsub.f32 %v8359_v47, %v8373_v6 }
0x39f9   : > { %v8379_v10 = vmul.f32 %v8376_v7, %v8376_v7 }
0x39fb   : > { %v8386_v13 = vsel %vm2409_vm0, %v8379_v10, 0.0 }
0x39fc   : > { %8387 = vadd.xlane.f32.xlu1 %v8386_v13 }
0x3a81   : > { %v8382_v23 = vpop.xlane.xlu1 %8381 }
0x3a82   : > { %v8389_v22 = vmul.f32 0.015625, %v8382_v23 }
0x3a83   : > { %v8385_v25 = vpop.xlane.xlu0 %8384 }
0x3a84   : > { %v8392_v63 = vadd.f32 1e-05, %v8389_v22  ;;  %v8390_v62 = vmul.f32 0.015625, %v8385_v25 }
0x3a86   : > { %11111 = vrsqrt.f32 %v8392_v63  ;;  %v8393_v49 = vadd.f32 1e-05, %v8390_v62 }
0x3a88   : > { %11113 = vrsqrt.f32 %v8393_v49 }
0x3a89   : > { %v8388_v60 = vpop.xlane.xlu1 %8387 }
0x3a8a   : > { %v8391_v53 = vmul.f32 0.015625, %v8388_v60 }
0x3a8c   : > { %v8394_v55 = vadd.f32 1e-05, %v8391_v53 }
0x3a8e   : > { %11115 = vrsqrt.f32 %v8394_v55 }
0x3a90   : > { %v11112_v40 = vpop.eup %11111 }
0x3a91   : > { %v8398_v5 = vmul.f32 %v11112_v40, %v8374_v57 }
0x3a92   : > { %v11114_v46 = vpop.eup %11113 }
0x3a93   : > { %v8407_v56 = vmul.f32 %v9628_v29, %v8398_v5  ;;  %v8399_v12 = vmul.f32 %v11114_v46, %v8375_v58 }
0x3a95   : > { %v8416_v24 = vadd.f32 %v9629_v31, %v8407_v56  ;;  %v8408_v33 = vmul.f32 %v9628_v29, %v8399_v12 }
0x3a97   : > { %8419 = vst.msk [vmem:[#allocation2] sm:$0xff] %vm2409_vm0, %v8416_v24  ;;  %v8417_v27 = vadd.f32 %v9629_v31, %v8408_v33 }
0x3a98   : > { %v11116_v59 = vpop.eup %11115 }
0x3a99   : > { %8420 = vst.msk [vmem:[#allocation2 + $0x8] sm:$0xff] %vm2409_vm0, %v8417_v27  ;;  %v8400_v26 = vmul.f32 %v11116_v59, %v8376_v7 }
0x3a9b   : > { %v8409_v35 = vmul.f32 %v9628_v29, %v8400_v26 }
0x3a9d   : > { %v8418_v28 = vadd.f32 %v9629_v31, %v8409_v35 }
0x3a9f   : > { %8421 = vst.msk [vmem:[#allocation2 + $0x10] sm:$0xff] %vm2409_vm0, %v8418_v28 }
0x3aa6   : > { %v8424_v38 = vld [vmem:[%s8423_s1] sm:$0x1] }
0x3aa7   : > { %v8428_v37 = vld [vmem:[%s8427_s4] sm:$0x1]  ;;  %8425 = vst.msk [vmem:[#allocation3] sm:$0x1] %vm5050_vm14, %v8424_v38 }
0x3aa8   : > { %v8432_v39 = vld [vmem:[%s8431_s5] sm:$0x1]  ;;  %8429 = vst.msk [vmem:[#allocation3 + $0x1] sm:$0x1] %vm5050_vm14, %v8428_v37 }
0x3aa9   : > { %8433 = vst.msk [vmem:[#allocation3 + $0x2] sm:$0x1] %vm5050_vm14, %v8432_v39 }
0x3ab0   : > { %v8434_v41 = vld [vmem:[#allocation3] sm:$0x7] }
0x3ab1   : > { %v8443_v42 = vpack.c.bf16 %v8434_v41, %v8434_v41 }
0x3ab3   : > { %10453 = vmatmul.mubr.msk.bf16.vlgmr.msra.gmra.mrb[64].mxu1 %vm2409_vm0, %v8443_v42  ;;  %vm8598_vm0 = vcmask 17408  }
0x3ab4   : > { %10458 = vmatprep.mubr.msk.f32.mxu1 %vm11254_vm3, %v11253_v4 }
0x3b86   : > { %v8505_v52 = vpop.f32.mrb[64].mxu1 }
0x3b87   : > { %v8511_v43 = vmul.f32 %v8505_v52, %v8505_v52  ;;  %v10454_v48 = vpop.f32.mrb[65].mxu1 }
0x3b88   : > { %v8508_v17 = vpop.f32.mrb[66].mxu1 }
0x3b89   : > { %v10455_v19 = vpop.f32.mrb[67].mxu1  ;;  %v8513_v3 = vsel %vm8512_vm4, %v8511_v43, 0.0 }
0x3b8a   : > { %8514 = vadd.xlane.f32.xlu0 %v8513_v3 }
0x3c17   : > { %v8515_v16 = vpop.xlane.xlu0 %8514 }
0x3c18   : > { %11117 = vrsqrt.f32 %v8515_v16 }
0x3c22   : > { %v11118_v50 = vpop.eup %11117 }
0x3c23   : > { %v8517_v44 = vmul.f32 %v11118_v50, %v8505_v52 }
0x3c25   : > { %8597 = vst.msk [vmem:[%s12156_s17 + $0x2] sm:$0x7] %vm8512_vm4, %v8517_v44  ;;  %10457 = vmatpush3.xpose.msk.msra.mxu1 %vm8518_vm5, %v8517_v44 }
0x3c28   : > { %10459 = vmatmul.mubr.msk.f32.vlgmr.msra.gmra.mrb[68].mxu1 %vm8518_vm5, %v12160_v30 }
0x3cfb   : > { %v8591_v61 = vpop.f32.mrb[68].mxu1 }
0x3cfc   : > { %v8596_v20 = vmul.f32 %v8595_v51, %v8591_v61  ;;  %v10460_v54 = vpop.f32.mrb[69].mxu1 }
0x3cfe   : > { %8599 = vst.msk [vmem:[%s12156_s17 + $0x5] sm:$0x3] %vm8598_vm0, %v8596_v20 }
0x3cff PF: > { %p9639_p4 = scmp.ne.s32.totalorder %s11519_s7, 1 }
0x3d00   : > { %s12897_s4 = sld [smem:[#allocation16_spill]] (!%p9639_p4)  ;;  %vm8606_vm6 = vcmask (!%p9639_p4), 256000   ;;  %v11255_v1 = vmov (!%p9639_p4), 0.0   ;;  %vm11256_vm7 = vmmov (!%p9639_p4), 0   ;;  %vm8612_vm8 = vcmask (!%p9639_p4), 261120  }
0x3d01   : > { %8603 = sbr.rel (%p9639_p4) target bundleno = 15999 (0x3e7f), region = 232  ;;  %10461 = vmatprep.subr.mxu0 (!%p9639_p4), %v11255_v1  ;;  %10463 = vmatprep.mubr.msk.f32.mxu0 (!%p9639_p4), %vm11256_vm7, %v11255_v1  ;;  %v8689_v58 = vstv (!%p9639_p4), %s11576_s28  ;;  %vm8692_vm9 = vcmask (!%p9639_p4), 17408  }
0x3d06   : > { %v8604_v47 = vld [vmem:[%s12897_s4] sm:$0x7] (!%p9639_p4) }
0x3d07   : > { %v8605_v32 = vmul.f32 (!%p9639_p4), %v8604_v47, %v8604_v47 }
0x3d09   : > { %v8607_v15 = vsel %vm8606_vm6, %v8605_v32, 0.0 }
0x3d0a   : > { %8608 = vadd.xlane.f32.xlu0 %v8607_v15 }
0x3d97   : > { %v8609_v34 = vpop.xlane.xlu0 %8608 }
0x3d98   : > { %11125 = vrsqrt.f32 %v8609_v34 }
0x3da2   : > { %v11126_v57 = vpop.eup %11125 }
0x3da3   : > { %v8611_v36 = vmul.f32 %v11126_v57, %v8604_v47 }
0x3da5   : > { %10462 = vmatpush3.xpose.msk.msra.mxu0 %vm8612_vm8, %v8611_v36  ;;  %8691 = vst.msk [vmem:[%s12156_s17 + $0x2] sm:$0x7] %vm8606_vm6, %v8611_v36 }
0x3da8   : > { %10464 = vmatmul.mubr.msk.f32.vlgmr.msra.gmra.mrb[0].mxu0 %vm8612_vm8, %v12160_v30 }
0x3e7b   : > { %v8685_v11 = vpop.f32.mrb[0].mxu0 }
0x3e7c   : > { %v8690_v0 = vmul.f32 %v8689_v58, %v8685_v11  ;;  %v10465_v2 = vpop.f32.mrb[1].mxu0 }
0x3e7e   : > { %8693 = vst.msk [vmem:[%s12156_s17 + $0x5] sm:$0x3] %vm8692_vm9, %v8690_v0 }
0x3e7f PF: > { %s112_s16 = sadd.s32 1, %s11184_s16  }
0x3e80   : > { %p109_p6 = scmp.ge.s32.totalorder %s112_s16, 4  }
0x3e82   :  { %111 = sbr.rel (!%p109_p6) target bundleno = 102 (0x66), region = 414 }
0x3e89   :  { %8713 = vsyncpa [#allocation6], 1 }
0x3e8a   :  { %8715 = vsyncpa [#allocation6 + $0x1], 1 }
0x3e8b   :  { %8716 = vsyncpa [#allocation7], 1 }
0x3e8c   :  { %8718 = vsyncpa [#allocation7 + $0x1], 1 }

</bundles_post_ra>
